<compile_context>
chip_gen: v5e
topology: v5e:2x2
jax: 0.10.0
libtpu: 0.0.40
codegen_flags: <defaults>
</compile_context>

<pallas_src>
import jax
import jax.numpy as jnp
from jax.experimental import pallas as pl
from jax.experimental.pallas import tpu as pltpu

_F32_MIN = float(jnp.finfo(jnp.float32).min)


def _round_up(x, m):
    return (x + m - 1) // m * m


# ----------------------------------------------------------------------------
# Pallas kernel: single-shot matmul with fused bias add + per-channel ReLU
# ----------------------------------------------------------------------------
def _matmul_bias_act_kernel(a_ref, b_ref, bias_ref, lower_ref, o_ref):
    y = jnp.dot(a_ref[...], b_ref[...], preferred_element_type=jnp.float32)
    y = jnp.maximum(y + bias_ref[...], lower_ref[...])
    o_ref[...] = y.astype(o_ref.dtype)


def fused_matmul(a, b, bias, lower):
    """a: (M, K) bf16, b: (K, N) bf16, bias/lower: (N,) f32.

    Returns f32 (M, N) = max(a @ b + bias, lower) computed on the MXU.
    K is taken at full extent (no K grid axis / accumulator)."""
    M, K = a.shape
    _, N = b.shape

    # --- M tiling: single block when small, >=2 parallel steps when large ----
    if M <= 512:
        Mp = _round_up(M, 8)
        tm = Mp
    else:
        Mp = _round_up(M, 128)
        tm = next(c for c in (512, 384, 256, 128) if Mp % c == 0)

    # --- N tiling: one lane-dense full block up to 1024, else 512-wide tiles -
    Np = _round_up(N, 128)
    if Np > 1024:
        Np = _round_up(N, 512)
        tn = 512
    else:
        tn = Np

    if Mp != M:
        a = jnp.pad(a, ((0, Mp - M), (0, 0)))
    if Np != N:
        b = jnp.pad(b, ((0, 0), (0, Np - N)))
        bias = jnp.pad(bias, (0, Np - N))
        lower = jnp.pad(lower, (0, Np - N))

    grid = (Mp // tm, Np // tn)
    out = pl.pallas_call(
        _matmul_bias_act_kernel,
        out_shape=jax.ShapeDtypeStruct((Mp, Np), jnp.float32),
        grid_spec=pltpu.PrefetchScalarGridSpec(
            num_scalar_prefetch=0,
            grid=grid,
            in_specs=[
                pl.BlockSpec((tm, K), lambda i, j: (i, 0)),   # A: full K
                pl.BlockSpec((K, tn), lambda i, j: (0, j)),   # B: full K
                pl.BlockSpec((1, tn), lambda i, j: (0, j)),   # bias
                pl.BlockSpec((1, tn), lambda i, j: (0, j)),   # relu lower bound
            ],
            out_specs=pl.BlockSpec((tm, tn), lambda i, j: (i, j)),
        ),
        compiler_params=pltpu.CompilerParams(
            dimension_semantics=("parallel", "parallel")),
    )(a, b, bias.reshape(1, -1), lower.reshape(1, -1))

    if Mp != M or Np != N:
        out = out[:M, :N]
    return out


# ----------------------------------------------------------------------------
# Convolution wrapper: shared im2col + (optionally Cout-fused) Pallas matmul
# ----------------------------------------------------------------------------
def _extract_patches(x, kh, kw, stride, padding):
    """x: (N, H, W, C) -> patches (N*Hout*Wout, kh*kw*C), ordering (kh, kw, c)."""
    n, h, w, c = x.shape
    xp = jnp.pad(x, ((0, 0), (padding, padding), (padding, padding), (0, 0)))
    hout = (h + 2 * padding - kh) // stride + 1
    wout = (w + 2 * padding - kw) // stride + 1
    slabs = []
    for i in range(kh):
        for j in range(kw):
            slabs.append(
                xp[:, i:i + (hout - 1) * stride + 1:stride,
                      j:j + (wout - 1) * stride + 1:stride, :])
    patches = jnp.concatenate(slabs, axis=-1)          # (N, Hout, Wout, kh*kw*C)
    return patches.reshape(n * hout * wout, kh * kw * c), (n, hout, wout)


def fused_conv2d(x, convs, stride, padding):
    """convs: list of (w_hwio, bn_scale_or_None, bn_bias_or_None, relu: bool).

    All convs share kernel size / stride / padding and the same input x;
    they are fused into a single matmul along Cout. Returns one NHWC output
    per conv."""
    kh, kw, cin, _ = convs[0][0].shape
    # Cast activations to bf16 *before* im2col to halve the duplicated traffic.
    a, (n, hout, wout) = _extract_patches(x.astype(jnp.bfloat16), kh, kw,
                                          stride, padding)

    mats, biases, lowers, couts = [], [], [], []
    for w, scale, bias, relu in convs:
        assert w.shape[:3] == (kh, kw, cin)
        cout = w.shape[-1]
        wm = w.reshape(kh * kw * cin, cout)
        if scale is not None:
            wm = wm * scale[None, :]                   # fold BN scale into weights
        mats.append(wm)
        biases.append(bias if bias is not None
                      else jnp.zeros((cout,), jnp.float32))
        lowers.append(jnp.zeros((cout,), jnp.float32) if relu
                      else jnp.full((cout,), _F32_MIN, jnp.float32))
        couts.append(cout)

    b = jnp.concatenate(mats, axis=1).astype(jnp.bfloat16)
    bias_v = jnp.concatenate(biases)
    lower_v = jnp.concatenate(lowers)

    y = fused_matmul(a, b, bias_v, lower_v)            # (M, sum(couts)) f32

    outs, off = [], 0
    for cout in couts:
        outs.append(y[:, off:off + cout].reshape(n, hout, wout, cout))
        off += cout
    return outs


# ----------------------------------------------------------------------------
# Deterministic parameter construction (shapes from Guidance.__init__)
# ----------------------------------------------------------------------------
def _init_conv_w(key, cin, cout, k):
    fan_in = cin * k * k
    std = (2.0 / fan_in) ** 0.5
    return std * jax.random.normal(key, (k, k, cin, cout), jnp.float32)


def _init_bn(key, c):
    k1, k2 = jax.random.split(key)
    gamma = 1.0 + 0.1 * jax.random.normal(k1, (c,), jnp.float32)
    beta = 0.1 * jax.random.normal(k2, (c,), jnp.float32)
    running_mean = jnp.zeros((c,), jnp.float32)
    running_var = jnp.ones((c,), jnp.float32)
    scale = gamma / jnp.sqrt(running_var + 1e-5)
    bias = beta - running_mean * scale
    return scale, bias


def init_params(key):
    params = {}
    keys = iter(jax.random.split(key, 64))

    def basic(cin, cout, k):
        w = _init_conv_w(next(keys), cin, cout, k)
        scale, bias = _init_bn(next(keys), cout)
        return (w, scale, bias)

    def plain(cin, cout, k):
        return _init_conv_w(next(keys), cin, cout, k)

    params['conv0'] = basic(64, 16, 3)
    params['conv1_0'] = basic(16, 32, 5)
    params['conv1_1'] = basic(32, 32, 3)
    params['conv2'] = basic(32, 32, 3)
    params['conv3'] = basic(32, 32, 3)
    params['conv11_0'] = basic(32, 48, 3)
    params['conv11_1'] = basic(48, 48, 3)
    params['conv12'] = basic(48, 48, 3)
    params['conv13'] = basic(48, 48, 3)
    params['conv14'] = basic(48, 48, 3)
    params['weight_sg1'] = plain(32, 640, 3)
    params['weight_sg2'] = plain(32, 640, 3)
    params['weight_sg3'] = plain(32, 640, 3)
    params['weight_sg11'] = plain(48, 960, 3)
    params['weight_sg12'] = plain(48, 960, 3)
    params['weight_sg13'] = plain(48, 960, 3)
    params['weight_sg14'] = plain(48, 960, 3)
    params['weight_lg1_0'] = basic(16, 16, 3)
    params['weight_lg1_1'] = plain(16, 75, 3)
    params['weight_lg2_0'] = basic(16, 16, 3)
    params['weight_lg2_1'] = plain(16, 75, 3)
    return params


# ----------------------------------------------------------------------------
# Guidance.forward (with Cout-fusion of convs that share their input)
# ----------------------------------------------------------------------------
def guidance_forward(x, P):
    def bc(name):           # BasicConv: conv -> BN (folded) -> ReLU
        w, s, b = P[name]
        return (w, s, b, True)

    def pc(name):           # plain nn.Conv2d, bias=False, no BN, no ReLU
        return (P[name], None, None, False)

    (x,) = fused_conv2d(x, [bc('conv0')], stride=1, padding=1)
    rem = x
    (x,) = fused_conv2d(x, [bc('conv1_0')], stride=3, padding=2)   # 5x5 s3 p2
    (x,) = fused_conv2d(x, [bc('conv1_1')], stride=1, padding=1)

    # sg1 and conv2 both read conv1's output -> one fused matmul, etc.
    sg1, x = fused_conv2d(x, [pc('weight_sg1'), bc('conv2')], 1, 1)
    sg2, x = fused_conv2d(x, [pc('weight_sg2'), bc('conv3')], 1, 1)
    (sg3,) = fused_conv2d(x, [pc('weight_sg3')], 1, 1)
    (x,) = fused_conv2d(x, [bc('conv11_0')], stride=2, padding=1)  # 3x3 s2 p1
    (x,) = fused_conv2d(x, [bc('conv11_1')], stride=1, padding=1)
    sg11, x = fused_conv2d(x, [pc('weight_sg11'), bc('conv12')], 1, 1)
    sg12, x = fused_conv2d(x, [pc('weight_sg12'), bc('conv13')], 1, 1)
    sg13, x = fused_conv2d(x, [pc('weight_sg13'), bc('conv14')], 1, 1)
    (sg14,) = fused_conv2d(x, [pc('weight_sg14')], 1, 1)

    # lg1[0] and lg2[0] both read `rem` -> fuse; second stages stay separate.
    lg1_mid, lg2_mid = fused_conv2d(rem, [bc('weight_lg1_0'),
                                          bc('weight_lg2_0')], 1, 1)
    (lg1,) = fused_conv2d(lg1_mid, [pc('weight_lg1_1')], 1, 1)
    (lg2,) = fused_conv2d(lg2_mid, [pc('weight_lg2_1')], 1, 1)

    return dict([('sg1', sg1), ('sg2', sg2), ('sg3', sg3),
                 ('sg11', sg11), ('sg12', sg12), ('sg13', sg13), ('sg14', sg14),
                 ('lg1', lg1), ('lg2', lg2)])


if __name__ == "__main__":
    key = jax.random.PRNGKey(0)
    k_params, k_input = jax.random.split(key)

    # Input: PyTorch would be (N, 64, H, W) NCHW; we use NHWC (N, H, W, 64).
    N, H, W, C = 2, 24, 24, 64
    x = jax.random.normal(k_input, (N, H, W, C), jnp.float32)

    params = init_params(k_params)

    fwd = jax.jit(guidance_forward)
    out = fwd(x, params)
    out = jax.block_until_ready(out)

    expected = {
        'sg1': (N, 8, 8, 640), 'sg2': (N, 8, 8, 640), 'sg3': (N, 8, 8, 640),
        'sg11': (N, 4, 4, 960), 'sg12': (N, 4, 4, 960),
        'sg13': (N, 4, 4, 960), 'sg14': (N, 4, 4, 960),
        'lg1': (N, 24, 24, 75), 'lg2': (N, 24, 24, 75),
    }
    for name, shape in expected.items():
        assert out[name].shape == shape, (name, out[name].shape, shape)
        assert bool(jnp.all(jnp.isfinite(out[name])))

    print("KERNEL_OK")
</pallas_src>

<mosaic_0001>
module attributes {stable_mosaic.version = 11 : i64} {
  func.func @_matmul_bias_act_kernel(%arg0: i32, %arg1: i32, %arg2: memref<384x576xbf16, #tpu.memory_space<vmem>>, %arg3: memref<576x128xbf16, #tpu.memory_space<vmem>>, %arg4: memref<1x128xf32, #tpu.memory_space<vmem>>, %arg5: memref<1x128xf32, #tpu.memory_space<vmem>>, %arg6: memref<384x128xf32, #tpu.memory_space<vmem>>) attributes {dimension_semantics = [#tpu.dimension_semantics<parallel>, #tpu.dimension_semantics<parallel>], iteration_bounds = array<i64: 3, 1>, scalar_prefetch = 0 : i64, scratch_operands = 0 : i64, tpu.core_type = #tpu.core_type<tc>, window_params = [{transform_indices = @transform_0, window_bounds = array<i64: 384, 576>}, {transform_indices = @transform_1, window_bounds = array<i64: 576, 128>}, {transform_indices = @transform_2, window_bounds = array<i64: 1, 128>}, {transform_indices = @transform_3, window_bounds = array<i64: 1, 128>}, {transform_indices = @transform_4, window_bounds = array<i64: 384, 128>}]} {
    %c0 = arith.constant 0 : index
    %c0_0 = arith.constant 0 : index
    %0 = vector.load %arg2[%c0, %c0_0] : memref<384x576xbf16, #tpu.memory_space<vmem>>, vector<384x576xbf16>
    %c0_1 = arith.constant 0 : index
    %c0_2 = arith.constant 0 : index
    %1 = vector.load %arg3[%c0_1, %c0_2] : memref<576x128xbf16, #tpu.memory_space<vmem>>, vector<576x128xbf16>
    %cst = arith.constant dense<0.000000e+00> : vector<384x128xf32>
    %2 = tpu.matmul %0, %1, %cst {dimension_numbers = #tpu.dot_dimension_numbers<[1], [0], [0], [1], [0, 0, 1, 1], [], []>} : vector<384x576xbf16>, vector<576x128xbf16>, vector<384x128xf32> -> vector<384x128xf32>
    %c0_3 = arith.constant 0 : index
    %c0_4 = arith.constant 0 : index
    %3 = vector.load %arg4[%c0_3, %c0_4] : memref<1x128xf32, #tpu.memory_space<vmem>>, vector<1x128xf32>
    %4 = vector.broadcast %3 : vector<1x128xf32> to vector<384x128xf32>
    %5 = arith.addf %2, %4 : vector<384x128xf32>
    %c0_5 = arith.constant 0 : index
    %c0_6 = arith.constant 0 : index
    %6 = vector.load %arg5[%c0_5, %c0_6] : memref<1x128xf32, #tpu.memory_space<vmem>>, vector<1x128xf32>
    %7 = vector.broadcast %6 : vector<1x128xf32> to vector<384x128xf32>
    %8 = arith.maximumf %5, %7 : vector<384x128xf32>
    %c0_7 = arith.constant 0 : index
    %c0_8 = arith.constant 0 : index
    %9 = vector.load %arg6[%c0_7, %c0_8] : memref<384x128xf32, #tpu.memory_space<vmem>>, vector<384x128xf32>
    tpu.vector_store %arg6[%c0_7, %c0_8], %8 {strides = array<i32>} : memref<384x128xf32, #tpu.memory_space<vmem>>, vector<384x128xf32>,
    return
  }
  func.func @transform_0(%arg0: i32, %arg1: i32) -> (i32, i32) {
    %c0_i32 = arith.constant 0 : i32
    %c0_i32_0 = arith.constant 0 : i32
    return %arg0, %c0_i32 : i32, i32
  }
  func.func @transform_1(%arg0: i32, %arg1: i32) -> (i32, i32) {
    %c0_i32 = arith.constant 0 : i32
    %c0_i32_0 = arith.constant 0 : i32
    return %c0_i32, %arg1 : i32, i32
  }
  func.func @transform_2(%arg0: i32, %arg1: i32) -> (i32, i32) {
    %c0_i32 = arith.constant 0 : i32
    %c0_i32_0 = arith.constant 0 : i32
    return %c0_i32, %arg1 : i32, i32
  }
  func.func @transform_3(%arg0: i32, %arg1: i32) -> (i32, i32) {
    %c0_i32 = arith.constant 0 : i32
    %c0_i32_0 = arith.constant 0 : i32
    return %c0_i32, %arg1 : i32, i32
  }
  func.func @transform_4(%arg0: i32, %arg1: i32) -> (i32, i32) {
    %c0_i32 = arith.constant 0 : i32
    return %arg0, %arg1 : i32, i32
  }
}

module attributes {stable_mosaic.version = 11 : i64} {
  func.func @_matmul_bias_act_kernel(%arg0: i32, %arg1: i32, %arg2: memref<384x144xbf16, #tpu.memory_space<vmem>>, %arg3: memref<144x128xbf16, #tpu.memory_space<vmem>>, %arg4: memref<1x128xf32, #tpu.memory_space<vmem>>, %arg5: memref<1x128xf32, #tpu.memory_space<vmem>>, %arg6: memref<384x128xf32, #tpu.memory_space<vmem>>) attributes {dimension_semantics = [#tpu.dimension_semantics<parallel>, #tpu.dimension_semantics<parallel>], iteration_bounds = array<i64: 3, 1>, scalar_prefetch = 0 : i64, scratch_operands = 0 : i64, tpu.core_type = #tpu.core_type<tc>, window_params = [{transform_indices = @transform_0, window_bounds = array<i64: 384, 144>}, {transform_indices = @transform_1, window_bounds = array<i64: 144, 128>}, {transform_indices = @transform_2, window_bounds = array<i64: 1, 128>}, {transform_indices = @transform_3, window_bounds = array<i64: 1, 128>}, {transform_indices = @transform_4, window_bounds = array<i64: 384, 128>}]} {
    %c0 = arith.constant 0 : index
    %c0_0 = arith.constant 0 : index
    %0 = vector.load %arg2[%c0, %c0_0] : memref<384x144xbf16, #tpu.memory_space<vmem>>, vector<384x144xbf16>
    %c0_1 = arith.constant 0 : index
    %c0_2 = arith.constant 0 : index
    %1 = vector.load %arg3[%c0_1, %c0_2] : memref<144x128xbf16, #tpu.memory_space<vmem>>, vector<144x128xbf16>
    %cst = arith.constant dense<0.000000e+00> : vector<384x128xf32>
    %2 = tpu.matmul %0, %1, %cst {dimension_numbers = #tpu.dot_dimension_numbers<[1], [0], [0], [1], [0, 0, 1, 1], [], []>} : vector<384x144xbf16>, vector<144x128xbf16>, vector<384x128xf32> -> vector<384x128xf32>
    %c0_3 = arith.constant 0 : index
    %c0_4 = arith.constant 0 : index
    %3 = vector.load %arg4[%c0_3, %c0_4] : memref<1x128xf32, #tpu.memory_space<vmem>>, vector<1x128xf32>
    %4 = vector.broadcast %3 : vector<1x128xf32> to vector<384x128xf32>
    %5 = arith.addf %2, %4 : vector<384x128xf32>
    %c0_5 = arith.constant 0 : index
    %c0_6 = arith.constant 0 : index
    %6 = vector.load %arg5[%c0_5, %c0_6] : memref<1x128xf32, #tpu.memory_space<vmem>>, vector<1x128xf32>
    %7 = vector.broadcast %6 : vector<1x128xf32> to vector<384x128xf32>
    %8 = arith.maximumf %5, %7 : vector<384x128xf32>
    %c0_7 = arith.constant 0 : index
    %c0_8 = arith.constant 0 : index
    %9 = vector.load %arg6[%c0_7, %c0_8] : memref<384x128xf32, #tpu.memory_space<vmem>>, vector<384x128xf32>
    tpu.vector_store %arg6[%c0_7, %c0_8], %8 {strides = array<i32>} : memref<384x128xf32, #tpu.memory_space<vmem>>, vector<384x128xf32>,
    return
  }
  func.func @transform_0(%arg0: i32, %arg1: i32) -> (i32, i32) {
    %c0_i32 = arith.constant 0 : i32
    %c0_i32_0 = arith.constant 0 : i32
    return %arg0, %c0_i32 : i32, i32
  }
  func.func @transform_1(%arg0: i32, %arg1: i32) -> (i32, i32) {
    %c0_i32 = arith.constant 0 : i32
    %c0_i32_0 = arith.constant 0 : i32
    return %c0_i32, %arg1 : i32, i32
  }
  func.func @transform_2(%arg0: i32, %arg1: i32) -> (i32, i32) {
    %c0_i32 = arith.constant 0 : i32
    %c0_i32_0 = arith.constant 0 : i32
    return %c0_i32, %arg1 : i32, i32
  }
  func.func @transform_3(%arg0: i32, %arg1: i32) -> (i32, i32) {
    %c0_i32 = arith.constant 0 : i32
    %c0_i32_0 = arith.constant 0 : i32
    return %c0_i32, %arg1 : i32, i32
  }
  func.func @transform_4(%arg0: i32, %arg1: i32) -> (i32, i32) {
    %c0_i32 = arith.constant 0 : i32
    return %arg0, %arg1 : i32, i32
  }
}

module attributes {stable_mosaic.version = 11 : i64} {
  func.func @_matmul_bias_act_kernel(%arg0: i32, %arg1: i32, %arg2: memref<384x144xbf16, #tpu.memory_space<vmem>>, %arg3: memref<144x128xbf16, #tpu.memory_space<vmem>>, %arg4: memref<1x128xf32, #tpu.memory_space<vmem>>, %arg5: memref<1x128xf32, #tpu.memory_space<vmem>>, %arg6: memref<384x128xf32, #tpu.memory_space<vmem>>) attributes {dimension_semantics = [#tpu.dimension_semantics<parallel>, #tpu.dimension_semantics<parallel>], iteration_bounds = array<i64: 3, 1>, scalar_prefetch = 0 : i64, scratch_operands = 0 : i64, tpu.core_type = #tpu.core_type<tc>, window_params = [{transform_indices = @transform_0, window_bounds = array<i64: 384, 144>}, {transform_indices = @transform_1, window_bounds = array<i64: 144, 128>}, {transform_indices = @transform_2, window_bounds = array<i64: 1, 128>}, {transform_indices = @transform_3, window_bounds = array<i64: 1, 128>}, {transform_indices = @transform_4, window_bounds = array<i64: 384, 128>}]} {
    %c0 = arith.constant 0 : index
    %c0_0 = arith.constant 0 : index
    %0 = vector.load %arg2[%c0, %c0_0] : memref<384x144xbf16, #tpu.memory_space<vmem>>, vector<384x144xbf16>
    %c0_1 = arith.constant 0 : index
    %c0_2 = arith.constant 0 : index
    %1 = vector.load %arg3[%c0_1, %c0_2] : memref<144x128xbf16, #tpu.memory_space<vmem>>, vector<144x128xbf16>
    %cst = arith.constant dense<0.000000e+00> : vector<384x128xf32>
    %2 = tpu.matmul %0, %1, %cst {dimension_numbers = #tpu.dot_dimension_numbers<[1], [0], [0], [1], [0, 0, 1, 1], [], []>} : vector<384x144xbf16>, vector<144x128xbf16>, vector<384x128xf32> -> vector<384x128xf32>
    %c0_3 = arith.constant 0 : index
    %c0_4 = arith.constant 0 : index
    %3 = vector.load %arg4[%c0_3, %c0_4] : memref<1x128xf32, #tpu.memory_space<vmem>>, vector<1x128xf32>
    %4 = vector.broadcast %3 : vector<1x128xf32> to vector<384x128xf32>
    %5 = arith.addf %2, %4 : vector<384x128xf32>
    %c0_5 = arith.constant 0 : index
    %c0_6 = arith.constant 0 : index
    %6 = vector.load %arg5[%c0_5, %c0_6] : memref<1x128xf32, #tpu.memory_space<vmem>>, vector<1x128xf32>
    %7 = vector.broadcast %6 : vector<1x128xf32> to vector<384x128xf32>
    %8 = arith.maximumf %5, %7 : vector<384x128xf32>
    %c0_7 = arith.constant 0 : index
    %c0_8 = arith.constant 0 : index
    %9 = vector.load %arg6[%c0_7, %c0_8] : memref<384x128xf32, #tpu.memory_space<vmem>>, vector<384x128xf32>
    tpu.vector_store %arg6[%c0_7, %c0_8], %8 {strides = array<i32>} : memref<384x128xf32, #tpu.memory_space<vmem>>, vector<384x128xf32>,
    return
  }
  func.func @transform_0(%arg0: i32, %arg1: i32) -> (i32, i32) {
    %c0_i32 = arith.constant 0 : i32
    %c0_i32_0 = arith.constant 0 : i32
    return %arg0, %c0_i32 : i32, i32
  }
  func.func @transform_1(%arg0: i32, %arg1: i32) -> (i32, i32) {
    %c0_i32 = arith.constant 0 : i32
    %c0_i32_0 = arith.constant 0 : i32
    return %c0_i32, %arg1 : i32, i32
  }
  func.func @transform_2(%arg0: i32, %arg1: i32) -> (i32, i32) {
    %c0_i32 = arith.constant 0 : i32
    %c0_i32_0 = arith.constant 0 : i32
    return %c0_i32, %arg1 : i32, i32
  }
  func.func @transform_3(%arg0: i32, %arg1: i32) -> (i32, i32) {
    %c0_i32 = arith.constant 0 : i32
    %c0_i32_0 = arith.constant 0 : i32
    return %c0_i32, %arg1 : i32, i32
  }
  func.func @transform_4(%arg0: i32, %arg1: i32) -> (i32, i32) {
    %c0_i32 = arith.constant 0 : i32
    return %arg0, %arg1 : i32, i32
  }
}

module attributes {stable_mosaic.version = 11 : i64} {
  func.func @_matmul_bias_act_kernel(%arg0: i32, %arg1: i32, %arg2: memref<128x400xbf16, #tpu.memory_space<vmem>>, %arg3: memref<400x128xbf16, #tpu.memory_space<vmem>>, %arg4: memref<1x128xf32, #tpu.memory_space<vmem>>, %arg5: memref<1x128xf32, #tpu.memory_space<vmem>>, %arg6: memref<128x128xf32, #tpu.memory_space<vmem>>) attributes {dimension_semantics = [#tpu.dimension_semantics<parallel>, #tpu.dimension_semantics<parallel>], iteration_bounds = array<i64: 1, 1>, scalar_prefetch = 0 : i64, scratch_operands = 0 : i64, tpu.core_type = #tpu.core_type<tc>, window_params = [{transform_indices = @transform_0, window_bounds = array<i64: 128, 400>}, {transform_indices = @transform_1, window_bounds = array<i64: 400, 128>}, {transform_indices = @transform_2, window_bounds = array<i64: 1, 128>}, {transform_indices = @transform_3, window_bounds = array<i64: 1, 128>}, {transform_indices = @transform_4, window_bounds = array<i64: 128, 128>}]} {
    %c0 = arith.constant 0 : index
    %c0_0 = arith.constant 0 : index
    %0 = vector.load %arg2[%c0, %c0_0] : memref<128x400xbf16, #tpu.memory_space<vmem>>, vector<128x400xbf16>
    %c0_1 = arith.constant 0 : index
    %c0_2 = arith.constant 0 : index
    %1 = vector.load %arg3[%c0_1, %c0_2] : memref<400x128xbf16, #tpu.memory_space<vmem>>, vector<400x128xbf16>
    %cst = arith.constant dense<0.000000e+00> : vector<128x128xf32>
    %2 = tpu.matmul %0, %1, %cst {dimension_numbers = #tpu.dot_dimension_numbers<[1], [0], [0], [1], [0, 0, 1, 1], [], []>} : vector<128x400xbf16>, vector<400x128xbf16>, vector<128x128xf32> -> vector<128x128xf32>
    %c0_3 = arith.constant 0 : index
    %c0_4 = arith.constant 0 : index
    %3 = vector.load %arg4[%c0_3, %c0_4] : memref<1x128xf32, #tpu.memory_space<vmem>>, vector<1x128xf32>
    %4 = vector.broadcast %3 : vector<1x128xf32> to vector<128x128xf32>
    %5 = arith.addf %2, %4 : vector<128x128xf32>
    %c0_5 = arith.constant 0 : index
    %c0_6 = arith.constant 0 : index
    %6 = vector.load %arg5[%c0_5, %c0_6] : memref<1x128xf32, #tpu.memory_space<vmem>>, vector<1x128xf32>
    %7 = vector.broadcast %6 : vector<1x128xf32> to vector<128x128xf32>
    %8 = arith.maximumf %5, %7 : vector<128x128xf32>
    %c0_7 = arith.constant 0 : index
    %c0_8 = arith.constant 0 : index
    %9 = vector.load %arg6[%c0_7, %c0_8] : memref<128x128xf32, #tpu.memory_space<vmem>>, vector<128x128xf32>
    tpu.vector_store %arg6[%c0_7, %c0_8], %8 {strides = array<i32>} : memref<128x128xf32, #tpu.memory_space<vmem>>, vector<128x128xf32>,
    return
  }
  func.func @transform_0(%arg0: i32, %arg1: i32) -> (i32, i32) {
    %c0_i32 = arith.constant 0 : i32
    %c0_i32_0 = arith.constant 0 : i32
    return %arg0, %c0_i32 : i32, i32
  }
  func.func @transform_1(%arg0: i32, %arg1: i32) -> (i32, i32) {
    %c0_i32 = arith.constant 0 : i32
    %c0_i32_0 = arith.constant 0 : i32
    return %c0_i32, %arg1 : i32, i32
  }
  func.func @transform_2(%arg0: i32, %arg1: i32) -> (i32, i32) {
    %c0_i32 = arith.constant 0 : i32
    %c0_i32_0 = arith.constant 0 : i32
    return %c0_i32, %arg1 : i32, i32
  }
  func.func @transform_3(%arg0: i32, %arg1: i32) -> (i32, i32) {
    %c0_i32 = arith.constant 0 : i32
    %c0_i32_0 = arith.constant 0 : i32
    return %c0_i32, %arg1 : i32, i32
  }
  func.func @transform_4(%arg0: i32, %arg1: i32) -> (i32, i32) {
    %c0_i32 = arith.constant 0 : i32
    return %arg0, %arg1 : i32, i32
  }
}

module attributes {stable_mosaic.version = 11 : i64} {
  func.func @_matmul_bias_act_kernel(%arg0: i32, %arg1: i32, %arg2: memref<128x288xbf16, #tpu.memory_space<vmem>>, %arg3: memref<288x128xbf16, #tpu.memory_space<vmem>>, %arg4: memref<1x128xf32, #tpu.memory_space<vmem>>, %arg5: memref<1x128xf32, #tpu.memory_space<vmem>>, %arg6: memref<128x128xf32, #tpu.memory_space<vmem>>) attributes {dimension_semantics = [#tpu.dimension_semantics<parallel>, #tpu.dimension_semantics<parallel>], iteration_bounds = array<i64: 1, 1>, scalar_prefetch = 0 : i64, scratch_operands = 0 : i64, tpu.core_type = #tpu.core_type<tc>, window_params = [{transform_indices = @transform_0, window_bounds = array<i64: 128, 288>}, {transform_indices = @transform_1, window_bounds = array<i64: 288, 128>}, {transform_indices = @transform_2, window_bounds = array<i64: 1, 128>}, {transform_indices = @transform_3, window_bounds = array<i64: 1, 128>}, {transform_indices = @transform_4, window_bounds = array<i64: 128, 128>}]} {
    %c0 = arith.constant 0 : index
    %c0_0 = arith.constant 0 : index
    %0 = vector.load %arg2[%c0, %c0_0] : memref<128x288xbf16, #tpu.memory_space<vmem>>, vector<128x288xbf16>
    %c0_1 = arith.constant 0 : index
    %c0_2 = arith.constant 0 : index
    %1 = vector.load %arg3[%c0_1, %c0_2] : memref<288x128xbf16, #tpu.memory_space<vmem>>, vector<288x128xbf16>
    %cst = arith.constant dense<0.000000e+00> : vector<128x128xf32>
    %2 = tpu.matmul %0, %1, %cst {dimension_numbers = #tpu.dot_dimension_numbers<[1], [0], [0], [1], [0, 0, 1, 1], [], []>} : vector<128x288xbf16>, vector<288x128xbf16>, vector<128x128xf32> -> vector<128x128xf32>
    %c0_3 = arith.constant 0 : index
    %c0_4 = arith.constant 0 : index
    %3 = vector.load %arg4[%c0_3, %c0_4] : memref<1x128xf32, #tpu.memory_space<vmem>>, vector<1x128xf32>
    %4 = vector.broadcast %3 : vector<1x128xf32> to vector<128x128xf32>
    %5 = arith.addf %2, %4 : vector<128x128xf32>
    %c0_5 = arith.constant 0 : index
    %c0_6 = arith.constant 0 : index
    %6 = vector.load %arg5[%c0_5, %c0_6] : memref<1x128xf32, #tpu.memory_space<vmem>>, vector<1x128xf32>
    %7 = vector.broadcast %6 : vector<1x128xf32> to vector<128x128xf32>
    %8 = arith.maximumf %5, %7 : vector<128x128xf32>
    %c0_7 = arith.constant 0 : index
    %c0_8 = arith.constant 0 : index
    %9 = vector.load %arg6[%c0_7, %c0_8] : memref<128x128xf32, #tpu.memory_space<vmem>>, vector<128x128xf32>
    tpu.vector_store %arg6[%c0_7, %c0_8], %8 {strides = array<i32>} : memref<128x128xf32, #tpu.memory_space<vmem>>, vector<128x128xf32>,
    return
  }
  func.func @transform_0(%arg0: i32, %arg1: i32) -> (i32, i32) {
    %c0_i32 = arith.constant 0 : i32
    %c0_i32_0 = arith.constant 0 : i32
    return %arg0, %c0_i32 : i32, i32
  }
  func.func @transform_1(%arg0: i32, %arg1: i32) -> (i32, i32) {
    %c0_i32 = arith.constant 0 : i32
    %c0_i32_0 = arith.constant 0 : i32
    return %c0_i32, %arg1 : i32, i32
  }
  func.func @transform_2(%arg0: i32, %arg1: i32) -> (i32, i32) {
    %c0_i32 = arith.constant 0 : i32
    %c0_i32_0 = arith.constant 0 : i32
    return %c0_i32, %arg1 : i32, i32
  }
  func.func @transform_3(%arg0: i32, %arg1: i32) -> (i32, i32) {
    %c0_i32 = arith.constant 0 : i32
    %c0_i32_0 = arith.constant 0 : i32
    return %c0_i32, %arg1 : i32, i32
  }
  func.func @transform_4(%arg0: i32, %arg1: i32) -> (i32, i32) {
    %c0_i32 = arith.constant 0 : i32
    return %arg0, %arg1 : i32, i32
  }
}

module attributes {stable_mosaic.version = 11 : i64} {
  func.func @_matmul_bias_act_kernel(%arg0: i32, %arg1: i32, %arg2: memref<128x288xbf16, #tpu.memory_space<vmem>>, %arg3: memref<288x768xbf16, #tpu.memory_space<vmem>>, %arg4: memref<1x768xf32, #tpu.memory_space<vmem>>, %arg5: memref<1x768xf32, #tpu.memory_space<vmem>>, %arg6: memref<128x768xf32, #tpu.memory_space<vmem>>) attributes {dimension_semantics = [#tpu.dimension_semantics<parallel>, #tpu.dimension_semantics<parallel>], iteration_bounds = array<i64: 1, 1>, scalar_prefetch = 0 : i64, scratch_operands = 0 : i64, tpu.core_type = #tpu.core_type<tc>, window_params = [{transform_indices = @transform_0, window_bounds = array<i64: 128, 288>}, {transform_indices = @transform_1, window_bounds = array<i64: 288, 768>}, {transform_indices = @transform_2, window_bounds = array<i64: 1, 768>}, {transform_indices = @transform_3, window_bounds = array<i64: 1, 768>}, {transform_indices = @transform_4, window_bounds = array<i64: 128, 768>}]} {
    %c0 = arith.constant 0 : index
    %c0_0 = arith.constant 0 : index
    %0 = vector.load %arg2[%c0, %c0_0] : memref<128x288xbf16, #tpu.memory_space<vmem>>, vector<128x288xbf16>
    %c0_1 = arith.constant 0 : index
    %c0_2 = arith.constant 0 : index
    %1 = vector.load %arg3[%c0_1, %c0_2] : memref<288x768xbf16, #tpu.memory_space<vmem>>, vector<288x768xbf16>
    %cst = arith.constant dense<0.000000e+00> : vector<128x768xf32>
    %2 = tpu.matmul %0, %1, %cst {dimension_numbers = #tpu.dot_dimension_numbers<[1], [0], [0], [1], [0, 0, 1, 1], [], []>} : vector<128x288xbf16>, vector<288x768xbf16>, vector<128x768xf32> -> vector<128x768xf32>
    %c0_3 = arith.constant 0 : index
    %c0_4 = arith.constant 0 : index
    %3 = vector.load %arg4[%c0_3, %c0_4] : memref<1x768xf32, #tpu.memory_space<vmem>>, vector<1x768xf32>
    %4 = vector.broadcast %3 : vector<1x768xf32> to vector<128x768xf32>
    %5 = arith.addf %2, %4 : vector<128x768xf32>
    %c0_5 = arith.constant 0 : index
    %c0_6 = arith.constant 0 : index
    %6 = vector.load %arg5[%c0_5, %c0_6] : memref<1x768xf32, #tpu.memory_space<vmem>>, vector<1x768xf32>
    %7 = vector.broadcast %6 : vector<1x768xf32> to vector<128x768xf32>
    %8 = arith.maximumf %5, %7 : vector<128x768xf32>
    %c0_7 = arith.constant 0 : index
    %c0_8 = arith.constant 0 : index
    %9 = vector.load %arg6[%c0_7, %c0_8] : memref<128x768xf32, #tpu.memory_space<vmem>>, vector<128x768xf32>
    tpu.vector_store %arg6[%c0_7, %c0_8], %8 {strides = array<i32>} : memref<128x768xf32, #tpu.memory_space<vmem>>, vector<128x768xf32>,
    return
  }
  func.func @transform_0(%arg0: i32, %arg1: i32) -> (i32, i32) {
    %c0_i32 = arith.constant 0 : i32
    %c0_i32_0 = arith.constant 0 : i32
    return %arg0, %c0_i32 : i32, i32
  }
  func.func @transform_1(%arg0: i32, %arg1: i32) -> (i32, i32) {
    %c0_i32 = arith.constant 0 : i32
    %c0_i32_0 = arith.constant 0 : i32
    return %c0_i32, %arg1 : i32, i32
  }
  func.func @transform_2(%arg0: i32, %arg1: i32) -> (i32, i32) {
    %c0_i32 = arith.constant 0 : i32
    %c0_i32_0 = arith.constant 0 : i32
    return %c0_i32, %arg1 : i32, i32
  }
  func.func @transform_3(%arg0: i32, %arg1: i32) -> (i32, i32) {
    %c0_i32 = arith.constant 0 : i32
    %c0_i32_0 = arith.constant 0 : i32
    return %c0_i32, %arg1 : i32, i32
  }
  func.func @transform_4(%arg0: i32, %arg1: i32) -> (i32, i32) {
    %c0_i32 = arith.constant 0 : i32
    return %arg0, %arg1 : i32, i32
  }
}

module attributes {stable_mosaic.version = 11 : i64} {
  func.func @_matmul_bias_act_kernel(%arg0: i32, %arg1: i32, %arg2: memref<32x288xbf16, #tpu.memory_space<vmem>>, %arg3: memref<288x128xbf16, #tpu.memory_space<vmem>>, %arg4: memref<1x128xf32, #tpu.memory_space<vmem>>, %arg5: memref<1x128xf32, #tpu.memory_space<vmem>>, %arg6: memref<32x128xf32, #tpu.memory_space<vmem>>) attributes {dimension_semantics = [#tpu.dimension_semantics<parallel>, #tpu.dimension_semantics<parallel>], iteration_bounds = array<i64: 1, 1>, scalar_prefetch = 0 : i64, scratch_operands = 0 : i64, tpu.core_type = #tpu.core_type<tc>, window_params = [{transform_indices = @transform_0, window_bounds = array<i64: 32, 288>}, {transform_indices = @transform_1, window_bounds = array<i64: 288, 128>}, {transform_indices = @transform_2, window_bounds = array<i64: 1, 128>}, {transform_indices = @transform_3, window_bounds = array<i64: 1, 128>}, {transform_indices = @transform_4, window_bounds = array<i64: 32, 128>}]} {
    %c0 = arith.constant 0 : index
    %c0_0 = arith.constant 0 : index
    %0 = vector.load %arg2[%c0, %c0_0] : memref<32x288xbf16, #tpu.memory_space<vmem>>, vector<32x288xbf16>
    %c0_1 = arith.constant 0 : index
    %c0_2 = arith.constant 0 : index
    %1 = vector.load %arg3[%c0_1, %c0_2] : memref<288x128xbf16, #tpu.memory_space<vmem>>, vector<288x128xbf16>
    %cst = arith.constant dense<0.000000e+00> : vector<32x128xf32>
    %2 = tpu.matmul %0, %1, %cst {dimension_numbers = #tpu.dot_dimension_numbers<[1], [0], [0], [1], [0, 0, 1, 1], [], []>} : vector<32x288xbf16>, vector<288x128xbf16>, vector<32x128xf32> -> vector<32x128xf32>
    %c0_3 = arith.constant 0 : index
    %c0_4 = arith.constant 0 : index
    %3 = vector.load %arg4[%c0_3, %c0_4] : memref<1x128xf32, #tpu.memory_space<vmem>>, vector<1x128xf32>
    %4 = vector.broadcast %3 : vector<1x128xf32> to vector<32x128xf32>
    %5 = arith.addf %2, %4 : vector<32x128xf32>
    %c0_5 = arith.constant 0 : index
    %c0_6 = arith.constant 0 : index
    %6 = vector.load %arg5[%c0_5, %c0_6] : memref<1x128xf32, #tpu.memory_space<vmem>>, vector<1x128xf32>
    %7 = vector.broadcast %6 : vector<1x128xf32> to vector<32x128xf32>
    %8 = arith.maximumf %5, %7 : vector<32x128xf32>
    %c0_7 = arith.constant 0 : index
    %c0_8 = arith.constant 0 : index
    %9 = vector.load %arg6[%c0_7, %c0_8] : memref<32x128xf32, #tpu.memory_space<vmem>>, vector<32x128xf32>
    tpu.vector_store %arg6[%c0_7, %c0_8], %8 {strides = array<i32>} : memref<32x128xf32, #tpu.memory_space<vmem>>, vector<32x128xf32>,
    return
  }
  func.func @transform_0(%arg0: i32, %arg1: i32) -> (i32, i32) {
    %c0_i32 = arith.constant 0 : i32
    %c0_i32_0 = arith.constant 0 : i32
    return %arg0, %c0_i32 : i32, i32
  }
  func.func @transform_1(%arg0: i32, %arg1: i32) -> (i32, i32) {
    %c0_i32 = arith.constant 0 : i32
    %c0_i32_0 = arith.constant 0 : i32
    return %c0_i32, %arg1 : i32, i32
  }
  func.func @transform_2(%arg0: i32, %arg1: i32) -> (i32, i32) {
    %c0_i32 = arith.constant 0 : i32
    %c0_i32_0 = arith.constant 0 : i32
    return %c0_i32, %arg1 : i32, i32
  }
  func.func @transform_3(%arg0: i32, %arg1: i32) -> (i32, i32) {
    %c0_i32 = arith.constant 0 : i32
    %c0_i32_0 = arith.constant 0 : i32
    return %c0_i32, %arg1 : i32, i32
  }
  func.func @transform_4(%arg0: i32, %arg1: i32) -> (i32, i32) {
    %c0_i32 = arith.constant 0 : i32
    return %arg0, %arg1 : i32, i32
  }
}

module attributes {stable_mosaic.version = 11 : i64} {
  func.func @_matmul_bias_act_kernel(%arg0: i32, %arg1: i32, %arg2: memref<32x432xbf16, #tpu.memory_space<vmem>>, %arg3: memref<432x128xbf16, #tpu.memory_space<vmem>>, %arg4: memref<1x128xf32, #tpu.memory_space<vmem>>, %arg5: memref<1x128xf32, #tpu.memory_space<vmem>>, %arg6: memref<32x128xf32, #tpu.memory_space<vmem>>) attributes {dimension_semantics = [#tpu.dimension_semantics<parallel>, #tpu.dimension_semantics<parallel>], iteration_bounds = array<i64: 1, 1>, scalar_prefetch = 0 : i64, scratch_operands = 0 : i64, tpu.core_type = #tpu.core_type<tc>, window_params = [{transform_indices = @transform_0, window_bounds = array<i64: 32, 432>}, {transform_indices = @transform_1, window_bounds = array<i64: 432, 128>}, {transform_indices = @transform_2, window_bounds = array<i64: 1, 128>}, {transform_indices = @transform_3, window_bounds = array<i64: 1, 128>}, {transform_indices = @transform_4, window_bounds = array<i64: 32, 128>}]} {
    %c0 = arith.constant 0 : index
    %c0_0 = arith.constant 0 : index
    %0 = vector.load %arg2[%c0, %c0_0] : memref<32x432xbf16, #tpu.memory_space<vmem>>, vector<32x432xbf16>
    %c0_1 = arith.constant 0 : index
    %c0_2 = arith.constant 0 : index
    %1 = vector.load %arg3[%c0_1, %c0_2] : memref<432x128xbf16, #tpu.memory_space<vmem>>, vector<432x128xbf16>
    %cst = arith.constant dense<0.000000e+00> : vector<32x128xf32>
    %2 = tpu.matmul %0, %1, %cst {dimension_numbers = #tpu.dot_dimension_numbers<[1], [0], [0], [1], [0, 0, 1, 1], [], []>} : vector<32x432xbf16>, vector<432x128xbf16>, vector<32x128xf32> -> vector<32x128xf32>
    %c0_3 = arith.constant 0 : index
    %c0_4 = arith.constant 0 : index
    %3 = vector.load %arg4[%c0_3, %c0_4] : memref<1x128xf32, #tpu.memory_space<vmem>>, vector<1x128xf32>
    %4 = vector.broadcast %3 : vector<1x128xf32> to vector<32x128xf32>
    %5 = arith.addf %2, %4 : vector<32x128xf32>
    %c0_5 = arith.constant 0 : index
    %c0_6 = arith.constant 0 : index
    %6 = vector.load %arg5[%c0_5, %c0_6] : memref<1x128xf32, #tpu.memory_space<vmem>>, vector<1x128xf32>
    %7 = vector.broadcast %6 : vector<1x128xf32> to vector<32x128xf32>
    %8 = arith.maximumf %5, %7 : vector<32x128xf32>
    %c0_7 = arith.constant 0 : index
    %c0_8 = arith.constant 0 : index
    %9 = vector.load %arg6[%c0_7, %c0_8] : memref<32x128xf32, #tpu.memory_space<vmem>>, vector<32x128xf32>
    tpu.vector_store %arg6[%c0_7, %c0_8], %8 {strides = array<i32>} : memref<32x128xf32, #tpu.memory_space<vmem>>, vector<32x128xf32>,
    return
  }
  func.func @transform_0(%arg0: i32, %arg1: i32) -> (i32, i32) {
    %c0_i32 = arith.constant 0 : i32
    %c0_i32_0 = arith.constant 0 : i32
    return %arg0, %c0_i32 : i32, i32
  }
  func.func @transform_1(%arg0: i32, %arg1: i32) -> (i32, i32) {
    %c0_i32 = arith.constant 0 : i32
    %c0_i32_0 = arith.constant 0 : i32
    return %c0_i32, %arg1 : i32, i32
  }
  func.func @transform_2(%arg0: i32, %arg1: i32) -> (i32, i32) {
    %c0_i32 = arith.constant 0 : i32
    %c0_i32_0 = arith.constant 0 : i32
    return %c0_i32, %arg1 : i32, i32
  }
  func.func @transform_3(%arg0: i32, %arg1: i32) -> (i32, i32) {
    %c0_i32 = arith.constant 0 : i32
    %c0_i32_0 = arith.constant 0 : i32
    return %c0_i32, %arg1 : i32, i32
  }
  func.func @transform_4(%arg0: i32, %arg1: i32) -> (i32, i32) {
    %c0_i32 = arith.constant 0 : i32
    return %arg0, %arg1 : i32, i32
  }
}

module attributes {stable_mosaic.version = 11 : i64} {
  func.func @_matmul_bias_act_kernel(%arg0: i32, %arg1: i32, %arg2: memref<32x432xbf16, #tpu.memory_space<vmem>>, %arg3: memref<432x1024xbf16, #tpu.memory_space<vmem>>, %arg4: memref<1x1024xf32, #tpu.memory_space<vmem>>, %arg5: memref<1x1024xf32, #tpu.memory_space<vmem>>, %arg6: memref<32x1024xf32, #tpu.memory_space<vmem>>) attributes {dimension_semantics = [#tpu.dimension_semantics<parallel>, #tpu.dimension_semantics<parallel>], iteration_bounds = array<i64: 1, 1>, scalar_prefetch = 0 : i64, scratch_operands = 0 : i64, tpu.core_type = #tpu.core_type<tc>, window_params = [{transform_indices = @transform_0, window_bounds = array<i64: 32, 432>}, {transform_indices = @transform_1, window_bounds = array<i64: 432, 1024>}, {transform_indices = @transform_2, window_bounds = array<i64: 1, 1024>}, {transform_indices = @transform_3, window_bounds = array<i64: 1, 1024>}, {transform_indices = @transform_4, window_bounds = array<i64: 32, 1024>}]} {
    %c0 = arith.constant 0 : index
    %c0_0 = arith.constant 0 : index
    %0 = vector.load %arg2[%c0, %c0_0] : memref<32x432xbf16, #tpu.memory_space<vmem>>, vector<32x432xbf16>
    %c0_1 = arith.constant 0 : index
    %c0_2 = arith.constant 0 : index
    %1 = vector.load %arg3[%c0_1, %c0_2] : memref<432x1024xbf16, #tpu.memory_space<vmem>>, vector<432x1024xbf16>
    %cst = arith.constant dense<0.000000e+00> : vector<32x1024xf32>
    %2 = tpu.matmul %0, %1, %cst {dimension_numbers = #tpu.dot_dimension_numbers<[1], [0], [0], [1], [0, 0, 1, 1], [], []>} : vector<32x432xbf16>, vector<432x1024xbf16>, vector<32x1024xf32> -> vector<32x1024xf32>
    %c0_3 = arith.constant 0 : index
    %c0_4 = arith.constant 0 : index
    %3 = vector.load %arg4[%c0_3, %c0_4] : memref<1x1024xf32, #tpu.memory_space<vmem>>, vector<1x1024xf32>
    %4 = vector.broadcast %3 : vector<1x1024xf32> to vector<32x1024xf32>
    %5 = arith.addf %2, %4 : vector<32x1024xf32>
    %c0_5 = arith.constant 0 : index
    %c0_6 = arith.constant 0 : index
    %6 = vector.load %arg5[%c0_5, %c0_6] : memref<1x1024xf32, #tpu.memory_space<vmem>>, vector<1x1024xf32>
    %7 = vector.broadcast %6 : vector<1x1024xf32> to vector<32x1024xf32>
    %8 = arith.maximumf %5, %7 : vector<32x1024xf32>
    %c0_7 = arith.constant 0 : index
    %c0_8 = arith.constant 0 : index
    %9 = vector.load %arg6[%c0_7, %c0_8] : memref<32x1024xf32, #tpu.memory_space<vmem>>, vector<32x1024xf32>
    tpu.vector_store %arg6[%c0_7, %c0_8], %8 {strides = array<i32>} : memref<32x1024xf32, #tpu.memory_space<vmem>>, vector<32x1024xf32>,
    return
  }
  func.func @transform_0(%arg0: i32, %arg1: i32) -> (i32, i32) {
    %c0_i32 = arith.constant 0 : i32
    %c0_i32_0 = arith.constant 0 : i32
    return %arg0, %c0_i32 : i32, i32
  }
  func.func @transform_1(%arg0: i32, %arg1: i32) -> (i32, i32) {
    %c0_i32 = arith.constant 0 : i32
    %c0_i32_0 = arith.constant 0 : i32
    return %c0_i32, %arg1 : i32, i32
  }
  func.func @transform_2(%arg0: i32, %arg1: i32) -> (i32, i32) {
    %c0_i32 = arith.constant 0 : i32
    %c0_i32_0 = arith.constant 0 : i32
    return %c0_i32, %arg1 : i32, i32
  }
  func.func @transform_3(%arg0: i32, %arg1: i32) -> (i32, i32) {
    %c0_i32 = arith.constant 0 : i32
    %c0_i32_0 = arith.constant 0 : i32
    return %c0_i32, %arg1 : i32, i32
  }
  func.func @transform_4(%arg0: i32, %arg1: i32) -> (i32, i32) {
    %c0_i32 = arith.constant 0 : i32
    return %arg0, %arg1 : i32, i32
  }
}

module attributes {stable_mosaic.version = 11 : i64} {
  func.func @_matmul_bias_act_kernel(%arg0: i32, %arg1: i32, %arg2: memref<128x288xbf16, #tpu.memory_space<vmem>>, %arg3: memref<288x640xbf16, #tpu.memory_space<vmem>>, %arg4: memref<1x640xf32, #tpu.memory_space<vmem>>, %arg5: memref<1x640xf32, #tpu.memory_space<vmem>>, %arg6: memref<128x640xf32, #tpu.memory_space<vmem>>) attributes {dimension_semantics = [#tpu.dimension_semantics<parallel>, #tpu.dimension_semantics<parallel>], iteration_bounds = array<i64: 1, 1>, scalar_prefetch = 0 : i64, scratch_operands = 0 : i64, tpu.core_type = #tpu.core_type<tc>, window_params = [{transform_indices = @transform_0, window_bounds = array<i64: 128, 288>}, {transform_indices = @transform_1, window_bounds = array<i64: 288, 640>}, {transform_indices = @transform_2, window_bounds = array<i64: 1, 640>}, {transform_indices = @transform_3, window_bounds = array<i64: 1, 640>}, {transform_indices = @transform_4, window_bounds = array<i64: 128, 640>}]} {
    %c0 = arith.constant 0 : index
    %c0_0 = arith.constant 0 : index
    %0 = vector.load %arg2[%c0, %c0_0] : memref<128x288xbf16, #tpu.memory_space<vmem>>, vector<128x288xbf16>
    %c0_1 = arith.constant 0 : index
    %c0_2 = arith.constant 0 : index
    %1 = vector.load %arg3[%c0_1, %c0_2] : memref<288x640xbf16, #tpu.memory_space<vmem>>, vector<288x640xbf16>
    %cst = arith.constant dense<0.000000e+00> : vector<128x640xf32>
    %2 = tpu.matmul %0, %1, %cst {dimension_numbers = #tpu.dot_dimension_numbers<[1], [0], [0], [1], [0, 0, 1, 1], [], []>} : vector<128x288xbf16>, vector<288x640xbf16>, vector<128x640xf32> -> vector<128x640xf32>
    %c0_3 = arith.constant 0 : index
    %c0_4 = arith.constant 0 : index
    %3 = vector.load %arg4[%c0_3, %c0_4] : memref<1x640xf32, #tpu.memory_space<vmem>>, vector<1x640xf32>
    %4 = vector.broadcast %3 : vector<1x640xf32> to vector<128x640xf32>
    %5 = arith.addf %2, %4 : vector<128x640xf32>
    %c0_5 = arith.constant 0 : index
    %c0_6 = arith.constant 0 : index
    %6 = vector.load %arg5[%c0_5, %c0_6] : memref<1x640xf32, #tpu.memory_space<vmem>>, vector<1x640xf32>
    %7 = vector.broadcast %6 : vector<1x640xf32> to vector<128x640xf32>
    %8 = arith.maximumf %5, %7 : vector<128x640xf32>
    %c0_7 = arith.constant 0 : index
    %c0_8 = arith.constant 0 : index
    %9 = vector.load %arg6[%c0_7, %c0_8] : memref<128x640xf32, #tpu.memory_space<vmem>>, vector<128x640xf32>
    tpu.vector_store %arg6[%c0_7, %c0_8], %8 {strides = array<i32>} : memref<128x640xf32, #tpu.memory_space<vmem>>, vector<128x640xf32>,
    return
  }
  func.func @transform_0(%arg0: i32, %arg1: i32) -> (i32, i32) {
    %c0_i32 = arith.constant 0 : i32
    %c0_i32_0 = arith.constant 0 : i32
    return %arg0, %c0_i32 : i32, i32
  }
  func.func @transform_1(%arg0: i32, %arg1: i32) -> (i32, i32) {
    %c0_i32 = arith.constant 0 : i32
    %c0_i32_0 = arith.constant 0 : i32
    return %c0_i32, %arg1 : i32, i32
  }
  func.func @transform_2(%arg0: i32, %arg1: i32) -> (i32, i32) {
    %c0_i32 = arith.constant 0 : i32
    %c0_i32_0 = arith.constant 0 : i32
    return %c0_i32, %arg1 : i32, i32
  }
  func.func @transform_3(%arg0: i32, %arg1: i32) -> (i32, i32) {
    %c0_i32 = arith.constant 0 : i32
    %c0_i32_0 = arith.constant 0 : i32
    return %c0_i32, %arg1 : i32, i32
  }
  func.func @transform_4(%arg0: i32, %arg1: i32) -> (i32, i32) {
    %c0_i32 = arith.constant 0 : i32
    return %arg0, %arg1 : i32, i32
  }
}

</mosaic_0001>

<bundles_post_ra>
// kernel: guidance_forward.15
= control target key start
LH: loop header
LB: loop body
LE: loop exit
PB: predicated region body
PF: predicated region fallthrough
CT: control target
= control target key end

     0   :  { %s3156_s15 = smov 0   ;;  %s3158_s16 = smov 0   ;;  %s3880_s0 = inlined_call_operand.vmem [shape: bf16[1152,576], index: 0, kind: input, shape index: {}]   ;;  %s3881_s1 = inlined_call_operand.vmem [shape: bf16[576,128], index: 1, kind: input, shape index: {}]   ;;  %s3882_s2 = inlined_call_operand.vmem [shape: f32[1,128], index: 2, kind: input, shape index: {}]   ;;  %s3883_s3 = inlined_call_operand.vmem [shape: f32[1,128], index: 3, kind: input, shape index: {}]   ;;  %s3884_s4 = inlined_call_operand.vmem [shape: f32[1152,128], index: 4, kind: output, shape index: {}]  }
   0x1   :  { %s3160_s17 = smov 0  }
   0x2 LB: > { %s26_s18 = sadd.s32 1, %s3125_s16  ;;  %p2245_p0 = scmp.ge.s32.totalorder %s3129_s17, 1  ;;  %s3129_s17 = sphi %s3160_s17, %s14_s17   ;;  %s3125_s16 = sphi %s3158_s16, %s3904_s16   ;;  %s3121_s15 = sphi %s3156_s15, %s3903_s15  }
   0x3   : > { %p28_p1 = scmp.ge.s32.totalorder %s26_s18, 3  ;;  %p203_p2 = scmp.lt.s32.totalorder %s3129_s17, 4 }
   0x5   : > { %s3906_s18 = smov (%p28_p1, %s26_s18), 0  ;;  %p204_p3 = pnand %p2245_p0, %p203_p2 }
   0x7   : > { %207 = sbr.rel (%p204_p3) target bundleno = 657 (0x291), region = 36 }
   0xc   : > { %v3025_v0 = vld [vmem:[%s3881_s1 + $0x38] sm:$0xff]  ;;  %v3024_v1 = vld [vmem:[%s3881_s1 + $0x30] sm:$0xff]  ;;  %v3023_v2 = vld [vmem:[%s3881_s1 + $0x28] sm:$0xff]  ;;  %s243_s25 = smul.u32 48, %s3121_s15  ;;  %vm1306_vm0 = vcmask 523264  }
   0xd   : > { %3054 = vmatpush.bf16.msra.mxu1 %v3025_v0  ;;  %3055 = vmatpush.bf16.msra.mxu2 %v3025_v0  ;;  %v3022_v3 = vld [vmem:[%s3881_s1 + $0x20] sm:$0xff]  ;;  %v3021_v4 = vld [vmem:[%s3881_s1 + $0x18] sm:$0xff]  ;;  %v3020_v5 = vld [vmem:[%s3881_s1 + $0x10] sm:$0xff] }
   0xe   : > { %3056 = vmatpush.bf16.msra.mxu3 %v3025_v0  ;;  %1379 = vmatpush.bf16.msra.mxu0 %v3025_v0  ;;  %p244_p4 = scmp.lt.s32.totalorder %s243_s25, 143  ;;  %v3019_v6 = vld [vmem:[%s3881_s1 + $0x8] sm:$0xff]  ;;  %v3018_v7 = vld [vmem:[%s3881_s1] sm:$0xff]  ;;  %v3041_v16 = vld [vmem:[%s3881_s1 + $0xb8] sm:$0xff] }
   0xf   : > { %v3049_v17 = vld [vmem:[%s3881_s1 + $0xf8] sm:$0xff]  ;;  %v3040_v24 = vld [vmem:[%s3881_s1 + $0xb0] sm:$0xff]  ;;  %v3039_v28 = vld [vmem:[%s3881_s1 + $0xa8] sm:$0xff] }
  0x10   : > { %s3908_s25 = smov (!%p244_p4, %s243_s25), 143  ;;  %v3033_v22 = vld [vmem:[%s3881_s1 + $0x78] sm:$0xff]  ;;  %v3048_v25 = vld [vmem:[%s3881_s1 + $0xf0] sm:$0xff]  ;;  %v3047_v29 = vld [vmem:[%s3881_s1 + $0xe8] sm:$0xff] }
  0x11   : > { %3057 = vmatpush.bf16.msra.mxu1 %v3024_v1  ;;  %3058 = vmatpush.bf16.msra.mxu2 %v3024_v1  ;;  %s3078_s6 = smul.u32 20, %s3908_s25  ;;  %v3053_v23 = vld [vmem:[%s3881_s1 + $0x118] sm:$0xff]  ;;  %v3032_v26 = vld [vmem:[%s3881_s1 + $0x70] sm:$0xff]  ;;  %v3031_v30 = vld [vmem:[%s3881_s1 + $0x68] sm:$0xff]  ;;  %s2247_s8 = sshll.u32 %s3908_s25, 3 }
  0x12   : > { %3059 = vmatpush.bf16.msra.mxu3 %v3024_v1  ;;  %1380 = vmatpush.bf16.msra.mxu0 %v3024_v1  ;;  %v3052_v27 = vld [vmem:[%s3881_s1 + $0x110] sm:$0xff]  ;;  %v3038_v31 = vld [vmem:[%s3881_s1 + $0xa0] sm:$0xff]  ;;  %v3037_v46 = vld [vmem:[%s3881_s1 + $0x98] sm:$0xff]  ;;  %s3538_s14 = scalar_lea.vmem %s3884_s4, %s2247_s8 }
  0x13   : > { %s3204_s11 = scalar_lea.vmem %s3880_s0, %s3078_s6  ;;  %v3046_v32 = vld [vmem:[%s3881_s1 + $0xe0] sm:$0xff]  ;;  %v3045_v47 = vld [vmem:[%s3881_s1 + $0xd8] sm:$0xff]  ;;  %v3051_v49 = vld [vmem:[%s3881_s1 + $0x108] sm:$0xff] }
  0x14   : > { %v2370_v8 = vld [vmem:[%s3204_s11 + $0xf0] sm:$0xf]  ;;  %v2930_v9 = vld [vmem:[%s3204_s11 + $0x100] sm:$0xf0]  ;;  %v2490_v10 = vld [vmem:[%s3204_s11 + $0x1e0] sm:$0xf] }
  0x15   : > { %3060 = vmatpush.bf16.msra.mxu1 %v3023_v2  ;;  %3061 = vmatpush.bf16.msra.mxu2 %v3023_v2  ;;  %v2960_v11 = vld [vmem:[%s3204_s11 + $0x1f0] sm:$0xf0]  ;;  %v2610_v12 = vld [vmem:[%s3204_s11 + $0x2d0] sm:$0xf]  ;;  %v2990_v13 = vld [vmem:[%s3204_s11 + $0x2e0] sm:$0xf0]  ;;  %v2371_v18 = vor.u32 %v2930_v9, %v2370_v8 }
  0x16   : > { %3062 = vmatpush.bf16.msra.mxu3 %v3023_v2  ;;  %1381 = vmatpush.bf16.msra.mxu0 %v3023_v2  ;;  %v2250_v14 = vld [vmem:[%s3204_s11] sm:$0xf]  ;;  %v2900_v15 = vld [vmem:[%s3204_s11 + $0x10] sm:$0xf0]  ;;  %v2491_v19 = vor.u32 %v2960_v11, %v2490_v10  ;;  %v2611_v20 = vor.u32 %v2990_v13, %v2610_v12  ;;  %v2390_v33 = vld [vmem:[%s3204_s11 + $0x118] sm:$0xf] }
  0x17   : > { %v2251_v21 = vor.u32 %v2900_v15, %v2250_v14  ;;  %v2935_v34 = vld [vmem:[%s3204_s11 + $0x128] sm:$0xf0]  ;;  %v2510_v35 = vld [vmem:[%s3204_s11 + $0x208] sm:$0xf]  ;;  %v2965_v36 = vld [vmem:[%s3204_s11 + $0x218] sm:$0xf0] }
  0x18   : > { %v2630_v37 = vld [vmem:[%s3204_s11 + $0x2f8] sm:$0xf]  ;;  %v2995_v38 = vld [vmem:[%s3204_s11 + $0x308] sm:$0xf0]  ;;  %v2270_v39 = vld [vmem:[%s3204_s11 + $0x28] sm:$0xf]  ;;  %v2391_v42 = vor.u32 %v2935_v34, %v2390_v33  ;;  %v2511_v43 = vor.u32 %v2965_v36, %v2510_v35 }
  0x19   : > { %3063 = vmatpush.bf16.msra.mxu1 %v3022_v3  ;;  %3064 = vmatpush.bf16.msra.mxu2 %v3022_v3  ;;  %v2905_v40 = vld [vmem:[%s3204_s11 + $0x38] sm:$0xf0]  ;;  %v3030_v41 = vld [vmem:[%s3881_s1 + $0x60] sm:$0xff]  ;;  %v2631_v44 = vor.u32 %v2995_v38, %v2630_v37  ;;  %v3036_v50 = vld [vmem:[%s3881_s1 + $0x90] sm:$0xff] }
  0x1a   : > { %3065 = vmatpush.bf16.msra.mxu3 %v3022_v3  ;;  %1382 = vmatpush.bf16.msra.mxu0 %v3022_v3  ;;  %v2271_v45 = vor.u32 %v2905_v40, %v2270_v39  ;;  %v3029_v48 = vld [vmem:[%s3881_s1 + $0x58] sm:$0xff]  ;;  %v3044_v51 = vld [vmem:[%s3881_s1 + $0xd0] sm:$0xff]  ;;  %v2410_v52 = vld [vmem:[%s3204_s11 + $0x140] sm:$0xf] }
  0x1b   : > { %v2940_v53 = vld [vmem:[%s3204_s11 + $0x150] sm:$0xf0]  ;;  %v2530_v54 = vld [vmem:[%s3204_s11 + $0x230] sm:$0xf]  ;;  %v2970_v55 = vld [vmem:[%s3204_s11 + $0x240] sm:$0xf0] }
  0x1c   : > { %v2650_v56 = vld [vmem:[%s3204_s11 + $0x320] sm:$0xf]  ;;  %v3000_v57 = vld [vmem:[%s3204_s11 + $0x330] sm:$0xf0]  ;;  %v2290_v58 = vld [vmem:[%s3204_s11 + $0x50] sm:$0xf]  ;;  %v2411_v60 = vor.u32 %v2940_v53, %v2410_v52  ;;  %v2531_v61 = vor.u32 %v2970_v55, %v2530_v54 }
  0x1d   : > { %3066 = vmatpush.bf16.msra.mxu1 %v3021_v4  ;;  %3067 = vmatpush.bf16.msra.mxu2 %v3021_v4  ;;  %v2910_v59 = vld [vmem:[%s3204_s11 + $0x60] sm:$0xf0]  ;;  %v2651_v62 = vor.u32 %v3000_v57, %v2650_v56  ;;  %v3028_v0 = vld [vmem:[%s3881_s1 + $0x50] sm:$0xff]  ;;  %v3035_v1 = vld [vmem:[%s3881_s1 + $0x88] sm:$0xff] }
  0x1e   : > { %3068 = vmatpush.bf16.msra.mxu3 %v3021_v4  ;;  %1383 = vmatpush.bf16.msra.mxu0 %v3021_v4  ;;  %v2291_v63 = vor.u32 %v2910_v59, %v2290_v58  ;;  %v3043_v2 = vld [vmem:[%s3881_s1 + $0xc8] sm:$0xff]  ;;  %v3005_v9 = vld [vmem:[%s3204_s11 + $0x358] sm:$0xf0]  ;;  %v2310_v10 = vld [vmem:[%s3204_s11 + $0x78] sm:$0xf] }
  0x1f   : > { %v3027_v3 = vld [vmem:[%s3881_s1 + $0x48] sm:$0xff]  ;;  %v2985_v35 = vld [vmem:[%s3204_s11 + $0x2b8] sm:$0xf0]  ;;  %v2710_v36 = vld [vmem:[%s3204_s11 + $0x398] sm:$0xf] }
  0x20   : > { %v2430_v4 = vld [vmem:[%s3204_s11 + $0x168] sm:$0xf]  ;;  %v2915_v11 = vld [vmem:[%s3204_s11 + $0x88] sm:$0xf0]  ;;  %v2925_v39 = vld [vmem:[%s3204_s11 + $0xd8] sm:$0xf0] }
  0x21   : > { %3069 = vmatpush.bf16.msra.mxu1 %v3020_v5  ;;  %3070 = vmatpush.bf16.msra.mxu2 %v3020_v5  ;;  %v2670_v8 = vld [vmem:[%s3204_s11 + $0x348] sm:$0xf]  ;;  %v2311_v15 = vor.u32 %v2915_v11, %v2310_v10  ;;  %v2955_v33 = vld [vmem:[%s3204_s11 + $0x1c8] sm:$0xf0]  ;;  %v2272_v57 = vld [vmem:[%s3204_s11 + $0x3c] sm:$0xf0] }
  0x22   : > { %3071 = vmatpush.bf16.msra.mxu3 %v3020_v5  ;;  %1384 = vmatpush.bf16.msra.mxu0 %v3020_v5  ;;  %v2945_v5 = vld [vmem:[%s3204_s11 + $0x178] sm:$0xf0]  ;;  %v2671_v14 = vor.u32 %v3005_v9, %v2670_v8  ;;  %v2590_v34 = vld [vmem:[%s3204_s11 + $0x2a8] sm:$0xf]  ;;  %v3015_v37 = vld [vmem:[%s3204_s11 + $0x3a8] sm:$0xf0] }
  0x23   : > { %v2431_v12 = vor.u32 %v2945_v5, %v2430_v4  ;;  %v2350_v38 = vld [vmem:[%s3204_s11 + $0xc8] sm:$0xf]  ;;  %v2903_v56 = vld [vmem:[%s3204_s11 + $0x2c] sm:$0xf]  ;;  %v2278_v58 = vld [vmem:[%s3204_s11 + $0x30] sm:$0xf] }
  0x24   : > { %v2906_v59 = vld [vmem:[%s3204_s11 + $0x40] sm:$0xf0]  ;;  %v2908_v4 = vld [vmem:[%s3204_s11 + $0x54] sm:$0xf]  ;;  %v2292_v5 = vld [vmem:[%s3204_s11 + $0x64] sm:$0xf0] }
  0x25   : > { %3072 = vmatpush.bf16.msra.mxu1 %v3019_v6  ;;  %3073 = vmatpush.bf16.msra.mxu2 %v3019_v6  ;;  %v2909_v8 = vld [vmem:[%s3204_s11 + $0x5c] sm:$0xf]  ;;  %v2300_v9 = vld [vmem:[%s3204_s11 + $0x6c] sm:$0xf0]  ;;  %v2306_v10 = vld [vmem:[%s3204_s11 + $0x60] sm:$0xf] }
  0x26   : > { %3074 = vmatpush.bf16.msra.mxu3 %v3019_v6  ;;  %1385 = vmatpush.bf16.msra.mxu0 %v3019_v6  ;;  %v2550_v6 = vld [vmem:[%s3204_s11 + $0x258] sm:$0xf]  ;;  %v2912_v11 = vld [vmem:[%s3204_s11 + $0x70] sm:$0xf0] }
  0x29   : > { %3075 = vmatpush.bf16.msra.mxu1 %v3018_v7  ;;  %3076 = vmatpush.bf16.msra.mxu2 %v3018_v7 }
  0x2a   : > { %3077 = vmatpush.bf16.msra.mxu3 %v3018_v7  ;;  %1386 = vmatpush.bf16.msra.mxu0 %v3018_v7  ;;  %v2975_v7 = vld [vmem:[%s3204_s11 + $0x268] sm:$0xf0] }
  0x2b   : > { %v2551_v13 = vor.u32 %v2975_v7, %v2550_v6  ;;  %v2298_v6 = vld [vmem:[%s3204_s11 + $0x58] sm:$0xf]  ;;  %v2911_v7 = vld [vmem:[%s3204_s11 + $0x68] sm:$0xf0] }
  0x2c   : > { %1417 = vmatmul.bf16.vlgmr.msra.gmra.mxu1 %v2371_v18  ;;  %1447 = vmatmul.bf16.vlgmr.msra.gmra.mxu2 %v2491_v19  ;;  %v3042_v18 = vld [vmem:[%s3881_s1 + $0xc0] sm:$0xff] }
  0x2d   : > { %1637 = vmatpush.bf16.msrb.mxu2 %v3041_v16  ;;  %1477 = vmatmul.bf16.vlgmr.msra.gmra.mxu3 %v2611_v20  ;;  %v3050_v16 = vld [vmem:[%s3881_s1 + $0x100] sm:$0xff]  ;;  %v2450_v20 = vld [vmem:[%s3204_s11 + $0x190] sm:$0xf] }
  0x2e   : > { %1766 = vmatpush.bf16.msrb.mxu3 %v3049_v17  ;;  %1387 = vmatmul.bf16.vlgmr.msra.gmra.mxu0 %v2251_v21  ;;  %v3034_v17 = vld [vmem:[%s3881_s1 + $0x80] sm:$0xff] }
  0x2f   : > { %1508 = vmatpush.bf16.msrb.mxu1 %v3033_v22  ;;  %1899 = vmatpush.bf16.msrb.mxu0 %v3053_v23  ;;  %v3026_v19 = vld [vmem:[%s3881_s1 + $0x40] sm:$0xff]  ;;  %v2980_v23 = vld [vmem:[%s3204_s11 + $0x290] sm:$0xf0] }
  0x30   : > { %v2950_v21 = vld [vmem:[%s3204_s11 + $0x1a0] sm:$0xf0]  ;;  %v2570_v22 = vld [vmem:[%s3204_s11 + $0x280] sm:$0xf] }
  0x31   : > { %1638 = vmatpush.bf16.msrb.mxu2 %v3040_v24  ;;  %v2690_v24 = vld [vmem:[%s3204_s11 + $0x370] sm:$0xf] }
  0x32   : > { %1767 = vmatpush.bf16.msrb.mxu3 %v3048_v25  ;;  %v3010_v25 = vld [vmem:[%s3204_s11 + $0x380] sm:$0xf0] }
  0x33   : > { %1509 = vmatpush.bf16.msrb.mxu1 %v3032_v26  ;;  %1900 = vmatpush.bf16.msrb.mxu0 %v3052_v27  ;;  %v2330_v26 = vld [vmem:[%s3204_s11 + $0xa0] sm:$0xf]  ;;  %v2920_v27 = vld [vmem:[%s3204_s11 + $0xb0] sm:$0xf0] }
  0x35   : > { %1639 = vmatpush.bf16.msrb.mxu2 %v3039_v28  ;;  %v2451_v28 = vor.u32 %v2950_v21, %v2450_v20 }
  0x36   : > { %1768 = vmatpush.bf16.msrb.mxu3 %v3047_v29  ;;  %v2571_v29 = vor.u32 %v2980_v23, %v2570_v22  ;;  %v2913_v22 = vld [vmem:[%s3204_s11 + $0x7c] sm:$0xf]  ;;  %v2312_v23 = vld [vmem:[%s3204_s11 + $0x8c] sm:$0xf0] }
  0x37   : > { %1510 = vmatpush.bf16.msrb.mxu1 %v3031_v30  ;;  %1901 = vmatpush.bf16.msrb.mxu0 %v3051_v49  ;;  %v2691_v30 = vor.u32 %v3010_v25, %v2690_v24  ;;  %v2260_v49 = vld [vmem:[%s3204_s11 + $0x1c] sm:$0xf0]  ;;  %v2916_v25 = vld [vmem:[%s3204_s11 + $0x90] sm:$0xf0] }
  0x38   : > { %v2318_v24 = vld [vmem:[%s3204_s11 + $0x80] sm:$0xf] }
  0x39   : > { %1640 = vmatpush.bf16.msrb.mxu2 %v3038_v31  ;;  %v2331_v31 = vor.u32 %v2920_v27, %v2330_v26  ;;  %v2914_v26 = vld [vmem:[%s3204_s11 + $0x84] sm:$0xf]  ;;  %v2320_v27 = vld [vmem:[%s3204_s11 + $0x94] sm:$0xf0] }
  0x3a   : > { %1769 = vmatpush.bf16.msrb.mxu3 %v3046_v32  ;;  %v2470_v32 = vld [vmem:[%s3204_s11 + $0x1b8] sm:$0xf] }
  0x3b   : > { %1511 = vmatpush.bf16.msrb.mxu1 %v3030_v41  ;;  %1902 = vmatpush.bf16.msrb.mxu0 %v3050_v16  ;;  %v2471_v40 = vor.u32 %v2955_v33, %v2470_v32  ;;  %v2591_v41 = vor.u32 %v2985_v35, %v2590_v34  ;;  %v2307_v16 = vor.u32 %v2912_v11, %v2306_v10 }
  0x3c   : > { %1422 = vmatmul.bf16.gmra.mxu1 %v2391_v42  ;;  %1452 = vmatmul.bf16.gmra.mxu2 %v2511_v43  ;;  %v2711_v42 = vor.u32 %v3015_v37, %v2710_v36  ;;  %v2351_v43 = vor.u32 %v2925_v39, %v2350_v38  ;;  %v2315_v32 = vor.u32 %v2913_v22, %v2312_v23 }
  0x3d   : > { %1482 = vmatmul.bf16.gmra.mxu3 %v2631_v44  ;;  %1641 = vmatpush.bf16.msrb.mxu2 %v3037_v46  ;;  %v2898_v44 = vld [vmem:[%s3204_s11 + $0x4] sm:$0xf]  ;;  %v2258_v46 = vld [vmem:[%s3204_s11 + $0x8] sm:$0xf]  ;;  %v2319_v33 = vor.u32 %v2916_v25, %v2318_v24  ;;  %v2323_v35 = vor.u32 %v2914_v26, %v2320_v27  ;;  %v2928_v24 = vld [vmem:[%s3204_s11 + $0xf4] sm:$0xf] }
  0x3e   : > { %1392 = vmatmul.bf16.gmra.mxu0 %v2271_v45  ;;  %1770 = vmatpush.bf16.msrb.mxu3 %v3045_v47  ;;  %v2252_v45 = vld [vmem:[%s3204_s11 + $0x14] sm:$0xf0]  ;;  %v2901_v47 = vld [vmem:[%s3204_s11 + $0x18] sm:$0xf0]  ;;  %v2372_v25 = vld [vmem:[%s3204_s11 + $0x104] sm:$0xf0] }
  0x3f   : > { %1512 = vmatpush.bf16.msrb.mxu1 %v3029_v48  ;;  %v2899_v48 = vld [vmem:[%s3204_s11 + $0xc] sm:$0xf]  ;;  %v2255_v52 = vor.u32 %v2898_v44, %v2252_v45  ;;  %v2259_v53 = vor.u32 %v2901_v47, %v2258_v46  ;;  %v2338_v44 = vld [vmem:[%s3204_s11 + $0xa8] sm:$0xf]  ;;  %v2921_v45 = vld [vmem:[%s3204_s11 + $0xb8] sm:$0xf0] }
  0x40   : > { %v2263_v54 = vor.u32 %v2899_v48, %v2260_v49  ;;  %v2919_v46 = vld [vmem:[%s3204_s11 + $0xac] sm:$0xf]  ;;  %v2340_v47 = vld [vmem:[%s3204_s11 + $0xbc] sm:$0xf0]  ;;  %v2346_v48 = vld [vmem:[%s3204_s11 + $0xb0] sm:$0xf] }
  0x41   : > { %1642 = vmatpush.bf16.msrb.mxu2 %v3036_v50  ;;  %v2266_v50 = vld [vmem:[%s3204_s11 + $0x10] sm:$0xf]  ;;  %v2922_v49 = vld [vmem:[%s3204_s11 + $0xc0] sm:$0xf0]  ;;  %v2378_v26 = vld [vmem:[%s3204_s11 + $0xf8] sm:$0xf] }
  0x42   : > { %1771 = vmatpush.bf16.msrb.mxu3 %v3044_v51  ;;  %v2902_v51 = vld [vmem:[%s3204_s11 + $0x20] sm:$0xf0]  ;;  %v2931_v27 = vld [vmem:[%s3204_s11 + $0x108] sm:$0xf0] }
  0x43   : > { %1513 = vmatpush.bf16.msrb.mxu1 %v3028_v0  ;;  %v2267_v55 = vor.u32 %v2902_v51, %v2266_v50  ;;  %v2275_v0 = vor.u32 %v2903_v56, %v2272_v57  ;;  %v2347_v56 = vor.u32 %v2922_v49, %v2346_v48 }
  0x45   : > { %1643 = vmatpush.bf16.msrb.mxu2 %v3035_v1  ;;  %v2279_v1 = vor.u32 %v2906_v59, %v2278_v58 }
  0x46   : > { %1772 = vmatpush.bf16.msrb.mxu3 %v3043_v2 }
  0x47   : > { %1514 = vmatpush.bf16.msrb.mxu1 %v3027_v3 }
  0x49   : > { %1644 = vmatpush.bf16.msrb.mxu2 %v3034_v17 }
  0x4a   : > { %1773 = vmatpush.bf16.msrb.mxu3 %v3042_v18 }
  0x4b   : > { %1515 = vmatpush.bf16.msrb.mxu1 %v3026_v19 }
  0x4c   : > { %1427 = vmatmul.bf16.gmra.mxu1 %v2411_v60  ;;  %1457 = vmatmul.bf16.gmra.mxu2 %v2531_v61  ;;  %v2904_v60 = vld [vmem:[%s3204_s11 + $0x34] sm:$0xf]  ;;  %v2280_v61 = vld [vmem:[%s3204_s11 + $0x44] sm:$0xf0] }
  0x4d   : > { %1487 = vmatmul.bf16.gmra.mxu3 %v2651_v62  ;;  %v2286_v62 = vld [vmem:[%s3204_s11 + $0x38] sm:$0xf]  ;;  %v2283_v2 = vor.u32 %v2904_v60, %v2280_v61 }
  0x4e   : > { %1397 = vmatmul.bf16.gmra.mxu0 %v2291_v63  ;;  %v2907_v63 = vld [vmem:[%s3204_s11 + $0x48] sm:$0xf0] }
  0x4f   : > { %v2287_v3 = vor.u32 %v2907_v63, %v2286_v62  ;;  %v2923_v62 = vld [vmem:[%s3204_s11 + $0xcc] sm:$0xf]  ;;  %v2352_v63 = vld [vmem:[%s3204_s11 + $0xdc] sm:$0xf0] }
  0x5c   : > { %1432 = vmatmul.bf16.gmra.mxu1 %v2431_v12  ;;  %1462 = vmatmul.bf16.gmra.mxu2 %v2551_v13  ;;  %v2295_v12 = vor.u32 %v2908_v4, %v2292_v5  ;;  %v2299_v13 = vor.u32 %v2911_v7, %v2298_v6  ;;  %v2366_v4 = vld [vmem:[%s3204_s11 + $0xd8] sm:$0xf]  ;;  %v2927_v5 = vld [vmem:[%s3204_s11 + $0xe8] sm:$0xf0] }
  0x5d   : > { %1492 = vmatmul.bf16.gmra.mxu3 %v2671_v14 }
  0x5e   : > { %1402 = vmatmul.bf16.gmra.mxu0 %v2311_v15  ;;  %v2303_v15 = vor.u32 %v2909_v8, %v2300_v9  ;;  %v2355_v8 = vor.u32 %v2923_v62, %v2352_v63  ;;  %v2398_v62 = vld [vmem:[%s3204_s11 + $0x120] sm:$0xf]  ;;  %v2936_v63 = vld [vmem:[%s3204_s11 + $0x130] sm:$0xf0] }
  0x6c   : > { %1437 = vmatmul.bf16.gmra.mxu1 %v2451_v28  ;;  %1467 = vmatmul.bf16.gmra.mxu2 %v2571_v29  ;;  %v2326_v28 = vld [vmem:[%s3204_s11 + $0x88] sm:$0xf]  ;;  %v2917_v29 = vld [vmem:[%s3204_s11 + $0x98] sm:$0xf0] }
  0x6d   : > { %1497 = vmatmul.bf16.gmra.mxu3 %v2691_v30  ;;  %v2327_v36 = vor.u32 %v2917_v29, %v2326_v28  ;;  %v2929_v28 = vld [vmem:[%s3204_s11 + $0xfc] sm:$0xf]  ;;  %v2380_v29 = vld [vmem:[%s3204_s11 + $0x10c] sm:$0xf0] }
  0x6e   : > { %1407 = vmatmul.bf16.gmra.mxu0 %v2331_v31 }
  0x7c   : > { %1442 = vmatmul.bf16.gmra.mxu1 %v2471_v40  ;;  %1472 = vmatmul.bf16.gmra.mxu2 %v2591_v41 }
  0x7d   : > { %1502 = vmatmul.bf16.gmra.mxu3 %v2711_v42  ;;  %v2918_v42 = vld [vmem:[%s3204_s11 + $0xa4] sm:$0xf] }
  0x7e   : > { %1412 = vmatmul.bf16.gmra.mxu0 %v2351_v43  ;;  %v2332_v43 = vld [vmem:[%s3204_s11 + $0xb4] sm:$0xf0] }
  0x8c   : > { %1516 = vmatmul.bf16.vlgmr.msrb.gmra.mxu1 %v2255_v52  ;;  %1645 = vmatmul.bf16.vlgmr.msrb.gmra.mxu2 %v2259_v53  ;;  %v2335_v52 = vor.u32 %v2918_v42, %v2332_v43  ;;  %v2339_v53 = vor.u32 %v2921_v45, %v2338_v44  ;;  %v2375_v42 = vor.u32 %v2928_v24, %v2372_v25 }
  0x8d   : > { %1774 = vmatmul.bf16.vlgmr.msrb.gmra.mxu3 %v2263_v54  ;;  %v2379_v43 = vor.u32 %v2931_v27, %v2378_v26  ;;  %v2383_v45 = vor.u32 %v2929_v28, %v2380_v29 }
  0x8e   : > { %2872 = vmatmul.msk.bf16.vlgmr.msrb.gmra.mxu0 %vm1306_vm0, %v2267_v55  ;;  %v2343_v55 = vor.u32 %v2919_v46, %v2340_v47 }
  0x9c   : > { %1521 = vmatmul.bf16.gmra.mxu1 %v2275_v0  ;;  %1650 = vmatmul.bf16.gmra.mxu2 %v2279_v1  ;;  %v2358_v0 = vld [vmem:[%s3204_s11 + $0xd0] sm:$0xf]  ;;  %v2926_v1 = vld [vmem:[%s3204_s11 + $0xe0] sm:$0xf0] }
  0x9d   : > { %1779 = vmatmul.bf16.gmra.mxu3 %v2283_v2  ;;  %v2924_v2 = vld [vmem:[%s3204_s11 + $0xd4] sm:$0xf]  ;;  %v2359_v9 = vor.u32 %v2926_v1, %v2358_v0  ;;  %v2934_v0 = vld [vmem:[%s3204_s11 + $0x124] sm:$0xf]  ;;  %v2400_v1 = vld [vmem:[%s3204_s11 + $0x134] sm:$0xf0] }
  0x9e   : > { %2873 = vmatmul.msk.bf16.gmra.mxu0 %vm1306_vm0, %v2287_v3  ;;  %v2360_v3 = vld [vmem:[%s3204_s11 + $0xe4] sm:$0xf0] }
  0x9f   : > { %v2363_v11 = vor.u32 %v2924_v2, %v2360_v3  ;;  %v2406_v2 = vld [vmem:[%s3204_s11 + $0x128] sm:$0xf]  ;;  %v2937_v3 = vld [vmem:[%s3204_s11 + $0x138] sm:$0xf0] }
  0xa0   : > { %v2407_v24 = vor.u32 %v2937_v3, %v2406_v2 }
  0xa9   : > { %v3367_v14 = vpop.f32.mrf.mxu1 }
  0xab   : > { %v3369_v17 = vpop.f32.mrf.mxu0 }
  0xac   : > { %1526 = vmatmul.bf16.gmra.mxu1 %v2295_v12  ;;  %1655 = vmatmul.bf16.gmra.mxu2 %v2299_v13  ;;  %v2367_v12 = vor.u32 %v2927_v5, %v2366_v4 }
  0xad   : > { %1784 = vmatmul.bf16.gmra.mxu3 %v2303_v15 }
  0xae   : > { %2874 = vmatmul.msk.bf16.gmra.mxu0 %vm1306_vm0, %v2307_v16 }
  0xaf   : > { %v3372_v18 = vpop.f32.mrf.mxu2 }
  0xb0   : > { %v3374_v19 = vpop.f32.mrf.mxu3 }
  0xb1   : > { %v3376_v20 = vpop.f32.mrf.mxu1 }
  0xb3   : > { %v3378_v21 = vpop.f32.mrf.mxu0 }
  0xb7   : > { %v3388_v30 = vpop.f32.mrf.mxu2 }
  0xb8   : > { %v3390_v31 = vpop.f32.mrf.mxu3 }
  0xb9   : > { %v3392_v34 = vpop.f32.mrf.mxu1 }
  0xbb   : > { %v3394_v37 = vpop.f32.mrf.mxu0 }
  0xbc   : > { %1531 = vmatmul.bf16.gmra.mxu1 %v2315_v32  ;;  %1660 = vmatmul.bf16.gmra.mxu2 %v2319_v33  ;;  %v2386_v32 = vld [vmem:[%s3204_s11 + $0x100] sm:$0xf]  ;;  %v2932_v33 = vld [vmem:[%s3204_s11 + $0x110] sm:$0xf0] }
  0xbd   : > { %1789 = vmatmul.bf16.gmra.mxu3 %v2323_v35  ;;  %v2387_v46 = vor.u32 %v2932_v33, %v2386_v32  ;;  %v2938_v32 = vld [vmem:[%s3204_s11 + $0x144] sm:$0xf]  ;;  %v2412_v33 = vld [vmem:[%s3204_s11 + $0x154] sm:$0xf0] }
  0xbe   : > { %2875 = vmatmul.msk.bf16.gmra.mxu0 %vm1306_vm0, %v2327_v36 }
  0xbf   : > { %v3397_v38 = vpop.f32.mrf.mxu2 }
  0xc0   : > { %v3399_v39 = vpop.f32.mrf.mxu3 }
  0xc1   : > { %v3401_v40 = vpop.f32.mrf.mxu1 }
  0xc3   : > { %v3403_v41 = vpop.f32.mrf.mxu0 }
  0xc7   : > { %v3413_v50 = vpop.f32.mrf.mxu2 }
  0xc8   : > { %v3415_v51 = vpop.f32.mrf.mxu3 }
  0xc9   : > { %3885 = vst [vmem:[#allocation2_spill] sm:$0xff] %v3415_v51  ;;  %v3417_v54 = vpop.f32.mrf.mxu1 }
  0xcb   : > { %v3419_v57 = vpop.f32.mrf.mxu0 }
  0xcc   : > { %1536 = vmatmul.bf16.gmra.mxu1 %v2335_v52  ;;  %1665 = vmatmul.bf16.gmra.mxu2 %v2339_v53 }
  0xcd   : > { %1794 = vmatmul.bf16.gmra.mxu3 %v2343_v55  ;;  %v2933_v55 = vld [vmem:[%s3204_s11 + $0x11c] sm:$0xf] }
  0xce   : > { %2876 = vmatmul.msk.bf16.gmra.mxu0 %vm1306_vm0, %v2347_v56  ;;  %v2392_v56 = vld [vmem:[%s3204_s11 + $0x12c] sm:$0xf0] }
  0xcf   : > { %v3422_v58 = vpop.f32.mrf.mxu2 }
  0xd0   : > { %v3424_v59 = vpop.f32.mrf.mxu3 }
  0xd1   : > { %3886 = vst [vmem:[#allocation3_spill] sm:$0xff] %v3424_v59  ;;  %v3426_v60 = vpop.f32.mrf.mxu1 }
  0xd3   : > { %v3428_v61 = vpop.f32.mrf.mxu0 }
  0xd7   : > { %v3438_v6 = vpop.f32.mrf.mxu2 }
  0xd8   : > { %v3440_v7 = vpop.f32.mrf.mxu3 }
  0xd9   : > { %3887 = vst [vmem:[#allocation4_spill] sm:$0xff] %v3440_v7  ;;  %v3442_v10 = vpop.f32.mrf.mxu1 }
  0xdb   : > { %v3444_v13 = vpop.f32.mrf.mxu0 }
  0xdc   : > { %1541 = vmatmul.bf16.gmra.mxu1 %v2355_v8  ;;  %1670 = vmatmul.bf16.gmra.mxu2 %v2359_v9  ;;  %v2395_v8 = vor.u32 %v2933_v55, %v2392_v56  ;;  %v2399_v9 = vor.u32 %v2936_v63, %v2398_v62  ;;  %v2426_v55 = vld [vmem:[%s3204_s11 + $0x150] sm:$0xf]  ;;  %v2942_v56 = vld [vmem:[%s3204_s11 + $0x160] sm:$0xf0] }
  0xdd   : > { %1799 = vmatmul.bf16.gmra.mxu3 %v2363_v11 }
  0xde   : > { %2877 = vmatmul.msk.bf16.gmra.mxu0 %vm1306_vm0, %v2367_v12  ;;  %v2403_v12 = vor.u32 %v2934_v0, %v2400_v1  ;;  %v2415_v0 = vor.u32 %v2938_v32, %v2412_v33 }
  0xdf   : > { %v3447_v15 = vpop.f32.mrf.mxu2 }
  0xe0   : > { %v3449_v16 = vpop.f32.mrf.mxu3 }
  0xe1   : > { %3888 = vst [vmem:[#allocation5_spill] sm:$0xff] %v3449_v16  ;;  %v3451_v22 = vpop.f32.mrf.mxu1 }
  0xe3   : > { %v3453_v23 = vpop.f32.mrf.mxu0 }
  0xe7   : > { %v3463_v35 = vpop.f32.mrf.mxu2 }
  0xe8   : > { %v3465_v36 = vpop.f32.mrf.mxu3 }
  0xe9   : > { %3889 = vst [vmem:[#allocation6_spill] sm:$0xff] %v3465_v36  ;;  %v3467_v44 = vpop.f32.mrf.mxu1 }
  0xeb   : > { %v3469_v47 = vpop.f32.mrf.mxu0 }
  0xec   : > { %1546 = vmatmul.bf16.gmra.mxu1 %v2375_v42  ;;  %1675 = vmatmul.bf16.gmra.mxu2 %v2379_v43  ;;  %v2418_v42 = vld [vmem:[%s3204_s11 + $0x148] sm:$0xf]  ;;  %v2941_v43 = vld [vmem:[%s3204_s11 + $0x158] sm:$0xf0] }
  0xed   : > { %1804 = vmatmul.bf16.gmra.mxu3 %v2383_v45  ;;  %v2939_v45 = vld [vmem:[%s3204_s11 + $0x14c] sm:$0xf]  ;;  %v2419_v1 = vor.u32 %v2941_v43, %v2418_v42 }
  0xee   : > { %2878 = vmatmul.msk.bf16.gmra.mxu0 %vm1306_vm0, %v2387_v46  ;;  %v2420_v46 = vld [vmem:[%s3204_s11 + $0x15c] sm:$0xf0] }
  0xef   : > { %v3472_v48 = vpop.f32.mrf.mxu2  ;;  %v2423_v3 = vor.u32 %v2939_v45, %v2420_v46  ;;  %v3529_v46 = vld [vmem:[%s3883_s3] ss:$0 sm:$0xff] }
  0xf0   : > { %v3474_v49 = vpop.f32.mrf.mxu3 }
  0xf1   : > { %3890 = vst [vmem:[#allocation7_spill] sm:$0xff] %v3474_v49  ;;  %v3476_v52 = vpop.f32.mrf.mxu1 }
  0xf3   : > { %v3478_v53 = vpop.f32.mrf.mxu0 }
  0xf7   : > { %v3488_v4 = vpop.f32.mrf.mxu2 }
  0xf8   : > { %v3490_v5 = vpop.f32.mrf.mxu3 }
  0xf9   : > { %3891 = vst [vmem:[#allocation8_spill] sm:$0xff] %v3490_v5  ;;  %v3492_v11 = vpop.f32.mrf.mxu1 }
  0xfb   : > { %v3494_v25 = vpop.f32.mrf.mxu0 }
  0xfc   : > { %1551 = vmatmul.bf16.gmra.mxu1 %v2395_v8  ;;  %1680 = vmatmul.bf16.gmra.mxu2 %v2399_v9  ;;  %v2427_v8 = vor.u32 %v2942_v56, %v2426_v55  ;;  %v3520_v9 = vld [vmem:[%s3882_s2] ss:$0 sm:$0xff] }
  0xfd   : > { %1809 = vmatmul.bf16.gmra.mxu3 %v2403_v12  ;;  %v1391_v56 = vadd.f32 %v3520_v9, %v3378_v21  ;;  %v1394_v51 = vadd.f32 %v3520_v9, %v3394_v37 }
  0xfe   : > { %2879 = vmatmul.msk.bf16.gmra.mxu0 %vm1306_vm0, %v2407_v24  ;;  %v1389_v24 = vadd.f32 %v3520_v9, %v3369_v17 }
  0xff   : > { %v3497_v26 = vpop.f32.mrf.mxu2 }
 0x100   : > { %v3499_v27 = vpop.f32.mrf.mxu3 }
 0x101   : > { %3892 = vst [vmem:[#allocation9_spill] sm:$0xff] %v3499_v27  ;;  %v3501_v28 = vpop.f32.mrf.mxu1 }
 0x103   : > { %v3503_v29 = vpop.f32.mrf.mxu0 }
 0x107   : > { %v3513_v62 = vpop.f32.mrf.mxu2 }
 0x108   : > { %v3515_v63 = vpop.f32.mrf.mxu3 }
 0x109   : > { %3893 = vst [vmem:[#allocation10_spill] sm:$0xff] %v3515_v63  ;;  %v1517_v2 = vpop.f32.mrf.mxu1  ;;  %v2947_v63 = vld [vmem:[%s3204_s11 + $0x188] sm:$0xf0] }
 0x10a   : > { %v1518_v32 = vadd.f32 %v1517_v2, %v1389_v24  ;;  %v2432_v2 = vld [vmem:[%s3204_s11 + $0x17c] sm:$0xf0]  ;;  %v2944_v24 = vld [vmem:[%s3204_s11 + $0x174] sm:$0xf] }
 0x10b   : > { %v1904_v12 = vpop.f32.mrf.mxu0 }
 0x10c   : > { %1556 = vmatmul.bf16.gmra.mxu1 %v2415_v0  ;;  %1685 = vmatmul.bf16.gmra.mxu2 %v2419_v1  ;;  %v2943_v1 = vld [vmem:[%s3204_s11 + $0x16c] sm:$0xf] }
 0x10d   : > { %1814 = vmatmul.bf16.gmra.mxu3 %v2423_v3  ;;  %v2438_v3 = vld [vmem:[%s3204_s11 + $0x170] sm:$0xf] }
 0x10e   : > { %2880 = vmatmul.msk.bf16.gmra.mxu0 %vm1306_vm0, %v2427_v8  ;;  %v2946_v8 = vld [vmem:[%s3204_s11 + $0x180] sm:$0xf0] }
 0x10f   : > { %v1646_v33 = vpop.f32.mrf.mxu2  ;;  %v2439_v5 = vor.u32 %v2946_v8, %v2438_v3  ;;  %v2458_v3 = vld [vmem:[%s3204_s11 + $0x198] sm:$0xf]  ;;  %v2951_v8 = vld [vmem:[%s3204_s11 + $0x1a8] sm:$0xf0] }
 0x110   : > { %v1647_v42 = vadd.f32 %v1646_v33, %v1518_v32  ;;  %v1775_v43 = vpop.f32.mrf.mxu3 }
 0x111   : > { %v1519_v45 = vpop.f32.mrf.mxu1 }
 0x112   : > { %v1776_v17 = vadd.f32 %v1775_v43, %v1647_v42  ;;  %v1520_v33 = vadd.f32 %v1519_v45, %v1391_v56  ;;  %v2440_v42 = vld [vmem:[%s3204_s11 + $0x184] sm:$0xf0]  ;;  %v2446_v43 = vld [vmem:[%s3204_s11 + $0x178] sm:$0xf] }
 0x113   : > { %v1906_v55 = vpop.f32.mrf.mxu0  ;;  %v2443_v36 = vor.u32 %v2944_v24, %v2440_v42  ;;  %v2447_v16 = vor.u32 %v2947_v63, %v2446_v43  ;;  %v2952_v42 = vld [vmem:[%s3204_s11 + $0x1b0] sm:$0xf0] }
 0x114   : > { %v1905_v0 = vadd.f32 %v1904_v12, %v1776_v17  ;;  %v2435_v17 = vor.u32 %v2943_v1, %v2432_v2  ;;  %v2452_v2 = vld [vmem:[%s3204_s11 + $0x1a4] sm:$0xf0] }
 0x116   : > { %v2028_v32 = vmax.f32 %v1905_v0, %v3529_v46 }
 0x117   : > { %v1648_v27 = vpop.f32.mrf.mxu2 }
 0x118   : > { %2076 = vst [vmem:[%s3538_s14] sm:$0xff] %v2028_v32  ;;  %v1649_v21 = vadd.f32 %v1648_v27, %v1520_v33  ;;  %v1777_v12 = vpop.f32.mrf.mxu3  ;;  %v2460_v32 = vld [vmem:[%s3204_s11 + $0x1ac] sm:$0xf0]  ;;  %v2466_v33 = vld [vmem:[%s3204_s11 + $0x1a0] sm:$0xf] }
 0x119   : > { %v1522_v49 = vpop.f32.mrf.mxu1 }
 0x11a   : > { %v1778_v7 = vadd.f32 %v1777_v12, %v1649_v21  ;;  %v1523_v45 = vadd.f32 %v1522_v49, %v1394_v51  ;;  %v2949_v51 = vld [vmem:[%s3204_s11 + $0x19c] sm:$0xf] }
 0x11b   : > { %v1909_v59 = vpop.f32.mrf.mxu0 }
 0x11c   : > { %v1907_v0 = vadd.f32 %v1906_v55, %v1778_v7  ;;  %1561 = vmatmul.bf16.gmra.mxu1 %v2435_v17  ;;  %1690 = vmatmul.bf16.gmra.mxu2 %v2439_v5 }
 0x11d   : > { %1819 = vmatmul.bf16.gmra.mxu3 %v2443_v36  ;;  %v1396_v36 = vadd.f32 %v3520_v9, %v3403_v41 }
 0x11e   : > { %2881 = vmatmul.msk.bf16.gmra.mxu0 %vm1306_vm0, %v2447_v16  ;;  %v2029_v27 = vmax.f32 %v1907_v0, %v3529_v46  ;;  %v2948_v16 = vld [vmem:[%s3204_s11 + $0x194] sm:$0xf]  ;;  %v2459_v0 = vor.u32 %v2951_v8, %v2458_v3  ;;  %v1401_v3 = vadd.f32 %v3520_v9, %v3428_v61 }
 0x11f   : > { %v1651_v63 = vpop.f32.mrf.mxu2  ;;  %v2455_v17 = vor.u32 %v2948_v16, %v2452_v2 }
 0x120   : > { %2077 = vst [vmem:[%s3538_s14 + $0x8] sm:$0xff] %v2029_v27  ;;  %v1652_v56 = vadd.f32 %v1651_v63, %v1523_v45  ;;  %v1780_v37 = vpop.f32.mrf.mxu3  ;;  %v2467_v27 = vor.u32 %v2952_v42, %v2466_v33  ;;  %v2954_v33 = vld [vmem:[%s3204_s11 + $0x1c4] sm:$0xf] }
 0x121   : > { %v1524_v7 = vpop.f32.mrf.mxu1 }
 0x122   : > { %v1781_v55 = vadd.f32 %v1780_v37, %v1652_v56  ;;  %v1525_v24 = vadd.f32 %v1524_v7, %v1396_v36  ;;  %v1399_v56 = vadd.f32 %v3520_v9, %v3419_v57 }
 0x123   : > { %v1911_v5 = vpop.f32.mrf.mxu0 }
 0x124   : > { %v1910_v1 = vadd.f32 %v1909_v59, %v1781_v55  ;;  %v2463_v59 = vor.u32 %v2949_v51, %v2460_v32  ;;  %v2953_v51 = vld [vmem:[%s3204_s11 + $0x1bc] sm:$0xf]  ;;  %v2956_v32 = vld [vmem:[%s3204_s11 + $0x1d0] sm:$0xf0] }
 0x126   : > { %v2030_v49 = vmax.f32 %v1910_v1, %v3529_v46 }
 0x127   : > { %v1653_v43 = vpop.f32.mrf.mxu2 }
 0x128   : > { %2078 = vst [vmem:[%s3538_s14 + $0x10] sm:$0xff] %v2030_v49  ;;  %v1654_v21 = vadd.f32 %v1653_v43, %v1525_v24  ;;  %v1782_v12 = vpop.f32.mrf.mxu3  ;;  %v2472_v49 = vld [vmem:[%s3204_s11 + $0x1cc] sm:$0xf0]  ;;  %v2478_v24 = vld [vmem:[%s3204_s11 + $0x1c0] sm:$0xf] }
 0x129   : > { %v1527_v41 = vpop.f32.mrf.mxu1 }
 0x12a   : > { %v1783_v45 = vadd.f32 %v1782_v12, %v1654_v21  ;;  %v1528_v55 = vadd.f32 %v1527_v41, %v1399_v56  ;;  %v2480_v21 = vld [vmem:[%s3204_s11 + $0x1d4] sm:$0xf0]  ;;  %v2486_v12 = vld [vmem:[%s3204_s11 + $0x1c8] sm:$0xf] }
 0x12b   : > { %v1914_v63 = vpop.f32.mrf.mxu0 }
 0x12c   : > { %v1912_v37 = vadd.f32 %v1911_v5, %v1783_v45  ;;  %1566 = vmatmul.bf16.gmra.mxu1 %v2455_v17  ;;  %1695 = vmatmul.bf16.gmra.mxu2 %v2459_v0  ;;  %v2957_v17 = vld [vmem:[%s3204_s11 + $0x1d8] sm:$0xf0]  ;;  %v2479_v45 = vor.u32 %v2956_v32, %v2478_v24  ;;  %v2958_v24 = vld [vmem:[%s3204_s11 + $0x1e4] sm:$0xf]  ;;  %v2492_v32 = vld [vmem:[%s3204_s11 + $0x1f4] sm:$0xf0] }
 0x12d   : > { %1824 = vmatmul.bf16.gmra.mxu3 %v2463_v59  ;;  %v2487_v56 = vor.u32 %v2957_v17, %v2486_v12  ;;  %v2500_v17 = vld [vmem:[%s3204_s11 + $0x1fc] sm:$0xf0] }
 0x12e   : > { %2882 = vmatmul.msk.bf16.gmra.mxu0 %vm1306_vm0, %v2467_v27  ;;  %v2031_v7 = vmax.f32 %v1912_v37, %v3529_v46  ;;  %v2475_v27 = vor.u32 %v2953_v51, %v2472_v49  ;;  %v1406_v51 = vadd.f32 %v3520_v9, %v3453_v23 }
 0x12f   : > { %v1656_v36 = vpop.f32.mrf.mxu2 }
 0x130   : > { %2079 = vst [vmem:[%s3538_s14 + $0x18] sm:$0xff] %v2031_v7  ;;  %v1657_v1 = vadd.f32 %v1656_v36, %v1528_v55  ;;  %v1785_v57 = vpop.f32.mrf.mxu3  ;;  %v1404_v55 = vadd.f32 %v3520_v9, %v3444_v13 }
 0x131   : > { %v1529_v5 = vpop.f32.mrf.mxu1 }
 0x132   : > { %v1786_v16 = vadd.f32 %v1785_v57, %v1657_v1  ;;  %v1530_v43 = vadd.f32 %v1529_v5, %v1401_v3 }
 0x133   : > { %v1916_v2 = vpop.f32.mrf.mxu0 }
 0x134   : > { %v1915_v8 = vadd.f32 %v1914_v63, %v1786_v16  ;;  %v2483_v63 = vor.u32 %v2954_v33, %v2480_v21  ;;  %v2498_v33 = vld [vmem:[%s3204_s11 + $0x1e8] sm:$0xf] }
 0x136   : > { %v2032_v42 = vmax.f32 %v1915_v8, %v3529_v46 }
 0x137   : > { %v1658_v0 = vpop.f32.mrf.mxu2 }
 0x138   : > { %2080 = vst [vmem:[%s3538_s14 + $0x20] sm:$0xff] %v2032_v42  ;;  %v1659_v41 = vadd.f32 %v1658_v0, %v1530_v43  ;;  %v1787_v59 = vpop.f32.mrf.mxu3  ;;  %v2961_v42 = vld [vmem:[%s3204_s11 + $0x1f8] sm:$0xf0]  ;;  %v2959_v43 = vld [vmem:[%s3204_s11 + $0x1ec] sm:$0xf] }
 0x139   : > { %v1532_v61 = vpop.f32.mrf.mxu1  ;;  %v2506_v0 = vld [vmem:[%s3204_s11 + $0x1f0] sm:$0xf] }
 0x13a   : > { %v1788_v37 = vadd.f32 %v1787_v59, %v1659_v41  ;;  %v1533_v57 = vadd.f32 %v1532_v61, %v1404_v55  ;;  %v2962_v41 = vld [vmem:[%s3204_s11 + $0x200] sm:$0xf0]  ;;  %v2495_v61 = vor.u32 %v2958_v24, %v2492_v32  ;;  %v2963_v24 = vld [vmem:[%s3204_s11 + $0x20c] sm:$0xf]  ;;  %v2512_v32 = vld [vmem:[%s3204_s11 + $0x21c] sm:$0xf0] }
 0x13b   : > { %v1919_v7 = vpop.f32.mrf.mxu0 }
 0x13c   : > { %v1917_v36 = vadd.f32 %v1916_v2, %v1788_v37  ;;  %1571 = vmatmul.bf16.gmra.mxu1 %v2475_v27  ;;  %1700 = vmatmul.bf16.gmra.mxu2 %v2479_v45  ;;  %v2507_v37 = vor.u32 %v2962_v41, %v2506_v0  ;;  %v2526_v0 = vld [vmem:[%s3204_s11 + $0x218] sm:$0xf]  ;;  %v2967_v41 = vld [vmem:[%s3204_s11 + $0x228] sm:$0xf0] }
 0x13d   : > { %1829 = vmatmul.bf16.gmra.mxu3 %v2483_v63  ;;  %v2499_v63 = vor.u32 %v2961_v42, %v2498_v33  ;;  %v2518_v33 = vld [vmem:[%s3204_s11 + $0x210] sm:$0xf]  ;;  %v2966_v42 = vld [vmem:[%s3204_s11 + $0x220] sm:$0xf0] }
 0x13e   : > { %2883 = vmatmul.msk.bf16.gmra.mxu0 %vm1306_vm0, %v2487_v56  ;;  %v2033_v1 = vmax.f32 %v1917_v36, %v3529_v46  ;;  %v2503_v56 = vor.u32 %v2959_v43, %v2500_v17  ;;  %v1409_v36 = vadd.f32 %v3520_v9, %v3469_v47  ;;  %v2964_v43 = vld [vmem:[%s3204_s11 + $0x214] sm:$0xf]  ;;  %v2520_v17 = vld [vmem:[%s3204_s11 + $0x224] sm:$0xf0] }
 0x13f   : > { %v1661_v5 = vpop.f32.mrf.mxu2 }
 0x140   : > { %2081 = vst [vmem:[%s3538_s14 + $0x28] sm:$0xff] %v2033_v1  ;;  %v1662_v16 = vadd.f32 %v1661_v5, %v1533_v57  ;;  %v1790_v13 = vpop.f32.mrf.mxu3 }
 0x141   : > { %v1534_v2 = vpop.f32.mrf.mxu1 }
 0x142   : > { %v1791_v3 = vadd.f32 %v1790_v13, %v1662_v16  ;;  %v1535_v12 = vadd.f32 %v1534_v2, %v1406_v51  ;;  %v1411_v51 = vadd.f32 %v3520_v9, %v3478_v53 }
 0x143   : > { %v1921_v8 = vpop.f32.mrf.mxu0 }
 0x144   : > { %v1920_v49 = vadd.f32 %v1919_v7, %v1791_v3 }
 0x146   : > { %v2034_v21 = vmax.f32 %v1920_v49, %v3529_v46 }
 0x147   : > { %v1663_v59 = vpop.f32.mrf.mxu2 }
 0x148   : > { %2082 = vst [vmem:[%s3538_s14 + $0x30] sm:$0xff] %v2034_v21  ;;  %v1664_v27 = vadd.f32 %v1663_v59, %v1535_v12  ;;  %v1792_v45 = vpop.f32.mrf.mxu3 }
 0x149   : > { %v1537_v23 = vpop.f32.mrf.mxu1 }
 0x14a   : > { %v1793_v7 = vadd.f32 %v1792_v45, %v1664_v27  ;;  %v1538_v5 = vadd.f32 %v1537_v23, %v1409_v36  ;;  %v2523_v23 = vor.u32 %v2964_v43, %v2520_v17  ;;  %v2972_v17 = vld [vmem:[%s3204_s11 + $0x250] sm:$0xf0] }
 0x14b   : > { %v1924_v55 = vpop.f32.mrf.mxu0 }
 0x14c   : > { %v1922_v1 = vadd.f32 %v1921_v8, %v1793_v7  ;;  %1576 = vmatmul.bf16.gmra.mxu1 %v2495_v61  ;;  %1705 = vmatmul.bf16.gmra.mxu2 %v2499_v63  ;;  %v2515_v61 = vor.u32 %v2963_v24, %v2512_v32  ;;  %v2519_v63 = vor.u32 %v2966_v42, %v2518_v33  ;;  %v2538_v24 = vld [vmem:[%s3204_s11 + $0x238] sm:$0xf]  ;;  %v2971_v32 = vld [vmem:[%s3204_s11 + $0x248] sm:$0xf0]  ;;  %v2969_v33 = vld [vmem:[%s3204_s11 + $0x23c] sm:$0xf] }
 0x14d   : > { %1834 = vmatmul.bf16.gmra.mxu3 %v2503_v56  ;;  %v2527_v56 = vor.u32 %v2967_v41, %v2526_v0 }
 0x14e   : > { %2884 = vmatmul.msk.bf16.gmra.mxu0 %vm1306_vm0, %v2507_v37  ;;  %v2035_v57 = vmax.f32 %v1922_v1, %v3529_v46 }
 0x14f   : > { %v1666_v16 = vpop.f32.mrf.mxu2 }
 0x150   : > { %2083 = vst [vmem:[%s3538_s14 + $0x38] sm:$0xff] %v2035_v57  ;;  %v1667_v13 = vadd.f32 %v1666_v16, %v1538_v5  ;;  %v1795_v47 = vpop.f32.mrf.mxu3 }
 0x151   : > { %v1539_v2 = vpop.f32.mrf.mxu1 }
 0x152   : > { %v1796_v3 = vadd.f32 %v1795_v47, %v1667_v13  ;;  %v1540_v12 = vadd.f32 %v1539_v2, %v1411_v51  ;;  %v2968_v51 = vld [vmem:[%s3204_s11 + $0x234] sm:$0xf] }
 0x153   : > { %v1926_v8 = vpop.f32.mrf.mxu0 }
 0x154   : > { %v1925_v49 = vadd.f32 %v1924_v55, %v1796_v3  ;;  %v1414_v55 = vadd.f32 %v3520_v9, %v3494_v25  ;;  %v1416_v3 = vadd.f32 %v3520_v9, %v3503_v29 }
 0x156   : > { %v2036_v21 = vmax.f32 %v1925_v49, %v3529_v46  ;;  %v2532_v49 = vld [vmem:[%s3204_s11 + $0x244] sm:$0xf0] }
 0x157   : > { %v1668_v59 = vpop.f32.mrf.mxu2 }
 0x158   : > { %2084 = vst [vmem:[%s3538_s14 + $0x40] sm:$0xff] %v2036_v21  ;;  %v1669_v27 = vadd.f32 %v1668_v59, %v1540_v12  ;;  %v1797_v45 = vpop.f32.mrf.mxu3  ;;  %v2540_v21 = vld [vmem:[%s3204_s11 + $0x24c] sm:$0xf0]  ;;  %v2546_v12 = vld [vmem:[%s3204_s11 + $0x240] sm:$0xf] }
 0x159   : > { %v1542_v53 = vpop.f32.mrf.mxu1 }
 0x15a   : > { %v1798_v37 = vadd.f32 %v1797_v45, %v1669_v27  ;;  %v1543_v57 = vadd.f32 %v1542_v53, %v1414_v55  ;;  %v2535_v27 = vor.u32 %v2968_v51, %v2532_v49  ;;  %v2539_v45 = vor.u32 %v2971_v32, %v2538_v24  ;;  %v2974_v51 = vld [vmem:[%s3204_s11 + $0x264] sm:$0xf]  ;;  %v2560_v32 = vld [vmem:[%s3204_s11 + $0x274] sm:$0xf0] }
 0x15b   : > { %v1929_v7 = vpop.f32.mrf.mxu0 }
 0x15c   : > { %v1927_v36 = vadd.f32 %v1926_v8, %v1798_v37  ;;  %1581 = vmatmul.bf16.gmra.mxu1 %v2515_v61  ;;  %1710 = vmatmul.bf16.gmra.mxu2 %v2519_v63  ;;  %v2543_v61 = vor.u32 %v2969_v33, %v2540_v21  ;;  %v2547_v63 = vor.u32 %v2972_v17, %v2546_v12  ;;  %v2566_v33 = vld [vmem:[%s3204_s11 + $0x268] sm:$0xf] }
 0x15d   : > { %1839 = vmatmul.bf16.gmra.mxu3 %v2523_v23 }
 0x15e   : > { %2885 = vmatmul.msk.bf16.gmra.mxu0 %vm1306_vm0, %v2527_v56  ;;  %v2037_v1 = vmax.f32 %v1927_v36, %v3529_v46  ;;  %v1419_v56 = vadd.f32 %v3520_v9, %v3367_v14 }
 0x15f   : > { %v1671_v5 = vpop.f32.mrf.mxu2 }
 0x160   : > { %2085 = vst [vmem:[%s3538_s14 + $0x48] sm:$0xff] %v2037_v1  ;;  %v1672_v16 = vadd.f32 %v1671_v5, %v1543_v57  ;;  %v1800_v25 = vpop.f32.mrf.mxu3 }
 0x161   : > { %v1544_v13 = vpop.f32.mrf.mxu1 }
 0x162   : > { %v1801_v47 = vadd.f32 %v1800_v25, %v1672_v16  ;;  %v1545_v43 = vadd.f32 %v1544_v13, %v1416_v3  ;;  %v1421_v25 = vadd.f32 %v3520_v9, %v3376_v20  ;;  %v2558_v3 = vld [vmem:[%s3204_s11 + $0x260] sm:$0xf] }
 0x163   : > { %v1931_v2 = vpop.f32.mrf.mxu0 }
 0x164   : > { %v1930_v8 = vadd.f32 %v1929_v7, %v1801_v47  ;;  %v2973_v47 = vld [vmem:[%s3204_s11 + $0x25c] sm:$0xf] }
 0x166   : > { %v2038_v42 = vmax.f32 %v1930_v8, %v3529_v46  ;;  %v2976_v8 = vld [vmem:[%s3204_s11 + $0x270] sm:$0xf0] }
 0x167   : > { %v1673_v0 = vpop.f32.mrf.mxu2 }
 0x168   : > { %2086 = vst [vmem:[%s3538_s14 + $0x50] sm:$0xff] %v2038_v42  ;;  %v1674_v41 = vadd.f32 %v1673_v0, %v1545_v43  ;;  %v1802_v59 = vpop.f32.mrf.mxu3  ;;  %v2977_v42 = vld [vmem:[%s3204_s11 + $0x278] sm:$0xf0]  ;;  %v2559_v0 = vor.u32 %v2976_v8, %v2558_v3  ;;  %v2586_v3 = vld [vmem:[%s3204_s11 + $0x290] sm:$0xf] }
 0x169   : > { %v1547_v29 = vpop.f32.mrf.mxu1  ;;  %v2982_v8 = vld [vmem:[%s3204_s11 + $0x2a0] sm:$0xf0] }
 0x16a   : > { %v1803_v53 = vadd.f32 %v1802_v59, %v1674_v41  ;;  %v1548_v55 = vadd.f32 %v1547_v29, %v1419_v56  ;;  %v2563_v41 = vor.u32 %v2974_v51, %v2560_v32  ;;  %v2567_v59 = vor.u32 %v2977_v42, %v2566_v33 }
 0x16b   : > { %v1934_v23 = vpop.f32.mrf.mxu0  ;;  %v1424_v29 = vadd.f32 %v3520_v9, %v3392_v34 }
 0x16c   : > { %v1932_v37 = vadd.f32 %v1931_v2, %v1803_v53  ;;  %1586 = vmatmul.bf16.gmra.mxu1 %v2535_v27  ;;  %1715 = vmatmul.bf16.gmra.mxu2 %v2539_v45  ;;  %v2552_v2 = vld [vmem:[%s3204_s11 + $0x26c] sm:$0xf0] }
 0x16d   : > { %1844 = vmatmul.bf16.gmra.mxu3 %v2543_v61  ;;  %v2555_v17 = vor.u32 %v2973_v47, %v2552_v2  ;;  %v2580_v2 = vld [vmem:[%s3204_s11 + $0x29c] sm:$0xf0] }
 0x16e   : > { %2886 = vmatmul.msk.bf16.gmra.mxu0 %vm1306_vm0, %v2547_v63  ;;  %v2039_v7 = vmax.f32 %v1932_v37, %v3529_v46 }
 0x16f   : > { %v1676_v36 = vpop.f32.mrf.mxu2 }
 0x170   : > { %2087 = vst [vmem:[%s3538_s14 + $0x58] sm:$0xff] %v2039_v7  ;;  %v1677_v1 = vadd.f32 %v1676_v36, %v1548_v55  ;;  %v1805_v14 = vpop.f32.mrf.mxu3  ;;  %v1426_v36 = vadd.f32 %v3520_v9, %v3401_v40 }
 0x171   : > { %v1549_v57 = vpop.f32.mrf.mxu1 }
 0x172   : > { %v1806_v5 = vadd.f32 %v1805_v14, %v1677_v1  ;;  %v1550_v24 = vadd.f32 %v1549_v57, %v1421_v25  ;;  %v2978_v14 = vld [vmem:[%s3204_s11 + $0x284] sm:$0xf]  ;;  %v2572_v57 = vld [vmem:[%s3204_s11 + $0x294] sm:$0xf0]  ;;  %v2979_v25 = vld [vmem:[%s3204_s11 + $0x28c] sm:$0xf] }
 0x173   : > { %v1936_v16 = vpop.f32.mrf.mxu0  ;;  %v2575_v32 = vor.u32 %v2978_v14, %v2572_v57  ;;  %v2583_v42 = vor.u32 %v2979_v25, %v2580_v2  ;;  %v2606_v14 = vld [vmem:[%s3204_s11 + $0x2b8] sm:$0xf]  ;;  %v2987_v57 = vld [vmem:[%s3204_s11 + $0x2c8] sm:$0xf0] }
 0x174   : > { %v1935_v13 = vadd.f32 %v1934_v23, %v1806_v5  ;;  %v2578_v5 = vld [vmem:[%s3204_s11 + $0x288] sm:$0xf] }
 0x176   : > { %v2040_v49 = vmax.f32 %v1935_v13, %v3529_v46 }
 0x177   : > { %v1678_v43 = vpop.f32.mrf.mxu2 }
 0x178   : > { %2088 = vst [vmem:[%s3538_s14 + $0x60] sm:$0xff] %v2040_v49  ;;  %v1679_v21 = vadd.f32 %v1678_v43, %v1550_v24  ;;  %v1807_v12 = vpop.f32.mrf.mxu3  ;;  %v2587_v43 = vor.u32 %v2982_v8, %v2586_v3  ;;  %v2607_v3 = vor.u32 %v2987_v57, %v2606_v14  ;;  %v1439_v57 = vadd.f32 %v3520_v9, %v3467_v44 }
 0x179   : > { %v1552_v20 = vpop.f32.mrf.mxu1 }
 0x17a   : > { %v1808_v27 = vadd.f32 %v1807_v12, %v1679_v21  ;;  %v1553_v53 = vadd.f32 %v1552_v20, %v1424_v29 }
 0x17b   : > { %v1939_v45 = vpop.f32.mrf.mxu0 }
 0x17c   : > { %v1937_v61 = vadd.f32 %v1936_v16, %v1808_v27  ;;  %1591 = vmatmul.bf16.gmra.mxu1 %v2555_v17  ;;  %1720 = vmatmul.bf16.gmra.mxu2 %v2559_v0  ;;  %v2981_v16 = vld [vmem:[%s3204_s11 + $0x298] sm:$0xf0]  ;;  %v1429_v17 = vadd.f32 %v3520_v9, %v3417_v54 }
 0x17d   : > { %1849 = vmatmul.bf16.gmra.mxu3 %v2563_v41  ;;  %v2579_v33 = vor.u32 %v2981_v16, %v2578_v5 }
 0x17e   : > { %2887 = vmatmul.msk.bf16.gmra.mxu0 %vm1306_vm0, %v2567_v59  ;;  %v2041_v63 = vmax.f32 %v1937_v61, %v3529_v46 }
 0x17f   : > { %v1681_v23 = vpop.f32.mrf.mxu2 }
 0x180   : > { %2089 = vst [vmem:[%s3538_s14 + $0x68] sm:$0xff] %v2041_v63  ;;  %v1682_v56 = vadd.f32 %v1681_v23, %v1553_v53  ;;  %v1810_v34 = vpop.f32.mrf.mxu3  ;;  %v1431_v63 = vadd.f32 %v3520_v9, %v3426_v60  ;;  %v2983_v23 = vld [vmem:[%s3204_s11 + $0x2ac] sm:$0xf] }
 0x181   : > { %v1554_v37 = vpop.f32.mrf.mxu1 }
 0x182   : > { %v1811_v7 = vadd.f32 %v1810_v34, %v1682_v56  ;;  %v1555_v47 = vadd.f32 %v1554_v37, %v1426_v36  ;;  %v2592_v56 = vld [vmem:[%s3204_s11 + $0x2bc] sm:$0xf0]  ;;  %v2598_v34 = vld [vmem:[%s3204_s11 + $0x2b0] sm:$0xf]  ;;  %v2986_v37 = vld [vmem:[%s3204_s11 + $0x2c0] sm:$0xf0] }
 0x183   : > { %v1941_v55 = vpop.f32.mrf.mxu0 }
 0x184   : > { %v1940_v1 = vadd.f32 %v1939_v45, %v1811_v7  ;;  %v2984_v7 = vld [vmem:[%s3204_s11 + $0x2b4] sm:$0xf] }
 0x186   : > { %v2042_v13 = vmax.f32 %v1940_v1, %v3529_v46  ;;  %v2600_v1 = vld [vmem:[%s3204_s11 + $0x2c4] sm:$0xf0] }
 0x187   : > { %v1683_v51 = vpop.f32.mrf.mxu2  ;;  %v2603_v2 = vor.u32 %v2984_v7, %v2600_v1 }
 0x188   : > { %2090 = vst [vmem:[%s3538_s14 + $0x70] sm:$0xff] %v2042_v13  ;;  %v1684_v49 = vadd.f32 %v1683_v51, %v1555_v47  ;;  %v1812_v24 = vpop.f32.mrf.mxu3  ;;  %v2595_v13 = vor.u32 %v2983_v23, %v2592_v56  ;;  %v2599_v47 = vor.u32 %v2986_v37, %v2598_v34 }
 0x189   : > { %v1557_v40 = vpop.f32.mrf.mxu1 }
 0x18a   : > { %v1813_v21 = vadd.f32 %v1812_v24, %v1684_v49  ;;  %v1558_v41 = vadd.f32 %v1557_v40, %v1429_v17  ;;  %v1434_v49 = vadd.f32 %v3520_v9, %v3442_v10  ;;  %v1436_v17 = vadd.f32 %v3520_v9, %v3451_v22 }
 0x18b   : > { %v1944_v12 = vpop.f32.mrf.mxu0 }
 0x18c   : > { %v1942_v0 = vadd.f32 %v1941_v55, %v1813_v21  ;;  %1596 = vmatmul.bf16.gmra.mxu1 %v2575_v32  ;;  %1725 = vmatmul.bf16.gmra.mxu2 %v2579_v33 }
 0x18d   : > { %1854 = vmatmul.bf16.gmra.mxu3 %v2583_v42 }
 0x18e   : > { %2888 = vmatmul.msk.bf16.gmra.mxu0 %vm1306_vm0, %v2587_v43  ;;  %v2043_v20 = vmax.f32 %v1942_v0, %v3529_v46 }
 0x18f   : > { %v1686_v59 = vpop.f32.mrf.mxu2 }
 0x190   : > { %2091 = vst [vmem:[%s3538_s14 + $0x78] sm:$0xff] %v2043_v20  ;;  %v1687_v27 = vadd.f32 %v1686_v59, %v1558_v41  ;;  %v1815_v54 = vpop.f32.mrf.mxu3  ;;  %v2988_v20 = vld [vmem:[%s3204_s11 + $0x2d4] sm:$0xf]  ;;  %v2612_v41 = vld [vmem:[%s3204_s11 + $0x2e4] sm:$0xf0] }
 0x191   : > { %v1559_v45 = vpop.f32.mrf.mxu1  ;;  %v2618_v59 = vld [vmem:[%s3204_s11 + $0x2d8] sm:$0xf]  ;;  %v2615_v37 = vor.u32 %v2988_v20, %v2612_v41 }
 0x192   : > { %v1816_v29 = vadd.f32 %v1815_v54, %v1687_v27  ;;  %v1560_v36 = vadd.f32 %v1559_v45, %v1431_v63  ;;  %v2991_v27 = vld [vmem:[%s3204_s11 + $0x2e8] sm:$0xf0]  ;;  %v2989_v54 = vld [vmem:[%s3204_s11 + $0x2dc] sm:$0xf]  ;;  %v2626_v63 = vld [vmem:[%s3204_s11 + $0x2e0] sm:$0xf] }
 0x193   : > { %v1946_v61 = vpop.f32.mrf.mxu0  ;;  %v2619_v7 = vor.u32 %v2991_v27, %v2618_v59 }
 0x194   : > { %v1945_v53 = vadd.f32 %v1944_v12, %v1816_v29 }
 0x196   : > { %v2044_v55 = vmax.f32 %v1945_v53, %v3529_v46  ;;  %v2992_v53 = vld [vmem:[%s3204_s11 + $0x2f0] sm:$0xf0] }
 0x197   : > { %v1688_v5 = vpop.f32.mrf.mxu2 }
 0x198   : > { %2092 = vst [vmem:[%s3538_s14 + $0x80] sm:$0xff] %v2044_v55  ;;  %v1689_v16 = vadd.f32 %v1688_v5, %v1560_v36  ;;  %v1817_v25 = vpop.f32.mrf.mxu3  ;;  %v2627_v36 = vor.u32 %v2992_v53, %v2626_v63 }
 0x199   : > { %v1562_v60 = vpop.f32.mrf.mxu1 }
 0x19a   : > { %v1818_v8 = vadd.f32 %v1817_v25, %v1689_v16  ;;  %v1563_v33 = vadd.f32 %v1562_v60, %v1434_v49  ;;  %v2993_v49 = vld [vmem:[%s3204_s11 + $0x2fc] sm:$0xf] }
 0x19b   : > { %v1949_v51 = vpop.f32.mrf.mxu0 }
 0x19c   : > { %v1947_v24 = vadd.f32 %v1946_v61, %v1818_v8  ;;  %1601 = vmatmul.bf16.gmra.mxu1 %v2595_v13  ;;  %1730 = vmatmul.bf16.gmra.mxu2 %v2599_v47  ;;  %v2620_v61 = vld [vmem:[%s3204_s11 + $0x2ec] sm:$0xf0]  ;;  %v1441_v8 = vadd.f32 %v3520_v9, %v3476_v52 }
 0x19d   : > { %1859 = vmatmul.bf16.gmra.mxu3 %v2603_v2  ;;  %v2623_v55 = vor.u32 %v2989_v54, %v2620_v61  ;;  %v1444_v61 = vadd.f32 %v3520_v9, %v3492_v11 }
 0x19e   : > { %2889 = vmatmul.msk.bf16.gmra.mxu0 %vm1306_vm0, %v2607_v3  ;;  %v2045_v32 = vmax.f32 %v1947_v24, %v3529_v46  ;;  %v2632_v24 = vld [vmem:[%s3204_s11 + $0x30c] sm:$0xf0] }
 0x19f   : > { %v1691_v40 = vpop.f32.mrf.mxu2  ;;  %v2635_v41 = vor.u32 %v2993_v49, %v2632_v24 }
 0x1a0   : > { %2093 = vst [vmem:[%s3538_s14 + $0x88] sm:$0xff] %v2045_v32  ;;  %v1692_v42 = vadd.f32 %v1691_v40, %v1563_v33  ;;  %v1820_v10 = vpop.f32.mrf.mxu3  ;;  %v2638_v32 = vld [vmem:[%s3204_s11 + $0x300] sm:$0xf]  ;;  %v2996_v33 = vld [vmem:[%s3204_s11 + $0x310] sm:$0xf0] }
 0x1a1   : > { %v1564_v43 = vpop.f32.mrf.mxu1  ;;  %v2994_v40 = vld [vmem:[%s3204_s11 + $0x304] sm:$0xf]  ;;  %v2639_v59 = vor.u32 %v2996_v33, %v2638_v32 }
 0x1a2   : > { %v1821_v21 = vadd.f32 %v1820_v10, %v1692_v42  ;;  %v1565_v29 = vadd.f32 %v1564_v43, %v1436_v17  ;;  %v2640_v43 = vld [vmem:[%s3204_s11 + $0x314] sm:$0xf0] }
 0x1a3   : > { %v1951_v12 = vpop.f32.mrf.mxu0  ;;  %v2643_v27 = vor.u32 %v2994_v40, %v2640_v43 }
 0x1a4   : > { %v1950_v0 = vadd.f32 %v1949_v51, %v1821_v21  ;;  %v2646_v21 = vld [vmem:[%s3204_s11 + $0x308] sm:$0xf] }
 0x1a6   : > { %v2046_v45 = vmax.f32 %v1950_v0, %v3529_v46 }
 0x1a7   : > { %v1693_v23 = vpop.f32.mrf.mxu2 }
 0x1a8   : > { %2094 = vst [vmem:[%s3538_s14 + $0x90] sm:$0xff] %v2046_v45  ;;  %v1694_v56 = vadd.f32 %v1693_v23, %v1565_v29  ;;  %v1822_v34 = vpop.f32.mrf.mxu3 }
 0x1a9   : > { %v1567_v22 = vpop.f32.mrf.mxu1 }
 0x1aa   : > { %v1823_v1 = vadd.f32 %v1822_v34, %v1694_v56  ;;  %v1568_v25 = vadd.f32 %v1567_v22, %v1439_v57  ;;  %v2658_v57 = vld [vmem:[%s3204_s11 + $0x328] sm:$0xf] }
 0x1ab   : > { %v1954_v14 = vpop.f32.mrf.mxu0 }
 0x1ac   : > { %v1952_v5 = vadd.f32 %v1951_v12, %v1823_v1  ;;  %1606 = vmatmul.bf16.gmra.mxu1 %v2615_v37  ;;  %1735 = vmatmul.bf16.gmra.mxu2 %v2619_v7  ;;  %v2997_v12 = vld [vmem:[%s3204_s11 + $0x318] sm:$0xf0]  ;;  %v2998_v1 = vld [vmem:[%s3204_s11 + $0x324] sm:$0xf] }
 0x1ad   : > { %1864 = vmatmul.bf16.gmra.mxu3 %v2623_v55  ;;  %v2647_v54 = vor.u32 %v2997_v12, %v2646_v21  ;;  %v1446_v55 = vadd.f32 %v3520_v9, %v3501_v28 }
 0x1ae   : > { %2890 = vmatmul.msk.bf16.gmra.mxu0 %vm1306_vm0, %v2627_v36  ;;  %v2047_v16 = vmax.f32 %v1952_v5, %v3529_v46  ;;  %v3001_v5 = vld [vmem:[%s3204_s11 + $0x338] sm:$0xf0] }
 0x1af   : > { %v1696_v13 = vpop.f32.mrf.mxu2  ;;  %v2659_v49 = vor.u32 %v3001_v5, %v2658_v57  ;;  %v1454_v5 = vadd.f32 %v3520_v9, %v3397_v38 }
 0x1b0   : > { %2095 = vst [vmem:[%s3538_s14 + $0x98] sm:$0xff] %v2047_v16  ;;  %v1697_v47 = vadd.f32 %v1696_v13, %v1568_v25  ;;  %v1825_v44 = vpop.f32.mrf.mxu3  ;;  %v2999_v16 = vld [vmem:[%s3204_s11 + $0x32c] sm:$0xf] }
 0x1b1   : > { %v1569_v60 = vpop.f32.mrf.mxu1 }
 0x1b2   : > { %v1826_v2 = vadd.f32 %v1825_v44, %v1697_v47  ;;  %v1570_v10 = vadd.f32 %v1569_v60, %v1441_v8  ;;  %v2660_v47 = vld [vmem:[%s3204_s11 + $0x33c] sm:$0xf0]  ;;  %v2666_v44 = vld [vmem:[%s3204_s11 + $0x330] sm:$0xf]  ;;  %v3002_v60 = vld [vmem:[%s3204_s11 + $0x340] sm:$0xf0] }
 0x1b3   : > { %v1956_v3 = vpop.f32.mrf.mxu0  ;;  %v2663_v24 = vor.u32 %v2999_v16, %v2660_v47  ;;  %v2667_v32 = vor.u32 %v3002_v60, %v2666_v44 }
 0x1b4   : > { %v1955_v51 = vadd.f32 %v1954_v14, %v1826_v2  ;;  %v2652_v14 = vld [vmem:[%s3204_s11 + $0x334] sm:$0xf0] }
 0x1b6   : > { %v2048_v42 = vmax.f32 %v1955_v51, %v3529_v46  ;;  %v2655_v51 = vor.u32 %v2998_v1, %v2652_v14 }
 0x1b7   : > { %v1698_v17 = vpop.f32.mrf.mxu2 }
 0x1b8   : > { %2096 = vst [vmem:[%s3538_s14 + $0xa0] sm:$0xff] %v2048_v42  ;;  %v1699_v0 = vadd.f32 %v1698_v17, %v1570_v10  ;;  %v1827_v20 = vpop.f32.mrf.mxu3  ;;  %v1449_v42 = vadd.f32 %v3520_v9, %v3372_v18 }
 0x1b9   : > { %v1572_v52 = vpop.f32.mrf.mxu1 }
 0x1ba   : > { %v1828_v45 = vadd.f32 %v1827_v20, %v1699_v0  ;;  %v1573_v23 = vadd.f32 %v1572_v52, %v1444_v61  ;;  %v3004_v61 = vld [vmem:[%s3204_s11 + $0x354] sm:$0xf] }
 0x1bb   : > { %v1959_v29 = vpop.f32.mrf.mxu0 }
 0x1bc   : > { %v1957_v63 = vadd.f32 %v1956_v3, %v1828_v45  ;;  %1611 = vmatmul.bf16.gmra.mxu1 %v2635_v41  ;;  %1740 = vmatmul.bf16.gmra.mxu2 %v2639_v59  ;;  %v1451_v59 = vadd.f32 %v3520_v9, %v3388_v30  ;;  %v2678_v45 = vld [vmem:[%s3204_s11 + $0x350] sm:$0xf] }
 0x1bd   : > { %1869 = vmatmul.bf16.gmra.mxu3 %v2643_v27  ;;  %v3003_v27 = vld [vmem:[%s3204_s11 + $0x34c] sm:$0xf] }
 0x1be   : > { %2891 = vmatmul.msk.bf16.gmra.mxu0 %vm1306_vm0, %v2647_v54  ;;  %v2049_v53 = vmax.f32 %v1957_v63, %v3529_v46  ;;  %v2672_v54 = vld [vmem:[%s3204_s11 + $0x35c] sm:$0xf0] }
 0x1bf   : > { %v1701_v56 = vpop.f32.mrf.mxu2 }
 0x1c0   : > { %2097 = vst [vmem:[%s3538_s14 + $0xa8] sm:$0xff] %v2049_v53  ;;  %v1702_v34 = vadd.f32 %v1701_v56, %v1573_v23  ;;  %v1830_v11 = vpop.f32.mrf.mxu3  ;;  %v2680_v23 = vld [vmem:[%s3204_s11 + $0x364] sm:$0xf0]  ;;  %v2686_v56 = vld [vmem:[%s3204_s11 + $0x358] sm:$0xf] }
 0x1c1   : > { %v1574_v37 = vpop.f32.mrf.mxu1 }
 0x1c2   : > { %v1831_v7 = vadd.f32 %v1830_v11, %v1702_v34  ;;  %v1575_v13 = vadd.f32 %v1574_v37, %v1446_v55  ;;  %v3007_v34 = vld [vmem:[%s3204_s11 + $0x368] sm:$0xf0] }
 0x1c3   : > { %v1961_v22 = vpop.f32.mrf.mxu0  ;;  %v2687_v1 = vor.u32 %v3007_v34, %v2686_v56 }
 0x1c4   : > { %v1960_v36 = vadd.f32 %v1959_v29, %v1831_v7  ;;  %v3006_v29 = vld [vmem:[%s3204_s11 + $0x360] sm:$0xf0] }
 0x1c5   : > { %v2679_v55 = vor.u32 %v3006_v29, %v2678_v45  ;;  %v3780_v45 = vld [vmem:[%s3883_s3] ss:$0 sm:$0xff] }
 0x1c6   : > { %v2050_v25 = vmax.f32 %v1960_v36, %v3529_v46  ;;  %v2683_v36 = vor.u32 %v3004_v61, %v2680_v23 }
 0x1c7   : > { %v1703_v2 = vpop.f32.mrf.mxu2 }
 0x1c8   : > { %2098 = vst [vmem:[%s3538_s14 + $0xb0] sm:$0xff] %v2050_v25  ;;  %v1704_v3 = vadd.f32 %v1703_v2, %v1575_v13  ;;  %v1832_v8 = vpop.f32.mrf.mxu3 }
 0x1c9   : > { %v1577_v28 = vpop.f32.mrf.mxu1 }
 0x1ca   : > { %v1833_v33 = vadd.f32 %v1832_v8, %v1704_v3  ;;  %v1578_v21 = vadd.f32 %v1577_v28, %v1449_v42  ;;  %v1456_v8 = vadd.f32 %v3520_v9, %v3413_v50  ;;  %v2692_v28 = vld [vmem:[%s3204_s11 + $0x384] sm:$0xf0] }
 0x1cb   : > { %v1964_v40 = vpop.f32.mrf.mxu0 }
 0x1cc   : > { %v1962_v10 = vadd.f32 %v1961_v22, %v1833_v33  ;;  %1616 = vmatmul.bf16.gmra.mxu1 %v2655_v51  ;;  %1745 = vmatmul.bf16.gmra.mxu2 %v2659_v49  ;;  %v2675_v22 = vor.u32 %v3003_v27, %v2672_v54  ;;  %v3008_v49 = vld [vmem:[%s3204_s11 + $0x374] sm:$0xf]  ;;  %v3009_v33 = vld [vmem:[%s3204_s11 + $0x37c] sm:$0xf] }
 0x1cd   : > { %1874 = vmatmul.bf16.gmra.mxu3 %v2663_v24  ;;  %v2698_v24 = vld [vmem:[%s3204_s11 + $0x378] sm:$0xf] }
 0x1ce   : > { %2892 = vmatmul.msk.bf16.gmra.mxu0 %vm1306_vm0, %v2667_v32  ;;  %v2051_v43 = vmax.f32 %v1962_v10, %v3529_v46  ;;  %v3011_v32 = vld [vmem:[%s3204_s11 + $0x388] sm:$0xf0]  ;;  %v2700_v10 = vld [vmem:[%s3204_s11 + $0x38c] sm:$0xf0] }
 0x1cf   : > { %v1706_v12 = vpop.f32.mrf.mxu2  ;;  %v2703_v50 = vor.u32 %v3009_v33, %v2700_v10 }
 0x1d0   : > { %2099 = vst [vmem:[%s3538_s14 + $0xb8] sm:$0xff] %v2051_v43  ;;  %v1707_v17 = vadd.f32 %v1706_v12, %v1578_v21  ;;  %v1835_v18 = vpop.f32.mrf.mxu3  ;;  %v2706_v43 = vld [vmem:[%s3204_s11 + $0x380] sm:$0xf]  ;;  %v3012_v21 = vld [vmem:[%s3204_s11 + $0x390] sm:$0xf0] }
 0x1d1   : > { %v1579_v0 = vpop.f32.mrf.mxu1  ;;  %v2707_v9 = vor.u32 %v3012_v21, %v2706_v43 }
 0x1d2   : > { %v1836_v20 = vadd.f32 %v1835_v18, %v1707_v17  ;;  %v1580_v53 = vadd.f32 %v1579_v0, %v1451_v59  ;;  %v2695_v0 = vor.u32 %v3008_v49, %v2692_v28 }
 0x1d3   : > { %v1966_v41 = vpop.f32.mrf.mxu0 }
 0x1d4   : > { %v1965_v52 = vadd.f32 %v1964_v40, %v1836_v20  ;;  %v2699_v20 = vor.u32 %v3011_v32, %v2698_v24 }
 0x1d6   : > { %v2052_v63 = vmax.f32 %v1965_v52, %v3529_v46 }
 0x1d7   : > { %v1708_v11 = vpop.f32.mrf.mxu2 }
 0x1d8   : > { %2100 = vst [vmem:[%s3538_s14 + $0xc0] sm:$0xff] %v2052_v63  ;;  %v1709_v37 = vadd.f32 %v1708_v11, %v1580_v53  ;;  %v1837_v7 = vpop.f32.mrf.mxu3 }
 0x1d9   : > { %v1582_v30 = vpop.f32.mrf.mxu1 }
 0x1da   : > { %v1838_v14 = vadd.f32 %v1837_v7, %v1709_v37  ;;  %v1583_v13 = vadd.f32 %v1582_v30, %v1454_v5  ;;  %v3013_v7 = vld [vmem:[%s3204_s11 + $0x39c] sm:$0xf]  ;;  %v3016_v30 = vld [vmem:[%s3204_s11 + $0x3b0] sm:$0xf0]  ;;  %v2726_v5 = vld [vmem:[%s3204_s11 + $0x3a8] sm:$0xf] }
 0x1db   : > { %v1969_v57 = vpop.f32.mrf.mxu0 }
 0x1dc   : > { %v1967_v16 = vadd.f32 %v1966_v41, %v1838_v14  ;;  %1621 = vmatmul.bf16.gmra.mxu1 %v2675_v22  ;;  %1750 = vmatmul.bf16.gmra.mxu2 %v2679_v55  ;;  %v2712_v22 = vld [vmem:[%s3204_s11 + $0x3ac] sm:$0xf0]  ;;  %v2718_v55 = vld [vmem:[%s3204_s11 + $0x3a0] sm:$0xf] }
 0x1dd   : > { %1879 = vmatmul.bf16.gmra.mxu3 %v2683_v36  ;;  %v3014_v36 = vld [vmem:[%s3204_s11 + $0x3a4] sm:$0xf] }
 0x1de   : > { %2893 = vmatmul.msk.bf16.gmra.mxu0 %vm1306_vm0, %v2687_v1  ;;  %v2053_v25 = vmax.f32 %v1967_v16, %v3529_v46  ;;  %v3017_v16 = vld [vmem:[%s3204_s11 + $0x3b8] sm:$0xf0] }
 0x1df   : > { %v1711_v47 = vpop.f32.mrf.mxu2 }
 0x1e0   : > { %2101 = vst [vmem:[%s3538_s14 + $0xc8] sm:$0xff] %v2053_v25  ;;  %v1712_v44 = vadd.f32 %v1711_v47, %v1583_v13  ;;  %v1840_v38 = vpop.f32.mrf.mxu3 }
 0x1e1   : > { %v1584_v60 = vpop.f32.mrf.mxu1 }
 0x1e2   : > { %v1841_v2 = vadd.f32 %v1840_v38, %v1712_v44  ;;  %v1585_v42 = vadd.f32 %v1584_v60, %v1456_v8  ;;  %v2715_v44 = vor.u32 %v3013_v7, %v2712_v22  ;;  %v2719_v38 = vor.u32 %v3016_v30, %v2718_v55 }
 0x1e3   : > { %v1971_v3 = vpop.f32.mrf.mxu0 }
 0x1e4   : > { %v1970_v51 = vadd.f32 %v1969_v57, %v1841_v2  ;;  %v2720_v57 = vld [vmem:[%s3204_s11 + $0x3b4] sm:$0xf0]  ;;  %v2727_v2 = vor.u32 %v3017_v16, %v2726_v5 }
 0x1e5   : > { %v2723_v60 = vor.u32 %v3014_v36, %v2720_v57 }
 0x1e6   : > { %v2054_v40 = vmax.f32 %v1970_v51, %v3529_v46  ;;  %v3772_v46 = vld [vmem:[%s3882_s2] ss:$0 sm:$0xff] }
 0x1e7   : > { %v1713_v12 = vpop.f32.mrf.mxu2  ;;  %v1459_v27 = vadd.f32 %v3772_v46, %v3422_v58  ;;  %v1461_v11 = vadd.f32 %v3772_v46, %v3438_v6  ;;  %v1464_v51 = vadd.f32 %v3772_v46, %v3447_v15  ;;  %v1466_v15 = vadd.f32 %v3772_v46, %v3463_v35 }
 0x1e8   : > { %2102 = vst [vmem:[%s3538_s14 + $0xd0] sm:$0xff] %v2054_v40  ;;  %v1714_v17 = vadd.f32 %v1713_v12, %v1585_v42  ;;  %v1842_v18 = vpop.f32.mrf.mxu3  ;;  %v1474_v36 = vadd.f32 %v3772_v46, %v3497_v26 }
 0x1e9   : > { %v1587_v41 = vpop.f32.mrf.mxu1 }
 0x1ea   : > { %v1843_v59 = vadd.f32 %v1842_v18, %v1714_v17  ;;  %v1588_v61 = vadd.f32 %v1587_v41, %v1459_v27 }
 0x1eb   : > { %v1974_v52 = vpop.f32.mrf.mxu0 }
 0x1ec   : > { %v1972_v54 = vadd.f32 %v1971_v3, %v1843_v59  ;;  %1626 = vmatmul.bf16.gmra.mxu1 %v2695_v0  ;;  %1755 = vmatmul.bf16.gmra.mxu2 %v2699_v20  ;;  %v1469_v59 = vadd.f32 %v3772_v46, %v3472_v48 }
 0x1ed   : > { %1884 = vmatmul.bf16.gmra.mxu3 %v2703_v50 }
 0x1ee   : > { %2894 = vmatmul.msk.bf16.gmra.mxu0 %vm1306_vm0, %v2707_v9  ;;  %v2055_v29 = vmax.f32 %v1972_v54, %v3780_v45 }
 0x1ef   : > { %v1716_v58 = vpop.f32.mrf.mxu2 }
 0x1f0   : > { %2103 = vst [vmem:[%s3538_s14 + $0xd8] sm:$0xff] %v2055_v29  ;;  %v1717_v63 = vadd.f32 %v1716_v58, %v1588_v61  ;;  %v1845_v53 = vpop.f32.mrf.mxu3 }
 0x1f1   : > { %v1589_v23 = vpop.f32.mrf.mxu1 }
 0x1f2   : > { %v1846_v56 = vadd.f32 %v1845_v53, %v1717_v63  ;;  %v1590_v14 = vadd.f32 %v1589_v23, %v1461_v11  ;;  %v1471_v23 = vadd.f32 %v3772_v46, %v3488_v4 }
 0x1f3   : > { %v1976_v34 = vpop.f32.mrf.mxu0 }
 0x1f4   : > { %v1975_v37 = vadd.f32 %v1974_v52, %v1846_v56 }
 0x1f6   : > { %v2056_v1 = vmax.f32 %v1975_v37, %v3780_v45 }
 0x1f7   : > { %v1718_v25 = vpop.f32.mrf.mxu2 }
 0x1f8   : > { %2104 = vst [vmem:[%s3538_s14 + $0xe0] sm:$0xff] %v2056_v1  ;;  %v1719_v13 = vadd.f32 %v1718_v25, %v1590_v14  ;;  %v1847_v47 = vpop.f32.mrf.mxu3 }
 0x1f9   : > { %v1592_v6 = vpop.f32.mrf.mxu1 }
 0x1fa   : > { %v1848_v3 = vadd.f32 %v1847_v47, %v1719_v13  ;;  %v1593_v24 = vadd.f32 %v1592_v6, %v1464_v51 }
 0x1fb   : > { %v1979_v8 = vpop.f32.mrf.mxu0 }
 0x1fc   : > { %v1977_v49 = vadd.f32 %v1976_v34, %v1848_v3  ;;  %1631 = vmatmul.bf16.gmra.mxu1 %v2715_v44  ;;  %1760 = vmatmul.bf16.gmra.mxu2 %v2719_v38  ;;  %v1476_v44 = vadd.f32 %v3772_v46, %v3513_v62 }
 0x1fd   : > { %1889 = vmatmul.bf16.gmra.mxu3 %v2723_v60 }
 0x1fe   : > { %2895 = vmatmul.msk.bf16.gmra.mxu0 %vm1306_vm0, %v2727_v2  ;;  %v2057_v28 = vmax.f32 %v1977_v49, %v3780_v45 }
 0x1ff   : > { %v1721_v32 = vpop.f32.mrf.mxu2 }
 0x200   : > { %2105 = vst [vmem:[%s3538_s14 + $0xe8] sm:$0xff] %v2057_v28  ;;  %v1722_v33 = vadd.f32 %v1721_v32, %v1593_v24  ;;  %v1850_v40 = vpop.f32.mrf.mxu3  ;;  %v1479_v28 = vadd.f32 %v3772_v46, %v3374_v19 }
 0x201   : > { %v1594_v42 = vpop.f32.mrf.mxu1 }
 0x202   : > { %v1851_v10 = vadd.f32 %v1850_v40, %v1722_v33  ;;  %v1595_v17 = vadd.f32 %v1594_v42, %v1466_v15 }
 0x203   : > { %v1981_v43 = vpop.f32.mrf.mxu0 }
 0x204   : > { %v1980_v21 = vadd.f32 %v1979_v8, %v1851_v10 }
 0x206   : > { %v2058_v12 = vmax.f32 %v1980_v21, %v3780_v45  ;;  %v1481_v21 = vadd.f32 %v3772_v46, %v3390_v31 }
 0x207   : > { %v1723_v18 = vpop.f32.mrf.mxu2 }
 0x208   : > { %2106 = vst [vmem:[%s3538_s14 + $0xf0] sm:$0xff] %v2058_v12  ;;  %v1724_v0 = vadd.f32 %v1723_v18, %v1595_v17  ;;  %v1852_v20 = vpop.f32.mrf.mxu3 }
 0x209   : > { %v1597_v41 = vpop.f32.mrf.mxu1 }
 0x20a   : > { %v1853_v50 = vadd.f32 %v1852_v20, %v1724_v0  ;;  %v1598_v35 = vadd.f32 %v1597_v41, %v1469_v59  ;;  %v1484_v59 = vadd.f32 %v3772_v46, %v3399_v39 }
 0x20b   : > { %v1984_v9 = vpop.f32.mrf.mxu0 }
 0x20c   : > { %v1982_v52 = vadd.f32 %v1981_v43, %v1853_v50 }
 0x20e   : > { %v2059_v27 = vmax.f32 %v1982_v52, %v3780_v45 }
 0x20f   : > { %v1726_v54 = vpop.f32.mrf.mxu2 }
 0x210   : > { %2107 = vst [vmem:[%s3538_s14 + $0xf8] sm:$0xff] %v2059_v27  ;;  %v1727_v29 = vadd.f32 %v1726_v54, %v1598_v35  ;;  %v1855_v61 = vpop.f32.mrf.mxu3 }
 0x211   : > { %v1599_v58 = vpop.f32.mrf.mxu1 }
 0x212   : > { %v1856_v63 = vadd.f32 %v1855_v61, %v1727_v29  ;;  %v1600_v48 = vadd.f32 %v1599_v58, %v1471_v23 }
 0x213   : > { %v1986_v53 = vpop.f32.mrf.mxu0 }
 0x214   : > { %v1985_v56 = vadd.f32 %v1984_v9, %v1856_v63 }
 0x216   : > { %v2060_v34 = vmax.f32 %v1985_v56, %v3780_v45 }
 0x217   : > { %v1728_v11 = vpop.f32.mrf.mxu2 }
 0x218   : > { %2108 = vst [vmem:[%s3538_s14 + $0x100] sm:$0xff] %v2060_v34  ;;  %v1729_v37 = vadd.f32 %v1728_v11, %v1600_v48  ;;  %v1857_v7 = vpop.f32.mrf.mxu3 }
 0x219   : > { %v1602_v22 = vpop.f32.mrf.mxu1 }
 0x21a   : > { %v1858_v55 = vadd.f32 %v1857_v7, %v1729_v37  ;;  %v1603_v4 = vadd.f32 %v1602_v22, %v1474_v36 }
 0x21b   : > { %v1989_v30 = vpop.f32.mrf.mxu0 }
 0x21c   : > { %v1987_v1 = vadd.f32 %v1986_v53, %v1858_v55  ;;  %v3894_v53 = vld [vmem:[#allocation2_spill] sm:$0xff] }
 0x21d   : > { %v1486_v23 = vadd.f32 %v3772_v46, %v3894_v53 }
 0x21e   : > { %v2061_v14 = vmax.f32 %v1987_v1, %v3780_v45 }
 0x21f   : > { %v1731_v57 = vpop.f32.mrf.mxu2 }
 0x220   : > { %2109 = vst [vmem:[%s3538_s14 + $0x108] sm:$0xff] %v2061_v14  ;;  %v1732_v5 = vadd.f32 %v1731_v57, %v1603_v4  ;;  %v1860_v16 = vpop.f32.mrf.mxu3 }
 0x221   : > { %v1604_v25 = vpop.f32.mrf.mxu1 }
 0x222   : > { %v1861_v13 = vadd.f32 %v1860_v16, %v1732_v5  ;;  %v1605_v26 = vadd.f32 %v1604_v25, %v1476_v44  ;;  %v3896_v44 = vld [vmem:[#allocation4_spill] sm:$0xff] }
 0x223   : > { %v1991_v47 = vpop.f32.mrf.mxu0 }
 0x224   : > { %v1990_v38 = vadd.f32 %v1989_v30, %v1861_v13  ;;  %v3895_v30 = vld [vmem:[#allocation3_spill] sm:$0xff] }
 0x225   : > { %v1489_v36 = vadd.f32 %v3772_v46, %v3895_v30 }
 0x226   : > { %v2062_v6 = vmax.f32 %v1990_v38, %v3780_v45  ;;  %v1491_v38 = vadd.f32 %v3772_v46, %v3896_v44 }
 0x227   : > { %v1733_v60 = vpop.f32.mrf.mxu2 }
 0x228   : > { %2110 = vst [vmem:[%s3538_s14 + $0x110] sm:$0xff] %v2062_v6  ;;  %v1734_v2 = vadd.f32 %v1733_v60, %v1605_v26  ;;  %v1862_v3 = vpop.f32.mrf.mxu3 }
 0x229   : > { %v1607_v8 = vpop.f32.mrf.mxu1 }
 0x22a   : > { %v1863_v51 = vadd.f32 %v1862_v3, %v1734_v2  ;;  %v1608_v62 = vadd.f32 %v1607_v8, %v1479_v28 }
 0x22b   : > { %v1994_v49 = vpop.f32.mrf.mxu0 }
 0x22c   : > { %v1992_v24 = vadd.f32 %v1991_v47, %v1863_v51 }
 0x22e   : > { %v2063_v32 = vmax.f32 %v1992_v24, %v3780_v45  ;;  %v3897_v24 = vld [vmem:[#allocation5_spill] sm:$0xff] }
 0x22f   : > { %v1736_v33 = vpop.f32.mrf.mxu2 }
 0x230   : > { %2111 = vst [vmem:[%s3538_s14 + $0x118] sm:$0xff] %v2063_v32  ;;  %v1737_v40 = vadd.f32 %v1736_v33, %v1608_v62  ;;  %v1865_v42 = vpop.f32.mrf.mxu3  ;;  %v1494_v32 = vadd.f32 %v3772_v46, %v3897_v24 }
 0x231   : > { %v1609_v10 = vpop.f32.mrf.mxu1 }
 0x232   : > { %v1866_v43 = vadd.f32 %v1865_v42, %v1737_v40  ;;  %v1610_v19 = vadd.f32 %v1609_v10, %v1481_v21 }
 0x233   : > { %v1996_v15 = vpop.f32.mrf.mxu0 }
 0x234   : > { %v1995_v12 = vadd.f32 %v1994_v49, %v1866_v43 }
 0x236   : > { %v2064_v17 = vmax.f32 %v1995_v12, %v3780_v45 }
 0x237   : > { %v1738_v18 = vpop.f32.mrf.mxu2 }
 0x238   : > { %2112 = vst [vmem:[%s3538_s14 + $0x120] sm:$0xff] %v2064_v17  ;;  %v1739_v0 = vadd.f32 %v1738_v18, %v1610_v19  ;;  %v1867_v20 = vpop.f32.mrf.mxu3  ;;  %v3898_v17 = vld [vmem:[#allocation6_spill] sm:$0xff] }
 0x239   : > { %v1612_v41 = vpop.f32.mrf.mxu1  ;;  %v1496_v19 = vadd.f32 %v3772_v46, %v3898_v17 }
 0x23a   : > { %v1868_v50 = vadd.f32 %v1867_v20, %v1739_v0  ;;  %v1613_v31 = vadd.f32 %v1612_v41, %v1484_v59 }
 0x23b   : > { %v1999_v9 = vpop.f32.mrf.mxu0 }
 0x23c   : > { %v1997_v52 = vadd.f32 %v1996_v15, %v1868_v50 }
 0x23e   : > { %v2065_v27 = vmax.f32 %v1997_v52, %v3780_v45 }
 0x23f   : > { %v1741_v35 = vpop.f32.mrf.mxu2 }
 0x240   : > { %2113 = vst [vmem:[%s3538_s14 + $0x128] sm:$0xff] %v2065_v27  ;;  %v1742_v54 = vadd.f32 %v1741_v35, %v1613_v31  ;;  %v1870_v29 = vpop.f32.mrf.mxu3  ;;  %v3899_v27 = vld [vmem:[#allocation7_spill] sm:$0xff] }
 0x241   : > { %v1614_v61 = vpop.f32.mrf.mxu1  ;;  %v1499_v31 = vadd.f32 %v3772_v46, %v3899_v27 }
 0x242   : > { %v1871_v58 = vadd.f32 %v1870_v29, %v1742_v54  ;;  %v1615_v39 = vadd.f32 %v1614_v61, %v1486_v23 }
 0x243   : > { %v2001_v63 = vpop.f32.mrf.mxu0 }
 0x244   : > { %v2000_v56 = vadd.f32 %v1999_v9, %v1871_v58 }
 0x246   : > { %v2066_v34 = vmax.f32 %v2000_v56, %v3780_v45 }
 0x247   : > { %v1743_v48 = vpop.f32.mrf.mxu2 }
 0x248   : > { %2114 = vst [vmem:[%s3538_s14 + $0x130] sm:$0xff] %v2066_v34  ;;  %v1744_v11 = vadd.f32 %v1743_v48, %v1615_v39  ;;  %v1872_v37 = vpop.f32.mrf.mxu3  ;;  %v3900_v34 = vld [vmem:[#allocation8_spill] sm:$0xff] }
 0x249   : > { %v1617_v7 = vpop.f32.mrf.mxu1  ;;  %v1501_v39 = vadd.f32 %v3772_v46, %v3900_v34 }
 0x24a   : > { %v1873_v22 = vadd.f32 %v1872_v37, %v1744_v11  ;;  %v1618_v4 = vadd.f32 %v1617_v7, %v1489_v36 }
 0x24b   : > { %v2004_v55 = vpop.f32.mrf.mxu0 }
 0x24c   : > { %v2002_v1 = vadd.f32 %v2001_v63, %v1873_v22 }
 0x24e   : > { %v2067_v14 = vmax.f32 %v2002_v1, %v3780_v45 }
 0x24f   : > { %v1746_v57 = vpop.f32.mrf.mxu2 }
 0x250   : > { %2115 = vst [vmem:[%s3538_s14 + $0x138] sm:$0xff] %v2067_v14  ;;  %v1747_v5 = vadd.f32 %v1746_v57, %v1618_v4  ;;  %v1875_v16 = vpop.f32.mrf.mxu3  ;;  %v3901_v14 = vld [vmem:[#allocation9_spill] sm:$0xff] }
 0x251   : > { %v1619_v25 = vpop.f32.mrf.mxu1  ;;  %v1504_v4 = vadd.f32 %v3772_v46, %v3901_v14 }
 0x252   : > { %v1876_v13 = vadd.f32 %v1875_v16, %v1747_v5  ;;  %v1620_v60 = vadd.f32 %v1619_v25, %v1491_v38 }
 0x253   : > { %v2006_v47 = vpop.f32.mrf.mxu0 }
 0x254   : > { %v2005_v6 = vadd.f32 %v2004_v55, %v1876_v13 }
 0x256   : > { %v2068_v26 = vmax.f32 %v2005_v6, %v3780_v45 }
 0x257   : > { %v1748_v2 = vpop.f32.mrf.mxu2 }
 0x258   : > { %2116 = vst [vmem:[%s3538_s14 + $0x140] sm:$0xff] %v2068_v26  ;;  %v1749_v3 = vadd.f32 %v1748_v2, %v1620_v60  ;;  %v1877_v8 = vpop.f32.mrf.mxu3  ;;  %v3902_v26 = vld [vmem:[#allocation10_spill] sm:$0xff] }
 0x259   : > { %v1622_v51 = vpop.f32.mrf.mxu1  ;;  %v1506_v60 = vadd.f32 %v3772_v46, %v3902_v26 }
 0x25a   : > { %v1878_v49 = vadd.f32 %v1877_v8, %v1749_v3  ;;  %v1623_v40 = vadd.f32 %v1622_v51, %v1494_v32 }
 0x25b   : > { %v2009_v28 = vpop.f32.mrf.mxu0 }
 0x25c   : > { %v2007_v62 = vadd.f32 %v2006_v47, %v1878_v49 }
 0x25e   : > { %v2069_v33 = vmax.f32 %v2007_v62, %v3780_v45 }
 0x25f   : > { %v1751_v42 = vpop.f32.mrf.mxu2 }
 0x260   : > { %2117 = vst [vmem:[%s3538_s14 + $0x148] sm:$0xff] %v2069_v33  ;;  %v1752_v10 = vadd.f32 %v1751_v42, %v1623_v40  ;;  %v1880_v43 = vpop.f32.mrf.mxu3 }
 0x261   : > { %v1624_v15 = vpop.f32.mrf.mxu1 }
 0x262   : > { %v1881_v21 = vadd.f32 %v1880_v43, %v1752_v10  ;;  %v1625_v20 = vadd.f32 %v1624_v15, %v1496_v19 }
 0x263   : > { %v2011_v12 = vpop.f32.mrf.mxu0 }
 0x264   : > { %v2010_v18 = vadd.f32 %v2009_v28, %v1881_v21 }
 0x266   : > { %v2070_v0 = vmax.f32 %v2010_v18, %v3780_v45 }
 0x267   : > { %v1753_v41 = vpop.f32.mrf.mxu2 }
 0x268   : > { %2118 = vst [vmem:[%s3538_s14 + $0x150] sm:$0xff] %v2070_v0  ;;  %v1754_v50 = vadd.f32 %v1753_v41, %v1625_v20  ;;  %v1882_v9 = vpop.f32.mrf.mxu3 }
 0x269   : > { %v1627_v59 = vpop.f32.mrf.mxu1 }
 0x26a   : > { %v1883_v52 = vadd.f32 %v1882_v9, %v1754_v50  ;;  %v1628_v61 = vadd.f32 %v1627_v59, %v1499_v31 }
 0x26b   : > { %v2014_v54 = vpop.f32.mrf.mxu0 }
 0x26c   : > { %v2012_v35 = vadd.f32 %v2011_v12, %v1883_v52 }
 0x26e   : > { %v2071_v29 = vmax.f32 %v2012_v35, %v3780_v45 }
 0x26f   : > { %v1756_v58 = vpop.f32.mrf.mxu2 }
 0x270   : > { %2119 = vst [vmem:[%s3538_s14 + $0x158] sm:$0xff] %v2071_v29  ;;  %v1757_v63 = vadd.f32 %v1756_v58, %v1628_v61  ;;  %v1885_v53 = vpop.f32.mrf.mxu3 }
 0x271   : > { %v1629_v23 = vpop.f32.mrf.mxu1 }
 0x272   : > { %v1886_v56 = vadd.f32 %v1885_v53, %v1757_v63  ;;  %v1630_v37 = vadd.f32 %v1629_v23, %v1501_v39 }
 0x273   : > { %v2016_v7 = vpop.f32.mrf.mxu0 }
 0x274   : > { %v2015_v48 = vadd.f32 %v2014_v54, %v1886_v56 }
 0x276   : > { %v2072_v11 = vmax.f32 %v2015_v48, %v3780_v45 }
 0x277   : > { %v1758_v22 = vpop.f32.mrf.mxu2 }
 0x278   : > { %2120 = vst [vmem:[%s3538_s14 + $0x160] sm:$0xff] %v2072_v11  ;;  %v1759_v55 = vadd.f32 %v1758_v22, %v1630_v37  ;;  %v1887_v30 = vpop.f32.mrf.mxu3 }
 0x279   : > { %v1632_v36 = vpop.f32.mrf.mxu1 }
 0x27a   : > { %v1888_v1 = vadd.f32 %v1887_v30, %v1759_v55  ;;  %v1633_v16 = vadd.f32 %v1632_v36, %v1504_v4 }
 0x27b   : > { %v2019_v44 = vpop.f32.mrf.mxu0 }
 0x27c   : > { %v2017_v57 = vadd.f32 %v2016_v7, %v1888_v1 }
 0x27e   : > { %v2073_v5 = vmax.f32 %v2017_v57, %v3780_v45 }
 0x27f   : > { %v1761_v25 = vpop.f32.mrf.mxu2 }
 0x280   : > { %2121 = vst [vmem:[%s3538_s14 + $0x168] sm:$0xff] %v2073_v5  ;;  %v1762_v13 = vadd.f32 %v1761_v25, %v1633_v16  ;;  %v1890_v47 = vpop.f32.mrf.mxu3 }
 0x281   : > { %v1634_v6 = vpop.f32.mrf.mxu1 }
 0x282   : > { %v1891_v38 = vadd.f32 %v1890_v47, %v1762_v13  ;;  %v1635_v8 = vadd.f32 %v1634_v6, %v1506_v60 }
 0x283   : > { %v2021_v32 = vpop.f32.mrf.mxu0 }
 0x284   : > { %v2020_v2 = vadd.f32 %v2019_v44, %v1891_v38 }
 0x286   : > { %v2074_v3 = vmax.f32 %v2020_v2, %v3780_v45 }
 0x287   : > { %v1763_v51 = vpop.f32.mrf.mxu2 }
 0x288   : > { %2122 = vst [vmem:[%s3538_s14 + $0x170] sm:$0xff] %v2074_v3  ;;  %v1764_v49 = vadd.f32 %v1763_v51, %v1635_v8  ;;  %v1892_v28 = vpop.f32.mrf.mxu3 }
 0x28a   : > { %v1893_v24 = vadd.f32 %v1892_v28, %v1764_v49 }
 0x28c   : > { %v2022_v62 = vadd.f32 %v2021_v32, %v1893_v24 }
 0x28e   : > { %v2075_v33 = vmax.f32 %v2022_v62, %v3780_v45 }
 0x290   : > { %2123 = vst [vmem:[%s3538_s14 + $0x178] sm:$0xff] %v2075_v33 }
 0x291 PF: > { %s14_s17 = sadd.s32 1, %s3129_s17   ;;  %s3903_s15 = smov %s3125_s16 }
 0x292   : > { %p11_p5 = scmp.ge.s32.totalorder %s14_s17, 5   ;;  %s3904_s16 = smov %s3906_s18 }
 0x294   :  { %13 = sbr.rel (!%p11_p5) target bundleno = 2 (0x2), region = 75 }

// kernel: guidance_forward.27
= control target key start
LH: loop header
LB: loop body
LE: loop exit
PB: predicated region body
PF: predicated region fallthrough
CT: control target
= control target key end

     0   :  { %s1562_s15 = smov 0   ;;  %s1564_s16 = smov 0   ;;  %s1928_s0 = inlined_call_operand.vmem [shape: bf16[1152,144], index: 0, kind: input, shape index: {}]   ;;  %s1929_s1 = inlined_call_operand.vmem [shape: bf16[144,128], index: 1, kind: input, shape index: {}]   ;;  %s1930_s2 = inlined_call_operand.vmem [shape: f32[1,128], index: 2, kind: input, shape index: {}]   ;;  %s1931_s3 = inlined_call_operand.vmem [shape: f32[1,128], index: 3, kind: input, shape index: {}]   ;;  %s1932_s4 = inlined_call_operand.vmem [shape: f32[1152,128], index: 4, kind: output, shape index: {}]  }
   0x1   :  { %s1566_s17 = smov 0  }
   0x2 LB: > { %s26_s18 = sadd.s32 1, %s1531_s16  ;;  %p1162_p0 = scmp.ge.s32.totalorder %s1535_s17, 1  ;;  %s1535_s17 = sphi %s1566_s17, %s14_s17   ;;  %s1531_s16 = sphi %s1564_s16, %s1934_s16   ;;  %s1527_s15 = sphi %s1562_s15, %s1933_s15  }
   0x3   : > { %p28_p1 = scmp.ge.s32.totalorder %s26_s18, 3  ;;  %p203_p2 = scmp.lt.s32.totalorder %s1535_s17, 4 }
   0x5   : > { %s1936_s18 = smov (%p28_p1, %s26_s18), 0  ;;  %p204_p3 = pnand %p1162_p0, %p203_p2 }
   0x6   : > { %s243_s23 = smul.u32 (!%p204_p3), 48, %s1527_s15 }
   0x7   : > { %207 = sbr.rel (%p204_p3) target bundleno = 367 (0x16f), region = 36 }
   0x8   : > { %p244_p4 = scmp.lt.s32.totalorder (!%p204_p3), %s243_s23, 143 }
   0xc   : > { %v1476_v0 = vld [vmem:[%s1929_s1 + $0x38] sm:$0xff]  ;;  %v1477_v1 = vld [vmem:[%s1929_s1 + $0x40] sm:$0xff]  ;;  %v1475_v2 = vld [vmem:[%s1929_s1 + $0x30] sm:$0xff]  ;;  %s1938_s23 = smov (!%p244_p4, %s243_s23), 143  ;;  %vm610_vm0 = vcmask 130048  }
   0xd   : > { %683 = vmatpush.bf16.msra.mxu0 %v1476_v0  ;;  %1478 = vmatpush.bf16.msra.mxu2 %v1476_v0  ;;  %v1474_v3 = vld [vmem:[%s1929_s1 + $0x28] sm:$0xff]  ;;  %s1420_s28 = sshll.u32 %s1938_s23, 3  ;;  %v1473_v7 = vld [vmem:[%s1929_s1 + $0x20] sm:$0xff]  ;;  %v1472_v11 = vld [vmem:[%s1929_s1 + $0x18] sm:$0xff] }
   0xe   : > { %819 = vmatpush.bf16.msra.mxu1 %v1477_v1  ;;  %1486 = vmatpush.bf16.msra.mxu3 %v1477_v1  ;;  %s1600_s5 = scalar_lea.vmem %s1928_s0, %s1420_s28  ;;  %v1471_v12 = vld [vmem:[%s1929_s1 + $0x10] sm:$0xff]  ;;  %v1470_v15 = vld [vmem:[%s1929_s1 + $0x8] sm:$0xff]  ;;  %v1469_v19 = vld [vmem:[%s1929_s1] sm:$0xff]  ;;  %s1733_s26 = scalar_lea.vmem %s1932_s4, %s1420_s28 }
   0xf   : > { %v1421_v4 = vld [vmem:[%s1600_s5 + $0x4] sm:$0xf]  ;;  %v1170_v5 = vld [vmem:[%s1600_s5 + $0x8] sm:$0xf0]  ;;  %v1447_v8 = vld [vmem:[%s1600_s5 + $0xd4] sm:$0xf] }
  0x10   : > { %v1173_v6 = vor.u32 %v1421_v4, %v1170_v5  ;;  %v1274_v9 = vld [vmem:[%s1600_s5 + $0xd8] sm:$0xf0]  ;;  %v1423_v13 = vld [vmem:[%s1600_s5 + $0x14] sm:$0xf]  ;;  %v1449_v17 = vld [vmem:[%s1600_s5 + $0xe4] sm:$0xf] }
  0x11   : > { %684 = vmatpush.bf16.msra.mxu0 %v1475_v2  ;;  %1479 = vmatpush.bf16.msra.mxu2 %v1475_v2  ;;  %v1277_v10 = vor.u32 %v1447_v8, %v1274_v9  ;;  %v1178_v14 = vld [vmem:[%s1600_s5 + $0x18] sm:$0xf0]  ;;  %v1282_v18 = vld [vmem:[%s1600_s5 + $0xe8] sm:$0xf0]  ;;  %v1168_v20 = vld [vmem:[%s1600_s5] sm:$0xf] }
  0x12   : > { %1394 = vmatmul.msk.bf16.vlgmr.msra.gmra.mxu1 %vm610_vm0, %v1173_v6  ;;  %v1181_v16 = vor.u32 %v1423_v13, %v1178_v14  ;;  %v1422_v21 = vld [vmem:[%s1600_s5 + $0x4] sm:$0xf0]  ;;  %v1264_v22 = vld [vmem:[%s1600_s5 + $0xc0] sm:$0xf]  ;;  %v1285_v24 = vor.u32 %v1449_v17, %v1282_v18  ;;  %v1425_v27 = vld [vmem:[%s1600_s5 + $0x24] sm:$0xf] }
  0x13   : > { %1407 = vmatmul.msk.bf16.vlgmr.msra.gmra.mxu3 %vm610_vm0, %v1277_v10  ;;  %v1446_v23 = vld [vmem:[%s1600_s5 + $0xc4] sm:$0xf0]  ;;  %v1169_v25 = vor.u32 %v1422_v21, %v1168_v20  ;;  %v1186_v28 = vld [vmem:[%s1600_s5 + $0x28] sm:$0xf0]  ;;  %v1451_v30 = vld [vmem:[%s1600_s5 + $0xf4] sm:$0xf] }
  0x14   : > { %v1265_v26 = vor.u32 %v1446_v23, %v1264_v22  ;;  %v1189_v29 = vor.u32 %v1425_v27, %v1186_v28  ;;  %v1290_v31 = vld [vmem:[%s1600_s5 + $0xf8] sm:$0xf0]  ;;  %v1176_v32 = vld [vmem:[%s1600_s5 + $0x10] sm:$0xf]  ;;  %v1424_v33 = vld [vmem:[%s1600_s5 + $0x14] sm:$0xf0] }
  0x15   : > { %685 = vmatpush.bf16.msra.mxu0 %v1474_v3  ;;  %1480 = vmatpush.bf16.msra.mxu2 %v1474_v3  ;;  %v1272_v34 = vld [vmem:[%s1600_s5 + $0xd0] sm:$0xf]  ;;  %v1448_v35 = vld [vmem:[%s1600_s5 + $0xd4] sm:$0xf0]  ;;  %v1293_v36 = vor.u32 %v1451_v30, %v1290_v31  ;;  %v1177_v37 = vor.u32 %v1424_v33, %v1176_v32  ;;  %v1427_v39 = vld [vmem:[%s1600_s5 + $0x34] sm:$0xf] }
  0x16   : > { %v1273_v38 = vor.u32 %v1448_v35, %v1272_v34  ;;  %v1194_v40 = vld [vmem:[%s1600_s5 + $0x38] sm:$0xf0]  ;;  %v1453_v42 = vld [vmem:[%s1600_s5 + $0x104] sm:$0xf]  ;;  %v1298_v43 = vld [vmem:[%s1600_s5 + $0x108] sm:$0xf0] }
  0x17   : > { %v1197_v41 = vor.u32 %v1427_v39, %v1194_v40  ;;  %v1184_v44 = vld [vmem:[%s1600_s5 + $0x20] sm:$0xf]  ;;  %v1426_v45 = vld [vmem:[%s1600_s5 + $0x24] sm:$0xf0]  ;;  %v1301_v48 = vor.u32 %v1453_v42, %v1298_v43  ;;  %v1429_v51 = vld [vmem:[%s1600_s5 + $0x44] sm:$0xf] }
  0x18   : > { %v1280_v46 = vld [vmem:[%s1600_s5 + $0xe0] sm:$0xf]  ;;  %v1450_v47 = vld [vmem:[%s1600_s5 + $0xe4] sm:$0xf0]  ;;  %v1185_v49 = vor.u32 %v1426_v45, %v1184_v44  ;;  %v1202_v52 = vld [vmem:[%s1600_s5 + $0x48] sm:$0xf0] }
  0x19   : > { %686 = vmatpush.bf16.msra.mxu0 %v1473_v7  ;;  %1481 = vmatpush.bf16.msra.mxu2 %v1473_v7  ;;  %v1281_v50 = vor.u32 %v1450_v47, %v1280_v46  ;;  %v1205_v53 = vor.u32 %v1429_v51, %v1202_v52  ;;  %v1455_v54 = vld [vmem:[%s1600_s5 + $0x114] sm:$0xf]  ;;  %v1306_v55 = vld [vmem:[%s1600_s5 + $0x118] sm:$0xf0]  ;;  %v1192_v56 = vld [vmem:[%s1600_s5 + $0x30] sm:$0xf] }
  0x1a   : > { %v1428_v57 = vld [vmem:[%s1600_s5 + $0x34] sm:$0xf0]  ;;  %v1288_v58 = vld [vmem:[%s1600_s5 + $0xf0] sm:$0xf]  ;;  %v1309_v60 = vor.u32 %v1455_v54, %v1306_v55  ;;  %v1431_v63 = vld [vmem:[%s1600_s5 + $0x54] sm:$0xf] }
  0x1b   : > { %v1452_v59 = vld [vmem:[%s1600_s5 + $0xf4] sm:$0xf0]  ;;  %v1193_v61 = vor.u32 %v1428_v57, %v1192_v56  ;;  %v1210_v0 = vld [vmem:[%s1600_s5 + $0x58] sm:$0xf0]  ;;  %v1457_v2 = vld [vmem:[%s1600_s5 + $0x124] sm:$0xf] }
  0x1c   : > { %v1289_v62 = vor.u32 %v1452_v59, %v1288_v58  ;;  %v1213_v1 = vor.u32 %v1431_v63, %v1210_v0  ;;  %v1314_v3 = vld [vmem:[%s1600_s5 + $0x128] sm:$0xf0]  ;;  %v1200_v4 = vld [vmem:[%s1600_s5 + $0x40] sm:$0xf]  ;;  %v1430_v5 = vld [vmem:[%s1600_s5 + $0x44] sm:$0xf0] }
  0x1d   : > { %687 = vmatpush.bf16.msra.mxu0 %v1472_v11  ;;  %1482 = vmatpush.bf16.msra.mxu2 %v1472_v11  ;;  %v1296_v6 = vld [vmem:[%s1600_s5 + $0x100] sm:$0xf]  ;;  %v1454_v7 = vld [vmem:[%s1600_s5 + $0x104] sm:$0xf0]  ;;  %v1317_v8 = vor.u32 %v1457_v2, %v1314_v3  ;;  %v1201_v9 = vor.u32 %v1430_v5, %v1200_v4  ;;  %v1433_v11 = vld [vmem:[%s1600_s5 + $0x64] sm:$0xf] }
  0x1e   : > { %v1297_v10 = vor.u32 %v1454_v7, %v1296_v6  ;;  %v1459_v14 = vld [vmem:[%s1600_s5 + $0x134] sm:$0xf]  ;;  %v1432_v17 = vld [vmem:[%s1600_s5 + $0x54] sm:$0xf0]  ;;  %v1304_v18 = vld [vmem:[%s1600_s5 + $0x110] sm:$0xf] }
  0x1f   : > { %v1435_v23 = vld [vmem:[%s1600_s5 + $0x74] sm:$0xf]  ;;  %v1216_v27 = vld [vmem:[%s1600_s5 + $0x60] sm:$0xf]  ;;  %v1330_v28 = vld [vmem:[%s1600_s5 + $0x148] sm:$0xf0] }
  0x20   : > { %v1312_v30 = vld [vmem:[%s1600_s5 + $0x120] sm:$0xf]  ;;  %v1458_v31 = vld [vmem:[%s1600_s5 + $0x124] sm:$0xf0]  ;;  %v1437_v35 = vld [vmem:[%s1600_s5 + $0x84] sm:$0xf] }
  0x21   : > { %688 = vmatpush.bf16.msra.mxu0 %v1471_v12  ;;  %1483 = vmatpush.bf16.msra.mxu2 %v1471_v12  ;;  %v1218_v12 = vld [vmem:[%s1600_s5 + $0x68] sm:$0xf0]  ;;  %v1313_v34 = vor.u32 %v1458_v31, %v1312_v30  ;;  %v1463_v39 = vld [vmem:[%s1600_s5 + $0x154] sm:$0xf]  ;;  %v1224_v40 = vld [vmem:[%s1600_s5 + $0x70] sm:$0xf] }
  0x22   : > { %1395 = vmatmul.msk.bf16.gmra.mxu1 %vm610_vm0, %v1181_v16  ;;  %v1221_v13 = vor.u32 %v1433_v11, %v1218_v12  ;;  %v1322_v16 = vld [vmem:[%s1600_s5 + $0x138] sm:$0xf0]  ;;  %v1436_v42 = vld [vmem:[%s1600_s5 + $0x74] sm:$0xf0]  ;;  %v1320_v43 = vld [vmem:[%s1600_s5 + $0x130] sm:$0xf] }
  0x23   : > { %1408 = vmatmul.msk.bf16.gmra.mxu3 %vm610_vm0, %v1285_v24  ;;  %v1325_v20 = vor.u32 %v1459_v14, %v1322_v16  ;;  %v1226_v24 = vld [vmem:[%s1600_s5 + $0x78] sm:$0xf0]  ;;  %v1460_v44 = vld [vmem:[%s1600_s5 + $0x134] sm:$0xf0]  ;;  %v1225_v46 = vor.u32 %v1436_v42, %v1224_v40  ;;  %v1465_v54 = vld [vmem:[%s1600_s5 + $0x164] sm:$0xf] }
  0x24   : > { %v1321_v47 = vor.u32 %v1460_v44, %v1320_v43  ;;  %v1242_v51 = vld [vmem:[%s1600_s5 + $0x98] sm:$0xf0]  ;;  %v1232_v55 = vld [vmem:[%s1600_s5 + $0x80] sm:$0xf]  ;;  %v1346_v56 = vld [vmem:[%s1600_s5 + $0x168] sm:$0xf0] }
  0x25   : > { %689 = vmatpush.bf16.msra.mxu0 %v1470_v15  ;;  %1484 = vmatpush.bf16.msra.mxu2 %v1470_v15  ;;  %v1208_v15 = vld [vmem:[%s1600_s5 + $0x50] sm:$0xf]  ;;  %v1438_v57 = vld [vmem:[%s1600_s5 + $0x84] sm:$0xf0]  ;;  %v1328_v58 = vld [vmem:[%s1600_s5 + $0x140] sm:$0xf] }
  0x26   : > { %v1209_v21 = vor.u32 %v1432_v17, %v1208_v15  ;;  %v1462_v59 = vld [vmem:[%s1600_s5 + $0x144] sm:$0xf0]  ;;  %v1233_v63 = vor.u32 %v1438_v57, %v1232_v55  ;;  %v1725_v3 = vld [vmem:[%s1931_s3] ss:$0 sm:$0xff]  ;;  %v1467_v15 = vld [vmem:[%s1600_s5 + $0x174] sm:$0xf] }
  0x27   : > { %v1329_v0 = vor.u32 %v1462_v59, %v1328_v58  ;;  %v1240_v17 = vld [vmem:[%s1600_s5 + $0x90] sm:$0xf] }
  0x29   : > { %690 = vmatpush.bf16.msra.mxu0 %v1469_v19  ;;  %1485 = vmatpush.bf16.msra.mxu2 %v1469_v19  ;;  %v1456_v19 = vld [vmem:[%s1600_s5 + $0x114] sm:$0xf0] }
  0x2a   : > { %v1305_v22 = vor.u32 %v1456_v19, %v1304_v18  ;;  %v1354_v18 = vld [vmem:[%s1600_s5 + $0x178] sm:$0xf0]  ;;  %v1440_v19 = vld [vmem:[%s1600_s5 + $0x94] sm:$0xf0] }
  0x2c   : > { %691 = vmatmul.bf16.vlgmr.msra.gmra.mxu0 %v1169_v25  ;;  %751 = vmatmul.bf16.vlgmr.msra.gmra.mxu2 %v1265_v26  ;;  %v1229_v25 = vor.u32 %v1435_v23, %v1226_v24  ;;  %v1461_v26 = vld [vmem:[%s1600_s5 + $0x144] sm:$0xf]  ;;  %v1357_v24 = vor.u32 %v1467_v15, %v1354_v18  ;;  %v1444_v15 = vld [vmem:[%s1600_s5 + $0xb4] sm:$0xf0] }
  0x2d   : > { %v1333_v32 = vor.u32 %v1461_v26, %v1330_v28  ;;  %v1241_v26 = vor.u32 %v1440_v19, %v1240_v17  ;;  %v1468_v17 = vld [vmem:[%s1600_s5 + $0x174] sm:$0xf0] }
  0x32   : > { %1396 = vmatmul.msk.bf16.gmra.mxu1 %vm610_vm0, %v1189_v29  ;;  %v1434_v29 = vld [vmem:[%s1600_s5 + $0x64] sm:$0xf0] }
  0x33   : > { %1409 = vmatmul.msk.bf16.gmra.mxu3 %vm610_vm0, %v1293_v36  ;;  %v1217_v33 = vor.u32 %v1434_v29, %v1216_v27  ;;  %v1234_v36 = vld [vmem:[%s1600_s5 + $0x88] sm:$0xf0] }
  0x3c   : > { %696 = vmatmul.bf16.gmra.mxu0 %v1177_v37  ;;  %756 = vmatmul.bf16.gmra.mxu2 %v1273_v38  ;;  %v1237_v37 = vor.u32 %v1437_v35, %v1234_v36  ;;  %v1258_v35 = vld [vmem:[%s1600_s5 + $0xb8] sm:$0xf0] }
  0x42   : > { %1397 = vmatmul.msk.bf16.gmra.mxu1 %vm610_vm0, %v1197_v41  ;;  %v1338_v41 = vld [vmem:[%s1600_s5 + $0x158] sm:$0xf0] }
  0x43   : > { %1410 = vmatmul.msk.bf16.gmra.mxu3 %vm610_vm0, %v1301_v48  ;;  %v1341_v45 = vor.u32 %v1463_v39, %v1338_v41 }
  0x4c   : > { %701 = vmatmul.bf16.gmra.mxu0 %v1185_v49  ;;  %761 = vmatmul.bf16.gmra.mxu2 %v1281_v50  ;;  %v1439_v50 = vld [vmem:[%s1600_s5 + $0x94] sm:$0xf] }
  0x4d   : > { %v1245_v52 = vor.u32 %v1439_v50, %v1242_v51 }
  0x52   : > { %1398 = vmatmul.msk.bf16.gmra.mxu1 %vm610_vm0, %v1205_v53 }
  0x53   : > { %1411 = vmatmul.msk.bf16.gmra.mxu3 %vm610_vm0, %v1309_v60 }
  0x5c   : > { %706 = vmatmul.bf16.gmra.mxu0 %v1193_v61  ;;  %766 = vmatmul.bf16.gmra.mxu2 %v1289_v62  ;;  %v1719_v61 = vld [vmem:[%s1930_s2] ss:$0 sm:$0xff]  ;;  %v1349_v62 = vor.u32 %v1465_v54, %v1346_v56 }
  0x62   : > { %1399 = vmatmul.msk.bf16.gmra.mxu1 %vm610_vm0, %v1213_v1 }
  0x63   : > { %1412 = vmatmul.msk.bf16.gmra.mxu3 %vm610_vm0, %v1317_v8 }
  0x6c   : > { %711 = vmatmul.bf16.gmra.mxu0 %v1201_v9  ;;  %771 = vmatmul.bf16.gmra.mxu2 %v1297_v10  ;;  %v1441_v9 = vld [vmem:[%s1600_s5 + $0xa4] sm:$0xf]  ;;  %v1250_v10 = vld [vmem:[%s1600_s5 + $0xa8] sm:$0xf0] }
  0x72   : > { %1400 = vmatmul.msk.bf16.gmra.mxu1 %vm610_vm0, %v1221_v13  ;;  %v1253_v13 = vor.u32 %v1441_v9, %v1250_v10 }
  0x73   : > { %1413 = vmatmul.msk.bf16.gmra.mxu3 %vm610_vm0, %v1325_v20  ;;  %v1336_v20 = vld [vmem:[%s1600_s5 + $0x150] sm:$0xf] }
  0x7c   : > { %716 = vmatmul.bf16.gmra.mxu0 %v1209_v21  ;;  %776 = vmatmul.bf16.gmra.mxu2 %v1305_v22  ;;  %v1464_v21 = vld [vmem:[%s1600_s5 + $0x154] sm:$0xf0] }
  0x7d   : > { %v1337_v27 = vor.u32 %v1464_v21, %v1336_v20 }
  0x82   : > { %1401 = vmatmul.msk.bf16.gmra.mxu1 %vm610_vm0, %v1229_v25 }
  0x83   : > { %1414 = vmatmul.msk.bf16.gmra.mxu3 %vm610_vm0, %v1333_v32 }
  0x8c   : > { %721 = vmatmul.bf16.gmra.mxu0 %v1217_v33  ;;  %781 = vmatmul.bf16.gmra.mxu2 %v1313_v34  ;;  %v1443_v34 = vld [vmem:[%s1600_s5 + $0xb4] sm:$0xf] }
  0x8d   : > { %v1261_v41 = vor.u32 %v1443_v34, %v1258_v35 }
  0x8f   : > { %v821_v38 = vpop.f32.mrf.mxu1 }
  0x92   : > { %1402 = vmatmul.msk.bf16.gmra.mxu1 %vm610_vm0, %v1237_v37 }
  0x93   : > { %1415 = vmatmul.msk.bf16.gmra.mxu3 %vm610_vm0, %v1341_v45  ;;  %v1248_v45 = vld [vmem:[%s1600_s5 + $0xa0] sm:$0xf] }
  0x96   : > { %v1703_v49 = vpop.f32.mrf.mxu3 }
  0x97   : > { %v823_v48 = vpop.f32.mrf.mxu1 }
  0x9c   : > { %726 = vmatmul.bf16.gmra.mxu0 %v1225_v46  ;;  %786 = vmatmul.bf16.gmra.mxu2 %v1321_v47  ;;  %v1442_v46 = vld [vmem:[%s1600_s5 + $0xa4] sm:$0xf0]  ;;  %v1344_v47 = vld [vmem:[%s1600_s5 + $0x160] sm:$0xf] }
  0x9e   : > { %v1713_v60 = vpop.f32.mrf.mxu3 }
  0x9f   : > { %v826_v53 = vpop.f32.mrf.mxu1 }
  0xa2   : > { %1403 = vmatmul.msk.bf16.gmra.mxu1 %vm610_vm0, %v1245_v52  ;;  %v1249_v52 = vor.u32 %v1442_v46, %v1248_v45 }
  0xa3   : > { %1416 = vmatmul.msk.bf16.gmra.mxu3 %vm610_vm0, %v1349_v62 }
  0xa6   : > { %v1735_v6 = vpop.f32.mrf.mxu3 }
  0xa7   : > { %v828_v4 = vpop.f32.mrf.mxu1 }
  0xa9   : > { %v692_v1 = vpop.f32.mrf.mxu0 }
  0xaa   : > { %v693_v2 = vadd.f32 %v1719_v61, %v692_v1  ;;  %v1445_v1 = vld [vmem:[%s1600_s5 + $0xc4] sm:$0xf] }
  0xac   : > { %v822_v5 = vadd.f32 %v821_v38, %v693_v2  ;;  %731 = vmatmul.bf16.gmra.mxu0 %v1233_v63  ;;  %791 = vmatmul.bf16.gmra.mxu2 %v1329_v0  ;;  %v1266_v2 = vld [vmem:[%s1600_s5 + $0xc8] sm:$0xf0] }
  0xad   : > { %v1269_v9 = vor.u32 %v1445_v1, %v1266_v2 }
  0xae   : > { %v945_v7 = vmax.f32 %v822_v5, %v1725_v3  ;;  %v1750_v22 = vpop.f32.mrf.mxu3 }
  0xaf   : > { %v1738_v8 = vpop.f32.mrf.mxu2  ;;  %v831_v14 = vpop.f32.mrf.mxu1 }
  0xb0   : > { %993 = vst [vmem:[%s1733_s26] sm:$0xff] %v945_v7 }
  0xb1   : > { %v694_v11 = vpop.f32.mrf.mxu0 }
  0xb2   : > { %v695_v12 = vadd.f32 %v1719_v61, %v694_v11  ;;  %1404 = vmatmul.msk.bf16.gmra.mxu1 %vm610_vm0, %v1253_v13 }
  0xb3   : > { %1417 = vmatmul.msk.bf16.gmra.mxu3 %vm610_vm0, %v1357_v24 }
  0xb4   : > { %v824_v16 = vadd.f32 %v823_v48, %v695_v12  ;;  %v1466_v48 = vld [vmem:[%s1600_s5 + $0x164] sm:$0xf0] }
  0xb6   : > { %v946_v23 = vmax.f32 %v824_v16, %v1725_v3  ;;  %v1762_v36 = vpop.f32.mrf.mxu3  ;;  %v1352_v16 = vld [vmem:[%s1600_s5 + $0x170] sm:$0xf] }
  0xb7   : > { %v1754_v25 = vpop.f32.mrf.mxu2  ;;  %v833_v30 = vpop.f32.mrf.mxu1  ;;  %v1353_v21 = vor.u32 %v1468_v17, %v1352_v16 }
  0xb8   : > { %994 = vst [vmem:[%s1733_s26 + $0x8] sm:$0xff] %v946_v23 }
  0xb9   : > { %v697_v28 = vpop.f32.mrf.mxu0 }
  0xba   : > { %v698_v29 = vadd.f32 %v1719_v61, %v697_v28 }
  0xbc   : > { %v827_v31 = vadd.f32 %v826_v53, %v698_v29  ;;  %736 = vmatmul.bf16.gmra.mxu0 %v1241_v26  ;;  %796 = vmatmul.bf16.gmra.mxu2 %v1337_v27  ;;  %v1345_v53 = vor.u32 %v1466_v48, %v1344_v47 }
  0xbe   : > { %v947_v32 = vmax.f32 %v827_v31, %v1725_v3  ;;  %v898_v55 = vpop.f32.mrf.mxu3 }
  0xbf   : > { %v757_v33 = vpop.f32.mrf.mxu2  ;;  %v836_v42 = vpop.f32.mrf.mxu1 }
  0xc0   : > { %995 = vst [vmem:[%s1733_s26 + $0x10] sm:$0xff] %v947_v32  ;;  %v758_v37 = vadd.f32 %v1719_v61, %v757_v33 }
  0xc1   : > { %v699_v38 = vpop.f32.mrf.mxu0 }
  0xc2   : > { %v887_v39 = vadd.f32 %v1703_v49, %v758_v37  ;;  %v700_v40 = vadd.f32 %v1719_v61, %v699_v38  ;;  %1405 = vmatmul.msk.bf16.gmra.mxu1 %vm610_vm0, %v1261_v41 }
  0xc4   : > { %v971_v43 = vmax.f32 %v887_v39, %v1725_v3  ;;  %v829_v44 = vadd.f32 %v828_v4, %v700_v40 }
  0xc6   : > { %1019 = vst [vmem:[%s1733_s26 + $0xd0] sm:$0xff] %v971_v43  ;;  %v948_v50 = vmax.f32 %v829_v44, %v1725_v3  ;;  %v901_v11 = vpop.f32.mrf.mxu3 }
  0xc7   : > { %v759_v51 = vpop.f32.mrf.mxu2  ;;  %v838_v58 = vpop.f32.mrf.mxu1 }
  0xc8   : > { %996 = vst [vmem:[%s1733_s26 + $0x18] sm:$0xff] %v948_v50  ;;  %v760_v49 = vadd.f32 %v1719_v61, %v759_v51 }
  0xc9   : > { %v702_v54 = vpop.f32.mrf.mxu0 }
  0xca   : > { %v889_v56 = vadd.f32 %v1713_v60, %v760_v49  ;;  %v703_v57 = vadd.f32 %v1719_v61, %v702_v54 }
  0xcc   : > { %v972_v59 = vmax.f32 %v889_v56, %v1725_v3  ;;  %v832_v62 = vadd.f32 %v831_v14, %v703_v57  ;;  %741 = vmatmul.bf16.gmra.mxu0 %v1249_v52  ;;  %801 = vmatmul.bf16.gmra.mxu2 %v1345_v53  ;;  %v1256_v14 = vld [vmem:[%s1600_s5 + $0xb0] sm:$0xf] }
  0xcd   : > { %v1257_v20 = vor.u32 %v1444_v15, %v1256_v14 }
  0xce   : > { %1020 = vst [vmem:[%s1733_s26 + $0xd8] sm:$0xff] %v972_v59  ;;  %v949_v63 = vmax.f32 %v832_v62, %v1725_v3 }
  0xcf   : > { %v762_v0 = vpop.f32.mrf.mxu2  ;;  %v841_v10 = vpop.f32.mrf.mxu1 }
  0xd0   : > { %997 = vst [vmem:[%s1733_s26 + $0x20] sm:$0xff] %v949_v63  ;;  %v763_v60 = vadd.f32 %v1719_v61, %v762_v0 }
  0xd1   : > { %v704_v4 = vpop.f32.mrf.mxu0 }
  0xd2   : > { %v892_v5 = vadd.f32 %v1735_v6, %v763_v60  ;;  %v705_v7 = vadd.f32 %v1719_v61, %v704_v4  ;;  %1406 = vmatmul.msk.bf16.gmra.mxu1 %vm610_vm0, %v1269_v9 }
  0xd4   : > { %v973_v12 = vmax.f32 %v892_v5, %v1725_v3  ;;  %v834_v13 = vadd.f32 %v833_v30, %v705_v7  ;;  %v903_v30 = vpop.f32.mrf.mxu3 }
  0xd6   : > { %1021 = vst [vmem:[%s1733_s26 + $0xe0] sm:$0xff] %v973_v12  ;;  %v950_v18 = vmax.f32 %v834_v13, %v1725_v3 }
  0xd7   : > { %v764_v19 = vpop.f32.mrf.mxu2  ;;  %v843_v27 = vpop.f32.mrf.mxu1 }
  0xd8   : > { %998 = vst [vmem:[%s1733_s26 + $0x28] sm:$0xff] %v950_v18  ;;  %v765_v6 = vadd.f32 %v1719_v61, %v764_v19 }
  0xd9   : > { %v707_v23 = vpop.f32.mrf.mxu0 }
  0xda   : > { %v894_v24 = vadd.f32 %v1750_v22, %v765_v6  ;;  %v708_v26 = vadd.f32 %v1719_v61, %v707_v23 }
  0xdc   : > { %v974_v28 = vmax.f32 %v894_v24, %v1725_v3  ;;  %v837_v29 = vadd.f32 %v836_v42, %v708_v26  ;;  %746 = vmatmul.bf16.gmra.mxu0 %v1257_v20  ;;  %806 = vmatmul.bf16.gmra.mxu2 %v1353_v21  ;;  %v906_v42 = vpop.f32.mrf.mxu3 }
  0xde   : > { %1022 = vst [vmem:[%s1733_s26 + $0xe8] sm:$0xff] %v974_v28  ;;  %v951_v31 = vmax.f32 %v837_v29, %v1725_v3 }
  0xdf   : > { %v767_v32 = vpop.f32.mrf.mxu2  ;;  %v846_v37 = vpop.f32.mrf.mxu1 }
  0xe0   : > { %999 = vst [vmem:[%s1733_s26 + $0x30] sm:$0xff] %v951_v31  ;;  %v768_v33 = vadd.f32 %v1719_v61, %v767_v32 }
  0xe1   : > { %v709_v34 = vpop.f32.mrf.mxu0 }
  0xe2   : > { %v897_v22 = vadd.f32 %v1762_v36, %v768_v33  ;;  %v710_v35 = vadd.f32 %v1719_v61, %v709_v34 }
  0xe4   : > { %v975_v38 = vmax.f32 %v897_v22, %v1725_v3  ;;  %v839_v39 = vadd.f32 %v838_v58, %v710_v35  ;;  %v908_v53 = vpop.f32.mrf.mxu3 }
  0xe6   : > { %1023 = vst [vmem:[%s1733_s26 + $0xf0] sm:$0xff] %v975_v38  ;;  %v952_v40 = vmax.f32 %v839_v39, %v1725_v3 }
  0xe7   : > { %v769_v41 = vpop.f32.mrf.mxu2  ;;  %v848_v46 = vpop.f32.mrf.mxu1 }
  0xe8   : > { %1000 = vst [vmem:[%s1733_s26 + $0x38] sm:$0xff] %v952_v40  ;;  %v770_v43 = vadd.f32 %v1719_v61, %v769_v41 }
  0xe9   : > { %v712_v44 = vpop.f32.mrf.mxu0 }
  0xea   : > { %v899_v45 = vadd.f32 %v898_v55, %v770_v43  ;;  %v713_v36 = vadd.f32 %v1719_v61, %v712_v44 }
  0xec   : > { %v976_v47 = vmax.f32 %v899_v45, %v1725_v3  ;;  %v842_v48 = vadd.f32 %v841_v10, %v713_v36  ;;  %v911_v4 = vpop.f32.mrf.mxu3 }
  0xee   : > { %1024 = vst [vmem:[%s1733_s26 + $0xf8] sm:$0xff] %v976_v47  ;;  %v953_v50 = vmax.f32 %v842_v48, %v1725_v3 }
  0xef   : > { %v772_v51 = vpop.f32.mrf.mxu2  ;;  %v851_v56 = vpop.f32.mrf.mxu1 }
  0xf0   : > { %1001 = vst [vmem:[%s1733_s26 + $0x40] sm:$0xff] %v953_v50  ;;  %v773_v49 = vadd.f32 %v1719_v61, %v772_v51 }
  0xf1   : > { %v714_v52 = vpop.f32.mrf.mxu0 }
  0xf2   : > { %v902_v54 = vadd.f32 %v901_v11, %v773_v49  ;;  %v715_v55 = vadd.f32 %v1719_v61, %v714_v52 }
  0xf4   : > { %v977_v57 = vmax.f32 %v902_v54, %v1725_v3  ;;  %v844_v58 = vadd.f32 %v843_v27, %v715_v55  ;;  %v913_v18 = vpop.f32.mrf.mxu3 }
  0xf6   : > { %1025 = vst [vmem:[%s1733_s26 + $0x100] sm:$0xff] %v977_v57  ;;  %v954_v59 = vmax.f32 %v844_v58, %v1725_v3 }
  0xf7   : > { %v774_v62 = vpop.f32.mrf.mxu2  ;;  %v853_v60 = vpop.f32.mrf.mxu1 }
  0xf8   : > { %1002 = vst [vmem:[%s1733_s26 + $0x48] sm:$0xff] %v954_v59  ;;  %v775_v63 = vadd.f32 %v1719_v61, %v774_v62 }
  0xf9   : > { %v717_v0 = vpop.f32.mrf.mxu0 }
  0xfa   : > { %v904_v1 = vadd.f32 %v903_v30, %v775_v63  ;;  %v718_v2 = vadd.f32 %v1719_v61, %v717_v0 }
  0xfc   : > { %v978_v5 = vmax.f32 %v904_v1, %v1725_v3  ;;  %v847_v7 = vadd.f32 %v846_v37, %v718_v2  ;;  %v916_v31 = vpop.f32.mrf.mxu3 }
  0xfe   : > { %1026 = vst [vmem:[%s1733_s26 + $0x108] sm:$0xff] %v978_v5  ;;  %v955_v9 = vmax.f32 %v847_v7, %v1725_v3 }
  0xff   : > { %v777_v10 = vpop.f32.mrf.mxu2  ;;  %v856_v15 = vpop.f32.mrf.mxu1 }
 0x100   : > { %1003 = vst [vmem:[%s1733_s26 + $0x50] sm:$0xff] %v955_v9  ;;  %v778_v11 = vadd.f32 %v1719_v61, %v777_v10 }
 0x101   : > { %v719_v12 = vpop.f32.mrf.mxu0 }
 0x102   : > { %v907_v13 = vadd.f32 %v906_v42, %v778_v11  ;;  %v720_v14 = vadd.f32 %v1719_v61, %v719_v12 }
 0x104   : > { %v979_v16 = vmax.f32 %v907_v13, %v1725_v3  ;;  %v849_v17 = vadd.f32 %v848_v46, %v720_v14  ;;  %v918_v43 = vpop.f32.mrf.mxu3 }
 0x106   : > { %1027 = vst [vmem:[%s1733_s26 + $0x110] sm:$0xff] %v979_v16  ;;  %v956_v19 = vmax.f32 %v849_v17, %v1725_v3 }
 0x107   : > { %v779_v6 = vpop.f32.mrf.mxu2  ;;  %v858_v26 = vpop.f32.mrf.mxu1 }
 0x108   : > { %1004 = vst [vmem:[%s1733_s26 + $0x58] sm:$0xff] %v956_v19  ;;  %v780_v20 = vadd.f32 %v1719_v61, %v779_v6 }
 0x109   : > { %v722_v21 = vpop.f32.mrf.mxu0 }
 0x10a   : > { %v909_v23 = vadd.f32 %v908_v53, %v780_v20  ;;  %v723_v24 = vadd.f32 %v1719_v61, %v722_v21 }
 0x10c   : > { %v980_v27 = vmax.f32 %v909_v23, %v1725_v3  ;;  %v852_v28 = vadd.f32 %v851_v56, %v723_v24  ;;  %v921_v55 = vpop.f32.mrf.mxu3 }
 0x10e   : > { %1028 = vst [vmem:[%s1733_s26 + $0x118] sm:$0xff] %v980_v27  ;;  %v957_v29 = vmax.f32 %v852_v28, %v1725_v3 }
 0x10f   : > { %v782_v30 = vpop.f32.mrf.mxu2  ;;  %v861_v35 = vpop.f32.mrf.mxu1 }
 0x110   : > { %1005 = vst [vmem:[%s1733_s26 + $0x60] sm:$0xff] %v957_v29  ;;  %v783_v32 = vadd.f32 %v1719_v61, %v782_v30 }
 0x111   : > { %v724_v33 = vpop.f32.mrf.mxu0 }
 0x112   : > { %v912_v34 = vadd.f32 %v911_v4, %v783_v32  ;;  %v725_v22 = vadd.f32 %v1719_v61, %v724_v33 }
 0x114   : > { %v981_v37 = vmax.f32 %v912_v34, %v1725_v3  ;;  %v854_v38 = vadd.f32 %v853_v60, %v725_v22  ;;  %v923_v5 = vpop.f32.mrf.mxu3 }
 0x116   : > { %1029 = vst [vmem:[%s1733_s26 + $0x120] sm:$0xff] %v981_v37  ;;  %v958_v39 = vmax.f32 %v854_v38, %v1725_v3 }
 0x117   : > { %v784_v40 = vpop.f32.mrf.mxu2  ;;  %v863_v36 = vpop.f32.mrf.mxu1 }
 0x118   : > { %1006 = vst [vmem:[%s1733_s26 + $0x68] sm:$0xff] %v958_v39  ;;  %v785_v41 = vadd.f32 %v1719_v61, %v784_v40 }
 0x119   : > { %v727_v42 = vpop.f32.mrf.mxu0 }
 0x11a   : > { %v914_v44 = vadd.f32 %v913_v18, %v785_v41  ;;  %v728_v45 = vadd.f32 %v1719_v61, %v727_v42 }
 0x11c   : > { %v982_v46 = vmax.f32 %v914_v44, %v1725_v3  ;;  %v857_v47 = vadd.f32 %v856_v15, %v728_v45  ;;  %v926_v19 = vpop.f32.mrf.mxu3 }
 0x11e   : > { %1030 = vst [vmem:[%s1733_s26 + $0x128] sm:$0xff] %v982_v46  ;;  %v959_v48 = vmax.f32 %v857_v47, %v1725_v3 }
 0x11f   : > { %v787_v50 = vpop.f32.mrf.mxu2  ;;  %v866_v54 = vpop.f32.mrf.mxu1 }
 0x120   : > { %1007 = vst [vmem:[%s1733_s26 + $0x70] sm:$0xff] %v959_v48  ;;  %v788_v51 = vadd.f32 %v1719_v61, %v787_v50 }
 0x121   : > { %v729_v49 = vpop.f32.mrf.mxu0 }
 0x122   : > { %v917_v52 = vadd.f32 %v916_v31, %v788_v51  ;;  %v730_v53 = vadd.f32 %v1719_v61, %v729_v49  ;;  %v753_v49 = vadd.f32 %v1719_v61, %v1738_v8 }
 0x124   : > { %v983_v56 = vmax.f32 %v917_v52, %v1725_v3  ;;  %v859_v57 = vadd.f32 %v858_v26, %v730_v53  ;;  %v928_v32 = vpop.f32.mrf.mxu3 }
 0x126   : > { %1031 = vst [vmem:[%s1733_s26 + $0x130] sm:$0xff] %v983_v56  ;;  %v960_v58 = vmax.f32 %v859_v57, %v1725_v3 }
 0x127   : > { %v789_v59 = vpop.f32.mrf.mxu2  ;;  %v868_v2 = vpop.f32.mrf.mxu1 }
 0x128   : > { %1008 = vst [vmem:[%s1733_s26 + $0x78] sm:$0xff] %v960_v58  ;;  %v790_v62 = vadd.f32 %v1719_v61, %v789_v59 }
 0x129   : > { %v732_v63 = vpop.f32.mrf.mxu0 }
 0x12a   : > { %v919_v0 = vadd.f32 %v918_v43, %v790_v62  ;;  %v733_v1 = vadd.f32 %v1719_v61, %v732_v63 }
 0x12c   : > { %v984_v60 = vmax.f32 %v919_v0, %v1725_v3  ;;  %v862_v4 = vadd.f32 %v861_v35, %v733_v1  ;;  %v931_v44 = vpop.f32.mrf.mxu3  ;;  %v755_v1 = vadd.f32 %v1719_v61, %v1754_v25 }
 0x12e   : > { %1032 = vst [vmem:[%s1733_s26 + $0x138] sm:$0xff] %v984_v60  ;;  %v961_v7 = vmax.f32 %v862_v4, %v1725_v3 }
 0x12f   : > { %v792_v9 = vpop.f32.mrf.mxu2  ;;  %v871_v14 = vpop.f32.mrf.mxu1 }
 0x130   : > { %1009 = vst [vmem:[%s1733_s26 + $0x80] sm:$0xff] %v961_v7  ;;  %v793_v10 = vadd.f32 %v1719_v61, %v792_v9 }
 0x131   : > { %v734_v11 = vpop.f32.mrf.mxu0 }
 0x132   : > { %v922_v12 = vadd.f32 %v921_v55, %v793_v10  ;;  %v735_v13 = vadd.f32 %v1719_v61, %v734_v11 }
 0x134   : > { %v985_v15 = vmax.f32 %v922_v12, %v1725_v3  ;;  %v864_v16 = vadd.f32 %v863_v36, %v735_v13  ;;  %v933_v58 = vpop.f32.mrf.mxu3 }
 0x136   : > { %1033 = vst [vmem:[%s1733_s26 + $0x140] sm:$0xff] %v985_v15  ;;  %v962_v17 = vmax.f32 %v864_v16, %v1725_v3 }
 0x137   : > { %v794_v18 = vpop.f32.mrf.mxu2  ;;  %v873_v24 = vpop.f32.mrf.mxu1 }
 0x138   : > { %1010 = vst [vmem:[%s1733_s26 + $0x88] sm:$0xff] %v962_v17  ;;  %v795_v6 = vadd.f32 %v1719_v61, %v794_v18 }
 0x139   : > { %v737_v20 = vpop.f32.mrf.mxu0 }
 0x13a   : > { %v924_v21 = vadd.f32 %v923_v5, %v795_v6  ;;  %v738_v23 = vadd.f32 %v1719_v61, %v737_v20 }
 0x13c   : > { %v986_v26 = vmax.f32 %v924_v21, %v1725_v3  ;;  %v867_v27 = vadd.f32 %v866_v54, %v738_v23  ;;  %v936_v12 = vpop.f32.mrf.mxu3 }
 0x13e   : > { %1034 = vst [vmem:[%s1733_s26 + $0x148] sm:$0xff] %v986_v26  ;;  %v963_v28 = vmax.f32 %v867_v27, %v1725_v3 }
 0x13f   : > { %v797_v29 = vpop.f32.mrf.mxu2  ;;  %v876_v22 = vpop.f32.mrf.mxu1 }
 0x140   : > { %1011 = vst [vmem:[%s1733_s26 + $0x90] sm:$0xff] %v963_v28  ;;  %v798_v30 = vadd.f32 %v1719_v61, %v797_v29 }
 0x141   : > { %v739_v31 = vpop.f32.mrf.mxu0 }
 0x142   : > { %v927_v33 = vadd.f32 %v926_v19, %v798_v30  ;;  %v740_v34 = vadd.f32 %v1719_v61, %v739_v31 }
 0x144   : > { %v987_v35 = vmax.f32 %v927_v33, %v1725_v3  ;;  %v869_v37 = vadd.f32 %v868_v2, %v740_v34  ;;  %v938_v21 = vpop.f32.mrf.mxu3 }
 0x146   : > { %1035 = vst [vmem:[%s1733_s26 + $0x150] sm:$0xff] %v987_v35  ;;  %v964_v38 = vmax.f32 %v869_v37, %v1725_v3 }
 0x147   : > { %v799_v39 = vpop.f32.mrf.mxu2  ;;  %v878_v45 = vpop.f32.mrf.mxu1 }
 0x148   : > { %1012 = vst [vmem:[%s1733_s26 + $0x98] sm:$0xff] %v964_v38  ;;  %v800_v40 = vadd.f32 %v1719_v61, %v799_v39 }
 0x149   : > { %v742_v41 = vpop.f32.mrf.mxu0 }
 0x14a   : > { %v929_v42 = vadd.f32 %v928_v32, %v800_v40  ;;  %v743_v43 = vadd.f32 %v1719_v61, %v742_v41 }
 0x14c   : > { %v988_v36 = vmax.f32 %v929_v42, %v1725_v3  ;;  %v872_v46 = vadd.f32 %v871_v14, %v743_v43 }
 0x14e   : > { %1036 = vst [vmem:[%s1733_s26 + $0x158] sm:$0xff] %v988_v36  ;;  %v965_v47 = vmax.f32 %v872_v46, %v1725_v3 }
 0x14f   : > { %v802_v48 = vpop.f32.mrf.mxu2  ;;  %v881_v54 = vpop.f32.mrf.mxu1 }
 0x150   : > { %1013 = vst [vmem:[%s1733_s26 + $0xa0] sm:$0xff] %v965_v47  ;;  %v803_v50 = vadd.f32 %v1719_v61, %v802_v48  ;;  %v882_v57 = vadd.f32 %v881_v54, %v753_v49 }
 0x151   : > { %v744_v51 = vpop.f32.mrf.mxu0 }
 0x152   : > { %v932_v52 = vadd.f32 %v931_v44, %v803_v50  ;;  %v745_v53 = vadd.f32 %v1719_v61, %v744_v51  ;;  %v969_v62 = vmax.f32 %v882_v57, %v1725_v3 }
 0x154   : > { %v989_v55 = vmax.f32 %v932_v52, %v1725_v3  ;;  %v874_v56 = vadd.f32 %v873_v24, %v745_v53  ;;  %1017 = vst [vmem:[%s1733_s26 + $0xc0] sm:$0xff] %v969_v62 }
 0x156   : > { %1037 = vst [vmem:[%s1733_s26 + $0x160] sm:$0xff] %v989_v55  ;;  %v966_v59 = vmax.f32 %v874_v56, %v1725_v3 }
 0x157   : > { %v804_v63 = vpop.f32.mrf.mxu2  ;;  %v883_v4 = vpop.f32.mrf.mxu1 }
 0x158   : > { %1014 = vst [vmem:[%s1733_s26 + $0xa8] sm:$0xff] %v966_v59  ;;  %v805_v8 = vadd.f32 %v1719_v61, %v804_v63  ;;  %v884_v9 = vadd.f32 %v883_v4, %v755_v1 }
 0x159   : > { %v747_v0 = vpop.f32.mrf.mxu0 }
 0x15a   : > { %v934_v2 = vadd.f32 %v933_v58, %v805_v8  ;;  %v748_v60 = vadd.f32 %v1719_v61, %v747_v0  ;;  %v970_v11 = vmax.f32 %v884_v9, %v1725_v3 }
 0x15c   : > { %v990_v5 = vmax.f32 %v934_v2, %v1725_v3  ;;  %v877_v7 = vadd.f32 %v876_v22, %v748_v60  ;;  %1018 = vst [vmem:[%s1733_s26 + $0xc8] sm:$0xff] %v970_v11 }
 0x15e   : > { %1038 = vst [vmem:[%s1733_s26 + $0x168] sm:$0xff] %v990_v5  ;;  %v967_v10 = vmax.f32 %v877_v7, %v1725_v3 }
 0x15f   : > { %v807_v13 = vpop.f32.mrf.mxu2 }
 0x160   : > { %1015 = vst [vmem:[%s1733_s26 + $0xb0] sm:$0xff] %v967_v10  ;;  %v808_v25 = vadd.f32 %v1719_v61, %v807_v13 }
 0x161   : > { %v749_v14 = vpop.f32.mrf.mxu0 }
 0x162   : > { %v937_v15 = vadd.f32 %v936_v12, %v808_v25  ;;  %v750_v16 = vadd.f32 %v1719_v61, %v749_v14 }
 0x164   : > { %v991_v17 = vmax.f32 %v937_v15, %v1725_v3  ;;  %v879_v18 = vadd.f32 %v878_v45, %v750_v16 }
 0x166   : > { %1039 = vst [vmem:[%s1733_s26 + $0x170] sm:$0xff] %v991_v17  ;;  %v968_v19 = vmax.f32 %v879_v18, %v1725_v3 }
 0x167   : > { %v809_v6 = vpop.f32.mrf.mxu2 }
 0x168   : > { %1016 = vst [vmem:[%s1733_s26 + $0xb8] sm:$0xff] %v968_v19  ;;  %v810_v20 = vadd.f32 %v1719_v61, %v809_v6 }
 0x16a   : > { %v939_v23 = vadd.f32 %v938_v21, %v810_v20 }
 0x16c   : > { %v992_v24 = vmax.f32 %v939_v23, %v1725_v3 }
 0x16e   : > { %1040 = vst [vmem:[%s1733_s26 + $0x178] sm:$0xff] %v992_v24 }
 0x16f PF: > { %s14_s17 = sadd.s32 1, %s1535_s17   ;;  %s1933_s15 = smov %s1531_s16 }
 0x170   : > { %p11_p5 = scmp.ge.s32.totalorder %s14_s17, 5   ;;  %s1934_s16 = smov %s1936_s18 }
 0x172   :  { %13 = sbr.rel (!%p11_p5) target bundleno = 2 (0x2), region = 75 }

// kernel: guidance_forward.28
= control target key start
LH: loop header
LB: loop body
LE: loop exit
PB: predicated region body
PF: predicated region fallthrough
CT: control target
= control target key end

     0   :  { %9 = vsyncpa [#allocation3], 0  ;;  %s2088_s0 = inlined_call_operand.vmem [shape: bf16[1152,144], index: 0, kind: input, shape index: {}]   ;;  %s2089_s1 = inlined_call_operand.vmem [shape: bf16[144,128], index: 1, kind: input, shape index: {}]   ;;  %s2090_s2 = inlined_call_operand.vmem [shape: f32[1,128], index: 2, kind: input, shape index: {}]   ;;  %s2091_s3 = inlined_call_operand.vmem [shape: f32[1,128], index: 3, kind: input, shape index: {}]   ;;  %s2092_s4 = inlined_call_operand.hbm [shape: f32[1152,128], index: 4, kind: output, shape index: {}]  }
   0x1   :  { %11 = vsyncpa [#allocation3 + $0x1], 0  ;;  %s1661_s15 = smov 0   ;;  %s1663_s16 = smov 0  }
   0x2   :  { %s1665_s17 = smov 0   ;;  %s1667_s18 = smov 0  }
   0x3   :  { %s1669_s19 = smov 0   ;;  %s1671_s20 = smov 0  }
   0x4 LB: > { %s1161_s21 = sadd.s32 4294967295, %s1632_s20   ;;  %s1162_s22 = sadd.s32 4294967294, %s1632_s20   ;;  %s1632_s20 = sphi %s1671_s20, %s17_s20   ;;  %s1628_s19 = sphi %s1669_s19, %s2099_s19   ;;  %s1624_s18 = sphi %s1667_s18, %s2098_s18   ;;  %s1620_s17 = sphi %s1665_s17, %s2097_s17   ;;  %s1616_s16 = sphi %s1663_s16, %s2096_s16   ;;  %s1612_s15 = sphi %s1661_s15, %s2095_s15  }
   0x5   : > { %s29_s23 = sadd.s32 1, %s1628_s19  ;;  %s142_s24 = sadd.s32 1, %s1620_s17 }
   0x6   : > { %p31_p0 = scmp.ge.s32.totalorder %s29_s23, 3  ;;  %p152_p1 = scmp.ne.s32.totalorder %s1620_s17, %s1616_s16 }
   0x7   : > { %p153_p2 = scmp.eq.s32.totalorder %s1161_s21, 2  ;;  %p158_p3 = scmp.ne.s32.totalorder %s1616_s16, %s1612_s15 }
   0x8   : > { %s2101_s23 = smov (%p31_p0, %s29_s23), 0  ;;  %p159_p5 = scmp.eq.s32.totalorder %s1162_s22, 2 }
   0x9   : > { %p1701_p4 = por %p153_p2, %p152_p1  ;;  %s137_s26 = ssub.s32 %s1628_s19, %s2101_s23 }
   0xa   : > { %p1168_p6 = scmp.ge.s32.totalorder %s1632_s20, 1  ;;  %p140_p7 = scmp.eq.s32.totalorder %s137_s26, 0 }
   0xb   : > { %p1708_p8 = por %p159_p5, %p158_p3  ;;  %p206_p9 = scmp.lt.s32.totalorder %s1632_s20, 4 }
   0xc   : > { %s1714_s28 = scalar_select %p140_p7, %s1620_s17, %s142_s24  }
   0xd   : > { %p207_p10 = pnand %p1168_p6, %p206_p9 }
   0xe   : > { %s243_s7 = smul.u32 (!%p207_p10), 48, %s1624_s18  ;;  %s240_s10 = sand.u32 (!%p207_p10), 1, %s1616_s16  }
   0xf   : > { %210 = sbr.rel (%p207_p10) target bundleno = 378 (0x17a), region = 36  ;;  %s1034_s6 = scalar_lea.sflag (!%p207_p10), [#allocation3], %s240_s10 }
  0x10   : > { %p244_p11 = scmp.lt.s32.totalorder (!%p207_p10), %s243_s7, 143  ;;  %s1494_s13 = smul.u32 (!%p207_p10), 384, %s240_s10 }
  0x12   : > { %s1870_s24 = scalar_lea.vmem (!%p207_p10), [#allocation2], %s1494_s13 }
  0x14   : > { %v1482_v0 = vld [vmem:[%s2089_s1 + $0x38] sm:$0xff]  ;;  %v1483_v1 = vld [vmem:[%s2089_s1 + $0x40] sm:$0xff]  ;;  %v1481_v2 = vld [vmem:[%s2089_s1 + $0x30] sm:$0xff]  ;;  %s2103_s7 = smov (!%p244_p11, %s243_s7), 143  ;;  %vm602_vm0 = vcmask 130048  }
  0x15   : > { %675 = vmatpush.bf16.msra.mxu0 %v1482_v0  ;;  %1485 = vmatpush.bf16.msra.mxu2 %v1482_v0  ;;  %v1480_v3 = vld [vmem:[%s2089_s1 + $0x28] sm:$0xff]  ;;  %s1426_s12 = sshll.u32 %s2103_s7, 3  ;;  %v1479_v7 = vld [vmem:[%s2089_s1 + $0x20] sm:$0xff]  ;;  %v1478_v11 = vld [vmem:[%s2089_s1 + $0x18] sm:$0xff] }
  0x16   : > { %811 = vmatpush.bf16.msra.mxu1 %v1483_v1  ;;  %1493 = vmatpush.bf16.msra.mxu3 %v1483_v1  ;;  %s1732_s21 = scalar_lea.vmem %s2088_s0, %s1426_s12  ;;  %v1477_v12 = vld [vmem:[%s2089_s1 + $0x10] sm:$0xff]  ;;  %v1476_v15 = vld [vmem:[%s2089_s1 + $0x8] sm:$0xff]  ;;  %v1475_v19 = vld [vmem:[%s2089_s1] sm:$0xff]  ;;  %s1574_s12 = scalar_lea.hbm %s2092_s4, 1152 }
  0x17   : > { %v1427_v4 = vld [vmem:[%s1732_s21 + $0x4] sm:$0xf]  ;;  %v1175_v5 = vld [vmem:[%s1732_s21 + $0x8] sm:$0xf0]  ;;  %v1453_v8 = vld [vmem:[%s1732_s21 + $0xd4] sm:$0xf] }
  0x18   : > { %v1178_v6 = vor.u32 %v1427_v4, %v1175_v5  ;;  %v1279_v9 = vld [vmem:[%s1732_s21 + $0xd8] sm:$0xf0]  ;;  %v1429_v13 = vld [vmem:[%s1732_s21 + $0x14] sm:$0xf]  ;;  %v1455_v17 = vld [vmem:[%s1732_s21 + $0xe4] sm:$0xf] }
  0x19   : > { %676 = vmatpush.bf16.msra.mxu0 %v1481_v2  ;;  %1486 = vmatpush.bf16.msra.mxu2 %v1481_v2  ;;  %v1282_v10 = vor.u32 %v1453_v8, %v1279_v9  ;;  %v1183_v14 = vld [vmem:[%s1732_s21 + $0x18] sm:$0xf0]  ;;  %v1287_v18 = vld [vmem:[%s1732_s21 + $0xe8] sm:$0xf0]  ;;  %v1173_v20 = vld [vmem:[%s1732_s21] sm:$0xf] }
  0x1a   : > { %1399 = vmatmul.msk.bf16.vlgmr.msra.gmra.mxu1 %vm602_vm0, %v1178_v6  ;;  %v1186_v16 = vor.u32 %v1429_v13, %v1183_v14  ;;  %v1428_v21 = vld [vmem:[%s1732_s21 + $0x4] sm:$0xf0]  ;;  %v1269_v22 = vld [vmem:[%s1732_s21 + $0xc0] sm:$0xf]  ;;  %v1290_v24 = vor.u32 %v1455_v17, %v1287_v18  ;;  %v1431_v27 = vld [vmem:[%s1732_s21 + $0x24] sm:$0xf] }
  0x1b   : > { %1412 = vmatmul.msk.bf16.vlgmr.msra.gmra.mxu3 %vm602_vm0, %v1282_v10  ;;  %v1452_v23 = vld [vmem:[%s1732_s21 + $0xc4] sm:$0xf0]  ;;  %v1174_v25 = vor.u32 %v1428_v21, %v1173_v20  ;;  %v1191_v28 = vld [vmem:[%s1732_s21 + $0x28] sm:$0xf0]  ;;  %v1457_v30 = vld [vmem:[%s1732_s21 + $0xf4] sm:$0xf] }
  0x1c   : > { %v1270_v26 = vor.u32 %v1452_v23, %v1269_v22  ;;  %v1194_v29 = vor.u32 %v1431_v27, %v1191_v28  ;;  %v1295_v31 = vld [vmem:[%s1732_s21 + $0xf8] sm:$0xf0]  ;;  %v1181_v32 = vld [vmem:[%s1732_s21 + $0x10] sm:$0xf]  ;;  %v1430_v33 = vld [vmem:[%s1732_s21 + $0x14] sm:$0xf0] }
  0x1d   : > { %677 = vmatpush.bf16.msra.mxu0 %v1480_v3  ;;  %1487 = vmatpush.bf16.msra.mxu2 %v1480_v3  ;;  %v1277_v34 = vld [vmem:[%s1732_s21 + $0xd0] sm:$0xf]  ;;  %v1454_v35 = vld [vmem:[%s1732_s21 + $0xd4] sm:$0xf0]  ;;  %v1298_v36 = vor.u32 %v1457_v30, %v1295_v31  ;;  %v1182_v37 = vor.u32 %v1430_v33, %v1181_v32  ;;  %v1433_v39 = vld [vmem:[%s1732_s21 + $0x34] sm:$0xf] }
  0x1e   : > { %v1278_v38 = vor.u32 %v1454_v35, %v1277_v34  ;;  %v1199_v40 = vld [vmem:[%s1732_s21 + $0x38] sm:$0xf0]  ;;  %v1459_v42 = vld [vmem:[%s1732_s21 + $0x104] sm:$0xf]  ;;  %v1303_v43 = vld [vmem:[%s1732_s21 + $0x108] sm:$0xf0] }
  0x1f   : > { %v1202_v41 = vor.u32 %v1433_v39, %v1199_v40  ;;  %v1189_v44 = vld [vmem:[%s1732_s21 + $0x20] sm:$0xf]  ;;  %v1432_v45 = vld [vmem:[%s1732_s21 + $0x24] sm:$0xf0]  ;;  %v1306_v48 = vor.u32 %v1459_v42, %v1303_v43  ;;  %v1435_v51 = vld [vmem:[%s1732_s21 + $0x44] sm:$0xf] }
  0x20   : > { %v1285_v46 = vld [vmem:[%s1732_s21 + $0xe0] sm:$0xf]  ;;  %v1456_v47 = vld [vmem:[%s1732_s21 + $0xe4] sm:$0xf0]  ;;  %v1190_v49 = vor.u32 %v1432_v45, %v1189_v44  ;;  %v1207_v52 = vld [vmem:[%s1732_s21 + $0x48] sm:$0xf0] }
  0x21   : > { %678 = vmatpush.bf16.msra.mxu0 %v1479_v7  ;;  %1488 = vmatpush.bf16.msra.mxu2 %v1479_v7  ;;  %v1286_v50 = vor.u32 %v1456_v47, %v1285_v46  ;;  %v1210_v53 = vor.u32 %v1435_v51, %v1207_v52  ;;  %v1461_v54 = vld [vmem:[%s1732_s21 + $0x114] sm:$0xf]  ;;  %v1311_v55 = vld [vmem:[%s1732_s21 + $0x118] sm:$0xf0]  ;;  %v1197_v56 = vld [vmem:[%s1732_s21 + $0x30] sm:$0xf] }
  0x22   : > { %v1434_v57 = vld [vmem:[%s1732_s21 + $0x34] sm:$0xf0]  ;;  %v1293_v58 = vld [vmem:[%s1732_s21 + $0xf0] sm:$0xf]  ;;  %v1314_v60 = vor.u32 %v1461_v54, %v1311_v55  ;;  %v1437_v63 = vld [vmem:[%s1732_s21 + $0x54] sm:$0xf] }
  0x23   : > { %v1458_v59 = vld [vmem:[%s1732_s21 + $0xf4] sm:$0xf0]  ;;  %v1198_v61 = vor.u32 %v1434_v57, %v1197_v56  ;;  %v1215_v0 = vld [vmem:[%s1732_s21 + $0x58] sm:$0xf0]  ;;  %v1463_v2 = vld [vmem:[%s1732_s21 + $0x124] sm:$0xf] }
  0x24   : > { %v1294_v62 = vor.u32 %v1458_v59, %v1293_v58  ;;  %v1218_v1 = vor.u32 %v1437_v63, %v1215_v0  ;;  %v1319_v3 = vld [vmem:[%s1732_s21 + $0x128] sm:$0xf0]  ;;  %v1205_v4 = vld [vmem:[%s1732_s21 + $0x40] sm:$0xf]  ;;  %v1436_v5 = vld [vmem:[%s1732_s21 + $0x44] sm:$0xf0] }
  0x25   : > { %679 = vmatpush.bf16.msra.mxu0 %v1478_v11  ;;  %1489 = vmatpush.bf16.msra.mxu2 %v1478_v11  ;;  %v1301_v6 = vld [vmem:[%s1732_s21 + $0x100] sm:$0xf]  ;;  %v1460_v7 = vld [vmem:[%s1732_s21 + $0x104] sm:$0xf0]  ;;  %v1322_v8 = vor.u32 %v1463_v2, %v1319_v3  ;;  %v1206_v9 = vor.u32 %v1436_v5, %v1205_v4  ;;  %v1439_v11 = vld [vmem:[%s1732_s21 + $0x64] sm:$0xf] }
  0x26   : > { %v1302_v10 = vor.u32 %v1460_v7, %v1301_v6  ;;  %v1465_v14 = vld [vmem:[%s1732_s21 + $0x134] sm:$0xf]  ;;  %v1438_v17 = vld [vmem:[%s1732_s21 + $0x54] sm:$0xf0]  ;;  %v1309_v18 = vld [vmem:[%s1732_s21 + $0x110] sm:$0xf] }
  0x27   : > { %v1441_v23 = vld [vmem:[%s1732_s21 + $0x74] sm:$0xf]  ;;  %v1221_v27 = vld [vmem:[%s1732_s21 + $0x60] sm:$0xf]  ;;  %v1335_v28 = vld [vmem:[%s1732_s21 + $0x148] sm:$0xf0] }
  0x28   : > { %v1317_v30 = vld [vmem:[%s1732_s21 + $0x120] sm:$0xf]  ;;  %v1464_v31 = vld [vmem:[%s1732_s21 + $0x124] sm:$0xf0]  ;;  %v1443_v35 = vld [vmem:[%s1732_s21 + $0x84] sm:$0xf] }
  0x29   : > { %680 = vmatpush.bf16.msra.mxu0 %v1477_v12  ;;  %1490 = vmatpush.bf16.msra.mxu2 %v1477_v12  ;;  %v1223_v12 = vld [vmem:[%s1732_s21 + $0x68] sm:$0xf0]  ;;  %v1318_v34 = vor.u32 %v1464_v31, %v1317_v30  ;;  %v1469_v39 = vld [vmem:[%s1732_s21 + $0x154] sm:$0xf]  ;;  %v1229_v40 = vld [vmem:[%s1732_s21 + $0x70] sm:$0xf] }
  0x2a   : > { %1400 = vmatmul.msk.bf16.gmra.mxu1 %vm602_vm0, %v1186_v16  ;;  %v1226_v13 = vor.u32 %v1439_v11, %v1223_v12  ;;  %v1327_v16 = vld [vmem:[%s1732_s21 + $0x138] sm:$0xf0]  ;;  %v1442_v42 = vld [vmem:[%s1732_s21 + $0x74] sm:$0xf0]  ;;  %v1325_v43 = vld [vmem:[%s1732_s21 + $0x130] sm:$0xf] }
  0x2b   : > { %1413 = vmatmul.msk.bf16.gmra.mxu3 %vm602_vm0, %v1290_v24  ;;  %v1330_v20 = vor.u32 %v1465_v14, %v1327_v16  ;;  %v1231_v24 = vld [vmem:[%s1732_s21 + $0x78] sm:$0xf0]  ;;  %v1466_v44 = vld [vmem:[%s1732_s21 + $0x134] sm:$0xf0]  ;;  %v1230_v46 = vor.u32 %v1442_v42, %v1229_v40  ;;  %v1471_v54 = vld [vmem:[%s1732_s21 + $0x164] sm:$0xf] }
  0x2c   : > { %v1326_v47 = vor.u32 %v1466_v44, %v1325_v43  ;;  %v1247_v51 = vld [vmem:[%s1732_s21 + $0x98] sm:$0xf0]  ;;  %v1237_v55 = vld [vmem:[%s1732_s21 + $0x80] sm:$0xf]  ;;  %v1351_v56 = vld [vmem:[%s1732_s21 + $0x168] sm:$0xf0] }
  0x2d   : > { %681 = vmatpush.bf16.msra.mxu0 %v1476_v15  ;;  %1491 = vmatpush.bf16.msra.mxu2 %v1476_v15  ;;  %v1213_v15 = vld [vmem:[%s1732_s21 + $0x50] sm:$0xf]  ;;  %v1444_v57 = vld [vmem:[%s1732_s21 + $0x84] sm:$0xf0]  ;;  %v1333_v58 = vld [vmem:[%s1732_s21 + $0x140] sm:$0xf] }
  0x2e   : > { %v1214_v21 = vor.u32 %v1438_v17, %v1213_v15  ;;  %v1468_v59 = vld [vmem:[%s1732_s21 + $0x144] sm:$0xf0]  ;;  %v1238_v63 = vor.u32 %v1444_v57, %v1237_v55  ;;  %v1860_v3 = vld [vmem:[%s2091_s3] ss:$0 sm:$0xff]  ;;  %v1473_v15 = vld [vmem:[%s1732_s21 + $0x174] sm:$0xf] }
  0x2f   : > { %v1334_v0 = vor.u32 %v1468_v59, %v1333_v58  ;;  %v1245_v17 = vld [vmem:[%s1732_s21 + $0x90] sm:$0xf] }
  0x31   : > { %682 = vmatpush.bf16.msra.mxu0 %v1475_v19  ;;  %1492 = vmatpush.bf16.msra.mxu2 %v1475_v19  ;;  %v1462_v19 = vld [vmem:[%s1732_s21 + $0x114] sm:$0xf0] }
  0x32   : > { %v1310_v22 = vor.u32 %v1462_v19, %v1309_v18  ;;  %v1359_v18 = vld [vmem:[%s1732_s21 + $0x178] sm:$0xf0]  ;;  %v1446_v19 = vld [vmem:[%s1732_s21 + $0x94] sm:$0xf0] }
  0x34   : > { %683 = vmatmul.bf16.vlgmr.msra.gmra.mxu0 %v1174_v25  ;;  %743 = vmatmul.bf16.vlgmr.msra.gmra.mxu2 %v1270_v26  ;;  %v1234_v25 = vor.u32 %v1441_v23, %v1231_v24  ;;  %v1467_v26 = vld [vmem:[%s1732_s21 + $0x144] sm:$0xf]  ;;  %v1362_v24 = vor.u32 %v1473_v15, %v1359_v18  ;;  %v1450_v15 = vld [vmem:[%s1732_s21 + $0xb4] sm:$0xf0] }
  0x35   : > { %v1338_v32 = vor.u32 %v1467_v26, %v1335_v28  ;;  %v1246_v26 = vor.u32 %v1446_v19, %v1245_v17  ;;  %v1474_v17 = vld [vmem:[%s1732_s21 + $0x174] sm:$0xf0] }
  0x3a   : > { %1401 = vmatmul.msk.bf16.gmra.mxu1 %vm602_vm0, %v1194_v29  ;;  %v1440_v29 = vld [vmem:[%s1732_s21 + $0x64] sm:$0xf0] }
  0x3b   : > { %1414 = vmatmul.msk.bf16.gmra.mxu3 %vm602_vm0, %v1298_v36  ;;  %v1222_v33 = vor.u32 %v1440_v29, %v1221_v27  ;;  %v1239_v36 = vld [vmem:[%s1732_s21 + $0x88] sm:$0xf0] }
  0x44   : > { %688 = vmatmul.bf16.gmra.mxu0 %v1182_v37  ;;  %748 = vmatmul.bf16.gmra.mxu2 %v1278_v38  ;;  %v1242_v37 = vor.u32 %v1443_v35, %v1239_v36  ;;  %v1263_v35 = vld [vmem:[%s1732_s21 + $0xb8] sm:$0xf0] }
  0x4a   : > { %1402 = vmatmul.msk.bf16.gmra.mxu1 %vm602_vm0, %v1202_v41  ;;  %v1343_v41 = vld [vmem:[%s1732_s21 + $0x158] sm:$0xf0] }
  0x4b   : > { %1415 = vmatmul.msk.bf16.gmra.mxu3 %vm602_vm0, %v1306_v48  ;;  %v1346_v45 = vor.u32 %v1469_v39, %v1343_v41 }
  0x54   : > { %693 = vmatmul.bf16.gmra.mxu0 %v1190_v49  ;;  %753 = vmatmul.bf16.gmra.mxu2 %v1286_v50  ;;  %v1445_v50 = vld [vmem:[%s1732_s21 + $0x94] sm:$0xf] }
  0x55   : > { %v1250_v52 = vor.u32 %v1445_v50, %v1247_v51 }
  0x5a   : > { %1403 = vmatmul.msk.bf16.gmra.mxu1 %vm602_vm0, %v1210_v53 }
  0x5b   : > { %1416 = vmatmul.msk.bf16.gmra.mxu3 %vm602_vm0, %v1314_v60 }
  0x64   : > { %698 = vmatmul.bf16.gmra.mxu0 %v1198_v61  ;;  %758 = vmatmul.bf16.gmra.mxu2 %v1294_v62  ;;  %v1852_v61 = vld [vmem:[%s2090_s2] ss:$0 sm:$0xff]  ;;  %v1354_v62 = vor.u32 %v1471_v54, %v1351_v56 }
  0x6a   : > { %1404 = vmatmul.msk.bf16.gmra.mxu1 %vm602_vm0, %v1218_v1 }
  0x6b   : > { %1417 = vmatmul.msk.bf16.gmra.mxu3 %vm602_vm0, %v1322_v8 }
  0x74   : > { %703 = vmatmul.bf16.gmra.mxu0 %v1206_v9  ;;  %763 = vmatmul.bf16.gmra.mxu2 %v1302_v10  ;;  %v1447_v9 = vld [vmem:[%s1732_s21 + $0xa4] sm:$0xf]  ;;  %v1255_v10 = vld [vmem:[%s1732_s21 + $0xa8] sm:$0xf0] }
  0x7a   : > { %1405 = vmatmul.msk.bf16.gmra.mxu1 %vm602_vm0, %v1226_v13  ;;  %v1258_v13 = vor.u32 %v1447_v9, %v1255_v10 }
  0x7b   : > { %1418 = vmatmul.msk.bf16.gmra.mxu3 %vm602_vm0, %v1330_v20  ;;  %v1341_v20 = vld [vmem:[%s1732_s21 + $0x150] sm:$0xf] }
  0x84   : > { %708 = vmatmul.bf16.gmra.mxu0 %v1214_v21  ;;  %768 = vmatmul.bf16.gmra.mxu2 %v1310_v22  ;;  %v1470_v21 = vld [vmem:[%s1732_s21 + $0x154] sm:$0xf0] }
  0x85   : > { %v1342_v27 = vor.u32 %v1470_v21, %v1341_v20 }
  0x8a   : > { %1406 = vmatmul.msk.bf16.gmra.mxu1 %vm602_vm0, %v1234_v25 }
  0x8b   : > { %1419 = vmatmul.msk.bf16.gmra.mxu3 %vm602_vm0, %v1338_v32 }
  0x94   : > { %713 = vmatmul.bf16.gmra.mxu0 %v1222_v33  ;;  %773 = vmatmul.bf16.gmra.mxu2 %v1318_v34  ;;  %v1449_v34 = vld [vmem:[%s1732_s21 + $0xb4] sm:$0xf] }
  0x95   : > { %v1266_v41 = vor.u32 %v1449_v34, %v1263_v35 }
  0x97   : > { %v813_v38 = vpop.f32.mrf.mxu1 }
  0x9a   : > { %1407 = vmatmul.msk.bf16.gmra.mxu1 %vm602_vm0, %v1242_v37 }
  0x9b   : > { %1420 = vmatmul.msk.bf16.gmra.mxu3 %vm602_vm0, %v1346_v45  ;;  %v1253_v45 = vld [vmem:[%s1732_s21 + $0xa0] sm:$0xf] }
  0x9e   : > { %v1835_v49 = vpop.f32.mrf.mxu3 }
  0x9f   : > { %v815_v48 = vpop.f32.mrf.mxu1 }
  0xa4   : > { %718 = vmatmul.bf16.gmra.mxu0 %v1230_v46  ;;  %778 = vmatmul.bf16.gmra.mxu2 %v1326_v47  ;;  %v1448_v46 = vld [vmem:[%s1732_s21 + $0xa4] sm:$0xf0]  ;;  %v1349_v47 = vld [vmem:[%s1732_s21 + $0x160] sm:$0xf] }
  0xa6   : > { %v1845_v60 = vpop.f32.mrf.mxu3 }
  0xa7   : > { %v818_v53 = vpop.f32.mrf.mxu1 }
  0xaa   : > { %1408 = vmatmul.msk.bf16.gmra.mxu1 %vm602_vm0, %v1250_v52  ;;  %v1254_v52 = vor.u32 %v1448_v46, %v1253_v45 }
  0xab   : > { %1421 = vmatmul.msk.bf16.gmra.mxu3 %vm602_vm0, %v1354_v62 }
  0xae   : > { %v1863_v6 = vpop.f32.mrf.mxu3 }
  0xaf   : > { %v820_v4 = vpop.f32.mrf.mxu1 }
  0xb1   : > { %v684_v1 = vpop.f32.mrf.mxu0 }
  0xb2   : > { %v685_v2 = vadd.f32 %v1852_v61, %v684_v1  ;;  %v1451_v1 = vld [vmem:[%s1732_s21 + $0xc4] sm:$0xf] }
  0xb4   : > { %v814_v5 = vadd.f32 %v813_v38, %v685_v2  ;;  %723 = vmatmul.bf16.gmra.mxu0 %v1238_v63  ;;  %783 = vmatmul.bf16.gmra.mxu2 %v1334_v0  ;;  %v1271_v2 = vld [vmem:[%s1732_s21 + $0xc8] sm:$0xf0] }
  0xb5   : > { %v1274_v9 = vor.u32 %v1451_v1, %v1271_v2 }
  0xb6   : > { %v937_v7 = vmax.f32 %v814_v5, %v1860_v3  ;;  %v1880_v22 = vpop.f32.mrf.mxu3 }
  0xb7   : > { %v1866_v8 = vpop.f32.mrf.mxu2  ;;  %v823_v14 = vpop.f32.mrf.mxu1 }
  0xb8   : > { %985 = vst [vmem:[%s1870_s24] sm:$0xff] %v937_v7 }
  0xb9   : > { %v686_v11 = vpop.f32.mrf.mxu0 }
  0xba   : > { %v687_v12 = vadd.f32 %v1852_v61, %v686_v11  ;;  %1409 = vmatmul.msk.bf16.gmra.mxu1 %vm602_vm0, %v1258_v13 }
  0xbb   : > { %1422 = vmatmul.msk.bf16.gmra.mxu3 %vm602_vm0, %v1362_v24 }
  0xbc   : > { %v816_v16 = vadd.f32 %v815_v48, %v687_v12  ;;  %v1472_v48 = vld [vmem:[%s1732_s21 + $0x164] sm:$0xf0] }
  0xbe   : > { %v938_v23 = vmax.f32 %v816_v16, %v1860_v3  ;;  %v1892_v36 = vpop.f32.mrf.mxu3  ;;  %v1357_v16 = vld [vmem:[%s1732_s21 + $0x170] sm:$0xf] }
  0xbf   : > { %v1884_v25 = vpop.f32.mrf.mxu2  ;;  %v825_v30 = vpop.f32.mrf.mxu1  ;;  %v1358_v21 = vor.u32 %v1474_v17, %v1357_v16 }
  0xc0   : > { %986 = vst [vmem:[%s1870_s24 + $0x8] sm:$0xff] %v938_v23 }
  0xc1   : > { %v689_v28 = vpop.f32.mrf.mxu0 }
  0xc2   : > { %v690_v29 = vadd.f32 %v1852_v61, %v689_v28 }
  0xc4   : > { %v819_v31 = vadd.f32 %v818_v53, %v690_v29  ;;  %728 = vmatmul.bf16.gmra.mxu0 %v1246_v26  ;;  %788 = vmatmul.bf16.gmra.mxu2 %v1342_v27  ;;  %v1350_v53 = vor.u32 %v1472_v48, %v1349_v47 }
  0xc6   : > { %v939_v32 = vmax.f32 %v819_v31, %v1860_v3  ;;  %v890_v55 = vpop.f32.mrf.mxu3 }
  0xc7   : > { %v749_v33 = vpop.f32.mrf.mxu2  ;;  %v828_v42 = vpop.f32.mrf.mxu1 }
  0xc8   : > { %987 = vst [vmem:[%s1870_s24 + $0x10] sm:$0xff] %v939_v32  ;;  %v750_v37 = vadd.f32 %v1852_v61, %v749_v33 }
  0xc9   : > { %v691_v38 = vpop.f32.mrf.mxu0 }
  0xca   : > { %v879_v39 = vadd.f32 %v1835_v49, %v750_v37  ;;  %v692_v40 = vadd.f32 %v1852_v61, %v691_v38  ;;  %1410 = vmatmul.msk.bf16.gmra.mxu1 %vm602_vm0, %v1266_v41 }
  0xcc   : > { %v963_v43 = vmax.f32 %v879_v39, %v1860_v3  ;;  %v821_v44 = vadd.f32 %v820_v4, %v692_v40 }
  0xce   : > { %1011 = vst [vmem:[%s1870_s24 + $0xd0] sm:$0xff] %v963_v43  ;;  %v940_v50 = vmax.f32 %v821_v44, %v1860_v3  ;;  %v893_v11 = vpop.f32.mrf.mxu3 }
  0xcf   : > { %v751_v51 = vpop.f32.mrf.mxu2  ;;  %v830_v58 = vpop.f32.mrf.mxu1 }
  0xd0   : > { %988 = vst [vmem:[%s1870_s24 + $0x18] sm:$0xff] %v940_v50  ;;  %v752_v49 = vadd.f32 %v1852_v61, %v751_v51 }
  0xd1   : > { %v694_v54 = vpop.f32.mrf.mxu0 }
  0xd2   : > { %v881_v56 = vadd.f32 %v1845_v60, %v752_v49  ;;  %v695_v57 = vadd.f32 %v1852_v61, %v694_v54 }
  0xd4   : > { %v964_v59 = vmax.f32 %v881_v56, %v1860_v3  ;;  %v824_v62 = vadd.f32 %v823_v14, %v695_v57  ;;  %733 = vmatmul.bf16.gmra.mxu0 %v1254_v52  ;;  %793 = vmatmul.bf16.gmra.mxu2 %v1350_v53  ;;  %v1261_v14 = vld [vmem:[%s1732_s21 + $0xb0] sm:$0xf]  ;;  %s1484_s21 = smul.u32 384, %s1624_s18  ;;  %s1047_s18 = sshll.u32 %s1870_s24, 4  ;;  %s1048_s18 = int_to_ptr.vmem [resolvable:$true] %s1047_s18 }
  0xd5   : > { %v1262_v20 = vor.u32 %v1450_v15, %v1261_v14 }
  0xd6   : > { %1012 = vst [vmem:[%s1870_s24 + $0xd8] sm:$0xff] %v964_v59  ;;  %v941_v63 = vmax.f32 %v824_v62, %v1860_v3  ;;  %s1046_s30 = scalar_lea.hbm %s2092_s4, %s1484_s21 }
  0xd7   : > { %v754_v0 = vpop.f32.mrf.mxu2  ;;  %v833_v10 = vpop.f32.mrf.mxu1  ;;  %s1049_s5 = sshll.u32 %s1046_s30, 4  ;;  %s1050_s5 = int_to_ptr.hbm [resolvable:$true] %s1049_s5 }
  0xd8   : > { %989 = vst [vmem:[%s1870_s24 + $0x20] sm:$0xff] %v941_v63  ;;  %v755_v60 = vadd.f32 %v1852_v61, %v754_v0  ;;  %s1568_s7 = sshra.s32 %s1050_s5, 4  ;;  %s1569_s7 = int_to_ptr.hbm [resolvable:$true] %s1568_s7 }
  0xd9   : > { %v696_v4 = vpop.f32.mrf.mxu0  ;;  %s1570_s8 = scalar_lea.hbm %s1569_s7, 384  ;;  %p1575_p1 = scmp.lt.s32.totalorder %s1569_s7, %s2092_s4 }
  0xda   : > { %v884_v5 = vadd.f32 %v1863_v6, %v755_v60  ;;  %v697_v7 = vadd.f32 %v1852_v61, %v696_v4  ;;  %1411 = vmatmul.msk.bf16.gmra.mxu1 %vm602_vm0, %v1274_v9  ;;  %p1571_p12 = scmp.ne.s32.totalorder %s1569_s7, %s1570_s8  ;;  %p1576_p2 = scmp.lt.s32.totalorder %s1574_s12, %s1570_s8 }
  0xdc   : > { %v965_v12 = vmax.f32 %v884_v5, %v1860_v3  ;;  %v826_v13 = vadd.f32 %v825_v30, %v697_v7  ;;  %v895_v30 = vpop.f32.mrf.mxu3  ;;  %p1572_p13 = pnand %p1571_p12, %p1701_p4  ;;  %p1577_p3 = por %p1576_p2, %p1575_p1 }
  0xde   : > { %1013 = vst [vmem:[%s1870_s24 + $0xe0] sm:$0xff] %v965_v12  ;;  %v942_v18 = vmax.f32 %v826_v13, %v1860_v3  ;;  %p1573_p0 = pneg %p1572_p13 }
  0xdf   : > { %v756_v19 = vpop.f32.mrf.mxu2  ;;  %v835_v27 = vpop.f32.mrf.mxu1 }
  0xe0   : > { %990 = vst [vmem:[%s1870_s24 + $0x28] sm:$0xff] %v942_v18  ;;  %v757_v6 = vadd.f32 %v1852_v61, %v756_v19  ;;  %p1578_p5 = pnand %p1577_p3, %p1573_p0 }
  0xe1   : > { %v699_v23 = vpop.f32.mrf.mxu0 }
  0xe2   : > { %v886_v24 = vadd.f32 %v1880_v22, %v757_v6  ;;  %v700_v26 = vadd.f32 %v1852_v61, %v699_v23 }
  0xe4   : > { %v966_v28 = vmax.f32 %v886_v24, %v1860_v3  ;;  %v829_v29 = vadd.f32 %v828_v42, %v700_v26  ;;  %738 = vmatmul.bf16.gmra.mxu0 %v1262_v20  ;;  %798 = vmatmul.bf16.gmra.mxu2 %v1358_v21  ;;  %v898_v42 = vpop.f32.mrf.mxu3 }
  0xe6   : > { %1014 = vst [vmem:[%s1870_s24 + $0xe8] sm:$0xff] %v966_v28  ;;  %v943_v31 = vmax.f32 %v829_v29, %v1860_v3 }
  0xe7   : > { %v759_v32 = vpop.f32.mrf.mxu2  ;;  %v838_v37 = vpop.f32.mrf.mxu1 }
  0xe8   : > { %991 = vst [vmem:[%s1870_s24 + $0x30] sm:$0xff] %v943_v31  ;;  %v760_v33 = vadd.f32 %v1852_v61, %v759_v32 }
  0xe9   : > { %v701_v34 = vpop.f32.mrf.mxu0 }
  0xea   : > { %v889_v22 = vadd.f32 %v1892_v36, %v760_v33  ;;  %v702_v35 = vadd.f32 %v1852_v61, %v701_v34 }
  0xec   : > { %v967_v38 = vmax.f32 %v889_v22, %v1860_v3  ;;  %v831_v39 = vadd.f32 %v830_v58, %v702_v35  ;;  %v900_v53 = vpop.f32.mrf.mxu3 }
  0xee   : > { %1015 = vst [vmem:[%s1870_s24 + $0xf0] sm:$0xff] %v967_v38  ;;  %v944_v40 = vmax.f32 %v831_v39, %v1860_v3 }
  0xef   : > { %v761_v41 = vpop.f32.mrf.mxu2  ;;  %v840_v46 = vpop.f32.mrf.mxu1 }
  0xf0   : > { %992 = vst [vmem:[%s1870_s24 + $0x38] sm:$0xff] %v944_v40  ;;  %v762_v43 = vadd.f32 %v1852_v61, %v761_v41 }
  0xf1   : > { %v704_v44 = vpop.f32.mrf.mxu0 }
  0xf2   : > { %v891_v45 = vadd.f32 %v890_v55, %v762_v43  ;;  %v705_v36 = vadd.f32 %v1852_v61, %v704_v44 }
  0xf4   : > { %v968_v47 = vmax.f32 %v891_v45, %v1860_v3  ;;  %v834_v48 = vadd.f32 %v833_v10, %v705_v36  ;;  %v903_v4 = vpop.f32.mrf.mxu3 }
  0xf6   : > { %1016 = vst [vmem:[%s1870_s24 + $0xf8] sm:$0xff] %v968_v47  ;;  %v945_v50 = vmax.f32 %v834_v48, %v1860_v3 }
  0xf7   : > { %v764_v51 = vpop.f32.mrf.mxu2  ;;  %v843_v56 = vpop.f32.mrf.mxu1 }
  0xf8   : > { %993 = vst [vmem:[%s1870_s24 + $0x40] sm:$0xff] %v945_v50  ;;  %v765_v49 = vadd.f32 %v1852_v61, %v764_v51 }
  0xf9   : > { %v706_v52 = vpop.f32.mrf.mxu0 }
  0xfa   : > { %v894_v54 = vadd.f32 %v893_v11, %v765_v49  ;;  %v707_v55 = vadd.f32 %v1852_v61, %v706_v52 }
  0xfc   : > { %v969_v57 = vmax.f32 %v894_v54, %v1860_v3  ;;  %v836_v58 = vadd.f32 %v835_v27, %v707_v55  ;;  %v905_v18 = vpop.f32.mrf.mxu3 }
  0xfe   : > { %1017 = vst [vmem:[%s1870_s24 + $0x100] sm:$0xff] %v969_v57  ;;  %v946_v59 = vmax.f32 %v836_v58, %v1860_v3 }
  0xff   : > { %v766_v62 = vpop.f32.mrf.mxu2  ;;  %v845_v60 = vpop.f32.mrf.mxu1 }
 0x100   : > { %994 = vst [vmem:[%s1870_s24 + $0x48] sm:$0xff] %v946_v59  ;;  %v767_v63 = vadd.f32 %v1852_v61, %v766_v62 }
 0x101   : > { %v709_v0 = vpop.f32.mrf.mxu0 }
 0x102   : > { %v896_v1 = vadd.f32 %v895_v30, %v767_v63  ;;  %v710_v2 = vadd.f32 %v1852_v61, %v709_v0 }
 0x104   : > { %v970_v5 = vmax.f32 %v896_v1, %v1860_v3  ;;  %v839_v7 = vadd.f32 %v838_v37, %v710_v2  ;;  %v908_v31 = vpop.f32.mrf.mxu3 }
 0x106   : > { %1018 = vst [vmem:[%s1870_s24 + $0x108] sm:$0xff] %v970_v5  ;;  %v947_v9 = vmax.f32 %v839_v7, %v1860_v3 }
 0x107   : > { %v769_v10 = vpop.f32.mrf.mxu2  ;;  %v848_v15 = vpop.f32.mrf.mxu1 }
 0x108   : > { %995 = vst [vmem:[%s1870_s24 + $0x50] sm:$0xff] %v947_v9  ;;  %v770_v11 = vadd.f32 %v1852_v61, %v769_v10 }
 0x109   : > { %v711_v12 = vpop.f32.mrf.mxu0 }
 0x10a   : > { %v899_v13 = vadd.f32 %v898_v42, %v770_v11  ;;  %v712_v14 = vadd.f32 %v1852_v61, %v711_v12 }
 0x10c   : > { %v971_v16 = vmax.f32 %v899_v13, %v1860_v3  ;;  %v841_v17 = vadd.f32 %v840_v46, %v712_v14  ;;  %v910_v43 = vpop.f32.mrf.mxu3 }
 0x10e   : > { %1019 = vst [vmem:[%s1870_s24 + $0x110] sm:$0xff] %v971_v16  ;;  %v948_v19 = vmax.f32 %v841_v17, %v1860_v3 }
 0x10f   : > { %v771_v6 = vpop.f32.mrf.mxu2  ;;  %v850_v26 = vpop.f32.mrf.mxu1 }
 0x110   : > { %996 = vst [vmem:[%s1870_s24 + $0x58] sm:$0xff] %v948_v19  ;;  %v772_v20 = vadd.f32 %v1852_v61, %v771_v6 }
 0x111   : > { %v714_v21 = vpop.f32.mrf.mxu0 }
 0x112   : > { %v901_v23 = vadd.f32 %v900_v53, %v772_v20  ;;  %v715_v24 = vadd.f32 %v1852_v61, %v714_v21 }
 0x114   : > { %v972_v27 = vmax.f32 %v901_v23, %v1860_v3  ;;  %v844_v28 = vadd.f32 %v843_v56, %v715_v24  ;;  %v913_v55 = vpop.f32.mrf.mxu3 }
 0x116   : > { %1020 = vst [vmem:[%s1870_s24 + $0x118] sm:$0xff] %v972_v27  ;;  %v949_v29 = vmax.f32 %v844_v28, %v1860_v3 }
 0x117   : > { %v774_v30 = vpop.f32.mrf.mxu2  ;;  %v853_v35 = vpop.f32.mrf.mxu1 }
 0x118   : > { %997 = vst [vmem:[%s1870_s24 + $0x60] sm:$0xff] %v949_v29  ;;  %v775_v32 = vadd.f32 %v1852_v61, %v774_v30 }
 0x119   : > { %v716_v33 = vpop.f32.mrf.mxu0 }
 0x11a   : > { %v904_v34 = vadd.f32 %v903_v4, %v775_v32  ;;  %v717_v22 = vadd.f32 %v1852_v61, %v716_v33 }
 0x11c   : > { %v973_v37 = vmax.f32 %v904_v34, %v1860_v3  ;;  %v846_v38 = vadd.f32 %v845_v60, %v717_v22  ;;  %v915_v5 = vpop.f32.mrf.mxu3 }
 0x11e   : > { %1021 = vst [vmem:[%s1870_s24 + $0x120] sm:$0xff] %v973_v37  ;;  %v950_v39 = vmax.f32 %v846_v38, %v1860_v3 }
 0x11f   : > { %v776_v40 = vpop.f32.mrf.mxu2  ;;  %v855_v36 = vpop.f32.mrf.mxu1 }
 0x120   : > { %998 = vst [vmem:[%s1870_s24 + $0x68] sm:$0xff] %v950_v39  ;;  %v777_v41 = vadd.f32 %v1852_v61, %v776_v40 }
 0x121   : > { %v719_v42 = vpop.f32.mrf.mxu0 }
 0x122   : > { %v906_v44 = vadd.f32 %v905_v18, %v777_v41  ;;  %v720_v45 = vadd.f32 %v1852_v61, %v719_v42 }
 0x124   : > { %v974_v46 = vmax.f32 %v906_v44, %v1860_v3  ;;  %v849_v47 = vadd.f32 %v848_v15, %v720_v45  ;;  %v918_v19 = vpop.f32.mrf.mxu3 }
 0x126   : > { %1022 = vst [vmem:[%s1870_s24 + $0x128] sm:$0xff] %v974_v46  ;;  %v951_v48 = vmax.f32 %v849_v47, %v1860_v3 }
 0x127   : > { %v779_v50 = vpop.f32.mrf.mxu2  ;;  %v858_v54 = vpop.f32.mrf.mxu1 }
 0x128   : > { %999 = vst [vmem:[%s1870_s24 + $0x70] sm:$0xff] %v951_v48  ;;  %v780_v51 = vadd.f32 %v1852_v61, %v779_v50 }
 0x129   : > { %v721_v49 = vpop.f32.mrf.mxu0 }
 0x12a   : > { %v909_v52 = vadd.f32 %v908_v31, %v780_v51  ;;  %v722_v53 = vadd.f32 %v1852_v61, %v721_v49  ;;  %v745_v49 = vadd.f32 %v1852_v61, %v1866_v8 }
 0x12c   : > { %v975_v56 = vmax.f32 %v909_v52, %v1860_v3  ;;  %v851_v57 = vadd.f32 %v850_v26, %v722_v53  ;;  %v920_v32 = vpop.f32.mrf.mxu3 }
 0x12e   : > { %1023 = vst [vmem:[%s1870_s24 + $0x130] sm:$0xff] %v975_v56  ;;  %v952_v58 = vmax.f32 %v851_v57, %v1860_v3 }
 0x12f   : > { %v781_v59 = vpop.f32.mrf.mxu2  ;;  %v860_v2 = vpop.f32.mrf.mxu1 }
 0x130   : > { %1000 = vst [vmem:[%s1870_s24 + $0x78] sm:$0xff] %v952_v58  ;;  %v782_v62 = vadd.f32 %v1852_v61, %v781_v59 }
 0x131   : > { %v724_v63 = vpop.f32.mrf.mxu0 }
 0x132   : > { %v911_v0 = vadd.f32 %v910_v43, %v782_v62  ;;  %v725_v1 = vadd.f32 %v1852_v61, %v724_v63 }
 0x134   : > { %v976_v60 = vmax.f32 %v911_v0, %v1860_v3  ;;  %v854_v4 = vadd.f32 %v853_v35, %v725_v1  ;;  %v923_v44 = vpop.f32.mrf.mxu3  ;;  %v747_v1 = vadd.f32 %v1852_v61, %v1884_v25 }
 0x136   : > { %1024 = vst [vmem:[%s1870_s24 + $0x138] sm:$0xff] %v976_v60  ;;  %v953_v7 = vmax.f32 %v854_v4, %v1860_v3 }
 0x137   : > { %v784_v9 = vpop.f32.mrf.mxu2  ;;  %v863_v14 = vpop.f32.mrf.mxu1 }
 0x138   : > { %1001 = vst [vmem:[%s1870_s24 + $0x80] sm:$0xff] %v953_v7  ;;  %v785_v10 = vadd.f32 %v1852_v61, %v784_v9 }
 0x139   : > { %v726_v11 = vpop.f32.mrf.mxu0 }
 0x13a   : > { %v914_v12 = vadd.f32 %v913_v55, %v785_v10  ;;  %v727_v13 = vadd.f32 %v1852_v61, %v726_v11 }
 0x13c   : > { %v977_v15 = vmax.f32 %v914_v12, %v1860_v3  ;;  %v856_v16 = vadd.f32 %v855_v36, %v727_v13  ;;  %v925_v58 = vpop.f32.mrf.mxu3 }
 0x13e   : > { %1025 = vst [vmem:[%s1870_s24 + $0x140] sm:$0xff] %v977_v15  ;;  %v954_v17 = vmax.f32 %v856_v16, %v1860_v3 }
 0x13f   : > { %v786_v18 = vpop.f32.mrf.mxu2  ;;  %v865_v24 = vpop.f32.mrf.mxu1 }
 0x140   : > { %1002 = vst [vmem:[%s1870_s24 + $0x88] sm:$0xff] %v954_v17  ;;  %v787_v6 = vadd.f32 %v1852_v61, %v786_v18 }
 0x141   : > { %v729_v20 = vpop.f32.mrf.mxu0 }
 0x142   : > { %v916_v21 = vadd.f32 %v915_v5, %v787_v6  ;;  %v730_v23 = vadd.f32 %v1852_v61, %v729_v20 }
 0x144   : > { %v978_v26 = vmax.f32 %v916_v21, %v1860_v3  ;;  %v859_v27 = vadd.f32 %v858_v54, %v730_v23  ;;  %v928_v12 = vpop.f32.mrf.mxu3 }
 0x146   : > { %1026 = vst [vmem:[%s1870_s24 + $0x148] sm:$0xff] %v978_v26  ;;  %v955_v28 = vmax.f32 %v859_v27, %v1860_v3 }
 0x147   : > { %v789_v29 = vpop.f32.mrf.mxu2  ;;  %v868_v22 = vpop.f32.mrf.mxu1 }
 0x148   : > { %1003 = vst [vmem:[%s1870_s24 + $0x90] sm:$0xff] %v955_v28  ;;  %v790_v30 = vadd.f32 %v1852_v61, %v789_v29 }
 0x149   : > { %v731_v31 = vpop.f32.mrf.mxu0 }
 0x14a   : > { %v919_v33 = vadd.f32 %v918_v19, %v790_v30  ;;  %v732_v34 = vadd.f32 %v1852_v61, %v731_v31 }
 0x14c   : > { %v979_v35 = vmax.f32 %v919_v33, %v1860_v3  ;;  %v861_v37 = vadd.f32 %v860_v2, %v732_v34  ;;  %v930_v21 = vpop.f32.mrf.mxu3 }
 0x14e   : > { %1027 = vst [vmem:[%s1870_s24 + $0x150] sm:$0xff] %v979_v35  ;;  %v956_v38 = vmax.f32 %v861_v37, %v1860_v3 }
 0x14f   : > { %v791_v39 = vpop.f32.mrf.mxu2  ;;  %v870_v45 = vpop.f32.mrf.mxu1 }
 0x150   : > { %1004 = vst [vmem:[%s1870_s24 + $0x98] sm:$0xff] %v956_v38  ;;  %v792_v40 = vadd.f32 %v1852_v61, %v791_v39 }
 0x151   : > { %v734_v41 = vpop.f32.mrf.mxu0 }
 0x152   : > { %v921_v42 = vadd.f32 %v920_v32, %v792_v40  ;;  %v735_v43 = vadd.f32 %v1852_v61, %v734_v41 }
 0x154   : > { %v980_v36 = vmax.f32 %v921_v42, %v1860_v3  ;;  %v864_v46 = vadd.f32 %v863_v14, %v735_v43 }
 0x156   : > { %1028 = vst [vmem:[%s1870_s24 + $0x158] sm:$0xff] %v980_v36  ;;  %v957_v47 = vmax.f32 %v864_v46, %v1860_v3 }
 0x157   : > { %v794_v48 = vpop.f32.mrf.mxu2  ;;  %v873_v54 = vpop.f32.mrf.mxu1 }
 0x158   : > { %1005 = vst [vmem:[%s1870_s24 + $0xa0] sm:$0xff] %v957_v47  ;;  %v795_v50 = vadd.f32 %v1852_v61, %v794_v48  ;;  %v874_v57 = vadd.f32 %v873_v54, %v745_v49 }
 0x159   : > { %v736_v51 = vpop.f32.mrf.mxu0 }
 0x15a   : > { %v924_v52 = vadd.f32 %v923_v44, %v795_v50  ;;  %v737_v53 = vadd.f32 %v1852_v61, %v736_v51  ;;  %v961_v62 = vmax.f32 %v874_v57, %v1860_v3 }
 0x15c   : > { %v981_v55 = vmax.f32 %v924_v52, %v1860_v3  ;;  %v866_v56 = vadd.f32 %v865_v24, %v737_v53  ;;  %1009 = vst [vmem:[%s1870_s24 + $0xc0] sm:$0xff] %v961_v62 }
 0x15e   : > { %1029 = vst [vmem:[%s1870_s24 + $0x160] sm:$0xff] %v981_v55  ;;  %v958_v59 = vmax.f32 %v866_v56, %v1860_v3 }
 0x15f   : > { %v796_v63 = vpop.f32.mrf.mxu2  ;;  %v875_v4 = vpop.f32.mrf.mxu1 }
 0x160   : > { %1006 = vst [vmem:[%s1870_s24 + $0xa8] sm:$0xff] %v958_v59  ;;  %v797_v8 = vadd.f32 %v1852_v61, %v796_v63  ;;  %v876_v9 = vadd.f32 %v875_v4, %v747_v1 }
 0x161   : > { %v739_v0 = vpop.f32.mrf.mxu0 }
 0x162   : > { %v926_v2 = vadd.f32 %v925_v58, %v797_v8  ;;  %v740_v60 = vadd.f32 %v1852_v61, %v739_v0  ;;  %v962_v11 = vmax.f32 %v876_v9, %v1860_v3 }
 0x164   : > { %v982_v5 = vmax.f32 %v926_v2, %v1860_v3  ;;  %v869_v7 = vadd.f32 %v868_v22, %v740_v60  ;;  %1010 = vst [vmem:[%s1870_s24 + $0xc8] sm:$0xff] %v962_v11 }
 0x166   : > { %1030 = vst [vmem:[%s1870_s24 + $0x168] sm:$0xff] %v982_v5  ;;  %v959_v10 = vmax.f32 %v869_v7, %v1860_v3 }
 0x167   : > { %v799_v13 = vpop.f32.mrf.mxu2 }
 0x168   : > { %1007 = vst [vmem:[%s1870_s24 + $0xb0] sm:$0xff] %v959_v10  ;;  %v800_v25 = vadd.f32 %v1852_v61, %v799_v13 }
 0x169   : > { %v741_v14 = vpop.f32.mrf.mxu0 }
 0x16a   : > { %v929_v15 = vadd.f32 %v928_v12, %v800_v25  ;;  %v742_v16 = vadd.f32 %v1852_v61, %v741_v14 }
 0x16c   : > { %v983_v17 = vmax.f32 %v929_v15, %v1860_v3  ;;  %v871_v18 = vadd.f32 %v870_v45, %v742_v16 }
 0x16e   : > { %1031 = vst [vmem:[%s1870_s24 + $0x170] sm:$0xff] %v983_v17  ;;  %v960_v19 = vmax.f32 %v871_v18, %v1860_v3 }
 0x16f   : > { %v801_v6 = vpop.f32.mrf.mxu2 }
 0x170   : > { %1008 = vst [vmem:[%s1870_s24 + $0xb8] sm:$0xff] %v960_v19  ;;  %v802_v20 = vadd.f32 %v1852_v61, %v801_v6 }
 0x172   : > { %v931_v23 = vadd.f32 %v930_v21, %v802_v20 }
 0x174   : > { %v984_v24 = vmax.f32 %v931_v23, %v1860_v3 }
 0x176   : > { %1032 = vst [vmem:[%s1870_s24 + $0x178] sm:$0xff] %v984_v24 }
 0x177   : > { %1581 = shalt.err (!%p1578_p5)
}
 0x178   : > { %s1634_s10 = smov 128   ;;  %s1635_s22 = smov 8  }
 0x179   : > { %1495 = dma.vmem_to_hbm [thread:$0]  (%p1701_p4), %s1048_s18, 6144, %s1050_s5, %s1034_s6, %s1634_s10, %s1634_s10, %s1635_s22  }
 0x17a PF: > { %p1501_p6 = scmp.ge.s32.totalorder %s1632_s20, 2  ;;  %s1064_s24 = sand.u32 1, %s1612_s15  }
 0x17b   : > { %s1065_s21 = scalar_lea.sflag [#allocation3], %s1064_s24 }
 0x17c   : > { %p1498_p7 = pnand %p1501_p6, %p1708_p8 }
 0x17e   : > { %p1499_p9 = pneg %p1498_p7 }
 0x180   : > { %1607 = dma.done.wait (%p1499_p9), %s1065_s21, 6144  }
 0x181   : > { %1609 = vsyncadd (%p1499_p9), %s1065_s21, 4294961152  ;;  %s17_s20 = sadd.s32 1, %s1632_s20   ;;  %s2095_s15 = smov %s1616_s16 }
 0x182   : > { %p14_p10 = scmp.ge.s32.totalorder %s17_s20, 5   ;;  %s2096_s16 = smov %s1620_s17 }
 0x183   : > { %s2097_s17 = smov %s1714_s28  ;;  %s2098_s18 = smov %s1628_s19 }
 0x184   : > { %s2099_s19 = smov %s2101_s23  ;;  %16 = sbr.rel (!%p14_p10) target bundleno = 4 (0x4), region = 80 }
 0x189   :  { %1071 = vsyncpa [#allocation3], 1 }
 0x18a   :  { %1073 = vsyncpa [#allocation3 + $0x1], 1 }

// kernel: guidance_forward.16
= control target key start
LH: loop header
LB: loop body
LE: loop exit
PB: predicated region body
PF: predicated region fallthrough
CT: control target
= control target key end

     0   :  { %vm406_vm0 = vcmask 130048   ;;  %s1352_s1 = inlined_call_operand.vmem [shape: bf16[400,128], index: 1, kind: input, shape index: {}]   ;;  %s1353_s0 = inlined_call_operand.vmem [shape: bf16[128,400], index: 0, kind: input, shape index: {}]   ;;  %s1354_s2 = inlined_call_operand.vmem [shape: f32[1,128], index: 2, kind: input, shape index: {}]   ;;  %s1355_s3 = inlined_call_operand.vmem [shape: f32[1,128], index: 3, kind: input, shape index: {}]   ;;  %s1356_s4 = inlined_call_operand.vmem [shape: f32[128,128], index: 4, kind: output, shape index: {}]  }
   0x1   :  { %v942_v0 = vld [vmem:[%s1352_s1 + $0x38] sm:$0xff]  ;;  %v941_v3 = vld [vmem:[%s1352_s1 + $0x30] sm:$0xff]  ;;  %v940_v6 = vld [vmem:[%s1352_s1 + $0x28] sm:$0xff] }
   0x2   :  { %v950_v1 = vld [vmem:[%s1352_s1 + $0x78] sm:$0xff]  ;;  %431 = vmatpush.bf16.msra.mxu0 %v942_v0  ;;  %v949_v4 = vld [vmem:[%s1352_s1 + $0x70] sm:$0xff]  ;;  %v948_v7 = vld [vmem:[%s1352_s1 + $0x68] sm:$0xff] }
   0x3   :  { %v958_v2 = vld [vmem:[%s1352_s1 + $0xb8] sm:$0xff]  ;;  %480 = vmatpush.bf16.msra.mxu1 %v950_v1  ;;  %v957_v5 = vld [vmem:[%s1352_s1 + $0xb0] sm:$0xff]  ;;  %v959_v8 = vld [vmem:[%s1352_s1 + $0xc0] sm:$0xff] }
   0x4   :  { %529 = vmatpush.bf16.msra.mxu2 %v958_v2  ;;  %v956_v9 = vld [vmem:[%s1352_s1 + $0xa8] sm:$0xff]  ;;  %v679_v11 = vld [vmem:[%s1353_s0 + $0x18] sm:$0xf0]  ;;  %585 = vmatpush.bf16.msra.mxu3 %v959_v8  ;;  %v939_v13 = vld [vmem:[%s1352_s1 + $0x20] sm:$0xff] }
   0x5   :  { %v904_v10 = vld [vmem:[%s1353_s0 + $0xc] sm:$0xf]  ;;  %v947_v14 = vld [vmem:[%s1352_s1 + $0x60] sm:$0xff]  ;;  %v938_v16 = vld [vmem:[%s1352_s1 + $0x18] sm:$0xff] }
   0x6   :  { %432 = vmatpush.bf16.msra.mxu0 %v941_v3  ;;  %v682_v12 = vor.u32 %v904_v10, %v679_v11  ;;  %v955_v15 = vld [vmem:[%s1352_s1 + $0xa0] sm:$0xff]  ;;  %v946_v17 = vld [vmem:[%s1352_s1 + $0x58] sm:$0xff]  ;;  %v937_v19 = vld [vmem:[%s1352_s1 + $0x10] sm:$0xff] }
   0x7   :  { %481 = vmatpush.bf16.msra.mxu1 %v949_v4  ;;  %v954_v18 = vld [vmem:[%s1352_s1 + $0x98] sm:$0xff]  ;;  %v945_v20 = vld [vmem:[%s1352_s1 + $0x50] sm:$0xff]  ;;  %v908_v22 = vld [vmem:[%s1353_s0 + $0x2c] sm:$0xf] }
   0x8   :  { %530 = vmatpush.bf16.msra.mxu2 %v957_v5  ;;  %895 = vmatmul.msk.bf16.vlgmr.msra.gmra.mxu3 %vm406_vm0, %v682_v12  ;;  %v953_v21 = vld [vmem:[%s1352_s1 + $0x90] sm:$0xff]  ;;  %v695_v23 = vld [vmem:[%s1353_s0 + $0x38] sm:$0xf0]  ;;  %v936_v24 = vld [vmem:[%s1352_s1 + $0x8] sm:$0xff] }
   0x9   :  { %v944_v25 = vld [vmem:[%s1352_s1 + $0x48] sm:$0xff]  ;;  %v698_v27 = vor.u32 %v908_v22, %v695_v23  ;;  %v935_v28 = vld [vmem:[%s1352_s1] sm:$0xff]  ;;  %v905_v31 = vld [vmem:[%s1353_s0 + $0xc] sm:$0xf0] }
   0xa   :  { %433 = vmatpush.bf16.msra.mxu0 %v940_v6  ;;  %v952_v26 = vld [vmem:[%s1352_s1 + $0x88] sm:$0xff]  ;;  %v943_v29 = vld [vmem:[%s1352_s1 + $0x40] sm:$0xff]  ;;  %v671_v33 = vld [vmem:[%s1353_s0 + $0x10] sm:$0xf0] }
   0xb   :  { %482 = vmatpush.bf16.msra.mxu1 %v948_v7  ;;  %v669_v30 = vld [vmem:[%s1353_s0] sm:$0xf]  ;;  %v903_v32 = vld [vmem:[%s1353_s0 + $0x4] sm:$0xf]  ;;  %v677_v35 = vld [vmem:[%s1353_s0 + $0x8] sm:$0xf] }
   0xc   :  { %531 = vmatpush.bf16.msra.mxu2 %v956_v9  ;;  %v951_v34 = vld [vmem:[%s1352_s1 + $0x80] sm:$0xff]  ;;  %v906_v36 = vld [vmem:[%s1353_s0 + $0x14] sm:$0xf0]  ;;  %v670_v37 = vor.u32 %v905_v31, %v669_v30  ;;  %v674_v38 = vor.u32 %v903_v32, %v671_v33  ;;  %v912_v40 = vld [vmem:[%s1353_s0 + $0x4c] sm:$0xf] }
   0xd   :  { %v678_v39 = vor.u32 %v906_v36, %v677_v35  ;;  %v711_v41 = vld [vmem:[%s1353_s0 + $0x58] sm:$0xf0]  ;;  %v685_v43 = vld [vmem:[%s1353_s0 + $0x20] sm:$0xf]  ;;  %v909_v44 = vld [vmem:[%s1353_s0 + $0x2c] sm:$0xf0] }
   0xe   :  { %434 = vmatpush.bf16.msra.mxu0 %v939_v13  ;;  %v714_v42 = vor.u32 %v912_v40, %v711_v41  ;;  %v907_v45 = vld [vmem:[%s1353_s0 + $0x24] sm:$0xf]  ;;  %v687_v46 = vld [vmem:[%s1353_s0 + $0x30] sm:$0xf0]  ;;  %v693_v47 = vld [vmem:[%s1353_s0 + $0x28] sm:$0xf]  ;;  %v686_v49 = vor.u32 %v909_v44, %v685_v43 }
   0xf   :  { %483 = vmatpush.bf16.msra.mxu1 %v947_v14  ;;  %v910_v48 = vld [vmem:[%s1353_s0 + $0x34] sm:$0xf0]  ;;  %v690_v50 = vor.u32 %v907_v45, %v687_v46  ;;  %v916_v52 = vld [vmem:[%s1353_s0 + $0x6c] sm:$0xf]  ;;  %v727_v53 = vld [vmem:[%s1353_s0 + $0x78] sm:$0xf0] }
  0x10   :  { %532 = vmatpush.bf16.msra.mxu2 %v955_v15  ;;  %v694_v51 = vor.u32 %v910_v48, %v693_v47  ;;  %v730_v54 = vor.u32 %v916_v52, %v727_v53  ;;  %v701_v55 = vld [vmem:[%s1353_s0 + $0x40] sm:$0xf]  ;;  %v913_v56 = vld [vmem:[%s1353_s0 + $0x4c] sm:$0xf0]  ;;  %v911_v57 = vld [vmem:[%s1353_s0 + $0x44] sm:$0xf] }
  0x11   :  { %v703_v58 = vld [vmem:[%s1353_s0 + $0x50] sm:$0xf0]  ;;  %v709_v59 = vld [vmem:[%s1353_s0 + $0x48] sm:$0xf]  ;;  %v914_v60 = vld [vmem:[%s1353_s0 + $0x54] sm:$0xf0]  ;;  %v702_v61 = vor.u32 %v913_v56, %v701_v55 }
  0x12   :  { %435 = vmatpush.bf16.msra.mxu0 %v938_v16  ;;  %v706_v62 = vor.u32 %v911_v57, %v703_v58  ;;  %v710_v63 = vor.u32 %v914_v60, %v709_v59  ;;  %v920_v0 = vld [vmem:[%s1353_s0 + $0x8c] sm:$0xf]  ;;  %v743_v1 = vld [vmem:[%s1353_s0 + $0x98] sm:$0xf0]  ;;  %v717_v3 = vld [vmem:[%s1353_s0 + $0x60] sm:$0xf] }
  0x13   :  { %484 = vmatpush.bf16.msra.mxu1 %v946_v17  ;;  %v746_v2 = vor.u32 %v920_v0, %v743_v1  ;;  %v917_v4 = vld [vmem:[%s1353_s0 + $0x6c] sm:$0xf0]  ;;  %v915_v5 = vld [vmem:[%s1353_s0 + $0x64] sm:$0xf]  ;;  %v719_v6 = vld [vmem:[%s1353_s0 + $0x70] sm:$0xf0] }
  0x14   :  { %533 = vmatpush.bf16.msra.mxu2 %v954_v18  ;;  %v725_v7 = vld [vmem:[%s1353_s0 + $0x68] sm:$0xf]  ;;  %v918_v8 = vld [vmem:[%s1353_s0 + $0x74] sm:$0xf0]  ;;  %v718_v9 = vor.u32 %v917_v4, %v717_v3  ;;  %v722_v10 = vor.u32 %v915_v5, %v719_v6  ;;  %v924_v12 = vld [vmem:[%s1353_s0 + $0xac] sm:$0xf] }
  0x15   :  { %v726_v11 = vor.u32 %v918_v8, %v725_v7  ;;  %v759_v13 = vld [vmem:[%s1353_s0 + $0xb8] sm:$0xf0]  ;;  %v733_v15 = vld [vmem:[%s1353_s0 + $0x80] sm:$0xf]  ;;  %v921_v16 = vld [vmem:[%s1353_s0 + $0x8c] sm:$0xf0] }
  0x16   :  { %436 = vmatpush.bf16.msra.mxu0 %v937_v19  ;;  %v762_v14 = vor.u32 %v924_v12, %v759_v13  ;;  %v919_v17 = vld [vmem:[%s1353_s0 + $0x84] sm:$0xf]  ;;  %v735_v18 = vld [vmem:[%s1353_s0 + $0x90] sm:$0xf0]  ;;  %v741_v19 = vld [vmem:[%s1353_s0 + $0x88] sm:$0xf] }
  0x17   :  { %485 = vmatpush.bf16.msra.mxu1 %v945_v20  ;;  %v922_v20 = vld [vmem:[%s1353_s0 + $0x94] sm:$0xf0]  ;;  %v738_v22 = vor.u32 %v919_v17, %v735_v18  ;;  %v751_v30 = vld [vmem:[%s1353_s0 + $0xb0] sm:$0xf0]  ;;  %v757_v31 = vld [vmem:[%s1353_s0 + $0xa8] sm:$0xf] }
  0x18   :  { %534 = vmatpush.bf16.msra.mxu2 %v953_v21  ;;  %896 = vmatmul.msk.bf16.gmra.mxu3 %vm406_vm0, %v698_v27  ;;  %v734_v21 = vor.u32 %v921_v16, %v733_v15  ;;  %v742_v23 = vor.u32 %v922_v20, %v741_v19  ;;  %v749_v27 = vld [vmem:[%s1353_s0 + $0xa0] sm:$0xf]  ;;  %v926_v32 = vld [vmem:[%s1353_s0 + $0xb4] sm:$0xf0]  ;;  %v932_v36 = vld [vmem:[%s1353_s0 + $0xec] sm:$0xf] }
  0x19   :  { %v758_v35 = vor.u32 %v926_v32, %v757_v31  ;;  %v929_v40 = vld [vmem:[%s1353_s0 + $0xcc] sm:$0xf0]  ;;  %v927_v41 = vld [vmem:[%s1353_s0 + $0xc4] sm:$0xf]  ;;  %v773_v43 = vld [vmem:[%s1353_s0 + $0xc8] sm:$0xf] }
  0x1a   :  { %437 = vmatpush.bf16.msra.mxu0 %v936_v24  ;;  %v928_v24 = vld [vmem:[%s1353_s0 + $0xcc] sm:$0xf]  ;;  %v930_v44 = vld [vmem:[%s1353_s0 + $0xd4] sm:$0xf0]  ;;  %v781_v48 = vld [vmem:[%s1353_s0 + $0xe0] sm:$0xf] }
  0x1b   :  { %486 = vmatpush.bf16.msra.mxu1 %v944_v25  ;;  %v775_v25 = vld [vmem:[%s1353_s0 + $0xd8] sm:$0xf0]  ;;  %v774_v47 = vor.u32 %v930_v44, %v773_v43  ;;  %v789_v52 = vld [vmem:[%s1353_s0 + $0xe8] sm:$0xf]  ;;  %v934_v53 = vld [vmem:[%s1353_s0 + $0xf4] sm:$0xf0] }
  0x1c   :  { %535 = vmatpush.bf16.msra.mxu2 %v952_v26  ;;  %v778_v26 = vor.u32 %v928_v24, %v775_v25  ;;  %v790_v56 = vor.u32 %v934_v53, %v789_v52  ;;  %v1265_v59 = vld [vmem:[%s1354_s2] ss:$0 sm:$0xff] }
  0x1d   :  { %v1271_v3 = vld [vmem:[%s1355_s3] ss:$0 sm:$0xff] }
  0x1e   :  { %438 = vmatpush.bf16.msra.mxu0 %v935_v28  ;;  %v925_v28 = vld [vmem:[%s1353_s0 + $0xac] sm:$0xf0] }
  0x1f   :  { %487 = vmatpush.bf16.msra.mxu1 %v943_v29  ;;  %v923_v29 = vld [vmem:[%s1353_s0 + $0xa4] sm:$0xf]  ;;  %v750_v33 = vor.u32 %v925_v28, %v749_v27 }
  0x20   :  { %536 = vmatpush.bf16.msra.mxu2 %v951_v34  ;;  %v754_v34 = vor.u32 %v923_v29, %v751_v30 }
  0x21   :  { %439 = vmatmul.bf16.vlgmr.msra.gmra.mxu0 %v670_v37  ;;  %v791_v37 = vld [vmem:[%s1353_s0 + $0xf8] sm:$0xf0] }
  0x22   :  { %488 = vmatmul.bf16.vlgmr.msra.gmra.mxu1 %v674_v38  ;;  %v794_v38 = vor.u32 %v932_v36, %v791_v37 }
  0x23   :  { %537 = vmatmul.bf16.vlgmr.msra.gmra.mxu2 %v678_v39  ;;  %v765_v39 = vld [vmem:[%s1353_s0 + $0xc0] sm:$0xf] }
  0x24   :  { %v766_v45 = vor.u32 %v929_v40, %v765_v39 }
  0x28   :  { %897 = vmatmul.msk.bf16.gmra.mxu3 %vm406_vm0, %v714_v42  ;;  %v767_v42 = vld [vmem:[%s1353_s0 + $0xd0] sm:$0xf0] }
  0x29   :  { %v770_v46 = vor.u32 %v927_v41, %v767_v42 }
  0x31   :  { %444 = vmatmul.bf16.gmra.mxu0 %v686_v49  ;;  %v933_v49 = vld [vmem:[%s1353_s0 + $0xec] sm:$0xf0] }
  0x32   :  { %493 = vmatmul.bf16.gmra.mxu1 %v690_v50  ;;  %v931_v50 = vld [vmem:[%s1353_s0 + $0xe4] sm:$0xf] }
  0x33   :  { %542 = vmatmul.bf16.gmra.mxu2 %v694_v51  ;;  %v783_v51 = vld [vmem:[%s1353_s0 + $0xf0] sm:$0xf0] }
  0x34   :  { %v786_v55 = vor.u32 %v931_v50, %v783_v51 }
  0x38   :  { %898 = vmatmul.msk.bf16.gmra.mxu3 %vm406_vm0, %v730_v54  ;;  %v782_v54 = vor.u32 %v933_v49, %v781_v48 }
  0x41   :  { %449 = vmatmul.bf16.gmra.mxu0 %v702_v61 }
  0x42   :  { %498 = vmatmul.bf16.gmra.mxu1 %v706_v62 }
  0x43   :  { %547 = vmatmul.bf16.gmra.mxu2 %v710_v63 }
  0x48   :  { %899 = vmatmul.msk.bf16.gmra.mxu3 %vm406_vm0, %v746_v2 }
  0x51   :  { %454 = vmatmul.bf16.gmra.mxu0 %v718_v9 }
  0x52   :  { %503 = vmatmul.bf16.gmra.mxu1 %v722_v10 }
  0x53   :  { %552 = vmatmul.bf16.gmra.mxu2 %v726_v11 }
  0x58   :  { %900 = vmatmul.msk.bf16.gmra.mxu3 %vm406_vm0, %v762_v14 }
  0x61   :  { %459 = vmatmul.bf16.gmra.mxu0 %v734_v21 }
  0x62   :  { %508 = vmatmul.bf16.gmra.mxu1 %v738_v22 }
  0x63   :  { %557 = vmatmul.bf16.gmra.mxu2 %v742_v23 }
  0x68   :  { %901 = vmatmul.msk.bf16.gmra.mxu3 %vm406_vm0, %v778_v26 }
  0x71   :  { %464 = vmatmul.bf16.gmra.mxu0 %v750_v33 }
  0x72   :  { %513 = vmatmul.bf16.gmra.mxu1 %v754_v34 }
  0x73   :  { %562 = vmatmul.bf16.gmra.mxu2 %v758_v35 }
  0x78   :  { %902 = vmatmul.msk.bf16.gmra.mxu3 %vm406_vm0, %v794_v38 }
  0x81   :  { %469 = vmatmul.bf16.gmra.mxu0 %v766_v45 }
  0x82   :  { %518 = vmatmul.bf16.gmra.mxu1 %v770_v46 }
  0x83   :  { %567 = vmatmul.bf16.gmra.mxu2 %v774_v47 }
  0x8b   :  { %v587_v57 = vpop.f32.mrf.mxu3 }
  0x91   :  { %474 = vmatmul.bf16.gmra.mxu0 %v782_v54 }
  0x92   :  { %523 = vmatmul.bf16.gmra.mxu1 %v786_v55 }
  0x93   :  { %572 = vmatmul.bf16.gmra.mxu2 %v790_v56  ;;  %v589_v58 = vpop.f32.mrf.mxu3 }
  0x9b   :  { %v592_v63 = vpop.f32.mrf.mxu3 }
  0x9e   :  { %v440_v60 = vpop.f32.mrf.mxu0 }
  0x9f   :  { %v489_v61 = vpop.f32.mrf.mxu1  ;;  %v441_v62 = vadd.f32 %v1265_v59, %v440_v60 }
  0xa1   :  { %v490_v0 = vadd.f32 %v489_v61, %v441_v62 }
  0xa3   :  { %v594_v6 = vpop.f32.mrf.mxu3 }
  0xa6   :  { %v538_v1 = vpop.f32.mrf.mxu2  ;;  %v442_v4 = vpop.f32.mrf.mxu0 }
  0xa7   :  { %v539_v2 = vadd.f32 %v538_v1, %v490_v0  ;;  %v491_v5 = vpop.f32.mrf.mxu1  ;;  %v443_v8 = vadd.f32 %v1265_v59, %v442_v4 }
  0xa9   :  { %v588_v7 = vadd.f32 %v587_v57, %v539_v2  ;;  %v492_v10 = vadd.f32 %v491_v5, %v443_v8 }
  0xab   :  { %v631_v9 = vmax.f32 %v588_v7, %v1271_v3  ;;  %v597_v17 = vpop.f32.mrf.mxu3 }
  0xad   :  { %647 = vst [vmem:[%s1356_s4] sm:$0xff] %v631_v9 }
  0xae   :  { %v540_v11 = vpop.f32.mrf.mxu2  ;;  %v445_v13 = vpop.f32.mrf.mxu0 }
  0xaf   :  { %v541_v12 = vadd.f32 %v540_v11, %v492_v10  ;;  %v494_v14 = vpop.f32.mrf.mxu1  ;;  %v446_v15 = vadd.f32 %v1265_v59, %v445_v13 }
  0xb1   :  { %v590_v16 = vadd.f32 %v589_v58, %v541_v12  ;;  %v495_v19 = vadd.f32 %v494_v14, %v446_v15 }
  0xb3   :  { %v632_v18 = vmax.f32 %v590_v16, %v1271_v3  ;;  %v599_v27 = vpop.f32.mrf.mxu3 }
  0xb5   :  { %648 = vst [vmem:[%s1356_s4 + $0x8] sm:$0xff] %v632_v18 }
  0xb6   :  { %v543_v20 = vpop.f32.mrf.mxu2  ;;  %v447_v22 = vpop.f32.mrf.mxu0 }
  0xb7   :  { %v544_v21 = vadd.f32 %v543_v20, %v495_v19  ;;  %v496_v23 = vpop.f32.mrf.mxu1  ;;  %v448_v25 = vadd.f32 %v1265_v59, %v447_v22 }
  0xb9   :  { %v593_v24 = vadd.f32 %v592_v63, %v544_v21  ;;  %v497_v28 = vadd.f32 %v496_v23, %v448_v25 }
  0xbb   :  { %v633_v26 = vmax.f32 %v593_v24, %v1271_v3  ;;  %v602_v38 = vpop.f32.mrf.mxu3 }
  0xbd   :  { %649 = vst [vmem:[%s1356_s4 + $0x10] sm:$0xff] %v633_v26 }
  0xbe   :  { %v545_v29 = vpop.f32.mrf.mxu2  ;;  %v450_v31 = vpop.f32.mrf.mxu0 }
  0xbf   :  { %v546_v30 = vadd.f32 %v545_v29, %v497_v28  ;;  %v499_v32 = vpop.f32.mrf.mxu1  ;;  %v451_v33 = vadd.f32 %v1265_v59, %v450_v31 }
  0xc1   :  { %v595_v34 = vadd.f32 %v594_v6, %v546_v30  ;;  %v500_v36 = vadd.f32 %v499_v32, %v451_v33 }
  0xc3   :  { %v634_v35 = vmax.f32 %v595_v34, %v1271_v3  ;;  %v604_v51 = vpop.f32.mrf.mxu3 }
  0xc5   :  { %650 = vst [vmem:[%s1356_s4 + $0x18] sm:$0xff] %v634_v35 }
  0xc6   :  { %v548_v37 = vpop.f32.mrf.mxu2  ;;  %v452_v40 = vpop.f32.mrf.mxu0 }
  0xc7   :  { %v549_v39 = vadd.f32 %v548_v37, %v500_v36  ;;  %v501_v41 = vpop.f32.mrf.mxu1  ;;  %v453_v43 = vadd.f32 %v1265_v59, %v452_v40 }
  0xc9   :  { %v598_v42 = vadd.f32 %v597_v17, %v549_v39  ;;  %v502_v45 = vadd.f32 %v501_v41, %v453_v43 }
  0xcb   :  { %v635_v44 = vmax.f32 %v598_v42, %v1271_v3  ;;  %v607_v62 = vpop.f32.mrf.mxu3 }
  0xcd   :  { %651 = vst [vmem:[%s1356_s4 + $0x20] sm:$0xff] %v635_v44 }
  0xce   :  { %v550_v46 = vpop.f32.mrf.mxu2  ;;  %v455_v48 = vpop.f32.mrf.mxu0 }
  0xcf   :  { %v551_v47 = vadd.f32 %v550_v46, %v502_v45  ;;  %v504_v49 = vpop.f32.mrf.mxu1  ;;  %v456_v50 = vadd.f32 %v1265_v59, %v455_v48 }
  0xd1   :  { %v600_v52 = vadd.f32 %v599_v27, %v551_v47  ;;  %v505_v54 = vadd.f32 %v504_v49, %v456_v50 }
  0xd3   :  { %v636_v53 = vmax.f32 %v600_v52, %v1271_v3  ;;  %v609_v10 = vpop.f32.mrf.mxu3 }
  0xd5   :  { %652 = vst [vmem:[%s1356_s4 + $0x28] sm:$0xff] %v636_v53 }
  0xd6   :  { %v553_v55 = vpop.f32.mrf.mxu2  ;;  %v457_v57 = vpop.f32.mrf.mxu0 }
  0xd7   :  { %v554_v56 = vadd.f32 %v553_v55, %v505_v54  ;;  %v506_v58 = vpop.f32.mrf.mxu1  ;;  %v458_v61 = vadd.f32 %v1265_v59, %v457_v57 }
  0xd9   :  { %v603_v60 = vadd.f32 %v602_v38, %v554_v56  ;;  %v507_v0 = vadd.f32 %v506_v58, %v458_v61 }
  0xdb   :  { %v637_v63 = vmax.f32 %v603_v60, %v1271_v3  ;;  %v612_v20 = vpop.f32.mrf.mxu3 }
  0xdd   :  { %653 = vst [vmem:[%s1356_s4 + $0x30] sm:$0xff] %v637_v63 }
  0xde   :  { %v555_v1 = vpop.f32.mrf.mxu2  ;;  %v460_v4 = vpop.f32.mrf.mxu0 }
  0xdf   :  { %v556_v2 = vadd.f32 %v555_v1, %v507_v0  ;;  %v509_v5 = vpop.f32.mrf.mxu1  ;;  %v461_v6 = vadd.f32 %v1265_v59, %v460_v4 }
  0xe1   :  { %v605_v7 = vadd.f32 %v604_v51, %v556_v2  ;;  %v510_v9 = vadd.f32 %v509_v5, %v461_v6 }
  0xe3   :  { %v638_v8 = vmax.f32 %v605_v7, %v1271_v3  ;;  %v614_v32 = vpop.f32.mrf.mxu3 }
  0xe5   :  { %654 = vst [vmem:[%s1356_s4 + $0x38] sm:$0xff] %v638_v8 }
  0xe6   :  { %v558_v11 = vpop.f32.mrf.mxu2  ;;  %v462_v13 = vpop.f32.mrf.mxu0 }
  0xe7   :  { %v559_v12 = vadd.f32 %v558_v11, %v510_v9  ;;  %v511_v14 = vpop.f32.mrf.mxu1  ;;  %v463_v16 = vadd.f32 %v1265_v59, %v462_v13 }
  0xe9   :  { %v608_v15 = vadd.f32 %v607_v62, %v559_v12  ;;  %v512_v18 = vadd.f32 %v511_v14, %v463_v16 }
  0xeb   :  { %v639_v17 = vmax.f32 %v608_v15, %v1271_v3  ;;  %v617_v43 = vpop.f32.mrf.mxu3 }
  0xed   :  { %655 = vst [vmem:[%s1356_s4 + $0x40] sm:$0xff] %v639_v17 }
  0xee   :  { %v560_v19 = vpop.f32.mrf.mxu2  ;;  %v465_v22 = vpop.f32.mrf.mxu0 }
  0xef   :  { %v561_v21 = vadd.f32 %v560_v19, %v512_v18  ;;  %v514_v23 = vpop.f32.mrf.mxu1  ;;  %v466_v24 = vadd.f32 %v1265_v59, %v465_v22 }
  0xf1   :  { %v610_v25 = vadd.f32 %v609_v10, %v561_v21  ;;  %v515_v27 = vadd.f32 %v514_v23, %v466_v24 }
  0xf3   :  { %v640_v26 = vmax.f32 %v610_v25, %v1271_v3  ;;  %v619_v53 = vpop.f32.mrf.mxu3 }
  0xf5   :  { %656 = vst [vmem:[%s1356_s4 + $0x48] sm:$0xff] %v640_v26 }
  0xf6   :  { %v563_v28 = vpop.f32.mrf.mxu2  ;;  %v467_v30 = vpop.f32.mrf.mxu0 }
  0xf7   :  { %v564_v29 = vadd.f32 %v563_v28, %v515_v27  ;;  %v516_v31 = vpop.f32.mrf.mxu1  ;;  %v468_v34 = vadd.f32 %v1265_v59, %v467_v30 }
  0xf9   :  { %v613_v33 = vadd.f32 %v612_v20, %v564_v29  ;;  %v517_v36 = vadd.f32 %v516_v31, %v468_v34 }
  0xfb   :  { %v641_v35 = vmax.f32 %v613_v33, %v1271_v3  ;;  %v622_v0 = vpop.f32.mrf.mxu3 }
  0xfd   :  { %657 = vst [vmem:[%s1356_s4 + $0x50] sm:$0xff] %v641_v35 }
  0xfe   :  { %v565_v37 = vpop.f32.mrf.mxu2  ;;  %v470_v39 = vpop.f32.mrf.mxu0 }
  0xff   :  { %v566_v38 = vadd.f32 %v565_v37, %v517_v36  ;;  %v519_v40 = vpop.f32.mrf.mxu1  ;;  %v471_v41 = vadd.f32 %v1265_v59, %v470_v39 }
 0x101   :  { %v615_v42 = vadd.f32 %v614_v32, %v566_v38  ;;  %v520_v45 = vadd.f32 %v519_v40, %v471_v41 }
 0x103   :  { %v642_v44 = vmax.f32 %v615_v42, %v1271_v3  ;;  %v624_v12 = vpop.f32.mrf.mxu3 }
 0x105   :  { %658 = vst [vmem:[%s1356_s4 + $0x58] sm:$0xff] %v642_v44 }
 0x106   :  { %v568_v46 = vpop.f32.mrf.mxu2  ;;  %v472_v48 = vpop.f32.mrf.mxu0 }
 0x107   :  { %v569_v47 = vadd.f32 %v568_v46, %v520_v45  ;;  %v521_v49 = vpop.f32.mrf.mxu1  ;;  %v473_v51 = vadd.f32 %v1265_v59, %v472_v48 }
 0x109   :  { %v618_v50 = vadd.f32 %v617_v43, %v569_v47  ;;  %v522_v54 = vadd.f32 %v521_v49, %v473_v51 }
 0x10b   :  { %v643_v52 = vmax.f32 %v618_v50, %v1271_v3 }
 0x10d   :  { %659 = vst [vmem:[%s1356_s4 + $0x60] sm:$0xff] %v643_v52 }
 0x10e   :  { %v570_v55 = vpop.f32.mrf.mxu2  ;;  %v475_v57 = vpop.f32.mrf.mxu0 }
 0x10f   :  { %v571_v56 = vadd.f32 %v570_v55, %v522_v54  ;;  %v476_v58 = vadd.f32 %v1265_v59, %v475_v57  ;;  %v524_v61 = vpop.f32.mrf.mxu1 }
 0x111   :  { %v620_v60 = vadd.f32 %v619_v53, %v571_v56  ;;  %v525_v63 = vadd.f32 %v524_v61, %v476_v58 }
 0x113   :  { %v644_v62 = vmax.f32 %v620_v60, %v1271_v3 }
 0x115   :  { %660 = vst [vmem:[%s1356_s4 + $0x68] sm:$0xff] %v644_v62 }
 0x116   :  { %v573_v1 = vpop.f32.mrf.mxu2  ;;  %v477_v4 = vpop.f32.mrf.mxu0 }
 0x117   :  { %v574_v2 = vadd.f32 %v573_v1, %v525_v63  ;;  %v478_v6 = vadd.f32 %v1265_v59, %v477_v4  ;;  %v526_v8 = vpop.f32.mrf.mxu1 }
 0x119   :  { %v623_v5 = vadd.f32 %v622_v0, %v574_v2  ;;  %v527_v9 = vadd.f32 %v526_v8, %v478_v6 }
 0x11b   :  { %v645_v7 = vmax.f32 %v623_v5, %v1271_v3 }
 0x11d   :  { %661 = vst [vmem:[%s1356_s4 + $0x70] sm:$0xff] %v645_v7 }
 0x11e   :  { %v575_v10 = vpop.f32.mrf.mxu2 }
 0x11f   :  { %v576_v11 = vadd.f32 %v575_v10, %v527_v9 }
 0x121   :  { %v625_v13 = vadd.f32 %v624_v12, %v576_v11 }
 0x123   :  { %v646_v14 = vmax.f32 %v625_v13, %v1271_v3 }
 0x125   :  { %662 = vst [vmem:[%s1356_s4 + $0x78] sm:$0xff] %v646_v14 }

// kernel: guidance_forward.17
= control target key start
LH: loop header
LB: loop body
LE: loop exit
PB: predicated region body
PF: predicated region fallthrough
CT: control target
= control target key end

     0   :  { %vm318_vm0 = vcmask 261120   ;;  %s1087_s1 = inlined_call_operand.vmem [shape: bf16[288,128], index: 1, kind: input, shape index: {}]   ;;  %s1088_s0 = inlined_call_operand.vmem [shape: bf16[128,288], index: 0, kind: input, shape index: {}]   ;;  %s1089_s2 = inlined_call_operand.vmem [shape: f32[1,128], index: 2, kind: input, shape index: {}]   ;;  %s1090_s3 = inlined_call_operand.vmem [shape: f32[1,128], index: 3, kind: input, shape index: {}]   ;;  %s1091_s4 = inlined_call_operand.vmem [shape: f32[128,128], index: 4, kind: output, shape index: {}]  }
   0x1   :  { %v737_v0 = vld [vmem:[%s1087_s1 + $0x38] sm:$0xff]  ;;  %v747_v1 = vld [vmem:[%s1087_s1 + $0x88] sm:$0xff]  ;;  %v736_v3 = vld [vmem:[%s1087_s1 + $0x30] sm:$0xff] }
   0x2   :  { %v745_v2 = vld [vmem:[%s1087_s1 + $0x78] sm:$0xff]  ;;  %343 = vmatpush.bf16.msra.mxu0 %v737_v0  ;;  %748 = vmatpush.bf16.msra.mxu3 %v737_v0  ;;  %v746_v4 = vld [vmem:[%s1087_s1 + $0x80] sm:$0xff]  ;;  %v744_v5 = vld [vmem:[%s1087_s1 + $0x70] sm:$0xff] }
   0x3   :  { %447 = vmatpush.bf16.msra.mxu2 %v747_v1  ;;  %392 = vmatpush.bf16.msra.mxu1 %v745_v2  ;;  %v540_v6 = vld [vmem:[%s1088_s0 + $0x8] sm:$0xf]  ;;  %v708_v7 = vld [vmem:[%s1088_s0 + $0x10] sm:$0xf0]  ;;  %v734_v11 = vld [vmem:[%s1087_s1 + $0x20] sm:$0xff] }
   0x4   :  { %v541_v8 = vor.u32 %v708_v7, %v540_v6  ;;  %v735_v9 = vld [vmem:[%s1087_s1 + $0x28] sm:$0xff]  ;;  %v742_v12 = vld [vmem:[%s1087_s1 + $0x60] sm:$0xff]  ;;  %v733_v13 = vld [vmem:[%s1087_s1 + $0x18] sm:$0xff] }
   0x5   :  { %v743_v10 = vld [vmem:[%s1087_s1 + $0x68] sm:$0xff]  ;;  %v741_v14 = vld [vmem:[%s1087_s1 + $0x58] sm:$0xff]  ;;  %v732_v15 = vld [vmem:[%s1087_s1 + $0x10] sm:$0xff] }
   0x6   :  { %344 = vmatpush.bf16.msra.mxu0 %v736_v3  ;;  %749 = vmatpush.bf16.msra.mxu3 %v736_v3  ;;  %v740_v16 = vld [vmem:[%s1087_s1 + $0x50] sm:$0xff]  ;;  %v552_v17 = vld [vmem:[%s1088_s0 + $0x20] sm:$0xf]  ;;  %v711_v18 = vld [vmem:[%s1088_s0 + $0x28] sm:$0xf0] }
   0x7   :  { %448 = vmatpush.bf16.msra.mxu2 %v746_v4  ;;  %393 = vmatpush.bf16.msra.mxu1 %v744_v5  ;;  %v553_v19 = vor.u32 %v711_v18, %v552_v17  ;;  %v731_v20 = vld [vmem:[%s1087_s1 + $0x8] sm:$0xff]  ;;  %v730_v22 = vld [vmem:[%s1087_s1] sm:$0xff]  ;;  %v604_v26 = vld [vmem:[%s1088_s0 + $0x90] sm:$0xf] }
   0x8   :  { %v739_v21 = vld [vmem:[%s1087_s1 + $0x48] sm:$0xff]  ;;  %v738_v23 = vld [vmem:[%s1087_s1 + $0x40] sm:$0xff]  ;;  %v725_v27 = vld [vmem:[%s1088_s0 + $0x98] sm:$0xf0] }
   0x9   :  { %v532_v24 = vld [vmem:[%s1088_s0] sm:$0xf]  ;;  %v707_v25 = vld [vmem:[%s1088_s0 + $0x8] sm:$0xf0]  ;;  %v706_v28 = vld [vmem:[%s1088_s0 + $0x4] sm:$0xf]  ;;  %v605_v31 = vor.u32 %v725_v27, %v604_v26 }
   0xa   :  { %698 = vmatmul.msk.bf16.vlgmr.msra.gmra.mxu2 %vm318_vm0, %v541_v8  ;;  %345 = vmatpush.bf16.msra.mxu0 %v735_v9  ;;  %v534_v29 = vld [vmem:[%s1088_s0 + $0xc] sm:$0xf0]  ;;  %v533_v30 = vor.u32 %v707_v25, %v532_v24  ;;  %v564_v33 = vld [vmem:[%s1088_s0 + $0x38] sm:$0xf]  ;;  %v714_v34 = vld [vmem:[%s1088_s0 + $0x40] sm:$0xf0] }
   0xb   :  { %750 = vmatpush.bf16.msra.mxu3 %v735_v9  ;;  %394 = vmatpush.bf16.msra.mxu1 %v743_v10  ;;  %v537_v32 = vor.u32 %v706_v28, %v534_v29  ;;  %v565_v35 = vor.u32 %v714_v34, %v564_v33  ;;  %v544_v36 = vld [vmem:[%s1088_s0 + $0x18] sm:$0xf]  ;;  %v710_v37 = vld [vmem:[%s1088_s0 + $0x20] sm:$0xf0]  ;;  %v616_v38 = vld [vmem:[%s1088_s0 + $0xa8] sm:$0xf] }
   0xc   :  { %v728_v39 = vld [vmem:[%s1088_s0 + $0xb0] sm:$0xf0]  ;;  %v709_v40 = vld [vmem:[%s1088_s0 + $0x1c] sm:$0xf]  ;;  %v546_v41 = vld [vmem:[%s1088_s0 + $0x24] sm:$0xf0]  ;;  %v545_v42 = vor.u32 %v710_v37, %v544_v36 }
   0xd   :  { %v617_v43 = vor.u32 %v728_v39, %v616_v38  ;;  %v549_v44 = vor.u32 %v709_v40, %v546_v41  ;;  %v576_v45 = vld [vmem:[%s1088_s0 + $0x50] sm:$0xf]  ;;  %v717_v46 = vld [vmem:[%s1088_s0 + $0x58] sm:$0xf0]  ;;  %v724_v50 = vld [vmem:[%s1088_s0 + $0x94] sm:$0xf] }
   0xe   :  { %346 = vmatpush.bf16.msra.mxu0 %v734_v11  ;;  %v577_v47 = vor.u32 %v717_v46, %v576_v45  ;;  %v556_v48 = vld [vmem:[%s1088_s0 + $0x30] sm:$0xf]  ;;  %v713_v49 = vld [vmem:[%s1088_s0 + $0x38] sm:$0xf0]  ;;  %v606_v51 = vld [vmem:[%s1088_s0 + $0x9c] sm:$0xf0] }
   0xf   :  { %751 = vmatpush.bf16.msra.mxu3 %v734_v11  ;;  %395 = vmatpush.bf16.msra.mxu1 %v742_v12  ;;  %v712_v52 = vld [vmem:[%s1088_s0 + $0x34] sm:$0xf]  ;;  %v558_v53 = vld [vmem:[%s1088_s0 + $0x3c] sm:$0xf0]  ;;  %v557_v54 = vor.u32 %v713_v49, %v556_v48  ;;  %v609_v55 = vor.u32 %v724_v50, %v606_v51  ;;  %v588_v57 = vld [vmem:[%s1088_s0 + $0x68] sm:$0xf] }
  0x10   :  { %v561_v56 = vor.u32 %v712_v52, %v558_v53  ;;  %v720_v58 = vld [vmem:[%s1088_s0 + $0x70] sm:$0xf0]  ;;  %v568_v60 = vld [vmem:[%s1088_s0 + $0x48] sm:$0xf]  ;;  %v727_v62 = vld [vmem:[%s1088_s0 + $0xac] sm:$0xf] }
  0x11   :  { %v589_v59 = vor.u32 %v720_v58, %v588_v57  ;;  %v716_v61 = vld [vmem:[%s1088_s0 + $0x50] sm:$0xf0]  ;;  %v618_v63 = vld [vmem:[%s1088_s0 + $0xb4] sm:$0xf0]  ;;  %v715_v0 = vld [vmem:[%s1088_s0 + $0x4c] sm:$0xf] }
  0x12   :  { %347 = vmatpush.bf16.msra.mxu0 %v733_v13  ;;  %v570_v1 = vld [vmem:[%s1088_s0 + $0x54] sm:$0xf0]  ;;  %v621_v3 = vor.u32 %v727_v62, %v618_v63  ;;  %v723_v6 = vld [vmem:[%s1088_s0 + $0x88] sm:$0xf0]  ;;  %v580_v8 = vld [vmem:[%s1088_s0 + $0x60] sm:$0xf] }
  0x13   :  { %752 = vmatpush.bf16.msra.mxu3 %v733_v13  ;;  %396 = vmatpush.bf16.msra.mxu1 %v741_v14  ;;  %v573_v4 = vor.u32 %v715_v0, %v570_v1  ;;  %v719_v9 = vld [vmem:[%s1088_s0 + $0x68] sm:$0xf0]  ;;  %v582_v11 = vld [vmem:[%s1088_s0 + $0x6c] sm:$0xf0]  ;;  %v592_v17 = vld [vmem:[%s1088_s0 + $0x78] sm:$0xf] }
  0x14   :  { %v722_v18 = vld [vmem:[%s1088_s0 + $0x80] sm:$0xf0]  ;;  %v729_v24 = vld [vmem:[%s1088_s0 + $0xb8] sm:$0xf0]  ;;  %v1000_v28 = vld [vmem:[%s1089_s2] ss:$0 sm:$0xff] }
  0x15   :  { %v1006_v34 = vld [vmem:[%s1090_s3] ss:$0 sm:$0xff] }
  0x16   :  { %348 = vmatpush.bf16.msra.mxu0 %v732_v15 }
  0x17   :  { %753 = vmatpush.bf16.msra.mxu3 %v732_v15  ;;  %397 = vmatpush.bf16.msra.mxu1 %v740_v16  ;;  %v726_v15 = vld [vmem:[%s1088_s0 + $0xa0] sm:$0xf0] }
  0x1a   :  { %699 = vmatmul.msk.bf16.gmra.mxu2 %vm318_vm0, %v553_v19  ;;  %349 = vmatpush.bf16.msra.mxu0 %v731_v20  ;;  %v721_v19 = vld [vmem:[%s1088_s0 + $0x7c] sm:$0xf] }
  0x1b   :  { %754 = vmatpush.bf16.msra.mxu3 %v731_v20  ;;  %398 = vmatpush.bf16.msra.mxu1 %v739_v21  ;;  %v594_v20 = vld [vmem:[%s1088_s0 + $0x84] sm:$0xf0] }
  0x1e   :  { %350 = vmatpush.bf16.msra.mxu0 %v730_v22 }
  0x1f   :  { %755 = vmatpush.bf16.msra.mxu3 %v730_v22  ;;  %399 = vmatpush.bf16.msra.mxu1 %v738_v23  ;;  %v597_v22 = vor.u32 %v721_v19, %v594_v20 }
  0x21   :  { %351 = vmatmul.bf16.vlgmr.msra.gmra.mxu0 %v533_v30 }
  0x22   :  { %381 = vmatmul.bf16.vlgmr.msra.gmra.mxu3 %v605_v31  ;;  %400 = vmatmul.bf16.vlgmr.msra.gmra.mxu1 %v537_v32 }
  0x23   :  { %756 = vmatpush.bf16.msrb.mxu3 %v745_v2  ;;  %v569_v2 = vor.u32 %v716_v61, %v568_v60 }
  0x27   :  { %757 = vmatpush.bf16.msrb.mxu3 %v744_v5  ;;  %v600_v5 = vld [vmem:[%s1088_s0 + $0x80] sm:$0xf] }
  0x28   :  { %v601_v7 = vor.u32 %v723_v6, %v600_v5 }
  0x2a   :  { %700 = vmatmul.msk.bf16.gmra.mxu2 %vm318_vm0, %v565_v35 }
  0x2b   :  { %758 = vmatpush.bf16.msrb.mxu3 %v743_v10  ;;  %v718_v10 = vld [vmem:[%s1088_s0 + $0x64] sm:$0xf] }
  0x2c   :  { %v585_v13 = vor.u32 %v718_v10, %v582_v11 }
  0x2f   :  { %759 = vmatpush.bf16.msrb.mxu3 %v742_v12  ;;  %v581_v12 = vor.u32 %v719_v9, %v580_v8 }
  0x31   :  { %356 = vmatmul.bf16.gmra.mxu0 %v545_v42 }
  0x32   :  { %386 = vmatmul.bf16.gmra.mxu3 %v617_v43  ;;  %405 = vmatmul.bf16.gmra.mxu1 %v549_v44 }
  0x33   :  { %760 = vmatpush.bf16.msrb.mxu3 %v741_v14  ;;  %v612_v14 = vld [vmem:[%s1088_s0 + $0x98] sm:$0xf] }
  0x37   :  { %761 = vmatpush.bf16.msrb.mxu3 %v740_v16  ;;  %v613_v16 = vor.u32 %v726_v15, %v612_v14 }
  0x3a   :  { %701 = vmatmul.msk.bf16.gmra.mxu2 %vm318_vm0, %v577_v47 }
  0x3b   :  { %762 = vmatpush.bf16.msrb.mxu3 %v739_v21  ;;  %v593_v21 = vor.u32 %v722_v18, %v592_v17 }
  0x3f   :  { %763 = vmatpush.bf16.msrb.mxu3 %v738_v23  ;;  %v624_v23 = vld [vmem:[%s1088_s0 + $0xb0] sm:$0xf] }
  0x40   :  { %v625_v25 = vor.u32 %v729_v24, %v624_v23 }
  0x41   :  { %361 = vmatmul.bf16.gmra.mxu0 %v557_v54 }
  0x42   :  { %430 = vmatmul.bf16.vlgmr.msrb.gmra.mxu3 %v609_v55  ;;  %410 = vmatmul.bf16.gmra.mxu1 %v561_v56 }
  0x4a   :  { %702 = vmatmul.msk.bf16.gmra.mxu2 %vm318_vm0, %v589_v59 }
  0x51   :  { %366 = vmatmul.bf16.gmra.mxu0 %v569_v2 }
  0x52   :  { %435 = vmatmul.bf16.gmra.mxu3 %v621_v3  ;;  %415 = vmatmul.bf16.gmra.mxu1 %v573_v4 }
  0x5a   :  { %703 = vmatmul.msk.bf16.gmra.mxu2 %vm318_vm0, %v601_v7 }
  0x61   :  { %371 = vmatmul.bf16.gmra.mxu0 %v581_v12 }
  0x62   :  { %420 = vmatmul.bf16.gmra.mxu1 %v585_v13 }
  0x6a   :  { %704 = vmatmul.msk.bf16.gmra.mxu2 %vm318_vm0, %v613_v16 }
  0x71   :  { %376 = vmatmul.bf16.gmra.mxu0 %v593_v21 }
  0x72   :  { %425 = vmatmul.bf16.gmra.mxu1 %v597_v22 }
  0x7a   :  { %705 = vmatmul.msk.bf16.gmra.mxu2 %vm318_vm0, %v625_v25 }
  0x8d   :  { %v450_v26 = vpop.f32.mrf.mxu2 }
  0x95   :  { %v452_v27 = vpop.f32.mrf.mxu2 }
  0x9d   :  { %v455_v29 = vpop.f32.mrf.mxu2 }
  0x9e   :  { %v352_v30 = vpop.f32.mrf.mxu0 }
  0x9f   :  { %v353_v31 = vadd.f32 %v1000_v28, %v352_v30  ;;  %v401_v32 = vpop.f32.mrf.mxu1 }
  0xa1   :  { %v402_v33 = vadd.f32 %v401_v32, %v353_v31 }
  0xa3   :  { %v451_v35 = vadd.f32 %v450_v26, %v402_v33 }
  0xa5   :  { %v494_v36 = vmax.f32 %v451_v35, %v1006_v34  ;;  %v457_v37 = vpop.f32.mrf.mxu2  ;;  %v382_v56 = vpop.f32.mrf.mxu3 }
  0xa6   :  { %v354_v38 = vpop.f32.mrf.mxu0 }
  0xa7   :  { %510 = vst [vmem:[%s1091_s4] sm:$0xff] %v494_v36  ;;  %v355_v39 = vadd.f32 %v1000_v28, %v354_v38  ;;  %v403_v40 = vpop.f32.mrf.mxu1 }
  0xa9   :  { %v404_v41 = vadd.f32 %v403_v40, %v355_v39  ;;  %v383_v40 = vadd.f32 %v1000_v28, %v382_v56 }
  0xab   :  { %v453_v42 = vadd.f32 %v452_v27, %v404_v41 }
  0xad   :  { %v495_v43 = vmax.f32 %v453_v42, %v1006_v34  ;;  %v460_v44 = vpop.f32.mrf.mxu2  ;;  %v384_v1 = vpop.f32.mrf.mxu3 }
  0xae   :  { %v357_v45 = vpop.f32.mrf.mxu0 }
  0xaf   :  { %511 = vst [vmem:[%s1091_s4 + $0x8] sm:$0xff] %v495_v43  ;;  %v358_v46 = vadd.f32 %v1000_v28, %v357_v45  ;;  %v406_v47 = vpop.f32.mrf.mxu1 }
  0xb1   :  { %v407_v48 = vadd.f32 %v406_v47, %v358_v46 }
  0xb3   :  { %v456_v49 = vadd.f32 %v455_v29, %v407_v48 }
  0xb5   :  { %v496_v50 = vmax.f32 %v456_v49, %v1006_v34  ;;  %v462_v51 = vpop.f32.mrf.mxu2  ;;  %v387_v12 = vpop.f32.mrf.mxu3 }
  0xb6   :  { %v359_v52 = vpop.f32.mrf.mxu0 }
  0xb7   :  { %512 = vst [vmem:[%s1091_s4 + $0x10] sm:$0xff] %v496_v50  ;;  %v360_v53 = vadd.f32 %v1000_v28, %v359_v52  ;;  %v408_v54 = vpop.f32.mrf.mxu1 }
  0xb9   :  { %v409_v55 = vadd.f32 %v408_v54, %v360_v53 }
  0xbb   :  { %v458_v57 = vadd.f32 %v457_v37, %v409_v55 }
  0xbd   :  { %v497_v58 = vmax.f32 %v458_v57, %v1006_v34  ;;  %v465_v59 = vpop.f32.mrf.mxu2  ;;  %v389_v22 = vpop.f32.mrf.mxu3 }
  0xbe   :  { %v362_v60 = vpop.f32.mrf.mxu0 }
  0xbf   :  { %513 = vst [vmem:[%s1091_s4 + $0x18] sm:$0xff] %v497_v58  ;;  %v363_v61 = vadd.f32 %v1000_v28, %v362_v60  ;;  %v411_v62 = vpop.f32.mrf.mxu1 }
  0xc1   :  { %v412_v63 = vadd.f32 %v411_v62, %v363_v61 }
  0xc3   :  { %v461_v0 = vadd.f32 %v460_v44, %v412_v63  ;;  %v388_v63 = vadd.f32 %v1000_v28, %v387_v12 }
  0xc5   :  { %v498_v2 = vmax.f32 %v461_v0, %v1006_v34  ;;  %v467_v3 = vpop.f32.mrf.mxu2  ;;  %v431_v32 = vpop.f32.mrf.mxu3 }
  0xc6   :  { %v364_v4 = vpop.f32.mrf.mxu0  ;;  %v432_v43 = vadd.f32 %v431_v32, %v383_v40 }
  0xc7   :  { %514 = vst [vmem:[%s1091_s4 + $0x20] sm:$0xff] %v498_v2  ;;  %v365_v5 = vadd.f32 %v1000_v28, %v364_v4  ;;  %v413_v6 = vpop.f32.mrf.mxu1 }
  0xc9   :  { %v414_v7 = vadd.f32 %v413_v6, %v365_v5 }
  0xcb   :  { %v463_v8 = vadd.f32 %v462_v51, %v414_v7  ;;  %v385_v51 = vadd.f32 %v1000_v28, %v384_v1  ;;  %v390_v7 = vadd.f32 %v1000_v28, %v389_v22 }
  0xcd   :  { %v499_v9 = vmax.f32 %v463_v8, %v1006_v34  ;;  %v470_v10 = vpop.f32.mrf.mxu2  ;;  %v433_v44 = vpop.f32.mrf.mxu3 }
  0xce   :  { %v367_v11 = vpop.f32.mrf.mxu0  ;;  %v434_v55 = vadd.f32 %v433_v44, %v385_v51 }
  0xcf   :  { %515 = vst [vmem:[%s1091_s4 + $0x28] sm:$0xff] %v499_v9  ;;  %v368_v13 = vadd.f32 %v1000_v28, %v367_v11  ;;  %v416_v14 = vpop.f32.mrf.mxu1 }
  0xd1   :  { %v417_v15 = vadd.f32 %v416_v14, %v368_v13 }
  0xd3   :  { %v466_v16 = vadd.f32 %v465_v59, %v417_v15 }
  0xd5   :  { %v500_v17 = vmax.f32 %v466_v16, %v1006_v34  ;;  %v472_v18 = vpop.f32.mrf.mxu2  ;;  %v436_v60 = vpop.f32.mrf.mxu3 }
  0xd6   :  { %v369_v19 = vpop.f32.mrf.mxu0 }
  0xd7   :  { %516 = vst [vmem:[%s1091_s4 + $0x30] sm:$0xff] %v500_v17  ;;  %v370_v20 = vadd.f32 %v1000_v28, %v369_v19  ;;  %v418_v21 = vpop.f32.mrf.mxu1 }
  0xd9   :  { %v419_v23 = vadd.f32 %v418_v21, %v370_v20 }
  0xdb   :  { %v468_v24 = vadd.f32 %v467_v3, %v419_v23  ;;  %v437_v3 = vadd.f32 %v436_v60, %v388_v63 }
  0xdd   :  { %v501_v25 = vmax.f32 %v468_v24, %v1006_v34  ;;  %v475_v26 = vpop.f32.mrf.mxu2  ;;  %v438_v9 = vpop.f32.mrf.mxu3 }
  0xde   :  { %v372_v27 = vpop.f32.mrf.mxu0 }
  0xdf   :  { %517 = vst [vmem:[%s1091_s4 + $0x38] sm:$0xff] %v501_v25  ;;  %v373_v29 = vadd.f32 %v1000_v28, %v372_v27  ;;  %v421_v30 = vpop.f32.mrf.mxu1 }
  0xe1   :  { %v422_v31 = vadd.f32 %v421_v30, %v373_v29 }
  0xe3   :  { %v471_v33 = vadd.f32 %v470_v10, %v422_v31  ;;  %v439_v10 = vadd.f32 %v438_v9, %v390_v7 }
  0xe5   :  { %v502_v35 = vmax.f32 %v471_v33, %v1006_v34  ;;  %v477_v36 = vpop.f32.mrf.mxu2 }
  0xe6   :  { %v374_v37 = vpop.f32.mrf.mxu0 }
  0xe7   :  { %518 = vst [vmem:[%s1091_s4 + $0x40] sm:$0xff] %v502_v35  ;;  %v375_v38 = vadd.f32 %v1000_v28, %v374_v37  ;;  %v423_v39 = vpop.f32.mrf.mxu1 }
  0xe9   :  { %v424_v41 = vadd.f32 %v423_v39, %v375_v38 }
  0xeb   :  { %v473_v42 = vadd.f32 %v472_v18, %v424_v41 }
  0xed   :  { %v503_v45 = vmax.f32 %v473_v42, %v1006_v34  ;;  %v480_v46 = vpop.f32.mrf.mxu2 }
  0xee   :  { %v481_v47 = vadd.f32 %v480_v46, %v432_v43  ;;  %v377_v48 = vpop.f32.mrf.mxu0 }
  0xef   :  { %519 = vst [vmem:[%s1091_s4 + $0x48] sm:$0xff] %v503_v45  ;;  %v378_v49 = vadd.f32 %v1000_v28, %v377_v48  ;;  %v426_v50 = vpop.f32.mrf.mxu1 }
  0xf0   :  { %v506_v52 = vmax.f32 %v481_v47, %v1006_v34 }
  0xf1   :  { %v427_v53 = vadd.f32 %v426_v50, %v378_v49 }
  0xf2   :  { %522 = vst [vmem:[%s1091_s4 + $0x60] sm:$0xff] %v506_v52 }
  0xf3   :  { %v476_v54 = vadd.f32 %v475_v26, %v427_v53 }
  0xf5   :  { %v504_v56 = vmax.f32 %v476_v54, %v1006_v34  ;;  %v482_v57 = vpop.f32.mrf.mxu2 }
  0xf6   :  { %v483_v58 = vadd.f32 %v482_v57, %v434_v55  ;;  %v379_v59 = vpop.f32.mrf.mxu0 }
  0xf7   :  { %520 = vst [vmem:[%s1091_s4 + $0x50] sm:$0xff] %v504_v56  ;;  %v380_v61 = vadd.f32 %v1000_v28, %v379_v59  ;;  %v428_v62 = vpop.f32.mrf.mxu1 }
  0xf8   :  { %v507_v0 = vmax.f32 %v483_v58, %v1006_v34 }
  0xf9   :  { %v429_v1 = vadd.f32 %v428_v62, %v380_v61 }
  0xfa   :  { %523 = vst [vmem:[%s1091_s4 + $0x68] sm:$0xff] %v507_v0 }
  0xfb   :  { %v478_v2 = vadd.f32 %v477_v36, %v429_v1 }
  0xfd   :  { %v505_v4 = vmax.f32 %v478_v2, %v1006_v34  ;;  %v485_v5 = vpop.f32.mrf.mxu2 }
  0xfe   :  { %v486_v6 = vadd.f32 %v485_v5, %v437_v3 }
  0xff   :  { %521 = vst [vmem:[%s1091_s4 + $0x58] sm:$0xff] %v505_v4 }
 0x100   :  { %v508_v8 = vmax.f32 %v486_v6, %v1006_v34 }
 0x102   :  { %524 = vst [vmem:[%s1091_s4 + $0x70] sm:$0xff] %v508_v8 }
 0x105   :  { %v487_v11 = vpop.f32.mrf.mxu2 }
 0x106   :  { %v488_v12 = vadd.f32 %v487_v11, %v439_v10 }
 0x108   :  { %v509_v13 = vmax.f32 %v488_v12, %v1006_v34 }
 0x10a   :  { %525 = vst [vmem:[%s1091_s4 + $0x78] sm:$0xff] %v509_v13 }

// kernel: guidance_forward.18
= control target key start
LH: loop header
LB: loop body
LE: loop exit
PB: predicated region body
PF: predicated region fallthrough
CT: control target
= control target key end

     0   :  { %vm832_vm0 = vcmask 261120   ;;  %s4535_s1 = inlined_call_operand.vmem [shape: bf16[288,768], index: 1, kind: input, shape index: {}]   ;;  %s4536_s0 = inlined_call_operand.vmem [shape: bf16[128,288], index: 0, kind: input, shape index: {}]   ;;  %s4537_s2 = inlined_call_operand.vmem [shape: f32[1,768], index: 2, kind: input, shape index: {}]   ;;  %s4538_s3 = inlined_call_operand.vmem [shape: f32[1,768], index: 3, kind: input, shape index: {}]   ;;  %s4539_s4 = inlined_call_operand.vmem [shape: f32[128,768], index: 4, kind: output, shape index: {}]  }
   0x1   :  { %v2215_v0 = vld [vmem:[%s4535_s1 + $0x150] sm:$0xf]  ;;  %v2594_v1 = vld [vmem:[%s4535_s1 + $0x164] sm:$0xf0]  ;;  %v2191_v5 = vld [vmem:[%s4535_s1 + $0x120] sm:$0xf] }
   0x2   :  { %v2455_v2 = vld [vmem:[%s4535_s1 + $0x330] sm:$0xf]  ;;  %v2216_v3 = vor.u32 %v2594_v1, %v2215_v0  ;;  %v2654_v4 = vld [vmem:[%s4535_s1 + $0x344] sm:$0xf0]  ;;  %v2588_v6 = vld [vmem:[%s4535_s1 + $0x134] sm:$0xf0] }
   0x3   :  { %v2456_v7 = vor.u32 %v2654_v4, %v2455_v2  ;;  %v2431_v8 = vld [vmem:[%s4535_s1 + $0x300] sm:$0xf]  ;;  %v2648_v9 = vld [vmem:[%s4535_s1 + $0x314] sm:$0xf0]  ;;  %v2192_v10 = vor.u32 %v2588_v6, %v2191_v5  ;;  %v1959_v11 = vld [vmem:[%s4536_s0 + $0x8] sm:$0xf] }
   0x4   :  { %857 = vmatpush.bf16.msra.mxu0 %v2216_v3  ;;  %2657 = vmatpush.bf16.msra.mxu1 %v2216_v3  ;;  %v2639_v12 = vld [vmem:[%s4535_s1 + $0x2d4] sm:$0xf]  ;;  %v2409_v13 = vld [vmem:[%s4535_s1 + $0x2e8] sm:$0xf0]  ;;  %v2432_v14 = vor.u32 %v2648_v9, %v2431_v8  ;;  %v2167_v16 = vld [vmem:[%s4535_s1 + $0xf0] sm:$0xf] }
   0x5   :  { %961 = vmatpush.bf16.msra.mxu2 %v2456_v7  ;;  %v2527_v15 = vld [vmem:[%s4536_s0 + $0x10] sm:$0xf0]  ;;  %v2582_v17 = vld [vmem:[%s4535_s1 + $0x104] sm:$0xf0]  ;;  %2665 = vmatpush.bf16.msra.mxu3 %v2456_v7  ;;  %v2412_v18 = vor.u32 %v2639_v12, %v2409_v13  ;;  %v2633_v19 = vld [vmem:[%s4535_s1 + $0x2a4] sm:$0xf] }
   0x6   :  { %v2385_v20 = vld [vmem:[%s4535_s1 + $0x2b8] sm:$0xf0]  ;;  %v2742_v21 = vor.u32 %v2527_v15, %v1959_v11  ;;  %v2168_v22 = vor.u32 %v2582_v17, %v2167_v16  ;;  %v2143_v23 = vld [vmem:[%s4535_s1 + $0xc0] sm:$0xf]  ;;  %v2576_v24 = vld [vmem:[%s4535_s1 + $0xd4] sm:$0xf0] }
   0x7   :  { %v2388_v25 = vor.u32 %v2633_v19, %v2385_v20  ;;  %v2627_v26 = vld [vmem:[%s4535_s1 + $0x274] sm:$0xf]  ;;  %v2361_v27 = vld [vmem:[%s4535_s1 + $0x288] sm:$0xf0]  ;;  %v2019_v28 = vld [vmem:[%s4536_s0 + $0x80] sm:$0xf]  ;;  %v2144_v30 = vor.u32 %v2576_v24, %v2143_v23 }
   0x8   :  { %858 = vmatpush.bf16.msra.mxu0 %v2192_v10  ;;  %2658 = vmatpush.bf16.msra.mxu1 %v2192_v10  ;;  %v2542_v29 = vld [vmem:[%s4536_s0 + $0x88] sm:$0xf0]  ;;  %v2119_v32 = vld [vmem:[%s4535_s1 + $0x90] sm:$0xf]  ;;  %v2570_v33 = vld [vmem:[%s4535_s1 + $0xa4] sm:$0xf0]  ;;  %v2364_v34 = vor.u32 %v2627_v26, %v2361_v27 }
   0x9   :  { %962 = vmatpush.bf16.msra.mxu2 %v2432_v14  ;;  %2666 = vmatpush.bf16.msra.mxu3 %v2432_v14  ;;  %v2764_v31 = vor.u32 %v2542_v29, %v2019_v28  ;;  %v2591_v35 = vld [vmem:[%s4535_s1 + $0x154] sm:$0xf]  ;;  %v2217_v36 = vld [vmem:[%s4535_s1 + $0x168] sm:$0xf0]  ;;  %v2621_v38 = vld [vmem:[%s4535_s1 + $0x244] sm:$0xf]  ;;  %v2120_v40 = vor.u32 %v2570_v33, %v2119_v32 }
   0xa   :  { %v2220_v37 = vor.u32 %v2591_v35, %v2217_v36  ;;  %v2337_v39 = vld [vmem:[%s4535_s1 + $0x258] sm:$0xf0]  ;;  %v2095_v41 = vld [vmem:[%s4535_s1 + $0x60] sm:$0xf]  ;;  %v2564_v42 = vld [vmem:[%s4535_s1 + $0x74] sm:$0xf0] }
   0xb   :  { %v2585_v43 = vld [vmem:[%s4535_s1 + $0x124] sm:$0xf]  ;;  %v2193_v44 = vld [vmem:[%s4535_s1 + $0x138] sm:$0xf0]  ;;  %v2340_v45 = vor.u32 %v2621_v38, %v2337_v39  ;;  %v1971_v47 = vld [vmem:[%s4536_s0 + $0x20] sm:$0xf]  ;;  %v2096_v49 = vor.u32 %v2564_v42, %v2095_v41 }
   0xc   :  { %2477 = vmatmul.msk.bf16.vlgmr.msra.gmra.mxu2 %vm832_vm0, %v2742_v21  ;;  %859 = vmatpush.bf16.msra.mxu0 %v2168_v22  ;;  %v2196_v46 = vor.u32 %v2585_v43, %v2193_v44  ;;  %v2530_v48 = vld [vmem:[%s4536_s0 + $0x28] sm:$0xf0]  ;;  %v2071_v50 = vld [vmem:[%s4535_s1 + $0x30] sm:$0xf]  ;;  %v2558_v51 = vld [vmem:[%s4535_s1 + $0x44] sm:$0xf0] }
   0xd   :  { %1053 = vmatpush.bf16.msrb.mxu2 %v2412_v18  ;;  %2659 = vmatpush.bf16.msra.mxu1 %v2168_v22  ;;  %v2615_v52 = vld [vmem:[%s4535_s1 + $0x214] sm:$0xf]  ;;  %v2313_v53 = vld [vmem:[%s4535_s1 + $0x228] sm:$0xf0]  ;;  %v2031_v58 = vld [vmem:[%s4536_s0 + $0x98] sm:$0xf]  ;;  %v2828_v60 = vor.u32 %v2530_v48, %v1971_v47  ;;  %v2072_v61 = vor.u32 %v2558_v51, %v2071_v50 }
   0xe   :  { %2482 = vmatmul.msk.bf16.vlgmr.msra.gmra.mxu3 %vm832_vm0, %v2764_v31  ;;  %v2579_v54 = vld [vmem:[%s4535_s1 + $0xf4] sm:$0xf]  ;;  %v2169_v55 = vld [vmem:[%s4535_s1 + $0x108] sm:$0xf0]  ;;  %v2316_v56 = vor.u32 %v2615_v52, %v2313_v53  ;;  %v2545_v59 = vld [vmem:[%s4536_s0 + $0xa0] sm:$0xf0] }
   0xf   :  { %1004 = vmatpush.bf16.msrb.mxu3 %v2220_v37  ;;  %v2172_v57 = vor.u32 %v2579_v54, %v2169_v55  ;;  %v2047_v62 = vld [vmem:[%s4535_s1] sm:$0xf]  ;;  %v2552_v63 = vld [vmem:[%s4535_s1 + $0x14] sm:$0xf0]  ;;  %v2651_v1 = vld [vmem:[%s4535_s1 + $0x334] sm:$0xf]  ;;  %v2845_v3 = vor.u32 %v2545_v59, %v2031_v58 }
  0x10   :  { %860 = vmatpush.bf16.msra.mxu0 %v2144_v30  ;;  %v1951_v0 = vld [vmem:[%s4536_s0] sm:$0xf]  ;;  %v2457_v2 = vld [vmem:[%s4535_s1 + $0x348] sm:$0xf0]  ;;  %v2407_v5 = vld [vmem:[%s4535_s1 + $0x2d0] sm:$0xf]  ;;  %v2048_v7 = vor.u32 %v2552_v63, %v2047_v62 }
  0x11   :  { %1054 = vmatpush.bf16.msrb.mxu2 %v2388_v25  ;;  %2660 = vmatpush.bf16.msra.mxu1 %v2144_v30  ;;  %v2526_v4 = vld [vmem:[%s4536_s0 + $0x8] sm:$0xf0]  ;;  %v2642_v6 = vld [vmem:[%s4535_s1 + $0x2e4] sm:$0xf0]  ;;  %v2573_v8 = vld [vmem:[%s4535_s1 + $0xc4] sm:$0xf]  ;;  %v2460_v13 = vor.u32 %v2651_v1, %v2457_v2 }
  0x12   :  { %v2145_v9 = vld [vmem:[%s4535_s1 + $0xd8] sm:$0xf0]  ;;  %v2609_v10 = vld [vmem:[%s4535_s1 + $0x1e4] sm:$0xf]  ;;  %v1999_v11 = vld [vmem:[%s4536_s0 + $0x60] sm:$0xf]  ;;  %v2408_v16 = vor.u32 %v2642_v6, %v2407_v5  ;;  %v2884_v20 = vor.u32 %v2526_v4, %v1951_v0 }
  0x13   :  { %1005 = vmatpush.bf16.msrb.mxu3 %v2196_v46  ;;  %v2538_v12 = vld [vmem:[%s4536_s0 + $0x68] sm:$0xf0]  ;;  %v2148_v14 = vor.u32 %v2573_v8, %v2145_v9  ;;  %v2289_v15 = vld [vmem:[%s4535_s1 + $0x1f8] sm:$0xf0]  ;;  %v2567_v18 = vld [vmem:[%s4535_s1 + $0x94] sm:$0xf] }
  0x14   :  { %861 = vmatpush.bf16.msra.mxu0 %v2120_v40  ;;  %v2292_v17 = vor.u32 %v2609_v10, %v2289_v15  ;;  %v2121_v19 = vld [vmem:[%s4535_s1 + $0xa8] sm:$0xf0]  ;;  %v2383_v22 = vld [vmem:[%s4535_s1 + $0x2a0] sm:$0xf]  ;;  %v2636_v23 = vld [vmem:[%s4535_s1 + $0x2b4] sm:$0xf0]  ;;  %v2892_v25 = vor.u32 %v2538_v12, %v1999_v11 }
  0x15   :  { %1055 = vmatpush.bf16.msrb.mxu2 %v2364_v34  ;;  %2661 = vmatpush.bf16.msra.mxu1 %v2120_v40  ;;  %v2124_v24 = vor.u32 %v2567_v18, %v2121_v19  ;;  %v2384_v26 = vor.u32 %v2636_v23, %v2383_v22  ;;  %v2359_v27 = vld [vmem:[%s4535_s1 + $0x270] sm:$0xf]  ;;  %v2630_v28 = vld [vmem:[%s4535_s1 + $0x284] sm:$0xf0]  ;;  %v1983_v29 = vld [vmem:[%s4536_s0 + $0x38] sm:$0xf] }
  0x16   :  { %v2533_v30 = vld [vmem:[%s4536_s0 + $0x40] sm:$0xf0]  ;;  %v2335_v33 = vld [vmem:[%s4535_s1 + $0x240] sm:$0xf]  ;;  %v2624_v34 = vld [vmem:[%s4535_s1 + $0x254] sm:$0xf0]  ;;  %v2360_v38 = vor.u32 %v2630_v28, %v2359_v27 }
  0x17   :  { %1006 = vmatpush.bf16.msrb.mxu3 %v2172_v57  ;;  %v2645_v32 = vld [vmem:[%s4535_s1 + $0x304] sm:$0xf]  ;;  %v2433_v35 = vld [vmem:[%s4535_s1 + $0x318] sm:$0xf0]  ;;  %v2603_v41 = vld [vmem:[%s4535_s1 + $0x1b4] sm:$0xf]  ;;  %v2944_v48 = vor.u32 %v2533_v30, %v1983_v29  ;;  %v2336_v51 = vor.u32 %v2624_v34, %v2335_v33 }
  0x18   :  { %862 = vmatpush.bf16.msra.mxu0 %v2096_v49  ;;  %v2561_v36 = vld [vmem:[%s4535_s1 + $0x64] sm:$0xf]  ;;  %v2097_v37 = vld [vmem:[%s4535_s1 + $0x78] sm:$0xf0]  ;;  %v2436_v39 = vor.u32 %v2645_v32, %v2433_v35  ;;  %v2265_v42 = vld [vmem:[%s4535_s1 + $0x1c8] sm:$0xf0] }
  0x19   :  { %1056 = vmatpush.bf16.msrb.mxu2 %v2340_v45  ;;  %2662 = vmatpush.bf16.msra.mxu1 %v2096_v49  ;;  %v2100_v40 = vor.u32 %v2561_v36, %v2097_v37  ;;  %v2555_v43 = vld [vmem:[%s4535_s1 + $0x34] sm:$0xf]  ;;  %v2043_v44 = vld [vmem:[%s4536_s0 + $0xb0] sm:$0xf]  ;;  %v2548_v45 = vld [vmem:[%s4536_s0 + $0xb8] sm:$0xf0]  ;;  %v2268_v46 = vor.u32 %v2603_v41, %v2265_v42 }
  0x1a   :  { %v2073_v47 = vld [vmem:[%s4535_s1 + $0x48] sm:$0xf0]  ;;  %v1963_v50 = vld [vmem:[%s4536_s0 + $0x18] sm:$0xf]  ;;  %v2949_v52 = vor.u32 %v2548_v45, %v2043_v44  ;;  %v2529_v53 = vld [vmem:[%s4536_s0 + $0x20] sm:$0xf0] }
  0x1b   :  { %1007 = vmatpush.bf16.msrb.mxu3 %v2148_v14  ;;  %v2076_v49 = vor.u32 %v2555_v43, %v2073_v47  ;;  %v2311_v54 = vld [vmem:[%s4535_s1 + $0x210] sm:$0xf]  ;;  %v2618_v55 = vld [vmem:[%s4535_s1 + $0x224] sm:$0xf0]  ;;  %v2049_v57 = vld [vmem:[%s4535_s1 + $0x18] sm:$0xf0]  ;;  %v2982_v2 = vor.u32 %v2529_v53, %v1963_v50 }
  0x1c   :  { %2478 = vmatmul.msk.bf16.gmra.mxu2 %vm832_vm0, %v2828_v60  ;;  %863 = vmatpush.bf16.msra.mxu0 %v2072_v61  ;;  %4553 = vst [vmem:[#allocation2_spill] sm:$0xff] %v2949_v52  ;;  %v2597_v58 = vld [vmem:[%s4535_s1 + $0x184] sm:$0xf]  ;;  %v2011_v59 = vld [vmem:[%s4536_s0 + $0x78] sm:$0xf]  ;;  %v2312_v0 = vor.u32 %v2618_v55, %v2311_v54 }
  0x1d   :  { %1057 = vmatpush.bf16.msrb.mxu2 %v2316_v56  ;;  %2663 = vmatpush.bf16.msra.mxu1 %v2072_v61  ;;  %v2549_v56 = vld [vmem:[%s4535_s1 + $0x4] sm:$0xf]  ;;  %v2241_v63 = vld [vmem:[%s4535_s1 + $0x198] sm:$0xf0]  ;;  %v2287_v4 = vld [vmem:[%s4535_s1 + $0x1e0] sm:$0xf] }
  0x1e   :  { %2483 = vmatmul.msk.bf16.gmra.mxu3 %vm832_vm0, %v2845_v3  ;;  %v2541_v61 = vld [vmem:[%s4536_s0 + $0x80] sm:$0xf0]  ;;  %v2052_v62 = vor.u32 %v2549_v56, %v2049_v57  ;;  %v2244_v1 = vor.u32 %v2597_v58, %v2241_v63  ;;  %v2612_v5 = vld [vmem:[%s4535_s1 + $0x1f4] sm:$0xf0]  ;;  %v2263_v8 = vld [vmem:[%s4535_s1 + $0x1b0] sm:$0xf] }
  0x1f   :  { %1008 = vmatpush.bf16.msrb.mxu3 %v2124_v24  ;;  %v2990_v6 = vor.u32 %v2541_v61, %v2011_v59  ;;  %v2606_v9 = vld [vmem:[%s4535_s1 + $0x1c4] sm:$0xf0]  ;;  %v2415_v10 = vld [vmem:[%s4535_s1 + $0x2d8] sm:$0xf]  ;;  %v1995_v11 = vld [vmem:[%s4536_s0 + $0x50] sm:$0xf] }
  0x20   :  { %864 = vmatpush.bf16.msra.mxu0 %v2048_v7  ;;  %v2536_v12 = vld [vmem:[%s4536_s0 + $0x58] sm:$0xf0]  ;;  %v2264_v14 = vor.u32 %v2606_v9, %v2263_v8  ;;  %v1975_v22 = vld [vmem:[%s4536_s0 + $0x30] sm:$0xf]  ;;  %v2463_v24 = vld [vmem:[%s4535_s1 + $0x338] sm:$0xf] }
  0x21   :  { %1058 = vmatpush.bf16.msrb.mxu2 %v2292_v17  ;;  %2664 = vmatpush.bf16.msra.mxu1 %v2048_v7  ;;  %v2288_v7 = vor.u32 %v2612_v5, %v2287_v4  ;;  %v2600_v17 = vld [vmem:[%s4535_s1 + $0x194] sm:$0xf0]  ;;  %v3018_v18 = vor.u32 %v2536_v12, %v1995_v11  ;;  %v2532_v23 = vld [vmem:[%s4536_s0 + $0x38] sm:$0xf0]  ;;  %v2023_v27 = vld [vmem:[%s4536_s0 + $0x90] sm:$0xf] }
  0x22   :  { %v2544_v28 = vld [vmem:[%s4536_s0 + $0x98] sm:$0xf0]  ;;  %v3041_v30 = vor.u32 %v2532_v23, %v1975_v22  ;;  %v2007_v33 = vld [vmem:[%s4536_s0 + $0x68] sm:$0xf]  ;;  %v2539_v34 = vld [vmem:[%s4536_s0 + $0x70] sm:$0xf0] }
  0x23   :  { %865 = vmatmul.bf16.vlgmr.msra.gmra.mxu0 %v2884_v20  ;;  %1009 = vmatpush.bf16.msrb.mxu3 %v2100_v40  ;;  %v3043_v32 = vor.u32 %v2544_v28, %v2023_v27  ;;  %v2223_v35 = vld [vmem:[%s4535_s1 + $0x158] sm:$0xf]  ;;  %v2595_v36 = vld [vmem:[%s4535_s1 + $0x16c] sm:$0xf0]  ;;  %v2592_v37 = vld [vmem:[%s4535_s1 + $0x15c] sm:$0xf]  ;;  %v3071_v44 = vor.u32 %v2539_v34, %v2007_v33 }
  0x24   :  { %1108 = vmatpush.bf16.msrb.mxu0 %v2460_v13  ;;  %885 = vmatmul.bf16.vlgmr.msra.gmra.mxu1 %v2892_v25  ;;  %v2643_v13 = vld [vmem:[%s4535_s1 + $0x2ec] sm:$0xf0]  ;;  %v2391_v40 = vld [vmem:[%s4535_s1 + $0x2a8] sm:$0xf]  ;;  %v2637_v41 = vld [vmem:[%s4535_s1 + $0x2bc] sm:$0xf0] }
  0x25   :  { %906 = vmatpush.bf16.msrb.mxu1 %v2408_v16  ;;  %1059 = vmatpush.bf16.msrb.mxu2 %v2268_v46  ;;  %v2416_v15 = vor.u32 %v2643_v13, %v2415_v10  ;;  %v2239_v16 = vld [vmem:[%s4535_s1 + $0x180] sm:$0xf]  ;;  %4554 = vst [vmem:[#allocation3_spill] sm:$0xff] %v3043_v32  ;;  %v2392_v43 = vor.u32 %v2637_v41, %v2391_v40  ;;  %v1987_v45 = vld [vmem:[%s4536_s0 + $0x48] sm:$0xf] }
  0x26   :  { %v2240_v19 = vor.u32 %v2600_v17, %v2239_v16  ;;  %v2535_v46 = vld [vmem:[%s4536_s0 + $0x50] sm:$0xf0]  ;;  %v2035_v47 = vld [vmem:[%s4536_s0 + $0xa8] sm:$0xf]  ;;  %v2525_v53 = vld [vmem:[%s4536_s0 + $0x4] sm:$0xf] }
  0x27   :  { %1010 = vmatpush.bf16.msrb.mxu3 %v2076_v49  ;;  %v2547_v49 = vld [vmem:[%s4536_s0 + $0xb0] sm:$0xf0]  ;;  %v3088_v50 = vor.u32 %v2535_v46, %v1987_v45  ;;  %v1953_v54 = vld [vmem:[%s4536_s0 + $0xc] sm:$0xf0]  ;;  %v2199_v55 = vld [vmem:[%s4535_s1 + $0x128] sm:$0xf] }
  0x28   :  { %1109 = vmatpush.bf16.msrb.mxu0 %v2436_v39  ;;  %v2225_v39 = vld [vmem:[%s4535_s1 + $0x170] sm:$0xf0]  ;;  %v2589_v56 = vld [vmem:[%s4535_s1 + $0x13c] sm:$0xf0]  ;;  %v2586_v57 = vld [vmem:[%s4535_s1 + $0x12c] sm:$0xf] }
  0x29   :  { %907 = vmatpush.bf16.msrb.mxu1 %v2384_v26  ;;  %1060 = vmatpush.bf16.msrb.mxu2 %v2244_v1  ;;  %v2655_v26 = vld [vmem:[%s4535_s1 + $0x34c] sm:$0xf0]  ;;  %v2228_v42 = vor.u32 %v2592_v37, %v2225_v39  ;;  %v2200_v58 = vor.u32 %v2589_v56, %v2199_v55  ;;  %v2201_v59 = vld [vmem:[%s4535_s1 + $0x140] sm:$0xf0]  ;;  %v2367_v61 = vld [vmem:[%s4535_s1 + $0x278] sm:$0xf]  ;;  %v3118_v1 = vor.u32 %v2525_v53, %v1953_v54 }
  0x2a   :  { %v2464_v29 = vor.u32 %v2655_v26, %v2463_v24  ;;  %v2204_v63 = vor.u32 %v2586_v57, %v2201_v59  ;;  %v2528_v4 = vld [vmem:[%s4536_s0 + $0x1c] sm:$0xf]  ;;  %v1965_v5 = vld [vmem:[%s4536_s0 + $0x24] sm:$0xf0]  ;;  %v2583_v8 = vld [vmem:[%s4535_s1 + $0x10c] sm:$0xf0] }
  0x2b   :  { %1011 = vmatpush.bf16.msrb.mxu3 %v2052_v62  ;;  %v2631_v62 = vld [vmem:[%s4535_s1 + $0x28c] sm:$0xf0]  ;;  %4556 = vst [vmem:[#allocation5_spill] sm:$0xff] %v3118_v1  ;;  %v2580_v9 = vld [vmem:[%s4535_s1 + $0xfc] sm:$0xf]  ;;  %v3149_v16 = vor.u32 %v2528_v4, %v1965_v5 }
  0x2c   :  { %2479 = vmatmul.msk.bf16.gmra.mxu2 %vm832_vm0, %v2944_v48  ;;  %1298 = vmatpush.bf16.msra.mxu0 %v2228_v42  ;;  %v2177_v11 = vld [vmem:[%s4535_s1 + $0x110] sm:$0xf0]  ;;  %v2343_v12 = vld [vmem:[%s4535_s1 + $0x248] sm:$0xf]  ;;  %v2625_v13 = vld [vmem:[%s4535_s1 + $0x25c] sm:$0xf0] }
  0x2d   :  { %908 = vmatpush.bf16.msrb.mxu1 %v2360_v38  ;;  %1255 = vmatpush.bf16.msra.mxu2 %v2464_v29  ;;  %v2224_v38 = vor.u32 %v2595_v36, %v2223_v35  ;;  %4557 = vst [vmem:[#allocation6_spill] sm:$0xff] %v3149_v16  ;;  %v2151_v17 = vld [vmem:[%s4535_s1 + $0xc8] sm:$0xf]  ;;  %v2574_v22 = vld [vmem:[%s4535_s1 + $0xcc] sm:$0xf] }
  0x2e   :  { %2484 = vmatmul.msk.bf16.gmra.mxu3 %vm832_vm0, %v2949_v52  ;;  %v2531_v23 = vld [vmem:[%s4536_s0 + $0x34] sm:$0xf]  ;;  %v1977_v24 = vld [vmem:[%s4536_s0 + $0x3c] sm:$0xf0]  ;;  %v2153_v27 = vld [vmem:[%s4535_s1 + $0xe0] sm:$0xf0] }
  0x2f   :  { %1200 = vmatpush.bf16.msra.mxu3 %v2416_v15  ;;  %v2344_v15 = vor.u32 %v2625_v13, %v2343_v12  ;;  %v2156_v28 = vor.u32 %v2574_v22, %v2153_v27  ;;  %v2319_v29 = vld [vmem:[%s4535_s1 + $0x218] sm:$0xf]  ;;  %v2619_v33 = vld [vmem:[%s4535_s1 + $0x22c] sm:$0xf0]  ;;  %v3180_v34 = vor.u32 %v2531_v23, %v1977_v24  ;;  %v2439_v36 = vld [vmem:[%s4535_s1 + $0x308] sm:$0xf] }
  0x30   :  { %1299 = vmatpush.bf16.msra.mxu0 %v2204_v63  ;;  %v2320_v35 = vor.u32 %v2619_v33, %v2319_v29  ;;  %v2649_v37 = vld [vmem:[%s4535_s1 + $0x31c] sm:$0xf0]  ;;  %v2127_v39 = vld [vmem:[%s4535_s1 + $0x98] sm:$0xf]  ;;  %v2571_v40 = vld [vmem:[%s4535_s1 + $0xac] sm:$0xf0] }
  0x31   :  { %909 = vmatpush.bf16.msrb.mxu1 %v2336_v51  ;;  %v3090_v51 = vor.u32 %v2547_v49, %v2035_v47  ;;  %4558 = vst [vmem:[#allocation7_spill] sm:$0xff] %v3180_v34  ;;  %v2568_v41 = vld [vmem:[%s4535_s1 + $0x9c] sm:$0xf]  ;;  %v2534_v42 = vld [vmem:[%s4536_s0 + $0x4c] sm:$0xf]  ;;  %v2128_v45 = vor.u32 %v2571_v40, %v2127_v39 }
  0x32   :  { %v2129_v46 = vld [vmem:[%s4535_s1 + $0xb0] sm:$0xf0]  ;;  %v2295_v53 = vld [vmem:[%s4535_s1 + $0x1e8] sm:$0xf]  ;;  %v2613_v54 = vld [vmem:[%s4535_s1 + $0x1fc] sm:$0xf0] }
  0x33   :  { %870 = vmatmul.bf16.gmra.mxu0 %v2982_v2  ;;  %1201 = vmatpush.bf16.msra.mxu3 %v2392_v43  ;;  %4555 = vst [vmem:[#allocation4_spill] sm:$0xff] %v3090_v51  ;;  %v1989_v43 = vld [vmem:[%s4536_s0 + $0x54] sm:$0xf0]  ;;  %v2132_v47 = vor.u32 %v2568_v41, %v2129_v46  ;;  %v2296_v55 = vor.u32 %v2613_v54, %v2295_v53  ;;  %v2565_v59 = vld [vmem:[%s4535_s1 + $0x7c] sm:$0xf0] }
  0x34   :  { %890 = vmatmul.bf16.gmra.mxu1 %v2990_v6  ;;  %v3211_v49 = vor.u32 %v2534_v42, %v1989_v43  ;;  %v2001_v63 = vld [vmem:[%s4536_s0 + $0x6c] sm:$0xf0]  ;;  %v2105_v4 = vld [vmem:[%s4535_s1 + $0x80] sm:$0xf0]  ;;  %v2079_v24 = vld [vmem:[%s4535_s1 + $0x38] sm:$0xf] }
  0x35   :  { %910 = vmatpush.bf16.msrb.mxu1 %v2312_v0  ;;  %v2368_v0 = vor.u32 %v2631_v62, %v2367_v61  ;;  %v2562_v61 = vld [vmem:[%s4535_s1 + $0x6c] sm:$0xf]  ;;  %v2537_v62 = vld [vmem:[%s4536_s0 + $0x64] sm:$0xf]  ;;  %v2556_v27 = vld [vmem:[%s4535_s1 + $0x3c] sm:$0xf] }
  0x36   :  { %v2108_v5 = vor.u32 %v2562_v61, %v2105_v4  ;;  %v3261_v12 = vld [vmem:[%s4537_s2] sm:$0x3f]  ;;  %v2013_v29 = vld [vmem:[%s4536_s0 + $0x84] sm:$0xf0] }
  0x37   :  { %1202 = vmatpush.bf16.msra.mxu3 %v2368_v0  ;;  %4559 = vst [vmem:[#allocation8_spill] sm:$0xff] %v3261_v12  ;;  %v2247_v43 = vld [vmem:[%s4535_s1 + $0x188] sm:$0xf]  ;;  %v2553_v61 = vld [vmem:[%s4535_s1 + $0x1c] sm:$0xf0] }
  0x39   :  { %911 = vmatpush.bf16.msrb.mxu1 %v2288_v7  ;;  %v2175_v7 = vld [vmem:[%s4535_s1 + $0xf8] sm:$0xf] }
  0x3a   :  { %v2176_v10 = vor.u32 %v2583_v8, %v2175_v7  ;;  %v3248_v8 = vor.u32 %v2537_v62, %v2001_v63  ;;  %v2550_v62 = vld [vmem:[%s4535_s1 + $0xc] sm:$0xf]  ;;  %v2543_v63 = vld [vmem:[%s4536_s0 + $0x94] sm:$0xf] }
  0x3b   :  { %1203 = vmatpush.bf16.msra.mxu3 %v2344_v15 }
  0x3c   :  { %2480 = vmatmul.msk.bf16.gmra.mxu2 %vm832_vm0, %v3018_v18 }
  0x3d   :  { %912 = vmatpush.bf16.msrb.mxu1 %v2264_v14  ;;  %v2180_v14 = vor.u32 %v2580_v9, %v2177_v11  ;;  %v2607_v11 = vld [vmem:[%s4535_s1 + $0x1cc] sm:$0xf0] }
  0x3e   :  { %1012 = vmatmul.bf16.vlgmr.msrb.gmra.mxu3 %v2884_v20 }
  0x3f   :  { %1300 = vmatpush.bf16.msra.mxu0 %v2180_v14  ;;  %1204 = vmatpush.bf16.msra.mxu3 %v2320_v35  ;;  %v3265_v14 = vperm.slane %v3261_v12, 0  ;;  %v2081_v35 = vld [vmem:[%s4535_s1 + $0x50] sm:$0xf0] }
  0x41   :  { %913 = vmatpush.bf16.msrb.mxu1 %v2240_v19  ;;  %v2577_v19 = vld [vmem:[%s4535_s1 + $0xdc] sm:$0xf0] }
  0x42   :  { %v2152_v26 = vor.u32 %v2577_v19, %v2151_v17 }
  0x43   :  { %875 = vmatmul.bf16.gmra.mxu0 %v3041_v30  ;;  %1205 = vmatpush.bf16.msra.mxu3 %v2296_v55 }
  0x44   :  { %895 = vmatmul.bf16.gmra.mxu1 %v3043_v32  ;;  %1301 = vmatpush.bf16.msra.mxu0 %v2156_v28  ;;  %v2540_v28 = vld [vmem:[%s4536_s0 + $0x7c] sm:$0xf] }
  0x45   :  { %1151 = vmatpush.bf16.msra.mxu1 %v2224_v38  ;;  %v2440_v38 = vor.u32 %v2649_v37, %v2439_v36  ;;  %v2084_v36 = vor.u32 %v2556_v27, %v2081_v35  ;;  %v3302_v39 = vor.u32 %v2540_v28, %v2013_v29  ;;  %v2652_v28 = vld [vmem:[%s4535_s1 + $0x33c] sm:$0xf]  ;;  %v2465_v29 = vld [vmem:[%s4535_s1 + $0x350] sm:$0xf0]  ;;  %v2231_v35 = vld [vmem:[%s4535_s1 + $0x160] sm:$0xf] }
  0x47   :  { %1256 = vmatpush.bf16.msra.mxu2 %v2440_v38 }
  0x48   :  { %1302 = vmatpush.bf16.msra.mxu0 %v2132_v47 }
  0x49   :  { %1152 = vmatpush.bf16.msra.mxu1 %v2200_v58  ;;  %v2103_v58 = vld [vmem:[%s4535_s1 + $0x68] sm:$0xf] }
  0x4a   :  { %v2104_v0 = vor.u32 %v2565_v59, %v2103_v58  ;;  %v2055_v59 = vld [vmem:[%s4535_s1 + $0x8] sm:$0xf] }
  0x4b   :  { %v2056_v4 = vor.u32 %v2553_v61, %v2055_v59  ;;  %v2546_v61 = vld [vmem:[%s4536_s0 + $0xac] sm:$0xf] }
  0x4c   :  { %2481 = vmatmul.msk.bf16.gmra.mxu2 %vm832_vm0, %v3071_v44  ;;  %1303 = vmatpush.bf16.msra.mxu0 %v2108_v5  ;;  %v2057_v5 = vld [vmem:[%s4535_s1 + $0x20] sm:$0xf0] }
  0x4d   :  { %1153 = vmatpush.bf16.msra.mxu1 %v2176_v10  ;;  %v2271_v10 = vld [vmem:[%s4535_s1 + $0x1b8] sm:$0xf] }
  0x4e   :  { %1017 = vmatmul.bf16.gmra.mxu3 %v2982_v2  ;;  %v2272_v13 = vor.u32 %v2607_v11, %v2271_v10  ;;  %v2060_v10 = vor.u32 %v2550_v62, %v2057_v5  ;;  %v2037_v62 = vld [vmem:[%s4536_s0 + $0xb4] sm:$0xf0]  ;;  %v2640_v5 = vld [vmem:[%s4535_s1 + $0x2dc] sm:$0xf] }
  0x50   :  { %1206 = vmatpush.bf16.msra.mxu3 %v2272_v13  ;;  %1304 = vmatpush.bf16.msra.mxu0 %v2084_v36  ;;  %v2596_v36 = vld [vmem:[%s4535_s1 + $0x174] sm:$0xf0] }
  0x51   :  { %1154 = vmatpush.bf16.msra.mxu1 %v2152_v26  ;;  %v2559_v26 = vld [vmem:[%s4535_s1 + $0x4c] sm:$0xf0] }
  0x52   :  { %v2080_v33 = vor.u32 %v2559_v26, %v2079_v24 }
  0x53   :  { %880 = vmatmul.bf16.gmra.mxu0 %v3088_v50 }
  0x54   :  { %900 = vmatmul.bf16.gmra.mxu1 %v3090_v51  ;;  %1305 = vmatpush.bf16.msra.mxu0 %v2060_v10  ;;  %v2417_v10 = vld [vmem:[%s4535_s1 + $0x2f0] sm:$0xf0] }
  0x55   :  { %1155 = vmatpush.bf16.msra.mxu1 %v2128_v45  ;;  %v2601_v45 = vld [vmem:[%s4535_s1 + $0x19c] sm:$0xf0] }
  0x56   :  { %v2248_v46 = vor.u32 %v2601_v45, %v2247_v43 }
  0x58   :  { %1207 = vmatpush.bf16.msra.mxu3 %v2248_v46 }
  0x59   :  { %1156 = vmatpush.bf16.msra.mxu1 %v2104_v0  ;;  %v2025_v0 = vld [vmem:[%s4536_s0 + $0x9c] sm:$0xf0] }
  0x5c   :  { %1061 = vmatmul.bf16.vlgmr.msrb.gmra.mxu2 %v3118_v1 }
  0x5d   :  { %1157 = vmatpush.bf16.msra.mxu1 %v2080_v33  ;;  %v2468_v33 = vor.u32 %v2652_v28, %v2465_v29 }
  0x5e   :  { %1022 = vmatmul.bf16.gmra.mxu3 %v3041_v30 }
  0x5f   :  { %1402 = vmatpush.bf16.msrb.mxu3 %v2468_v33  ;;  %v2420_v33 = vor.u32 %v2640_v5, %v2417_v10  ;;  %v2590_v5 = vld [vmem:[%s4535_s1 + $0x144] sm:$0xf0] }
  0x61   :  { %1158 = vmatpush.bf16.msra.mxu1 %v2056_v4  ;;  %v3392_v4 = vor.u32 %v2546_v61, %v2037_v62  ;;  %v2207_v62 = vld [vmem:[%s4535_s1 + $0x130] sm:$0xf] }
  0x63   :  { %2485 = vmatmul.msk.bf16.vlgmr.msrb.gmra.mxu0 %vm832_vm0, %v2742_v21 }
  0x64   :  { %914 = vmatmul.bf16.vlgmr.msrb.gmra.mxu1 %v3118_v1 }
  0x65   :  { %1347 = vmatpush.bf16.msrb.mxu1 %v2420_v33 }
  0x6c   :  { %1066 = vmatmul.bf16.gmra.mxu2 %v3149_v16 }
  0x6e   :  { %1027 = vmatmul.bf16.gmra.mxu3 %v3088_v50 }
  0x73   :  { %2486 = vmatmul.msk.bf16.gmra.mxu0 %vm832_vm0, %v2828_v60 }
  0x74   :  { %919 = vmatmul.bf16.gmra.mxu1 %v3149_v16 }
  0x7c   :  { %1071 = vmatmul.bf16.gmra.mxu2 %v3180_v34 }
  0x7e   :  { %1032 = vmatmul.bf16.gmra.mxu3 %v2892_v25 }
  0x83   :  { %2487 = vmatmul.msk.bf16.gmra.mxu0 %vm832_vm0, %v2944_v48 }
  0x84   :  { %924 = vmatmul.bf16.gmra.mxu1 %v3180_v34 }
  0x8c   :  { %1076 = vmatmul.bf16.gmra.mxu2 %v3211_v49 }
  0x8e   :  { %1037 = vmatmul.bf16.gmra.mxu3 %v2990_v6 }
  0x8f   :  { %v3221_v56 = vpop.f32.mrf.mxu2 }
  0x91   :  { %v3223_v57 = vpop.f32.mrf.mxu3 }
  0x93   :  { %2488 = vmatmul.msk.bf16.gmra.mxu0 %vm832_vm0, %v3018_v18 }
  0x94   :  { %929 = vmatmul.bf16.gmra.mxu1 %v3211_v49 }
  0x97   :  { %v3246_v7 = vpop.f32.mrf.mxu2 }
  0x99   :  { %v3250_v9 = vpop.f32.mrf.mxu3 }
  0x9c   :  { %1081 = vmatmul.bf16.gmra.mxu2 %v3248_v8 }
  0x9e   :  { %1042 = vmatmul.bf16.gmra.mxu3 %v3043_v32 }
  0x9f   :  { %v3268_v15 = vpop.f32.mrf.mxu2 }
  0xa0   :  { %v3270_v17 = vpop.f32.mrf.mxu0 }
  0xa1   :  { %v886_v19 = vpop.f32.mrf.mxu1  ;;  %v3272_v22 = vpop.f32.mrf.mxu3 }
  0xa2   :  { %4560 = vst [vmem:[#allocation9_spill] sm:$0xff] %v3272_v22  ;;  %v3275_v23 = vadd.f32 %v886_v19, %v3265_v14  ;;  %v3351_v19 = vor.u32 %v2543_v63, %v2025_v0 }
  0xa3   :  { %2489 = vmatmul.msk.bf16.gmra.mxu0 %vm832_vm0, %v3071_v44 }
  0xa4   :  { %934 = vmatmul.bf16.gmra.mxu1 %v3248_v8 }
  0xa7   :  { %v3298_v37 = vpop.f32.mrf.mxu2 }
  0xa8   :  { %v3300_v38 = vpop.f32.mrf.mxu0 }
  0xa9   :  { %v888_v40 = vpop.f32.mrf.mxu1  ;;  %v3304_v41 = vpop.f32.mrf.mxu3 }
  0xaa   :  { %4561 = vst [vmem:[#allocation10_spill] sm:$0xff] %v3304_v41  ;;  %v3307_v42 = vadd.f32 %v888_v40, %v3265_v14  ;;  %v2232_v40 = vor.u32 %v2596_v36, %v2231_v35  ;;  %v2644_v35 = vld [vmem:[%s4535_s1 + $0x2f4] sm:$0xf0] }
  0xac   :  { %1086 = vmatmul.bf16.gmra.mxu2 %v3302_v39 }
  0xad   :  { %1445 = vmatpush.bf16.msrb.mxu2 %v2232_v40 }
  0xae   :  { %1047 = vmatmul.bf16.gmra.mxu3 %v3090_v51 }
  0xaf   :  { %v3317_v47 = vpop.f32.mrf.mxu2 }
  0xb0   :  { %v3319_v53 = vpop.f32.mrf.mxu0 }
  0xb1   :  { %v891_v54 = vpop.f32.mrf.mxu1  ;;  %v3321_v55 = vpop.f32.mrf.mxu3 }
  0xb2   :  { %4562 = vst [vmem:[#allocation11_spill] sm:$0xff] %v3321_v55  ;;  %v3324_v58 = vadd.f32 %v891_v54, %v3265_v14 }
  0xb3   :  { %2490 = vmatmul.msk.bf16.gmra.mxu0 %vm832_vm0, %v2764_v31 }
  0xb4   :  { %939 = vmatmul.bf16.gmra.mxu1 %v3302_v39 }
  0xb7   :  { %v3347_v11 = vpop.f32.mrf.mxu2 }
  0xb8   :  { %v3349_v13 = vpop.f32.mrf.mxu0 }
  0xb9   :  { %v893_v24 = vpop.f32.mrf.mxu1  ;;  %v3353_v26 = vpop.f32.mrf.mxu3 }
  0xba   :  { %4563 = vst [vmem:[#allocation12_spill] sm:$0xff] %v3353_v26  ;;  %v3356_v27 = vadd.f32 %v893_v24, %v3265_v14  ;;  %v2423_v24 = vld [vmem:[%s4535_s1 + $0x2e0] sm:$0xf]  ;;  %v2638_v26 = vld [vmem:[%s4535_s1 + $0x2c4] sm:$0xf0] }
  0xbb   :  { %v2424_v40 = vor.u32 %v2644_v35, %v2423_v24  ;;  %v3430_v35 = vperm.slane %v3261_v12, 1 }
  0xbc   :  { %1091 = vmatmul.bf16.gmra.mxu2 %v3351_v19 }
  0xbd   :  { %1494 = vmatpush.bf16.msrb.mxu0 %v2424_v40 }
  0xbe   :  { %1208 = vmatmul.bf16.vlgmr.msra.gmra.mxu3 %v3118_v1 }
  0xbf   :  { %v3372_v43 = vpop.f32.mrf.mxu2 }
  0xc0   :  { %v3374_v45 = vpop.f32.mrf.mxu0 }
  0xc1   :  { %v896_v46 = vpop.f32.mrf.mxu1  ;;  %v1013_v54 = vpop.f32.mrf.mxu3 }
  0xc2   :  { %v3377_v59 = vadd.f32 %v896_v46, %v3265_v14 }
  0xc3   :  { %2491 = vmatmul.msk.bf16.gmra.mxu0 %vm832_vm0, %v2845_v3 }
  0xc4   :  { %944 = vmatmul.bf16.gmra.mxu1 %v3351_v19 }
  0xc7   :  { %v3388_v63 = vpop.f32.mrf.mxu2 }
  0xc8   :  { %v3390_v0 = vpop.f32.mrf.mxu0 }
  0xc9   :  { %v898_v28 = vpop.f32.mrf.mxu1  ;;  %v1015_v29 = vpop.f32.mrf.mxu3 }
  0xca   :  { %v3407_v36 = vadd.f32 %v898_v28, %v3265_v14  ;;  %v2208_v28 = vor.u32 %v2590_v5, %v2207_v62  ;;  %v2634_v62 = vld [vmem:[%s4535_s1 + $0x2ac] sm:$0xf]  ;;  %v2393_v5 = vld [vmem:[%s4535_s1 + $0x2c0] sm:$0xf0]  ;;  %v1016_v22 = vadd.f32 %v1015_v29, %v3430_v35  ;;  %v2369_v29 = vld [vmem:[%s4535_s1 + $0x290] sm:$0xf0] }
  0xcb   :  { %v2396_v12 = vor.u32 %v2634_v62, %v2393_v5  ;;  %v867_v5 = vadd.f32 %v3270_v17, %v3265_v14 }
  0xcc   :  { %4564 = vst [vmem:[#allocation13_spill] sm:$0xff] %v3407_v36  ;;  %1096 = vmatmul.bf16.gmra.mxu2 %v3392_v4 }
  0xcd   :  { %1446 = vmatpush.bf16.msrb.mxu2 %v2208_v28  ;;  %1348 = vmatpush.bf16.msrb.mxu1 %v2396_v12 }
  0xce   :  { %1213 = vmatmul.bf16.gmra.mxu3 %v3149_v16 }
  0xcf   :  { %v3411_v46 = vpop.f32.mrf.mxu2 }
  0xd0   :  { %v3413_v61 = vpop.f32.mrf.mxu0 }
  0xd1   :  { %v901_v10 = vpop.f32.mrf.mxu1  ;;  %v3421_v24 = vpop.f32.mrf.mxu3 }
  0xd2   :  { %v3424_v33 = vadd.f32 %v901_v10, %v3265_v14  ;;  %v2399_v10 = vld [vmem:[%s4535_s1 + $0x2b0] sm:$0xf] }
  0xd3   :  { %2492 = vmatmul.msk.bf16.gmra.mxu0 %vm832_vm0, %v2949_v52  ;;  %v2400_v51 = vor.u32 %v2638_v26, %v2399_v10  ;;  %v3459_v52 = vld [vmem:[%s4538_s3] sm:$0x3f] }
  0xd4   :  { %4565 = vst [vmem:[#allocation14_spill] sm:$0xff] %v3424_v33  ;;  %949 = vmatmul.bf16.gmra.mxu1 %v3392_v4  ;;  %v1014_v33 = vadd.f32 %v1013_v54, %v3430_v35  ;;  %v3465_v12 = vperm.slane %v3459_v52, 1  ;;  %v2584_v54 = vld [vmem:[%s4535_s1 + $0x114] sm:$0xf0]  ;;  %v3476_v17 = vperm.slane %v3459_v52, 0 }
  0xd5   :  { %1495 = vmatpush.bf16.msrb.mxu0 %v2400_v51  ;;  %v2183_v51 = vld [vmem:[%s4535_s1 + $0x100] sm:$0xf] }
  0xd7   :  { %v3432_v40 = vpop.f32.mrf.mxu2 }
  0xd8   :  { %v3434_v16 = vpop.f32.mrf.mxu0 }
  0xd9   :  { %v903_v28 = vpop.f32.mrf.mxu1  ;;  %v3445_v1 = vpop.f32.mrf.mxu3 }
  0xda   :  { %v3451_v55 = vadd.f32 %v903_v28, %v3265_v14 }
  0xdc   :  { %4566 = vst [vmem:[#allocation15_spill] sm:$0xff] %v3451_v55  ;;  %2493 = vmatmul.msk.bf16.vlgmr.msra.gmra.mxu2 %vm832_vm0, %v2742_v21 }
  0xde   :  { %1218 = vmatmul.bf16.gmra.mxu3 %v3180_v34  ;;  %v2184_v34 = vor.u32 %v2584_v54, %v2183_v51 }
  0xdf   :  { %v1062_v62 = vpop.f32.mrf.mxu2 }
  0xe0   :  { %v1063_v28 = vadd.f32 %v1062_v62, %v1014_v33  ;;  %v1111_v26 = vpop.f32.mrf.mxu0  ;;  %1447 = vmatpush.bf16.msrb.mxu2 %v2184_v34 }
  0xe1   :  { %v915_v10 = vpop.f32.mrf.mxu1  ;;  %v3473_v55 = vpop.f32.mrf.mxu3 }
  0xe2   :  { %v916_v41 = vadd.f32 %v915_v10, %v867_v5  ;;  %v1112_v33 = vadd.f32 %v1111_v26, %v1063_v28  ;;  %v869_v28 = vadd.f32 %v3300_v38, %v3265_v14 }
  0xe3   :  { %1306 = vmatmul.bf16.vlgmr.msra.gmra.mxu0 %v2884_v20 }
  0xe4   :  { %v965_v62 = vadd.f32 %v3221_v56, %v916_v41  ;;  %v1754_v36 = vmax.f32 %v1112_v33, %v3465_v12  ;;  %1159 = vmatmul.bf16.vlgmr.msra.gmra.mxu1 %v2884_v20  ;;  %v2628_v41 = vld [vmem:[%s4535_s1 + $0x27c] sm:$0xf]  ;;  %v1019_v33 = vadd.f32 %v3421_v24, %v3430_v35  ;;  %v872_v24 = vadd.f32 %v3319_v53, %v3265_v14 }
  0xe5   :  { %v2372_v51 = vor.u32 %v2628_v41, %v2369_v29  ;;  %v2578_v29 = vld [vmem:[%s4535_s1 + $0xe4] sm:$0xf0] }
  0xe6   :  { %v1753_v32 = vmax.f32 %v965_v62, %v3476_v17  ;;  %1850 = vst [vmem:[%s4539_s4 + $0x8] sm:$0xff] %v1754_v36  ;;  %v2375_v36 = vld [vmem:[%s4535_s1 + $0x280] sm:$0xf] }
  0xe7   :  { %v1064_v5 = vpop.f32.mrf.mxu2  ;;  %1349 = vmatpush.bf16.msrb.mxu1 %v2372_v51 }
  0xe8   :  { %1849 = vst [vmem:[%s4539_s4] sm:$0xff] %v1753_v32  ;;  %v1065_v34 = vadd.f32 %v1064_v5, %v1016_v22  ;;  %v1113_v56 = vpop.f32.mrf.mxu0  ;;  %v2632_v32 = vld [vmem:[%s4535_s1 + $0x294] sm:$0xf0] }
  0xe9   :  { %v917_v26 = vpop.f32.mrf.mxu1  ;;  %v3501_v38 = vpop.f32.mrf.mxu3  ;;  %v2376_v10 = vor.u32 %v2632_v32, %v2375_v36 }
  0xea   :  { %v918_v22 = vadd.f32 %v917_v26, %v869_v28  ;;  %v1114_v54 = vadd.f32 %v1113_v56, %v1065_v34  ;;  %v2159_v56 = vld [vmem:[%s4535_s1 + $0xd0] sm:$0xf] }
  0xeb   :  { %1496 = vmatpush.bf16.msrb.mxu0 %v2376_v10  ;;  %v2160_v51 = vor.u32 %v2578_v29, %v2159_v56  ;;  %v1021_v10 = vadd.f32 %v3445_v1, %v3430_v35  ;;  %v2622_v1 = vld [vmem:[%s4535_s1 + $0x24c] sm:$0xf]  ;;  %v2626_v56 = vld [vmem:[%s4535_s1 + $0x264] sm:$0xf0] }
  0xec   :  { %v967_v62 = vadd.f32 %v3246_v7, %v918_v22  ;;  %v1760_v5 = vmax.f32 %v1114_v54, %v3465_v12  ;;  %2494 = vmatmul.msk.bf16.gmra.mxu2 %vm832_vm0, %v2828_v60 }
  0xed   :  { %1448 = vmatpush.bf16.msrb.mxu2 %v2160_v51 }
  0xee   :  { %v1759_v41 = vmax.f32 %v967_v62, %v3476_v17  ;;  %1856 = vst [vmem:[%s4539_s4 + $0x38] sm:$0xff] %v1760_v5  ;;  %1223 = vmatmul.bf16.gmra.mxu3 %v3211_v49  ;;  %v874_v5 = vadd.f32 %v3349_v13, %v3265_v14  ;;  %v2351_v13 = vld [vmem:[%s4535_s1 + $0x250] sm:$0xf] }
  0xef   :  { %v1067_v28 = vpop.f32.mrf.mxu2  ;;  %v2352_v51 = vor.u32 %v2626_v56, %v2351_v13 }
  0xf0   :  { %1855 = vst [vmem:[%s4539_s4 + $0x30] sm:$0xff] %v1759_v41  ;;  %v1068_v7 = vadd.f32 %v1067_v28, %v1019_v33  ;;  %v1116_v34 = vpop.f32.mrf.mxu0  ;;  %v2345_v28 = vld [vmem:[%s4535_s1 + $0x260] sm:$0xf0] }
  0xf1   :  { %v920_v36 = vpop.f32.mrf.mxu1  ;;  %v3528_v26 = vpop.f32.mrf.mxu3  ;;  %1497 = vmatpush.bf16.msrb.mxu0 %v2352_v51 }
  0xf2   :  { %v921_v32 = vadd.f32 %v920_v36, %v872_v24  ;;  %v1117_v53 = vadd.f32 %v1116_v34, %v1068_v7  ;;  %v2348_v34 = vor.u32 %v2622_v1, %v2345_v28  ;;  %v2572_v28 = vld [vmem:[%s4535_s1 + $0xb4] sm:$0xf0] }
  0xf3   :  { %1311 = vmatmul.bf16.gmra.mxu0 %v2982_v2 }
  0xf4   :  { %v970_v22 = vadd.f32 %v3268_v15, %v921_v32  ;;  %v1766_v54 = vmax.f32 %v1117_v53, %v3465_v12  ;;  %1164 = vmatmul.bf16.gmra.mxu1 %v2982_v2  ;;  %v1024_v32 = vadd.f32 %v3473_v55, %v3430_v35  ;;  %v877_v55 = vadd.f32 %v3374_v45, %v3265_v14  ;;  %v2135_v45 = vld [vmem:[%s4535_s1 + $0xa0] sm:$0xf] }
  0xf5   :  { %1350 = vmatpush.bf16.msrb.mxu1 %v2348_v34  ;;  %v2136_v13 = vor.u32 %v2572_v28, %v2135_v45 }
  0xf6   :  { %v1765_v33 = vmax.f32 %v970_v22, %v3476_v17  ;;  %1862 = vst [vmem:[%s4539_s4 + $0x68] sm:$0xff] %v1766_v54 }
  0xf7   :  { %v1069_v62 = vpop.f32.mrf.mxu2  ;;  %1449 = vmatpush.bf16.msrb.mxu2 %v2136_v13 }
  0xf8   :  { %1861 = vst [vmem:[%s4539_s4 + $0x60] sm:$0xff] %v1765_v33  ;;  %v1070_v15 = vadd.f32 %v1069_v62, %v1021_v10  ;;  %v1118_v41 = vpop.f32.mrf.mxu0  ;;  %v2646_v62 = vld [vmem:[%s4535_s1 + $0x30c] sm:$0xf] }
  0xf9   :  { %v922_v24 = vpop.f32.mrf.mxu1  ;;  %v3551_v7 = vpop.f32.mrf.mxu3 }
  0xfa   :  { %v923_v29 = vadd.f32 %v922_v24, %v874_v5  ;;  %v1119_v36 = vadd.f32 %v1118_v41, %v1070_v15  ;;  %v2441_v5 = vld [vmem:[%s4535_s1 + $0x320] sm:$0xf0] }
  0xfb   :  { %v2444_v1 = vor.u32 %v2646_v62, %v2441_v5 }
  0xfc   :  { %v972_v53 = vadd.f32 %v3298_v37, %v923_v29  ;;  %v1772_v22 = vmax.f32 %v1119_v36, %v3465_v12  ;;  %2495 = vmatmul.msk.bf16.gmra.mxu2 %vm832_vm0, %v2944_v48  ;;  %v1026_v36 = vadd.f32 %v3501_v38, %v3430_v35  ;;  %v2616_v38 = vld [vmem:[%s4535_s1 + $0x21c] sm:$0xf] }
  0xfd   :  { %1403 = vmatpush.bf16.msrb.mxu3 %v2444_v1  ;;  %v1029_v1 = vadd.f32 %v3528_v26, %v3430_v35  ;;  %v882_v26 = vadd.f32 %v3413_v61, %v3265_v14 }
  0xfe   :  { %v1771_v54 = vmax.f32 %v972_v53, %v3476_v17  ;;  %1868 = vst [vmem:[%s4539_s4 + $0x98] sm:$0xff] %v1772_v22  ;;  %1228 = vmatmul.bf16.gmra.mxu3 %v3248_v8  ;;  %v879_v53 = vadd.f32 %v3390_v0, %v3265_v14  ;;  %v2327_v0 = vld [vmem:[%s4535_s1 + $0x220] sm:$0xf] }
  0xff   :  { %v1072_v10 = vpop.f32.mrf.mxu2 }
 0x100   :  { %1867 = vst [vmem:[%s4539_s4 + $0x90] sm:$0xff] %v1771_v54  ;;  %v1073_v37 = vadd.f32 %v1072_v10, %v1024_v32  ;;  %v1121_v33 = vpop.f32.mrf.mxu0  ;;  %v2321_v54 = vld [vmem:[%s4535_s1 + $0x230] sm:$0xf0] }
 0x101   :  { %v925_v15 = vpop.f32.mrf.mxu1  ;;  %v3581_v41 = vpop.f32.mrf.mxu3 }
 0x102   :  { %v926_v24 = vadd.f32 %v925_v15, %v877_v55  ;;  %v1122_v34 = vadd.f32 %v1121_v33, %v1073_v37  ;;  %v2324_v37 = vor.u32 %v2616_v38, %v2321_v54  ;;  %v2620_v33 = vld [vmem:[%s4535_s1 + $0x234] sm:$0xf0]  ;;  %v1031_v38 = vadd.f32 %v3551_v7, %v3430_v35  ;;  %v2610_v7 = vld [vmem:[%s4535_s1 + $0x1ec] sm:$0xf] }
 0x103   :  { %1316 = vmatmul.bf16.gmra.mxu0 %v3041_v30  ;;  %v2328_v15 = vor.u32 %v2620_v33, %v2327_v0  ;;  %v2297_v33 = vld [vmem:[%s4535_s1 + $0x200] sm:$0xf0] }
 0x104   :  { %v975_v56 = vadd.f32 %v3317_v47, %v926_v24  ;;  %v1778_v29 = vmax.f32 %v1122_v34, %v3465_v12  ;;  %1169 = vmatmul.bf16.gmra.mxu1 %v3041_v30 }
 0x105   :  { %1351 = vmatpush.bf16.msrb.mxu1 %v2324_v37  ;;  %1498 = vmatpush.bf16.msrb.mxu0 %v2328_v15  ;;  %v884_v37 = vadd.f32 %v3434_v16, %v3265_v14  ;;  %v2300_v15 = vor.u32 %v2610_v7, %v2297_v33  ;;  %v2303_v16 = vld [vmem:[%s4535_s1 + $0x1f0] sm:$0xf]  ;;  %v2614_v14 = vld [vmem:[%s4535_s1 + $0x204] sm:$0xf0] }
 0x106   :  { %v1777_v51 = vmax.f32 %v975_v56, %v3476_v17  ;;  %1874 = vst [vmem:[%s4539_s4 + $0xc8] sm:$0xff] %v1778_v29  ;;  %v2111_v56 = vld [vmem:[%s4535_s1 + $0x70] sm:$0xf]  ;;  %v2566_v29 = vld [vmem:[%s4535_s1 + $0x84] sm:$0xf0] }
 0x107   :  { %v1074_v32 = vpop.f32.mrf.mxu2 }
 0x108   :  { %1873 = vst [vmem:[%s4539_s4 + $0xc0] sm:$0xff] %v1777_v51  ;;  %v1075_v47 = vadd.f32 %v1074_v32, %v1026_v36  ;;  %v1123_v22 = vpop.f32.mrf.mxu0  ;;  %v2112_v32 = vor.u32 %v2566_v29, %v2111_v56  ;;  %v2087_v56 = vld [vmem:[%s4535_s1 + $0x40] sm:$0xf]  ;;  %v2560_v29 = vld [vmem:[%s4535_s1 + $0x54] sm:$0xf0] }
 0x109   :  { %v927_v10 = vpop.f32.mrf.mxu1  ;;  %v3610_v55 = vpop.f32.mrf.mxu3  ;;  %1352 = vmatpush.bf16.msrb.mxu1 %v2300_v15  ;;  %v2608_v15 = vld [vmem:[%s4535_s1 + $0x1d4] sm:$0xf0] }
 0x10a   :  { %v928_v62 = vadd.f32 %v927_v10, %v879_v53  ;;  %v1124_v5 = vadd.f32 %v1123_v22, %v1075_v47  ;;  %1450 = vmatpush.bf16.msrb.mxu2 %v2112_v32 }
 0x10c   :  { %v977_v45 = vadd.f32 %v3347_v11, %v928_v62  ;;  %v1784_v28 = vmax.f32 %v1124_v5, %v3465_v12  ;;  %2496 = vmatmul.msk.bf16.gmra.mxu2 %vm832_vm0, %v3018_v18 }
 0x10e   :  { %v1783_v24 = vmax.f32 %v977_v45, %v3476_v17  ;;  %1880 = vst [vmem:[%s4539_s4 + $0xf8] sm:$0xff] %v1784_v28  ;;  %1233 = vmatmul.bf16.gmra.mxu3 %v3302_v39  ;;  %v2304_v28 = vor.u32 %v2614_v14, %v2303_v16 }
 0x10f   :  { %v1077_v34 = vpop.f32.mrf.mxu2 }
 0x110   :  { %1879 = vst [vmem:[%s4539_s4 + $0xf0] sm:$0xff] %v1783_v24  ;;  %v1078_v11 = vadd.f32 %v1077_v34, %v1029_v1  ;;  %v1126_v13 = vpop.f32.mrf.mxu0  ;;  %v1034_v24 = vadd.f32 %v3581_v41, %v3430_v35  ;;  %1499 = vmatpush.bf16.msrb.mxu0 %v2304_v28 }
 0x111   :  { %v930_v36 = vpop.f32.mrf.mxu1  ;;  %v3640_v51 = vpop.f32.mrf.mxu3 }
 0x112   :  { %v931_v53 = vadd.f32 %v930_v36, %v882_v26  ;;  %v1127_v61 = vadd.f32 %v1126_v13, %v1078_v11 }
 0x113   :  { %1321 = vmatmul.bf16.gmra.mxu0 %v3088_v50 }
 0x114   :  { %v980_v47 = vadd.f32 %v3372_v43, %v931_v53  ;;  %v1790_v22 = vmax.f32 %v1127_v61, %v3465_v12  ;;  %1174 = vmatmul.bf16.gmra.mxu1 %v3088_v50  ;;  %v2088_v53 = vor.u32 %v2560_v29, %v2087_v56 }
 0x116   :  { %v1789_v54 = vmax.f32 %v980_v47, %v3476_v17  ;;  %1886 = vst [vmem:[%s4539_s4 + $0x128] sm:$0xff] %v1790_v22  ;;  %1451 = vmatpush.bf16.msrb.mxu2 %v2088_v53 }
 0x117   :  { %v1079_v10 = vpop.f32.mrf.mxu2 }
 0x118   :  { %1885 = vst [vmem:[%s4539_s4 + $0x120] sm:$0xff] %v1789_v54  ;;  %v1080_v43 = vadd.f32 %v1079_v10, %v1031_v38  ;;  %v1128_v0 = vpop.f32.mrf.mxu0  ;;  %v1036_v54 = vadd.f32 %v3610_v55, %v3430_v35  ;;  %v2273_v55 = vld [vmem:[%s4535_s1 + $0x1d0] sm:$0xf0] }
 0x119   :  { %v932_v62 = vpop.f32.mrf.mxu1  ;;  %v3663_v5 = vpop.f32.mrf.mxu3 }
 0x11a   :  { %v933_v1 = vadd.f32 %v932_v62, %v884_v37  ;;  %v1129_v45 = vadd.f32 %v1128_v0, %v1080_v43  ;;  %v2604_v43 = vld [vmem:[%s4535_s1 + $0x1bc] sm:$0xf]  ;;  %v2279_v62 = vld [vmem:[%s4535_s1 + $0x1c0] sm:$0xf] }
 0x11b   :  { %v2276_v33 = vor.u32 %v2604_v43, %v2273_v55 }
 0x11c   :  { %v982_v34 = vadd.f32 %v3388_v63, %v933_v1  ;;  %v1796_v26 = vmax.f32 %v1129_v45, %v3465_v12  ;;  %2497 = vmatmul.msk.bf16.gmra.mxu2 %vm832_vm0, %v3071_v44  ;;  %v2280_v1 = vor.u32 %v2608_v15, %v2279_v62  ;;  %v1039_v45 = vadd.f32 %v3640_v51, %v3430_v35 }
 0x11d   :  { %1353 = vmatpush.bf16.msrb.mxu1 %v2276_v33 }
 0x11e   :  { %v1795_v11 = vmax.f32 %v982_v34, %v3476_v17  ;;  %1892 = vst [vmem:[%s4539_s4 + $0x158] sm:$0xff] %v1796_v26  ;;  %1238 = vmatmul.bf16.gmra.mxu3 %v3351_v19  ;;  %1500 = vmatpush.bf16.msrb.mxu0 %v2280_v1  ;;  %v2063_v26 = vld [vmem:[%s4535_s1 + $0x10] sm:$0xf]  ;;  %v2233_v1 = vld [vmem:[%s4535_s1 + $0x178] sm:$0xf0] }
 0x11f   :  { %v1082_v13 = vpop.f32.mrf.mxu2 }
 0x120   :  { %1891 = vst [vmem:[%s4539_s4 + $0x150] sm:$0xff] %v1795_v11  ;;  %v1083_v63 = vadd.f32 %v1082_v13, %v1034_v24  ;;  %v1131_v41 = vpop.f32.mrf.mxu0  ;;  %v2554_v11 = vld [vmem:[%s4535_s1 + $0x24] sm:$0xf0] }
 0x121   :  { %v935_v36 = vpop.f32.mrf.mxu1  ;;  %v3691_v32 = vpop.f32.mrf.mxu3 }
 0x122   :  { %v936_v61 = vadd.f32 %v935_v36, %v3275_v23  ;;  %v1132_v47 = vadd.f32 %v1131_v41, %v1083_v63  ;;  %v2064_v41 = vor.u32 %v2554_v11, %v2063_v26  ;;  %v1044_v33 = vadd.f32 %v3691_v32, %v3430_v35  ;;  %v4567_v11 = vld [vmem:[#allocation3_spill] sm:$0xff] }
 0x123   :  { %1326 = vmatmul.bf16.gmra.mxu0 %v2892_v25 }
 0x124   :  { %v985_v22 = vadd.f32 %v3411_v46, %v936_v61  ;;  %v1802_v38 = vmax.f32 %v1132_v47, %v3465_v12  ;;  %1179 = vmatmul.bf16.gmra.mxu1 %v2892_v25  ;;  %1452 = vmatpush.bf16.msrb.mxu2 %v2064_v41  ;;  %v1041_v61 = vadd.f32 %v3663_v5, %v3430_v35  ;;  %v2249_v5 = vld [vmem:[%s4535_s1 + $0x1a0] sm:$0xf0] }
 0x126   :  { %v1801_v10 = vmax.f32 %v985_v22, %v3476_v17  ;;  %1898 = vst [vmem:[%s4539_s4 + $0x188] sm:$0xff] %v1802_v38  ;;  %v2598_v38 = vld [vmem:[%s4535_s1 + $0x18c] sm:$0xf] }
 0x127   :  { %v1084_v23 = vpop.f32.mrf.mxu2 }
 0x128   :  { %1897 = vst [vmem:[%s4539_s4 + $0x180] sm:$0xff] %v1801_v10  ;;  %v1085_v37 = vadd.f32 %v1084_v23, %v1036_v54  ;;  %v1133_v46 = vpop.f32.mrf.mxu0  ;;  %v2252_v23 = vor.u32 %v2598_v38, %v2249_v5  ;;  %v2656_v5 = vld [vmem:[%s4535_s1 + $0x354] sm:$0xf0] }
 0x129   :  { %v937_v0 = vpop.f32.mrf.mxu1  ;;  %v3713_v7 = vpop.f32.mrf.mxu3 }
 0x12a   :  { %v938_v16 = vadd.f32 %v937_v0, %v3307_v42  ;;  %v1134_v14 = vadd.f32 %v1133_v46, %v1085_v37  ;;  %v2255_v37 = vld [vmem:[%s4535_s1 + $0x190] sm:$0xf]  ;;  %v2602_v46 = vld [vmem:[%s4535_s1 + $0x1a4] sm:$0xf0]  ;;  %1354 = vmatpush.bf16.msrb.mxu1 %v2252_v23 }
 0x12b   :  { %v2256_v0 = vor.u32 %v2602_v46, %v2255_v37  ;;  %v2473_v37 = vld [vmem:[%s4535_s1 + $0x358] sm:$0xf0] }
 0x12c   :  { %v987_v28 = vadd.f32 %v3432_v40, %v938_v16  ;;  %v1808_v24 = vmax.f32 %v1134_v14, %v3465_v12  ;;  %2498 = vmatmul.msk.bf16.gmra.mxu2 %vm832_vm0, %v2764_v31  ;;  %v2593_v14 = vld [vmem:[%s4535_s1 + $0x164] sm:$0xf] }
 0x12d   :  { %1501 = vmatpush.bf16.msrb.mxu0 %v2256_v0 }
 0x12e   :  { %v1807_v34 = vmax.f32 %v987_v28, %v3476_v17  ;;  %1904 = vst [vmem:[%s4539_s4 + $0x1b8] sm:$0xff] %v1808_v24  ;;  %1243 = vmatmul.bf16.gmra.mxu3 %v3392_v4  ;;  %v2236_v24 = vor.u32 %v2593_v14, %v2233_v1  ;;  %v4572_v14 = vld [vmem:[#allocation14_spill] sm:$0xff] }
 0x12f   :  { %v1087_v42 = vpop.f32.mrf.mxu2 }
 0x130   :  { %1903 = vst [vmem:[%s4539_s4 + $0x1b0] sm:$0xff] %v1807_v34  ;;  %v1088_v40 = vadd.f32 %v1087_v42, %v1039_v45  ;;  %v1136_v51 = vpop.f32.mrf.mxu0  ;;  %v2641_v34 = vld [vmem:[%s4535_s1 + $0x2e4] sm:$0xf]  ;;  %v2425_v42 = vld [vmem:[%s4535_s1 + $0x2f8] sm:$0xf0]  ;;  %1592 = vmatpush.bf16.msra.mxu3 %v2236_v24 }
 0x131   :  { %v940_v13 = vpop.f32.mrf.mxu1  ;;  %v3742_v63 = vpop.f32.mrf.mxu3  ;;  %v2428_v26 = vor.u32 %v2641_v34, %v2425_v42  ;;  %v2587_v24 = vld [vmem:[%s4535_s1 + $0x134] sm:$0xf]  ;;  %v2209_v34 = vld [vmem:[%s4535_s1 + $0x148] sm:$0xf0] }
 0x132   :  { %v941_v56 = vadd.f32 %v940_v13, %v3324_v58  ;;  %v1137_v29 = vadd.f32 %v1136_v51, %v1088_v40  ;;  %v4568_v13 = vld [vmem:[#allocation9_spill] sm:$0xff]  ;;  %v1049_v46 = vadd.f32 %v3742_v63, %v3430_v35  ;;  %v2635_v42 = vld [vmem:[%s4535_s1 + $0x2b4] sm:$0xf] }
 0x133   :  { %1331 = vmatmul.bf16.gmra.mxu0 %v2990_v6  ;;  %1641 = vmatpush.bf16.msra.mxu2 %v2428_v26  ;;  %v2401_v26 = vld [vmem:[%s4535_s1 + $0x2c8] sm:$0xf0] }
 0x134   :  { %v990_v36 = vadd.f32 %v3223_v57, %v941_v56  ;;  %v1814_v53 = vmax.f32 %v1137_v29, %v3465_v12  ;;  %1184 = vmatmul.bf16.gmra.mxu1 %v2990_v6  ;;  %v1046_v29 = vadd.f32 %v3713_v7, %v3430_v35  ;;  %v2471_v7 = vld [vmem:[%s4535_s1 + $0x340] sm:$0xf] }
 0x135   :  { %v2472_v23 = vor.u32 %v2656_v5, %v2471_v7 }
 0x136   :  { %v1813_v47 = vmax.f32 %v990_v36, %v3476_v17  ;;  %1910 = vst [vmem:[%s4539_s4 + $0x1e8] sm:$0xff] %v1814_v53 }
 0x137   :  { %v1089_v58 = vpop.f32.mrf.mxu2  ;;  %1549 = vmatpush.bf16.msra.mxu1 %v2472_v23 }
 0x138   :  { %1909 = vst [vmem:[%s4539_s4 + $0x1e0] sm:$0xff] %v1813_v47  ;;  %v1090_v22 = vadd.f32 %v1089_v58, %v1041_v61  ;;  %v1138_v57 = vpop.f32.mrf.mxu0 }
 0x139   :  { %v942_v54 = vpop.f32.mrf.mxu1  ;;  %v3764_v10 = vpop.f32.mrf.mxu3 }
 0x13a   :  { %v943_v43 = vadd.f32 %v942_v54, %v3356_v27  ;;  %v1139_v55 = vadd.f32 %v1138_v57, %v1090_v22  ;;  %v4569_v22 = vld [vmem:[#allocation13_spill] sm:$0xff]  ;;  %v2653_v54 = vld [vmem:[%s4535_s1 + $0x344] sm:$0xf] }
 0x13c   :  { %v992_v62 = vadd.f32 %v3250_v9, %v943_v43  ;;  %v1820_v15 = vmax.f32 %v1139_v55, %v3465_v12  ;;  %2499 = vmatmul.msk.bf16.gmra.mxu2 %vm832_vm0, %v2845_v3  ;;  %v4570_v43 = vld [vmem:[#allocation10_spill] sm:$0xff] }
 0x13e   :  { %v1819_v16 = vmax.f32 %v992_v62, %v3476_v17  ;;  %1916 = vst [vmem:[%s4539_s4 + $0x218] sm:$0xff] %v1820_v15  ;;  %2501 = vmatmul.msk.bf16.vlgmr.msrb.gmra.mxu3 %vm832_vm0, %v2742_v21  ;;  %v2476_v62 = vor.u32 %v2653_v54, %v2473_v37  ;;  %v4577_v37 = vld [vmem:[#allocation8_spill] sm:$0xff] }
 0x13f   :  { %v1092_v27 = vpop.f32.mrf.mxu2 }
 0x140   :  { %1915 = vst [vmem:[%s4539_s4 + $0x210] sm:$0xff] %v1819_v16  ;;  %v1093_v9 = vadd.f32 %v1092_v27, %v1044_v33  ;;  %v1141_v32 = vpop.f32.mrf.mxu0  ;;  %v4571_v33 = vld [vmem:[#allocation2_spill] sm:$0xff]  ;;  %1696 = vmatpush.bf16.msra.mxu0 %v2476_v62 }
 0x141   :  { %v945_v45 = vpop.f32.mrf.mxu1  ;;  %v3794_v28 = vpop.f32.mrf.mxu3  ;;  %v2581_v62 = vld [vmem:[%s4535_s1 + $0x104] sm:$0xf] }
 0x142   :  { %v946_v40 = vadd.f32 %v945_v45, %v3377_v59  ;;  %v1142_v51 = vadd.f32 %v1141_v32, %v1093_v9 }
 0x143   :  { %1336 = vmatmul.bf16.gmra.mxu0 %v4567_v11 }
 0x144   :  { %v995_v41 = vadd.f32 %v4568_v13, %v946_v40  ;;  %v1826_v56 = vmax.f32 %v1142_v51, %v3465_v12  ;;  %1189 = vmatmul.bf16.gmra.mxu1 %v4567_v11  ;;  %v4573_v40 = vld [vmem:[#allocation4_spill] sm:$0xff]  ;;  %v2212_v51 = vor.u32 %v2587_v24, %v2209_v34  ;;  %v4574_v13 = vld [vmem:[#allocation11_spill] sm:$0xff] }
 0x146   :  { %v1825_v36 = vmax.f32 %v995_v41, %v3476_v17  ;;  %1922 = vst [vmem:[%s4539_s4 + $0x248] sm:$0xff] %v1826_v56  ;;  %1593 = vmatpush.bf16.msra.mxu3 %v2212_v51 }
 0x147   :  { %v1094_v59 = vpop.f32.mrf.mxu2 }
 0x148   :  { %1921 = vst [vmem:[%s4539_s4 + $0x240] sm:$0xff] %v1825_v36  ;;  %v1095_v53 = vadd.f32 %v1094_v59, %v1046_v29  ;;  %v1143_v61 = vpop.f32.mrf.mxu0  ;;  %v2404_v29 = vor.u32 %v2635_v42, %v2401_v26  ;;  %v1051_v36 = vadd.f32 %v3764_v10, %v3430_v35  ;;  %v4576_v10 = vld [vmem:[#allocation12_spill] sm:$0xff] }
 0x149   :  { %v947_v47 = vpop.f32.mrf.mxu1  ;;  %v3816_v58 = vpop.f32.mrf.mxu3 }
 0x14a   :  { %v948_v57 = vadd.f32 %v947_v47, %v4569_v22  ;;  %v1144_v38 = vadd.f32 %v1143_v61, %v1095_v53  ;;  %1642 = vmatpush.bf16.msra.mxu2 %v2404_v29 }
 0x14c   :  { %v997_v55 = vadd.f32 %v4570_v43, %v948_v57  ;;  %v1832_v0 = vmax.f32 %v1144_v38, %v3465_v12  ;;  %2500 = vmatmul.msk.bf16.gmra.mxu2 %vm832_vm0, %v4571_v33  ;;  %v4575_v38 = vld [vmem:[#allocation15_spill] sm:$0xff] }
 0x14e   :  { %v1831_v15 = vmax.f32 %v997_v55, %v3476_v17  ;;  %1928 = vst [vmem:[%s4539_s4 + $0x278] sm:$0xff] %v1832_v0  ;;  %2502 = vmatmul.msk.bf16.gmra.mxu3 %vm832_vm0, %v2828_v60 }
 0x14f   :  { %v1097_v63 = vpop.f32.mrf.mxu2 }
 0x150   :  { %1927 = vst [vmem:[%s4539_s4 + $0x270] sm:$0xff] %v1831_v15  ;;  %v1098_v16 = vadd.f32 %v1097_v63, %v1049_v46  ;;  %v1146_v27 = vpop.f32.mrf.mxu0  ;;  %v3885_v46 = vperm.slane %v4577_v37, 2  ;;  %v2185_v15 = vld [vmem:[%s4535_s1 + $0x118] sm:$0xf0]  ;;  %v2629_v63 = vld [vmem:[%s4535_s1 + $0x284] sm:$0xf] }
 0x151   :  { %v950_v9 = vpop.f32.mrf.mxu1  ;;  %v3846_v32 = vpop.f32.mrf.mxu3 }
 0x152   :  { %v951_v1 = vadd.f32 %v950_v9, %v4572_v14  ;;  %v1147_v45 = vadd.f32 %v1146_v27, %v1098_v16  ;;  %v4578_v16 = vld [vmem:[#allocation5_spill] sm:$0xff]  ;;  %v2188_v27 = vor.u32 %v2581_v62, %v2185_v15 }
 0x153   :  { %1341 = vmatmul.bf16.gmra.mxu0 %v4573_v40  ;;  %v2377_v9 = vld [vmem:[%s4535_s1 + $0x298] sm:$0xf0] }
 0x154   :  { %v1000_v41 = vadd.f32 %v4574_v13, %v951_v1  ;;  %v1838_v56 = vmax.f32 %v1147_v45, %v3465_v12  ;;  %1194 = vmatmul.bf16.gmra.mxu1 %v4573_v40  ;;  %v3912_v1 = vperm.slane %v3459_v52, 2  ;;  %v2380_v45 = vor.u32 %v2629_v63, %v2377_v9  ;;  %1594 = vmatpush.bf16.msra.mxu3 %v2188_v27 }
 0x156   :  { %v1837_v59 = vmax.f32 %v1000_v41, %v3476_v17  ;;  %1934 = vst [vmem:[%s4539_s4 + $0x2a8] sm:$0xff] %v1838_v56  ;;  %1643 = vmatpush.bf16.msra.mxu2 %v2380_v45 }
 0x157   :  { %v1099_v53 = vpop.f32.mrf.mxu2 }
 0x158   :  { %1933 = vst [vmem:[%s4539_s4 + $0x2a0] sm:$0xff] %v1837_v59  ;;  %v1100_v61 = vadd.f32 %v1099_v53, %v1051_v36  ;;  %v1148_v47 = vpop.f32.mrf.mxu0 }
 0x159   :  { %v952_v22 = vpop.f32.mrf.mxu1  ;;  %v3874_v57 = vpop.f32.mrf.mxu3 }
 0x15a   :  { %v953_v7 = vadd.f32 %v952_v22, %v4575_v38  ;;  %v1149_v35 = vadd.f32 %v1148_v47, %v1100_v61  ;;  %v2575_v61 = vld [vmem:[%s4535_s1 + $0xd4] sm:$0xf]  ;;  %v2161_v47 = vld [vmem:[%s4535_s1 + $0xe8] sm:$0xf0]  ;;  %v4579_v22 = vld [vmem:[#allocation6_spill] sm:$0xff] }
 0x15b   :  { %v2164_v38 = vor.u32 %v2575_v61, %v2161_v47 }
 0x15c   :  { %v1002_v5 = vadd.f32 %v4576_v10, %v953_v7  ;;  %v1844_v54 = vmax.f32 %v1149_v35, %v3465_v12  ;;  %1453 = vmatmul.bf16.vlgmr.msrb.gmra.mxu2 %v2884_v20  ;;  %v2623_v7 = vld [vmem:[%s4535_s1 + $0x254] sm:$0xf]  ;;  %v2353_v35 = vld [vmem:[%s4535_s1 + $0x268] sm:$0xf0] }
 0x15d   :  { %1595 = vmatpush.bf16.msra.mxu3 %v2164_v38 }
 0x15e   :  { %v1843_v23 = vmax.f32 %v1002_v5, %v3476_v17  ;;  %1940 = vst [vmem:[%s4539_s4 + $0x2d8] sm:$0xff] %v1844_v54  ;;  %2503 = vmatmul.msk.bf16.gmra.mxu3 %vm832_vm0, %v2944_v48  ;;  %v2356_v5 = vor.u32 %v2623_v7, %v2353_v35  ;;  %v2447_v7 = vld [vmem:[%s4535_s1 + $0x310] sm:$0xf]  ;;  %v2650_v35 = vld [vmem:[%s4535_s1 + $0x324] sm:$0xf0] }
 0x15f   :  { %v1258_v43 = vpop.f32.mrf.mxu2 }
 0x160   :  { %1939 = vst [vmem:[%s4539_s4 + $0x2d0] sm:$0xff] %v1843_v23  ;;  %v3892_v12 = vpop.f32.mrf.mxu0  ;;  %1644 = vmatpush.bf16.msra.mxu2 %v2356_v5  ;;  %v2647_v5 = vld [vmem:[%s4535_s1 + $0x314] sm:$0xf] }
 0x161   :  { %v1160_v55 = vpop.f32.mrf.mxu1  ;;  %v3894_v0 = vpop.f32.mrf.mxu3 }
 0x162   :  { %v1161_v17 = vadd.f32 %v1160_v55, %v3885_v46 }
 0x163   :  { %1502 = vmatmul.bf16.vlgmr.msrb.gmra.mxu0 %v4578_v16 }
 0x164   :  { %v1210_v14 = vadd.f32 %v3794_v28, %v1161_v17  ;;  %1355 = vmatmul.bf16.vlgmr.msrb.gmra.mxu1 %v4578_v16 }
 0x166   :  { %v1259_v24 = vadd.f32 %v1258_v43, %v1210_v14 }
 0x167   :  { %v1260_v34 = vpop.f32.mrf.mxu2 }
 0x168   :  { %v1755_v42 = vmax.f32 %v1259_v24, %v3912_v1  ;;  %v3916_v51 = vpop.f32.mrf.mxu0  ;;  %v2569_v24 = vld [vmem:[%s4535_s1 + $0xa4] sm:$0xf] }
 0x169   :  { %v1162_v26 = vpop.f32.mrf.mxu1  ;;  %v3918_v13 = vpop.f32.mrf.mxu3 }
 0x16a   :  { %1851 = vst [vmem:[%s4539_s4 + $0x10] sm:$0xff] %v1755_v42  ;;  %v1163_v52 = vadd.f32 %v1162_v26, %v3885_v46  ;;  %v4580_v42 = vld [vmem:[#allocation7_spill] sm:$0xff] }
 0x16c   :  { %v1212_v28 = vadd.f32 %v3816_v58, %v1163_v52  ;;  %1458 = vmatmul.bf16.gmra.mxu2 %v2982_v2  ;;  %v2617_v52 = vld [vmem:[%s4535_s1 + $0x224] sm:$0xf] }
 0x16e   :  { %v1261_v41 = vadd.f32 %v1260_v34, %v1212_v28  ;;  %2504 = vmatmul.msk.bf16.gmra.mxu3 %vm832_vm0, %v3018_v18  ;;  %v2137_v34 = vld [vmem:[%s4535_s1 + $0xb8] sm:$0xf0] }
 0x16f   :  { %v1263_v56 = vpop.f32.mrf.mxu2  ;;  %v2140_v26 = vor.u32 %v2569_v24, %v2137_v34  ;;  %v2329_v28 = vld [vmem:[%s4535_s1 + $0x238] sm:$0xf0]  ;;  %v2611_v34 = vld [vmem:[%s4535_s1 + $0x1f4] sm:$0xf] }
 0x170   :  { %v1761_v29 = vmax.f32 %v1261_v41, %v3912_v1  ;;  %v3929_v36 = vpop.f32.mrf.mxu0 }
 0x171   :  { %v1165_v59 = vpop.f32.mrf.mxu1  ;;  %v3931_v53 = vpop.f32.mrf.mxu3  ;;  %1596 = vmatpush.bf16.msra.mxu3 %v2140_v26  ;;  %v2305_v26 = vld [vmem:[%s4535_s1 + $0x208] sm:$0xf0] }
 0x172   :  { %1857 = vst [vmem:[%s4539_s4 + $0x40] sm:$0xff] %v1761_v29  ;;  %v1166_v58 = vadd.f32 %v1165_v59, %v3885_v46 }
 0x173   :  { %1507 = vmatmul.bf16.gmra.mxu0 %v4579_v22 }
 0x174   :  { %v1215_v10 = vadd.f32 %v3846_v32, %v1166_v58  ;;  %1360 = vmatmul.bf16.gmra.mxu1 %v4579_v22 }
 0x176   :  { %v1264_v54 = vadd.f32 %v1263_v56, %v1215_v10  ;;  %v2332_v56 = vor.u32 %v2617_v52, %v2329_v28  ;;  %v2448_v10 = vor.u32 %v2650_v35, %v2447_v7  ;;  %v2308_v28 = vor.u32 %v2611_v34, %v2305_v26 }
 0x177   :  { %v1265_v23 = vpop.f32.mrf.mxu2 }
 0x178   :  { %v1767_v37 = vmax.f32 %v1264_v54, %v3912_v1  ;;  %v3953_v43 = vpop.f32.mrf.mxu0  ;;  %1645 = vmatpush.bf16.msra.mxu2 %v2332_v56  ;;  %v2449_v54 = vld [vmem:[%s4535_s1 + $0x328] sm:$0xf0]  ;;  %1550 = vmatpush.bf16.msra.mxu1 %v2448_v10 }
 0x179   :  { %v1167_v55 = vpop.f32.mrf.mxu1  ;;  %v3955_v17 = vpop.f32.mrf.mxu3 }
 0x17a   :  { %1863 = vst [vmem:[%s4539_s4 + $0x70] sm:$0xff] %v1767_v37  ;;  %v1168_v32 = vadd.f32 %v1167_v55, %v3885_v46  ;;  %v2452_v37 = vor.u32 %v2647_v5, %v2449_v54 }
 0x17c   :  { %v1217_v62 = vadd.f32 %v3874_v57, %v1168_v32  ;;  %1463 = vmatmul.bf16.gmra.mxu2 %v3041_v30  ;;  %1697 = vmatpush.bf16.msra.mxu0 %v2452_v37  ;;  %v2557_v37 = vld [vmem:[%s4535_s1 + $0x44] sm:$0xf] }
 0x17d   :  { %1646 = vmatpush.bf16.msra.mxu2 %v2308_v28 }
 0x17e   :  { %v1266_v15 = vadd.f32 %v1265_v23, %v1217_v62  ;;  %2505 = vmatmul.msk.bf16.gmra.mxu3 %vm832_vm0, %v3071_v44 }
 0x17f   :  { %v1268_v63 = vpop.f32.mrf.mxu2 }
 0x180   :  { %v1773_v27 = vmax.f32 %v1266_v15, %v3912_v1  ;;  %v3966_v9 = vpop.f32.mrf.mxu0 }
 0x181   :  { %v1170_v14 = vpop.f32.mrf.mxu1  ;;  %v3968_v45 = vpop.f32.mrf.mxu3 }
 0x182   :  { %1869 = vst [vmem:[%s4539_s4 + $0xa0] sm:$0xff] %v1773_v27  ;;  %v1171_v57 = vadd.f32 %v1170_v14, %v3885_v46  ;;  %v2563_v14 = vld [vmem:[%s4535_s1 + $0x74] sm:$0xf] }
 0x183   :  { %1512 = vmatmul.bf16.gmra.mxu0 %v4580_v42 }
 0x184   :  { %v1220_v41 = vadd.f32 %v3894_v0, %v1171_v57  ;;  %1365 = vmatmul.bf16.gmra.mxu1 %v4580_v42  ;;  %v2113_v57 = vld [vmem:[%s4535_s1 + $0x88] sm:$0xf0] }
 0x185   :  { %v2116_v24 = vor.u32 %v2563_v14, %v2113_v57 }
 0x186   :  { %v1269_v29 = vadd.f32 %v1268_v63, %v1220_v41 }
 0x187   :  { %v1270_v59 = vpop.f32.mrf.mxu2  ;;  %1597 = vmatpush.bf16.msra.mxu3 %v2116_v24 }
 0x188   :  { %v1779_v58 = vmax.f32 %v1269_v29, %v3912_v1  ;;  %v3990_v61 = vpop.f32.mrf.mxu0 }
 0x189   :  { %v1172_v47 = vpop.f32.mrf.mxu1  ;;  %v3992_v38 = vpop.f32.mrf.mxu3 }
 0x18a   :  { %1875 = vst [vmem:[%s4539_s4 + $0xd0] sm:$0xff] %v1779_v58  ;;  %v1173_v0 = vadd.f32 %v1172_v47, %v3885_v46 }
 0x18c   :  { %v1222_v23 = vadd.f32 %v3918_v13, %v1173_v0  ;;  %1468 = vmatmul.bf16.gmra.mxu2 %v3088_v50 }
 0x18e   :  { %v1271_v55 = vadd.f32 %v1270_v59, %v1222_v23  ;;  %2506 = vmatmul.msk.bf16.gmra.mxu3 %vm832_vm0, %v2764_v31 }
 0x18f   :  { %v1273_v32 = vpop.f32.mrf.mxu2 }
 0x190   :  { %v1785_v62 = vmax.f32 %v1271_v55, %v3912_v1  ;;  %v4015_v15 = vpop.f32.mrf.mxu0  ;;  %v2089_v55 = vld [vmem:[%s4535_s1 + $0x58] sm:$0xf0] }
 0x191   :  { %v1175_v63 = vpop.f32.mrf.mxu1  ;;  %v4017_v27 = vpop.f32.mrf.mxu3 }
 0x192   :  { %1881 = vst [vmem:[%s4539_s4 + $0x100] sm:$0xff] %v1785_v62  ;;  %v1176_v13 = vadd.f32 %v1175_v63, %v3885_v46  ;;  %v2605_v62 = vld [vmem:[%s4535_s1 + $0x1c4] sm:$0xf]  ;;  %v2281_v63 = vld [vmem:[%s4535_s1 + $0x1d8] sm:$0xf0] }
 0x193   :  { %1517 = vmatmul.bf16.gmra.mxu0 %v3211_v49  ;;  %v2284_v14 = vor.u32 %v2605_v62, %v2281_v63 }
 0x194   :  { %v1225_v52 = vadd.f32 %v3931_v53, %v1176_v13  ;;  %1370 = vmatmul.bf16.gmra.mxu1 %v3211_v49 }
 0x195   :  { %1647 = vmatpush.bf16.msra.mxu2 %v2284_v14 }
 0x196   :  { %v1274_v41 = vadd.f32 %v1273_v32, %v1225_v52  ;;  %v2092_v32 = vor.u32 %v2557_v37, %v2089_v55  ;;  %v2257_v37 = vld [vmem:[%s4535_s1 + $0x1a8] sm:$0xf0] }
 0x197   :  { %v1275_v56 = vpop.f32.mrf.mxu2 }
 0x198   :  { %v1791_v29 = vmax.f32 %v1274_v41, %v3912_v1  ;;  %v4039_v59 = vpop.f32.mrf.mxu0  ;;  %1598 = vmatpush.bf16.msra.mxu3 %v2092_v32 }
 0x199   :  { %v1177_v58 = vpop.f32.mrf.mxu1  ;;  %v4041_v47 = vpop.f32.mrf.mxu3 }
 0x19a   :  { %1887 = vst [vmem:[%s4539_s4 + $0x130] sm:$0xff] %v1791_v29  ;;  %v1178_v53 = vadd.f32 %v1177_v58, %v3885_v46  ;;  %v2065_v29 = vld [vmem:[%s4535_s1 + $0x28] sm:$0xf0] }
 0x19c   :  { %v1227_v0 = vadd.f32 %v3955_v17, %v1178_v53  ;;  %1473 = vmatmul.bf16.gmra.mxu2 %v2892_v25 }
 0x19e   :  { %v1276_v7 = vadd.f32 %v1275_v56, %v1227_v0  ;;  %2507 = vmatmul.msk.bf16.gmra.mxu3 %vm832_vm0, %v2845_v3  ;;  %v2551_v56 = vld [vmem:[%s4535_s1 + $0x14] sm:$0xf] }
 0x19f   :  { %v1278_v35 = vpop.f32.mrf.mxu2  ;;  %v2068_v58 = vor.u32 %v2551_v56, %v2065_v29 }
 0x1a0   :  { %v1797_v10 = vmax.f32 %v1276_v7, %v3912_v1  ;;  %v4052_v5 = vpop.f32.mrf.mxu0 }
 0x1a1   :  { %v1180_v54 = vpop.f32.mrf.mxu1  ;;  %v4054_v23 = vpop.f32.mrf.mxu3  ;;  %1599 = vmatpush.bf16.msra.mxu3 %v2068_v58 }
 0x1a2   :  { %1893 = vst [vmem:[%s4539_s4 + $0x160] sm:$0xff] %v1797_v10  ;;  %v1181_v17 = vadd.f32 %v1180_v54, %v3885_v46 }
 0x1a3   :  { %1522 = vmatmul.bf16.gmra.mxu0 %v3248_v8 }
 0x1a4   :  { %v1230_v13 = vadd.f32 %v3968_v45, %v1181_v17  ;;  %1375 = vmatmul.bf16.gmra.mxu1 %v3248_v8  ;;  %v2599_v17 = vld [vmem:[%s4535_s1 + $0x194] sm:$0xf] }
 0x1a5   :  { %v2260_v55 = vor.u32 %v2599_v17, %v2257_v37 }
 0x1a6   :  { %v1279_v57 = vadd.f32 %v1278_v35, %v1230_v13 }
 0x1a7   :  { %v1280_v24 = vpop.f32.mrf.mxu2  ;;  %1648 = vmatpush.bf16.msra.mxu2 %v2260_v55 }
 0x1a8   :  { %v1803_v34 = vmax.f32 %v1279_v57, %v3912_v1  ;;  %v4076_v26 = vpop.f32.mrf.mxu0 }
 0x1a9   :  { %v1182_v52 = vpop.f32.mrf.mxu1  ;;  %v1241_v28 = vpop.f32.mrf.mxu3 }
 0x1aa   :  { %1899 = vst [vmem:[%s4539_s4 + $0x190] sm:$0xff] %v1803_v34  ;;  %v1183_v41 = vadd.f32 %v1182_v52, %v3885_v46 }
 0x1ac   :  { %v1232_v45 = vadd.f32 %v3992_v38, %v1183_v41  ;;  %1478 = vmatmul.bf16.gmra.mxu2 %v2990_v6 }
 0x1ae   :  { %v1281_v53 = vadd.f32 %v1280_v24, %v1232_v45  ;;  %2508 = vmatmul.msk.bf16.gmra.mxu3 %vm832_vm0, %v4571_v33 }
 0x1af   :  { %v1283_v0 = vpop.f32.mrf.mxu2 }
 0x1b0   :  { %v1809_v7 = vmax.f32 %v1281_v53, %v3912_v1  ;;  %v4093_v38 = vpop.f32.mrf.mxu0 }
 0x1b1   :  { %v1185_v35 = vpop.f32.mrf.mxu1  ;;  %v1244_v10 = vpop.f32.mrf.mxu3 }
 0x1b2   :  { %1905 = vst [vmem:[%s4539_s4 + $0x1c0] sm:$0xff] %v1809_v7  ;;  %v1186_v54 = vadd.f32 %v1185_v35, %v3885_v46 }
 0x1b3   :  { %1527 = vmatmul.bf16.gmra.mxu0 %v3302_v39 }
 0x1b4   :  { %v1235_v32 = vadd.f32 %v4017_v27, %v1186_v54  ;;  %1380 = vmatmul.bf16.gmra.mxu1 %v3302_v39 }
 0x1b6   :  { %v1284_v62 = vadd.f32 %v1283_v0, %v1235_v32 }
 0x1b7   :  { %v1285_v63 = vpop.f32.mrf.mxu2 }
 0x1b8   :  { %v1815_v13 = vmax.f32 %v1284_v62, %v3912_v1  ;;  %v4109_v14 = vpop.f32.mrf.mxu0 }
 0x1b9   :  { %v1187_v57 = vpop.f32.mrf.mxu1  ;;  %v1246_v24 = vpop.f32.mrf.mxu3 }
 0x1ba   :  { %1911 = vst [vmem:[%s4539_s4 + $0x1f0] sm:$0xff] %v1815_v13  ;;  %v1188_v34 = vadd.f32 %v1187_v57, %v3885_v46 }
 0x1bc   :  { %v1237_v52 = vadd.f32 %v4041_v47, %v1188_v34  ;;  %1483 = vmatmul.bf16.gmra.mxu2 %v4567_v11 }
 0x1be   :  { %v1286_v27 = vadd.f32 %v1285_v63, %v1237_v52  ;;  %1600 = vmatmul.bf16.vlgmr.msra.gmra.mxu3 %v2884_v20 }
 0x1bf   :  { %v1288_v41 = vpop.f32.mrf.mxu2 }
 0x1c0   :  { %v1821_v45 = vmax.f32 %v1286_v27, %v3912_v1  ;;  %v4119_v56 = vpop.f32.mrf.mxu0 }
 0x1c1   :  { %v1190_v29 = vpop.f32.mrf.mxu1  ;;  %v1405_v58 = vpop.f32.mrf.mxu3 }
 0x1c2   :  { %1917 = vst [vmem:[%s4539_s4 + $0x220] sm:$0xff] %v1821_v45  ;;  %v1191_v53 = vadd.f32 %v1190_v29, %v3885_v46 }
 0x1c3   :  { %1532 = vmatmul.bf16.gmra.mxu0 %v3351_v19 }
 0x1c4   :  { %v1240_v47 = vadd.f32 %v4054_v23, %v1191_v53  ;;  %1385 = vmatmul.bf16.gmra.mxu1 %v3351_v19 }
 0x1c6   :  { %v1289_v20 = vadd.f32 %v1288_v41, %v1240_v47 }
 0x1c7   :  { %v1290_v0 = vpop.f32.mrf.mxu2 }
 0x1c8   :  { %v1827_v7 = vmax.f32 %v1289_v20, %v3912_v1  ;;  %v4129_v35 = vpop.f32.mrf.mxu0 }
 0x1c9   :  { %v1192_v54 = vpop.f32.mrf.mxu1  ;;  %v1407_v17 = vpop.f32.mrf.mxu3 }
 0x1ca   :  { %1923 = vst [vmem:[%s4539_s4 + $0x250] sm:$0xff] %v1827_v7  ;;  %v1193_v37 = vadd.f32 %v1192_v54, %v3885_v46 }
 0x1cc   :  { %v1242_v55 = vadd.f32 %v1241_v28, %v1193_v37  ;;  %1488 = vmatmul.bf16.gmra.mxu2 %v4573_v40 }
 0x1ce   :  { %v1291_v23 = vadd.f32 %v1290_v0, %v1242_v55  ;;  %1605 = vmatmul.bf16.gmra.mxu3 %v2982_v2 }
 0x1cf   :  { %v1293_v32 = vpop.f32.mrf.mxu2 }
 0x1d0   :  { %v1833_v62 = vmax.f32 %v1291_v23, %v3912_v1  ;;  %v4138_v63 = vpop.f32.mrf.mxu0 }
 0x1d1   :  { %v1195_v13 = vpop.f32.mrf.mxu1  ;;  %v1410_v57 = vpop.f32.mrf.mxu3 }
 0x1d2   :  { %1929 = vst [vmem:[%s4539_s4 + $0x280] sm:$0xff] %v1833_v62  ;;  %v1196_v34 = vadd.f32 %v1195_v13, %v3885_v46 }
 0x1d3   :  { %1537 = vmatmul.bf16.gmra.mxu0 %v3392_v4 }
 0x1d4   :  { %v1245_v28 = vadd.f32 %v1244_v10, %v1196_v34  ;;  %1390 = vmatmul.bf16.gmra.mxu1 %v3392_v4  ;;  %v4156_v10 = vld [vmem:[%s4537_s2] sm:$0x3f] }
 0x1d5   :  { %v4159_v47 = vperm.slane %v4156_v10, 3  ;;  %v4163_v0 = vperm.slane %v4156_v10, 4 }
 0x1d6   :  { %v1294_v52 = vadd.f32 %v1293_v32, %v1245_v28 }
 0x1d7   :  { %v1295_v2 = vpop.f32.mrf.mxu2  ;;  %v1310_v28 = vadd.f32 %v3916_v51, %v4159_v47 }
 0x1d8   :  { %v1839_v27 = vmax.f32 %v1294_v52, %v3912_v1  ;;  %v4147_v41 = vpop.f32.mrf.mxu0 }
 0x1d9   :  { %v1197_v45 = vpop.f32.mrf.mxu1  ;;  %v1412_v29 = vpop.f32.mrf.mxu3 }
 0x1da   :  { %1935 = vst [vmem:[%s4539_s4 + $0x2b0] sm:$0xff] %v1839_v27  ;;  %v1198_v53 = vadd.f32 %v1197_v45, %v3885_v46  ;;  %v1308_v46 = vadd.f32 %v3892_v12, %v4159_v47 }
 0x1dc   :  { %v1247_v20 = vadd.f32 %v1246_v24, %v1198_v53  ;;  %1649 = vmatmul.bf16.vlgmr.msra.gmra.mxu2 %v4578_v16 }
 0x1de   :  { %v1296_v7 = vadd.f32 %v1295_v2, %v1247_v20  ;;  %1610 = vmatmul.bf16.gmra.mxu3 %v3041_v30  ;;  %v4176_v30 = vld [vmem:[%s4538_s3] sm:$0x3f] }
 0x1df   :  { %v1454_v54 = vpop.f32.mrf.mxu2  ;;  %v4179_v24 = vperm.slane %v4176_v30, 3 }
 0x1e0   :  { %v1845_v37 = vmax.f32 %v1296_v7, %v3912_v1  ;;  %v1455_v55 = vadd.f32 %v1454_v54, %v4163_v0  ;;  %v1503_v23 = vpop.f32.mrf.mxu0  ;;  %v1313_v7 = vadd.f32 %v3929_v36, %v4159_v47 }
 0x1e1   :  { %v1356_v32 = vpop.f32.mrf.mxu1  ;;  %v1415_v62 = vpop.f32.mrf.mxu3 }
 0x1e2   :  { %1941 = vst [vmem:[%s4539_s4 + $0x2e0] sm:$0xff] %v1845_v37  ;;  %v1357_v16 = vadd.f32 %v1356_v32, %v1308_v46  ;;  %v4181_v12 = vadd.f32 %v1503_v23, %v1455_v55  ;;  %v1315_v32 = vadd.f32 %v3953_v43, %v4159_v47 }
 0x1e3   :  { %2517 = vmatmul.msk.bf16.vlgmr.msra.gmra.mxu0 %vm832_vm0, %v2742_v21 }
 0x1e4   :  { %v1406_v1 = vadd.f32 %v1405_v58, %v1357_v16  ;;  %2509 = vmatmul.msk.bf16.vlgmr.msra.gmra.mxu1 %vm832_vm0, %v2742_v21 }
 0x1e6   :  { %v1756_v13 = vmax.f32 %v1406_v1, %v4179_v24 }
 0x1e7   :  { %v1456_v34 = vpop.f32.mrf.mxu2 }
 0x1e8   :  { %1852 = vst [vmem:[%s4539_s4 + $0x18] sm:$0xff] %v1756_v13  ;;  %v1457_v52 = vadd.f32 %v1456_v34, %v4163_v0  ;;  %v1505_v2 = vpop.f32.mrf.mxu0 }
 0x1e9   :  { %v1358_v27 = vpop.f32.mrf.mxu1  ;;  %v1417_v45 = vpop.f32.mrf.mxu3 }
 0x1ea   :  { %v1359_v53 = vadd.f32 %v1358_v27, %v1310_v28  ;;  %v4194_v58 = vadd.f32 %v1505_v2, %v1457_v52  ;;  %v1318_v2 = vadd.f32 %v3966_v9, %v4159_v47 }
 0x1ec   :  { %v1408_v20 = vadd.f32 %v1407_v17, %v1359_v53  ;;  %1654 = vmatmul.bf16.gmra.mxu2 %v4579_v22 }
 0x1ee   :  { %v1762_v21 = vmax.f32 %v1408_v20, %v4179_v24  ;;  %1615 = vmatmul.bf16.gmra.mxu3 %v3088_v50 }
 0x1ef   :  { %v1459_v51 = vpop.f32.mrf.mxu2 }
 0x1f0   :  { %1858 = vst [vmem:[%s4539_s4 + $0x48] sm:$0xff] %v1762_v21  ;;  %v1460_v54 = vadd.f32 %v1459_v51, %v4163_v0  ;;  %v1508_v46 = vpop.f32.mrf.mxu0 }
 0x1f1   :  { %v1361_v37 = vpop.f32.mrf.mxu1  ;;  %v1420_v55 = vpop.f32.mrf.mxu3 }
 0x1f2   :  { %v1362_v17 = vadd.f32 %v1361_v37, %v1313_v7  ;;  %v4205_v23 = vadd.f32 %v1508_v46, %v1460_v54  ;;  %v1320_v7 = vadd.f32 %v3990_v61, %v4159_v47 }
 0x1f3   :  { %2518 = vmatmul.msk.bf16.gmra.mxu0 %vm832_vm0, %v2828_v60 }
 0x1f4   :  { %v1411_v50 = vadd.f32 %v1410_v57, %v1362_v17  ;;  %2510 = vmatmul.msk.bf16.gmra.mxu1 %vm832_vm0, %v2828_v60 }
 0x1f6   :  { %v1768_v36 = vmax.f32 %v1411_v50, %v4179_v24 }
 0x1f7   :  { %v1461_v22 = vpop.f32.mrf.mxu2 }
 0x1f8   :  { %1864 = vst [vmem:[%s4539_s4 + $0x78] sm:$0xff] %v1768_v36  ;;  %v1462_v16 = vadd.f32 %v1461_v22, %v4163_v0  ;;  %v1510_v1 = vpop.f32.mrf.mxu0  ;;  %v1323_v22 = vadd.f32 %v4015_v15, %v4159_v47 }
 0x1f9   :  { %v1363_v13 = vpop.f32.mrf.mxu1  ;;  %v1422_v34 = vpop.f32.mrf.mxu3 }
 0x1fa   :  { %v1364_v28 = vadd.f32 %v1363_v13, %v1315_v32  ;;  %v4218_v57 = vadd.f32 %v1510_v1, %v1462_v16 }
 0x1fc   :  { %v1413_v52 = vadd.f32 %v1412_v29, %v1364_v28  ;;  %1659 = vmatmul.bf16.gmra.mxu2 %v4580_v42 }
 0x1fe   :  { %v1774_v60 = vmax.f32 %v1413_v52, %v4179_v24  ;;  %1620 = vmatmul.bf16.gmra.mxu3 %v2892_v25  ;;  %v1325_v52 = vadd.f32 %v4039_v59, %v4159_v47 }
 0x1ff   :  { %v1464_v43 = vpop.f32.mrf.mxu2 }
 0x200   :  { %1870 = vst [vmem:[%s4539_s4 + $0xa8] sm:$0xff] %v1774_v60  ;;  %v1465_v27 = vadd.f32 %v1464_v43, %v4163_v0  ;;  %v1513_v53 = vpop.f32.mrf.mxu0 }
 0x201   :  { %v1366_v20 = vpop.f32.mrf.mxu1  ;;  %v1425_v21 = vpop.f32.mrf.mxu3 }
 0x202   :  { %v1367_v29 = vadd.f32 %v1366_v20, %v1318_v2  ;;  %v4229_v51 = vadd.f32 %v1513_v53, %v1465_v27 }
 0x203   :  { %2519 = vmatmul.msk.bf16.gmra.mxu0 %vm832_vm0, %v2944_v48 }
 0x204   :  { %v1416_v25 = vadd.f32 %v1415_v62, %v1367_v29  ;;  %2511 = vmatmul.msk.bf16.gmra.mxu1 %vm832_vm0, %v2944_v48  ;;  %v1328_v29 = vadd.f32 %v4052_v5, %v4159_v47 }
 0x206   :  { %v1780_v9 = vmax.f32 %v1416_v25, %v4179_v24 }
 0x207   :  { %v1466_v42 = vpop.f32.mrf.mxu2 }
 0x208   :  { %1876 = vst [vmem:[%s4539_s4 + $0xd8] sm:$0xff] %v1780_v9  ;;  %v1467_v54 = vadd.f32 %v1466_v42, %v4163_v0  ;;  %v1515_v46 = vpop.f32.mrf.mxu0 }
 0x209   :  { %v1368_v37 = vpop.f32.mrf.mxu1  ;;  %v1427_v17 = vpop.f32.mrf.mxu3 }
 0x20a   :  { %v1369_v50 = vadd.f32 %v1368_v37, %v1320_v7  ;;  %v4242_v62 = vadd.f32 %v1515_v46, %v1467_v54  ;;  %v1330_v46 = vadd.f32 %v4076_v26, %v4159_v47 }
 0x20c   :  { %v1418_v36 = vadd.f32 %v1417_v45, %v1369_v50  ;;  %1664 = vmatmul.bf16.gmra.mxu2 %v3211_v49 }
 0x20e   :  { %v1786_v48 = vmax.f32 %v1418_v36, %v4179_v24  ;;  %1625 = vmatmul.bf16.gmra.mxu3 %v2990_v6 }
 0x20f   :  { %v1469_v61 = vpop.f32.mrf.mxu2 }
 0x210   :  { %1882 = vst [vmem:[%s4539_s4 + $0x108] sm:$0xff] %v1786_v48  ;;  %v1470_v32 = vadd.f32 %v1469_v61, %v4163_v0  ;;  %v1518_v16 = vpop.f32.mrf.mxu0 }
 0x211   :  { %v1371_v1 = vpop.f32.mrf.mxu1  ;;  %v1430_v13 = vpop.f32.mrf.mxu3 }
 0x212   :  { %v1372_v45 = vadd.f32 %v1371_v1, %v1323_v22  ;;  %v4253_v28 = vadd.f32 %v1518_v16, %v1470_v32  ;;  %v1333_v32 = vadd.f32 %v4093_v38, %v4159_v47 }
 0x213   :  { %2520 = vmatmul.msk.bf16.gmra.mxu0 %vm832_vm0, %v3018_v18 }
 0x214   :  { %v1421_v6 = vadd.f32 %v1420_v55, %v1372_v45  ;;  %2512 = vmatmul.msk.bf16.gmra.mxu1 %vm832_vm0, %v3018_v18 }
 0x216   :  { %v1792_v49 = vmax.f32 %v1421_v6, %v4179_v24 }
 0x217   :  { %v1471_v15 = vpop.f32.mrf.mxu2 }
 0x218   :  { %1888 = vst [vmem:[%s4539_s4 + $0x138] sm:$0xff] %v1792_v49  ;;  %v1472_v60 = vadd.f32 %v1471_v15, %v4163_v0  ;;  %v1520_v43 = vpop.f32.mrf.mxu0  ;;  %v1335_v15 = vadd.f32 %v4109_v14, %v4159_v47  ;;  %v1338_v14 = vadd.f32 %v4119_v56, %v4159_v47 }
 0x219   :  { %v1373_v2 = vpop.f32.mrf.mxu1  ;;  %v1432_v27 = vpop.f32.mrf.mxu3 }
 0x21a   :  { %v1374_v53 = vadd.f32 %v1373_v2, %v1325_v52  ;;  %v4266_v55 = vadd.f32 %v1520_v43, %v1472_v60 }
 0x21c   :  { %v1423_v20 = vadd.f32 %v1422_v34, %v1374_v53  ;;  %1669 = vmatmul.bf16.gmra.mxu2 %v3248_v8 }
 0x21e   :  { %v1798_v18 = vmax.f32 %v1423_v20, %v4179_v24  ;;  %1630 = vmatmul.bf16.gmra.mxu3 %v4567_v11 }
 0x21f   :  { %v1474_v59 = vpop.f32.mrf.mxu2 }
 0x220   :  { %1894 = vst [vmem:[%s4539_s4 + $0x168] sm:$0xff] %v1798_v18  ;;  %v1475_v25 = vadd.f32 %v1474_v59, %v4163_v0  ;;  %v1523_v9 = vpop.f32.mrf.mxu0 }
 0x221   :  { %v1376_v42 = vpop.f32.mrf.mxu1  ;;  %v1435_v7 = vpop.f32.mrf.mxu3 }
 0x222   :  { %v1377_v34 = vadd.f32 %v1376_v42, %v1328_v29  ;;  %v4277_v54 = vadd.f32 %v1523_v9, %v1475_v25 }
 0x223   :  { %2521 = vmatmul.msk.bf16.gmra.mxu0 %vm832_vm0, %v3071_v44 }
 0x224   :  { %v1426_v8 = vadd.f32 %v1425_v21, %v1377_v34  ;;  %2513 = vmatmul.msk.bf16.gmra.mxu1 %vm832_vm0, %v3071_v44 }
 0x226   :  { %v1804_v11 = vmax.f32 %v1426_v8, %v4179_v24  ;;  %v1340_v8 = vadd.f32 %v4129_v35, %v4159_v47  ;;  %v1343_v35 = vadd.f32 %v4138_v63, %v4159_v47 }
 0x227   :  { %v1476_v5 = vpop.f32.mrf.mxu2 }
 0x228   :  { %1900 = vst [vmem:[%s4539_s4 + $0x198] sm:$0xff] %v1804_v11  ;;  %v1477_v37 = vadd.f32 %v1476_v5, %v4163_v0  ;;  %v1525_v50 = vpop.f32.mrf.mxu0 }
 0x229   :  { %v1378_v36 = vpop.f32.mrf.mxu1  ;;  %v1437_v48 = vpop.f32.mrf.mxu3 }
 0x22a   :  { %v1379_v61 = vadd.f32 %v1378_v36, %v1330_v46  ;;  %v4290_v21 = vadd.f32 %v1525_v50, %v1477_v37 }
 0x22c   :  { %v1428_v22 = vadd.f32 %v1427_v17, %v1379_v61  ;;  %1674 = vmatmul.bf16.gmra.mxu2 %v3302_v39 }
 0x22e   :  { %v1810_v44 = vmax.f32 %v1428_v22, %v4179_v24  ;;  %1635 = vmatmul.bf16.gmra.mxu3 %v4573_v40 }
 0x22f   :  { %v1479_v26 = vpop.f32.mrf.mxu2 }
 0x230   :  { %1906 = vst [vmem:[%s4539_s4 + $0x1c8] sm:$0xff] %v1810_v44  ;;  %v1480_v16 = vadd.f32 %v1479_v26, %v4163_v0  ;;  %v1528_v1 = vpop.f32.mrf.mxu0 }
 0x231   :  { %v1381_v45 = vpop.f32.mrf.mxu1  ;;  %v1440_v6 = vpop.f32.mrf.mxu3 }
 0x232   :  { %v1382_v17 = vadd.f32 %v1381_v45, %v1333_v32  ;;  %v4301_v49 = vadd.f32 %v1528_v1, %v1480_v16  ;;  %v1345_v45 = vadd.f32 %v4147_v41, %v4159_v47 }
 0x233   :  { %2522 = vmatmul.msk.bf16.gmra.mxu0 %vm832_vm0, %v2764_v31 }
 0x234   :  { %v1431_v39 = vadd.f32 %v1430_v13, %v1382_v17  ;;  %2514 = vmatmul.msk.bf16.gmra.mxu1 %vm832_vm0, %v2764_v31  ;;  %v4360_v17 = vperm.slane %v4156_v10, 5 }
 0x236   :  { %v1816_v40 = vmax.f32 %v1431_v39, %v4179_v24 }
 0x237   :  { %v1481_v38 = vpop.f32.mrf.mxu2 }
 0x238   :  { %1912 = vst [vmem:[%s4539_s4 + $0x1f8] sm:$0xff] %v1816_v40  ;;  %v1482_v52 = vadd.f32 %v1481_v38, %v4163_v0  ;;  %v1530_v60 = vpop.f32.mrf.mxu0 }
 0x239   :  { %v1383_v43 = vpop.f32.mrf.mxu1  ;;  %v1442_v2 = vpop.f32.mrf.mxu3 }
 0x23a   :  { %v1384_v53 = vadd.f32 %v1383_v43, %v1335_v15  ;;  %v4314_v13 = vadd.f32 %v1530_v60, %v1482_v52  ;;  %v4371_v43 = vperm.slane %v4176_v30, 4 }
 0x23c   :  { %v1433_v20 = vadd.f32 %v1432_v27, %v1384_v53  ;;  %1679 = vmatmul.bf16.gmra.mxu2 %v3351_v19  ;;  %v4374_v53 = vperm.slane %v4176_v30, 5 }
 0x23e   :  { %v1822_v31 = vmax.f32 %v1433_v20, %v4179_v24 }
 0x23f   :  { %v1484_v18 = vpop.f32.mrf.mxu2 }
 0x240   :  { %1918 = vst [vmem:[%s4539_s4 + $0x228] sm:$0xff] %v1822_v31  ;;  %v1485_v59 = vadd.f32 %v1484_v18, %v4163_v0  ;;  %v1533_v29 = vpop.f32.mrf.mxu0 }
 0x241   :  { %v1386_v25 = vpop.f32.mrf.mxu1  ;;  %v1601_v9 = vpop.f32.mrf.mxu3 }
 0x242   :  { %v1387_v42 = vadd.f32 %v1386_v25, %v1338_v14  ;;  %v4324_v34 = vadd.f32 %v1533_v29, %v1485_v59  ;;  %v1602_v52 = vadd.f32 %v1601_v9, %v4360_v17 }
 0x243   :  { %2523 = vmatmul.msk.bf16.gmra.mxu0 %vm832_vm0, %v2845_v3 }
 0x244   :  { %v1436_v19 = vadd.f32 %v1435_v7, %v1387_v42  ;;  %2515 = vmatmul.msk.bf16.gmra.mxu1 %vm832_vm0, %v2845_v3 }
 0x246   :  { %v1828_v56 = vmax.f32 %v1436_v19, %v4179_v24 }
 0x247   :  { %v1486_v27 = vpop.f32.mrf.mxu2 }
 0x248   :  { %1924 = vst [vmem:[%s4539_s4 + $0x258] sm:$0xff] %v1828_v56  ;;  %v1487_v11 = vadd.f32 %v1486_v27, %v4163_v0  ;;  %v1535_v5 = vpop.f32.mrf.mxu0 }
 0x249   :  { %v1388_v46 = vpop.f32.mrf.mxu1  ;;  %v1603_v37 = vpop.f32.mrf.mxu3 }
 0x24a   :  { %v1389_v50 = vadd.f32 %v1388_v46, %v1340_v8  ;;  %v4337_v7 = vadd.f32 %v1535_v5, %v1487_v11  ;;  %v1604_v59 = vadd.f32 %v1603_v37, %v4360_v17 }
 0x24c   :  { %v1438_v36 = vadd.f32 %v1437_v48, %v1389_v50  ;;  %1684 = vmatmul.bf16.gmra.mxu2 %v3392_v4 }
 0x24e   :  { %v1834_v3 = vmax.f32 %v1438_v36, %v4179_v24 }
 0x24f   :  { %v1489_v61 = vpop.f32.mrf.mxu2 }
 0x250   :  { %1930 = vst [vmem:[%s4539_s4 + $0x288] sm:$0xff] %v1834_v3  ;;  %v1490_v22 = vadd.f32 %v1489_v61, %v4163_v0  ;;  %v1538_v44 = vpop.f32.mrf.mxu0 }
 0x251   :  { %v1391_v26 = vpop.f32.mrf.mxu1  ;;  %v1606_v32 = vpop.f32.mrf.mxu3 }
 0x252   :  { %v1392_v16 = vadd.f32 %v1391_v26, %v1343_v35  ;;  %v4347_v1 = vadd.f32 %v1538_v44, %v1490_v22  ;;  %v1607_v19 = vadd.f32 %v1606_v32, %v4360_v17 }
 0x253   :  { %2524 = vmatmul.msk.bf16.gmra.mxu0 %vm832_vm0, %v4571_v33 }
 0x254   :  { %v1441_v4 = vadd.f32 %v1440_v6, %v1392_v16  ;;  %2516 = vmatmul.msk.bf16.gmra.mxu1 %vm832_vm0, %v4571_v33 }
 0x256   :  { %v1840_v63 = vmax.f32 %v1441_v4, %v4179_v24 }
 0x257   :  { %v1491_v48 = vpop.f32.mrf.mxu2 }
 0x258   :  { %1936 = vst [vmem:[%s4539_s4 + $0x2b8] sm:$0xff] %v1840_v63  ;;  %v1492_v39 = vadd.f32 %v1491_v48, %v4163_v0  ;;  %v1540_v40 = vpop.f32.mrf.mxu0 }
 0x259   :  { %v1393_v6 = vpop.f32.mrf.mxu1  ;;  %v1608_v33 = vpop.f32.mrf.mxu3 }
 0x25a   :  { %v1394_v38 = vadd.f32 %v1393_v6, %v1345_v45  ;;  %v4363_v15 = vadd.f32 %v1540_v40, %v1492_v39  ;;  %v1609_v61 = vadd.f32 %v1608_v33, %v4360_v17 }
 0x25c   :  { %v1443_v60 = vadd.f32 %v1442_v2, %v1394_v38 }
 0x25e   :  { %v1846_v41 = vmax.f32 %v1443_v60, %v4179_v24 }
 0x25f   :  { %v1650_v47 = vpop.f32.mrf.mxu2 }
 0x260   :  { %1942 = vst [vmem:[%s4539_s4 + $0x2e8] sm:$0xff] %v1846_v41  ;;  %v1651_v10 = vadd.f32 %v1650_v47, %v1602_v52  ;;  %v1699_v0 = vpop.f32.mrf.mxu0 }
 0x261   :  { %v1552_v20 = vpop.f32.mrf.mxu1  ;;  %v1611_v14 = vpop.f32.mrf.mxu3 }
 0x262   :  { %v1553_v31 = vadd.f32 %v1552_v20, %v4181_v12  ;;  %v1700_v18 = vadd.f32 %v1699_v0, %v1651_v10  ;;  %v1612_v4 = vadd.f32 %v1611_v14, %v4360_v17 }
 0x264   :  { %v1757_v2 = vmax.f32 %v1553_v31, %v4371_v43  ;;  %v1758_v24 = vmax.f32 %v1700_v18, %v4374_v53 }
 0x266   :  { %1853 = vst [vmem:[%s4539_s4 + $0x20] sm:$0xff] %v1757_v2 }
 0x267   :  { %1854 = vst [vmem:[%s4539_s4 + $0x28] sm:$0xff] %v1758_v24  ;;  %v1652_v30 = vpop.f32.mrf.mxu2 }
 0x268   :  { %v1653_v29 = vadd.f32 %v1652_v30, %v1604_v59  ;;  %v1701_v25 = vpop.f32.mrf.mxu0 }
 0x269   :  { %v1554_v12 = vpop.f32.mrf.mxu1  ;;  %v1613_v11 = vpop.f32.mrf.mxu3 }
 0x26a   :  { %v1555_v9 = vadd.f32 %v1554_v12, %v4194_v58  ;;  %v1702_v42 = vadd.f32 %v1701_v25, %v1653_v29  ;;  %v1614_v41 = vadd.f32 %v1613_v11, %v4360_v17 }
 0x26c   :  { %v1763_v56 = vmax.f32 %v1555_v9, %v4371_v43  ;;  %v1764_v27 = vmax.f32 %v1702_v42, %v4374_v53 }
 0x26e   :  { %1859 = vst [vmem:[%s4539_s4 + $0x50] sm:$0xff] %v1763_v56 }
 0x26f   :  { %1860 = vst [vmem:[%s4539_s4 + $0x58] sm:$0xff] %v1764_v27  ;;  %v1655_v8 = vpop.f32.mrf.mxu2 }
 0x270   :  { %v1656_v5 = vadd.f32 %v1655_v8, %v1607_v19  ;;  %v1704_v46 = vpop.f32.mrf.mxu0 }
 0x271   :  { %v1557_v58 = vpop.f32.mrf.mxu1 }
 0x272   :  { %v1558_v37 = vadd.f32 %v1557_v58, %v4205_v23  ;;  %v1705_v50 = vadd.f32 %v1704_v46, %v1656_v5  ;;  %v1616_v23 = vpop.f32.mrf.mxu3 }
 0x273   :  { %v1617_v18 = vadd.f32 %v1616_v23, %v4360_v17 }
 0x274   :  { %v1769_v36 = vmax.f32 %v1558_v37, %v4371_v43  ;;  %v1770_v3 = vmax.f32 %v1705_v50, %v4374_v53 }
 0x276   :  { %1865 = vst [vmem:[%s4539_s4 + $0x80] sm:$0xff] %v1769_v36 }
 0x277   :  { %1866 = vst [vmem:[%s4539_s4 + $0x88] sm:$0xff] %v1770_v3  ;;  %v1657_v35 = vpop.f32.mrf.mxu2 }
 0x278   :  { %v1658_v22 = vadd.f32 %v1657_v35, %v1609_v61  ;;  %v1706_v44 = vpop.f32.mrf.mxu0 }
 0x279   :  { %v1559_v26 = vpop.f32.mrf.mxu1 }
 0x27a   :  { %v1560_v32 = vadd.f32 %v1559_v26, %v4218_v57  ;;  %v1707_v16 = vadd.f32 %v1706_v44, %v1658_v22  ;;  %v1618_v33 = vpop.f32.mrf.mxu3 }
 0x27b   :  { %v1619_v19 = vadd.f32 %v1618_v33, %v4360_v17 }
 0x27c   :  { %v1775_v63 = vmax.f32 %v1560_v32, %v4371_v43  ;;  %v1776_v48 = vmax.f32 %v1707_v16, %v4374_v53 }
 0x27e   :  { %1871 = vst [vmem:[%s4539_s4 + $0xb0] sm:$0xff] %v1775_v63 }
 0x27f   :  { %1872 = vst [vmem:[%s4539_s4 + $0xb8] sm:$0xff] %v1776_v48  ;;  %v1660_v45 = vpop.f32.mrf.mxu2 }
 0x280   :  { %v1661_v39 = vadd.f32 %v1660_v45, %v1612_v4  ;;  %v1709_v40 = vpop.f32.mrf.mxu0 }
 0x281   :  { %v1562_v6 = vpop.f32.mrf.mxu1 }
 0x282   :  { %v1563_v57 = vadd.f32 %v1562_v6, %v4229_v51  ;;  %v1710_v38 = vadd.f32 %v1709_v40, %v1661_v39  ;;  %v1621_v14 = vpop.f32.mrf.mxu3 }
 0x283   :  { %v1622_v58 = vadd.f32 %v1621_v14, %v4360_v17 }
 0x284   :  { %v1781_v52 = vmax.f32 %v1563_v57, %v4371_v43  ;;  %v1782_v60 = vmax.f32 %v1710_v38, %v4374_v53 }
 0x286   :  { %1877 = vst [vmem:[%s4539_s4 + $0xe0] sm:$0xff] %v1781_v52 }
 0x287   :  { %1878 = vst [vmem:[%s4539_s4 + $0xe8] sm:$0xff] %v1782_v60  ;;  %v1662_v47 = vpop.f32.mrf.mxu2 }
 0x288   :  { %v1663_v10 = vadd.f32 %v1662_v47, %v1614_v41  ;;  %v1711_v0 = vpop.f32.mrf.mxu0 }
 0x289   :  { %v1564_v51 = vpop.f32.mrf.mxu1 }
 0x28a   :  { %v1565_v20 = vadd.f32 %v1564_v51, %v4242_v62  ;;  %v1712_v31 = vadd.f32 %v1711_v0, %v1663_v10  ;;  %v1623_v27 = vpop.f32.mrf.mxu3 }
 0x28b   :  { %v1624_v32 = vadd.f32 %v1623_v27, %v4360_v17 }
 0x28c   :  { %v1787_v2 = vmax.f32 %v1565_v20, %v4371_v43  ;;  %v1788_v24 = vmax.f32 %v1712_v31, %v4374_v53 }
 0x28e   :  { %1883 = vst [vmem:[%s4539_s4 + $0x110] sm:$0xff] %v1787_v2 }
 0x28f   :  { %1884 = vst [vmem:[%s4539_s4 + $0x118] sm:$0xff] %v1788_v24  ;;  %v1665_v59 = vpop.f32.mrf.mxu2 }
 0x290   :  { %v1666_v30 = vadd.f32 %v1665_v59, %v1617_v18  ;;  %v1714_v29 = vpop.f32.mrf.mxu0 }
 0x291   :  { %v1567_v62 = vpop.f32.mrf.mxu1 }
 0x292   :  { %v1568_v25 = vadd.f32 %v1567_v62, %v4253_v28  ;;  %v1715_v12 = vadd.f32 %v1714_v29, %v1666_v30 }
 0x294   :  { %v1793_v9 = vmax.f32 %v1568_v25, %v4371_v43  ;;  %v1794_v42 = vmax.f32 %v1715_v12, %v4374_v53 }
 0x296   :  { %1889 = vst [vmem:[%s4539_s4 + $0x140] sm:$0xff] %v1793_v9 }
 0x297   :  { %1890 = vst [vmem:[%s4539_s4 + $0x148] sm:$0xff] %v1794_v42  ;;  %v1667_v56 = vpop.f32.mrf.mxu2 }
 0x298   :  { %v1668_v8 = vadd.f32 %v1667_v56, %v1619_v19  ;;  %v1716_v11 = vpop.f32.mrf.mxu0 }
 0x299   :  { %v1569_v28 = vpop.f32.mrf.mxu1 }
 0x29a   :  { %v1570_v5 = vadd.f32 %v1569_v28, %v4266_v55  ;;  %v1717_v46 = vadd.f32 %v1716_v11, %v1668_v8  ;;  %v1626_v55 = vpop.f32.mrf.mxu3 }
 0x29b   :  { %v1627_v40 = vadd.f32 %v1626_v55, %v4360_v17 }
 0x29c   :  { %v1799_v37 = vmax.f32 %v1570_v5, %v4371_v43  ;;  %v1800_v50 = vmax.f32 %v1717_v46, %v4374_v53 }
 0x29e   :  { %1895 = vst [vmem:[%s4539_s4 + $0x170] sm:$0xff] %v1799_v37 }
 0x29f   :  { %1896 = vst [vmem:[%s4539_s4 + $0x178] sm:$0xff] %v1800_v50  ;;  %v1670_v36 = vpop.f32.mrf.mxu2 }
 0x2a0   :  { %v1671_v3 = vadd.f32 %v1670_v36, %v1622_v58  ;;  %v1719_v61 = vpop.f32.mrf.mxu0 }
 0x2a1   :  { %v1572_v35 = vpop.f32.mrf.mxu1 }
 0x2a2   :  { %v1573_v22 = vadd.f32 %v1572_v35, %v4277_v54  ;;  %v1720_v44 = vadd.f32 %v1719_v61, %v1671_v3  ;;  %v1628_v39 = vpop.f32.mrf.mxu3 }
 0x2a3   :  { %v1629_v51 = vadd.f32 %v1628_v39, %v4360_v17 }
 0x2a4   :  { %v1805_v26 = vmax.f32 %v1573_v22, %v4371_v43  ;;  %v1806_v23 = vmax.f32 %v1720_v44, %v4374_v53 }
 0x2a6   :  { %1901 = vst [vmem:[%s4539_s4 + $0x1a0] sm:$0xff] %v1805_v26 }
 0x2a7   :  { %1902 = vst [vmem:[%s4539_s4 + $0x1a8] sm:$0xff] %v1806_v23  ;;  %v1672_v16 = vpop.f32.mrf.mxu2 }
 0x2a8   :  { %v1673_v4 = vadd.f32 %v1672_v16, %v1624_v32  ;;  %v1721_v63 = vpop.f32.mrf.mxu0 }
 0x2a9   :  { %v1574_v48 = vpop.f32.mrf.mxu1 }
 0x2aa   :  { %v1575_v54 = vadd.f32 %v1574_v48, %v4290_v21  ;;  %v1722_v45 = vadd.f32 %v1721_v63, %v1673_v4  ;;  %v1631_v0 = vpop.f32.mrf.mxu3 }
 0x2ab   :  { %v1632_v14 = vadd.f32 %v1631_v0, %v4360_v17 }
 0x2ac   :  { %v1811_v6 = vmax.f32 %v1575_v54, %v4371_v43  ;;  %v1812_v57 = vmax.f32 %v1722_v45, %v4374_v53 }
 0x2ae   :  { %1907 = vst [vmem:[%s4539_s4 + $0x1d0] sm:$0xff] %v1811_v6 }
 0x2af   :  { %1908 = vst [vmem:[%s4539_s4 + $0x1d8] sm:$0xff] %v1812_v57  ;;  %v1675_v38 = vpop.f32.mrf.mxu2 }
 0x2b0   :  { %v1676_v33 = vadd.f32 %v1675_v38, %v1627_v40  ;;  %v1724_v52 = vpop.f32.mrf.mxu0 }
 0x2b1   :  { %v1577_v21 = vpop.f32.mrf.mxu1 }
 0x2b2   :  { %v1578_v60 = vadd.f32 %v1577_v21, %v4301_v49  ;;  %v1725_v41 = vadd.f32 %v1724_v52, %v1676_v33  ;;  %v1633_v29 = vpop.f32.mrf.mxu3 }
 0x2b3   :  { %v1634_v27 = vadd.f32 %v1633_v29, %v4360_v17 }
 0x2b4   :  { %v1817_v47 = vmax.f32 %v1578_v60, %v4371_v43  ;;  %v1818_v10 = vmax.f32 %v1725_v41, %v4374_v53 }
 0x2b6   :  { %1913 = vst [vmem:[%s4539_s4 + $0x200] sm:$0xff] %v1817_v47 }
 0x2b7   :  { %1914 = vst [vmem:[%s4539_s4 + $0x208] sm:$0xff] %v1818_v10  ;;  %v1677_v20 = vpop.f32.mrf.mxu2 }
 0x2b8   :  { %v1678_v31 = vadd.f32 %v1677_v20, %v1629_v51  ;;  %v1726_v18 = vpop.f32.mrf.mxu0 }
 0x2b9   :  { %v1579_v49 = vpop.f32.mrf.mxu1 }
 0x2ba   :  { %v1580_v2 = vadd.f32 %v1579_v49, %v4314_v13  ;;  %v1727_v24 = vadd.f32 %v1726_v18, %v1678_v31  ;;  %v1636_v5 = vpop.f32.mrf.mxu3 }
 0x2bb   :  { %v1637_v37 = vadd.f32 %v1636_v5, %v4360_v17 }
 0x2bc   :  { %v1823_v59 = vmax.f32 %v1580_v2, %v4371_v43  ;;  %v1824_v30 = vmax.f32 %v1727_v24, %v4374_v53 }
 0x2be   :  { %1919 = vst [vmem:[%s4539_s4 + $0x230] sm:$0xff] %v1823_v59 }
 0x2bf   :  { %1920 = vst [vmem:[%s4539_s4 + $0x238] sm:$0xff] %v1824_v30  ;;  %v1680_v62 = vpop.f32.mrf.mxu2 }
 0x2c0   :  { %v1681_v25 = vadd.f32 %v1680_v62, %v1632_v14  ;;  %v1729_v12 = vpop.f32.mrf.mxu0 }
 0x2c1   :  { %v1582_v13 = vpop.f32.mrf.mxu1 }
 0x2c2   :  { %v1583_v9 = vadd.f32 %v1582_v13, %v4324_v34  ;;  %v1730_v42 = vadd.f32 %v1729_v12, %v1681_v25  ;;  %v1638_v44 = vpop.f32.mrf.mxu3 }
 0x2c3   :  { %v1639_v32 = vadd.f32 %v1638_v44, %v4360_v17 }
 0x2c4   :  { %v1829_v19 = vmax.f32 %v1583_v9, %v4371_v43  ;;  %v1830_v56 = vmax.f32 %v1730_v42, %v4374_v53 }
 0x2c6   :  { %1925 = vst [vmem:[%s4539_s4 + $0x260] sm:$0xff] %v1829_v19 }
 0x2c7   :  { %1926 = vst [vmem:[%s4539_s4 + $0x268] sm:$0xff] %v1830_v56  ;;  %v1682_v8 = vpop.f32.mrf.mxu2 }
 0x2c8   :  { %v1683_v11 = vadd.f32 %v1682_v8, %v1634_v27  ;;  %v1731_v28 = vpop.f32.mrf.mxu0 }
 0x2c9   :  { %v1584_v34 = vpop.f32.mrf.mxu1 }
 0x2ca   :  { %v1585_v46 = vadd.f32 %v1584_v34, %v4337_v7  ;;  %v1732_v58 = vadd.f32 %v1731_v28, %v1683_v11 }
 0x2cc   :  { %v1835_v50 = vmax.f32 %v1585_v46, %v4371_v43  ;;  %v1836_v36 = vmax.f32 %v1732_v58, %v4374_v53 }
 0x2ce   :  { %1931 = vst [vmem:[%s4539_s4 + $0x290] sm:$0xff] %v1835_v50 }
 0x2cf   :  { %1932 = vst [vmem:[%s4539_s4 + $0x298] sm:$0xff] %v1836_v36  ;;  %v1685_v3 = vpop.f32.mrf.mxu2 }
 0x2d0   :  { %v1686_v61 = vadd.f32 %v1685_v3, %v1637_v37  ;;  %v1734_v35 = vpop.f32.mrf.mxu0 }
 0x2d1   :  { %v1587_v55 = vpop.f32.mrf.mxu1 }
 0x2d2   :  { %v1588_v7 = vadd.f32 %v1587_v55, %v4347_v1  ;;  %v1735_v22 = vadd.f32 %v1734_v35, %v1686_v61 }
 0x2d4   :  { %v1841_v26 = vmax.f32 %v1588_v7, %v4371_v43  ;;  %v1842_v23 = vmax.f32 %v1735_v22, %v4374_v53 }
 0x2d6   :  { %1937 = vst [vmem:[%s4539_s4 + $0x2c0] sm:$0xff] %v1841_v26 }
 0x2d7   :  { %1938 = vst [vmem:[%s4539_s4 + $0x2c8] sm:$0xff] %v1842_v23  ;;  %v1687_v16 = vpop.f32.mrf.mxu2 }
 0x2d8   :  { %v1688_v4 = vadd.f32 %v1687_v16, %v1639_v32  ;;  %v1736_v63 = vpop.f32.mrf.mxu0 }
 0x2d9   :  { %v1589_v1 = vpop.f32.mrf.mxu1 }
 0x2da   :  { %v1590_v48 = vadd.f32 %v1589_v1, %v4363_v15  ;;  %v1737_v54 = vadd.f32 %v1736_v63, %v1688_v4 }
 0x2dc   :  { %v1847_v45 = vmax.f32 %v1590_v48, %v4371_v43  ;;  %v1848_v39 = vmax.f32 %v1737_v54, %v4374_v53 }
 0x2de   :  { %1943 = vst [vmem:[%s4539_s4 + $0x2f0] sm:$0xff] %v1847_v45 }
 0x2df   :  { %1944 = vst [vmem:[%s4539_s4 + $0x2f8] sm:$0xff] %v1848_v39 }

// kernel: guidance_forward.21
= control target key start
LH: loop header
LB: loop body
LE: loop exit
PB: predicated region body
PF: predicated region fallthrough
CT: control target
= control target key end

     0   :  { %vm204_vm0 = vcmask 261120   ;;  %s551_s1 = inlined_call_operand.vmem [shape: bf16[288,128], index: 1, kind: input, shape index: {}]   ;;  %s552_s0 = inlined_call_operand.vmem [shape: bf16[32,288], index: 0, kind: input, shape index: {}]   ;;  %s553_s2 = inlined_call_operand.vmem [shape: f32[1,128], index: 2, kind: input, shape index: {}]   ;;  %s554_s3 = inlined_call_operand.vmem [shape: f32[1,128], index: 3, kind: input, shape index: {}]   ;;  %s555_s4 = inlined_call_operand.vmem [shape: f32[32,128], index: 4, kind: output, shape index: {}]  }
   0x1   :  { %v395_v0 = vld [vmem:[%s551_s1 + $0x38] sm:$0xff]  ;;  %v394_v2 = vld [vmem:[%s551_s1 + $0x30] sm:$0xff]  ;;  %v405_v3 = vld [vmem:[%s551_s1 + $0x88] sm:$0xff] }
   0x2   :  { %v403_v1 = vld [vmem:[%s551_s1 + $0x78] sm:$0xff]  ;;  %211 = vmatpush.bf16.msra.mxu0 %v395_v0  ;;  %406 = vmatpush.bf16.msra.mxu3 %v395_v0  ;;  %v402_v4 = vld [vmem:[%s551_s1 + $0x70] sm:$0xff]  ;;  %v404_v5 = vld [vmem:[%s551_s1 + $0x80] sm:$0xff] }
   0x3   :  { %230 = vmatpush.bf16.msra.mxu1 %v403_v1  ;;  %255 = vmatpush.bf16.msra.mxu2 %v405_v3  ;;  %v294_v6 = vld [vmem:[%s552_s0 + $0x8] sm:$0xf]  ;;  %v384_v7 = vld [vmem:[%s552_s0 + $0x10] sm:$0xf0]  ;;  %v392_v11 = vld [vmem:[%s551_s1 + $0x20] sm:$0xff] }
   0x4   :  { %v393_v8 = vld [vmem:[%s551_s1 + $0x28] sm:$0xff]  ;;  %v295_v10 = vor.u32 %v384_v7, %v294_v6  ;;  %v400_v12 = vld [vmem:[%s551_s1 + $0x60] sm:$0xff]  ;;  %v391_v13 = vld [vmem:[%s551_s1 + $0x18] sm:$0xff] }
   0x5   :  { %v401_v9 = vld [vmem:[%s551_s1 + $0x68] sm:$0xff]  ;;  %v399_v14 = vld [vmem:[%s551_s1 + $0x58] sm:$0xff]  ;;  %v390_v15 = vld [vmem:[%s551_s1 + $0x10] sm:$0xff] }
   0x6   :  { %212 = vmatpush.bf16.msra.mxu0 %v394_v2  ;;  %407 = vmatpush.bf16.msra.mxu3 %v394_v2  ;;  %v398_v16 = vld [vmem:[%s551_s1 + $0x50] sm:$0xff]  ;;  %v306_v17 = vld [vmem:[%s552_s0 + $0x20] sm:$0xf]  ;;  %v387_v18 = vld [vmem:[%s552_s0 + $0x28] sm:$0xf0] }
   0x7   :  { %231 = vmatpush.bf16.msra.mxu1 %v402_v4  ;;  %256 = vmatpush.bf16.msra.mxu2 %v404_v5  ;;  %v389_v19 = vld [vmem:[%s551_s1 + $0x8] sm:$0xff]  ;;  %v307_v21 = vor.u32 %v387_v18, %v306_v17  ;;  %v388_v22 = vld [vmem:[%s551_s1] sm:$0xff]  ;;  %v298_v25 = vld [vmem:[%s552_s0 + $0x18] sm:$0xf] }
   0x8   :  { %v397_v20 = vld [vmem:[%s551_s1 + $0x48] sm:$0xff]  ;;  %v286_v23 = vld [vmem:[%s552_s0] sm:$0xf]  ;;  %v386_v26 = vld [vmem:[%s552_s0 + $0x20] sm:$0xf0] }
   0x9   :  { %v383_v24 = vld [vmem:[%s552_s0 + $0x8] sm:$0xf0]  ;;  %v396_v27 = vld [vmem:[%s551_s1 + $0x40] sm:$0xff]  ;;  %v288_v29 = vld [vmem:[%s552_s0 + $0xc] sm:$0xf0]  ;;  %v299_v31 = vor.u32 %v386_v26, %v298_v25 }
   0xa   :  { %213 = vmatpush.bf16.msra.mxu0 %v393_v8  ;;  %408 = vmatpush.bf16.msra.mxu3 %v393_v8  ;;  %v382_v28 = vld [vmem:[%s552_s0 + $0x4] sm:$0xf]  ;;  %v287_v30 = vor.u32 %v383_v24, %v286_v23  ;;  %v385_v33 = vld [vmem:[%s552_s0 + $0x1c] sm:$0xf]  ;;  %v300_v34 = vld [vmem:[%s552_s0 + $0x24] sm:$0xf0] }
   0xb   :  { %232 = vmatpush.bf16.msra.mxu1 %v401_v9  ;;  %380 = vmatmul.msk.bf16.vlgmr.msra.gmra.mxu2 %vm204_vm0, %v295_v10  ;;  %v291_v32 = vor.u32 %v382_v28, %v288_v29  ;;  %v303_v35 = vor.u32 %v385_v33, %v300_v34  ;;  %v414_v37 = vld [vmem:[%s553_s2] ss:$0 sm:$0xff] }
   0xc   :  { %v415_v42 = vld [vmem:[%s554_s3] ss:$0 sm:$0xff] }
   0xe   :  { %214 = vmatpush.bf16.msra.mxu0 %v392_v11  ;;  %409 = vmatpush.bf16.msra.mxu3 %v392_v11 }
   0xf   :  { %233 = vmatpush.bf16.msra.mxu1 %v400_v12 }
  0x12   :  { %215 = vmatpush.bf16.msra.mxu0 %v391_v13  ;;  %410 = vmatpush.bf16.msra.mxu3 %v391_v13 }
  0x13   :  { %234 = vmatpush.bf16.msra.mxu1 %v399_v14 }
  0x16   :  { %216 = vmatpush.bf16.msra.mxu0 %v390_v15  ;;  %411 = vmatpush.bf16.msra.mxu3 %v390_v15 }
  0x17   :  { %235 = vmatpush.bf16.msra.mxu1 %v398_v16 }
  0x1a   :  { %217 = vmatpush.bf16.msra.mxu0 %v389_v19  ;;  %412 = vmatpush.bf16.msra.mxu3 %v389_v19 }
  0x1b   :  { %236 = vmatpush.bf16.msra.mxu1 %v397_v20  ;;  %381 = vmatmul.msk.bf16.gmra.mxu2 %vm204_vm0, %v307_v21 }
  0x1e   :  { %218 = vmatpush.bf16.msra.mxu0 %v388_v22  ;;  %413 = vmatpush.bf16.msra.mxu3 %v388_v22 }
  0x1f   :  { %237 = vmatpush.bf16.msra.mxu1 %v396_v27 }
  0x21   :  { %219 = vmatmul.bf16.vlgmr.msra.gmra.mxu0 %v287_v30  ;;  %224 = vmatmul.bf16.vlgmr.msra.gmra.mxu3 %v299_v31 }
  0x22   :  { %238 = vmatmul.bf16.vlgmr.msra.gmra.mxu1 %v291_v32 }
  0x32   :  { %243 = vmatmul.bf16.gmra.mxu1 %v303_v35 }
  0x8e   :  { %v258_v36 = vpop.f32.mrf.mxu2 }
  0x96   :  { %v260_v45 = vpop.f32.mrf.mxu2 }
  0x9e   :  { %v220_v38 = vpop.f32.mrf.mxu0  ;;  %v263_v54 = vpop.f32.mrf.mxu2 }
  0x9f   :  { %v221_v39 = vadd.f32 %v414_v37, %v220_v38  ;;  %v239_v40 = vpop.f32.mrf.mxu1 }
  0xa1   :  { %v240_v41 = vadd.f32 %v239_v40, %v221_v39 }
  0xa3   :  { %v259_v43 = vadd.f32 %v258_v36, %v240_v41 }
  0xa4   :  { %v225_v49 = vpop.f32.mrf.mxu3 }
  0xa5   :  { %v272_v44 = vmax.f32 %v259_v43, %v415_v42  ;;  %v226_v52 = vadd.f32 %v414_v37, %v225_v49 }
  0xa6   :  { %v222_v46 = vpop.f32.mrf.mxu0  ;;  %v265_v63 = vpop.f32.mrf.mxu2 }
  0xa7   :  { %276 = vst [vmem:[%s555_s4] sm:$0xff] %v272_v44  ;;  %v223_v47 = vadd.f32 %v414_v37, %v222_v46  ;;  %v241_v48 = vpop.f32.mrf.mxu1 }
  0xa9   :  { %v242_v50 = vadd.f32 %v241_v48, %v223_v47 }
  0xab   :  { %v261_v51 = vadd.f32 %v260_v45, %v242_v50 }
  0xac   :  { %v227_v58 = vpop.f32.mrf.mxu3 }
  0xad   :  { %v273_v53 = vmax.f32 %v261_v51, %v415_v42  ;;  %v228_v60 = vadd.f32 %v414_v37, %v227_v58 }
  0xaf   :  { %277 = vst [vmem:[%s555_s4 + $0x8] sm:$0xff] %v273_v53  ;;  %v244_v55 = vpop.f32.mrf.mxu1 }
  0xb0   :  { %v245_v56 = vadd.f32 %v244_v55, %v226_v52 }
  0xb2   :  { %v264_v57 = vadd.f32 %v263_v54, %v245_v56 }
  0xb4   :  { %v274_v59 = vmax.f32 %v264_v57, %v415_v42 }
  0xb6   :  { %278 = vst [vmem:[%s555_s4 + $0x10] sm:$0xff] %v274_v59 }
  0xb7   :  { %v246_v61 = vpop.f32.mrf.mxu1 }
  0xb8   :  { %v247_v62 = vadd.f32 %v246_v61, %v228_v60 }
  0xba   :  { %v266_v0 = vadd.f32 %v265_v63, %v247_v62 }
  0xbc   :  { %v275_v1 = vmax.f32 %v266_v0, %v415_v42 }
  0xbe   :  { %279 = vst [vmem:[%s555_s4 + $0x18] sm:$0xff] %v275_v1 }

// kernel: guidance_forward.22
= control target key start
LH: loop header
LB: loop body
LE: loop exit
PB: predicated region body
PF: predicated region fallthrough
CT: control target
= control target key end

     0   :  { %vm284_vm0 = vcmask 392192   ;;  %s736_s1 = inlined_call_operand.vmem [shape: bf16[432,128], index: 1, kind: input, shape index: {}]   ;;  %s737_s0 = inlined_call_operand.vmem [shape: bf16[32,432], index: 0, kind: input, shape index: {}]   ;;  %s738_s2 = inlined_call_operand.vmem [shape: f32[1,128], index: 2, kind: input, shape index: {}]   ;;  %s739_s3 = inlined_call_operand.vmem [shape: f32[1,128], index: 3, kind: input, shape index: {}]   ;;  %s740_s4 = inlined_call_operand.vmem [shape: f32[32,128], index: 4, kind: output, shape index: {}]  }
   0x1   :  { %v540_v0 = vld [vmem:[%s736_s1 + $0x38] sm:$0xff]  ;;  %v539_v3 = vld [vmem:[%s736_s1 + $0x30] sm:$0xff]  ;;  %v538_v7 = vld [vmem:[%s736_s1 + $0x28] sm:$0xff] }
   0x2   :  { %v548_v1 = vld [vmem:[%s736_s1 + $0x78] sm:$0xff]  ;;  %291 = vmatpush.bf16.msra.mxu0 %v540_v0  ;;  %v547_v4 = vld [vmem:[%s736_s1 + $0x70] sm:$0xff]  ;;  %v546_v8 = vld [vmem:[%s736_s1 + $0x68] sm:$0xff] }
   0x3   :  { %v556_v2 = vld [vmem:[%s736_s1 + $0xb8] sm:$0xff]  ;;  %310 = vmatpush.bf16.msra.mxu1 %v548_v1  ;;  %v555_v5 = vld [vmem:[%s736_s1 + $0xb0] sm:$0xff]  ;;  %v554_v9 = vld [vmem:[%s736_s1 + $0xa8] sm:$0xff] }
   0x4   :  { %329 = vmatpush.bf16.msra.mxu2 %v556_v2  ;;  %v559_v6 = vld [vmem:[%s736_s1 + $0xd0] sm:$0xff]  ;;  %v558_v10 = vld [vmem:[%s736_s1 + $0xc8] sm:$0xff]  ;;  %v537_v11 = vld [vmem:[%s736_s1 + $0x20] sm:$0xff] }
   0x5   :  { %353 = vmatpush.bf16.msra.mxu3 %v559_v6  ;;  %v545_v12 = vld [vmem:[%s736_s1 + $0x60] sm:$0xff]  ;;  %v526_v15 = vld [vmem:[%s737_s0 + $0xc] sm:$0xf]  ;;  %v395_v16 = vld [vmem:[%s737_s0 + $0x18] sm:$0xf0] }
   0x6   :  { %292 = vmatpush.bf16.msra.mxu0 %v539_v3  ;;  %v553_v13 = vld [vmem:[%s736_s1 + $0xa0] sm:$0xff]  ;;  %v536_v17 = vld [vmem:[%s736_s1 + $0x18] sm:$0xff]  ;;  %v398_v20 = vor.u32 %v526_v15, %v395_v16  ;;  %v535_v21 = vld [vmem:[%s736_s1 + $0x10] sm:$0xff] }
   0x7   :  { %311 = vmatpush.bf16.msra.mxu1 %v547_v4  ;;  %v557_v14 = vld [vmem:[%s736_s1 + $0xc0] sm:$0xff]  ;;  %v544_v18 = vld [vmem:[%s736_s1 + $0x58] sm:$0xff]  ;;  %v543_v22 = vld [vmem:[%s736_s1 + $0x50] sm:$0xff] }
   0x8   :  { %330 = vmatpush.bf16.msra.mxu2 %v555_v5  ;;  %v552_v19 = vld [vmem:[%s736_s1 + $0x98] sm:$0xff]  ;;  %v551_v23 = vld [vmem:[%s736_s1 + $0x90] sm:$0xff]  ;;  %v534_v24 = vld [vmem:[%s736_s1 + $0x8] sm:$0xff] }
   0x9   :  { %354 = vmatpush.bf16.msra.mxu3 %v558_v10  ;;  %v542_v25 = vld [vmem:[%s736_s1 + $0x48] sm:$0xff]  ;;  %v533_v27 = vld [vmem:[%s736_s1] sm:$0xff]  ;;  %v527_v30 = vld [vmem:[%s737_s0 + $0xc] sm:$0xf0] }
   0xa   :  { %293 = vmatpush.bf16.msra.mxu0 %v538_v7  ;;  %v550_v26 = vld [vmem:[%s736_s1 + $0x88] sm:$0xff]  ;;  %v541_v28 = vld [vmem:[%s736_s1 + $0x40] sm:$0xff]  ;;  %v387_v32 = vld [vmem:[%s737_s0 + $0x10] sm:$0xf0] }
   0xb   :  { %312 = vmatpush.bf16.msra.mxu1 %v546_v8  ;;  %v385_v29 = vld [vmem:[%s737_s0] sm:$0xf]  ;;  %v525_v31 = vld [vmem:[%s737_s0 + $0x4] sm:$0xf]  ;;  %v393_v34 = vld [vmem:[%s737_s0 + $0x8] sm:$0xf] }
   0xc   :  { %331 = vmatpush.bf16.msra.mxu2 %v554_v9  ;;  %v549_v33 = vld [vmem:[%s736_s1 + $0x80] sm:$0xff]  ;;  %v528_v35 = vld [vmem:[%s737_s0 + $0x14] sm:$0xf0]  ;;  %v530_v36 = vld [vmem:[%s737_s0 + $0x2c] sm:$0xf]  ;;  %v386_v38 = vor.u32 %v527_v30, %v385_v29  ;;  %v390_v39 = vor.u32 %v525_v31, %v387_v32 }
   0xd   :  { %355 = vmatpush.bf16.msra.mxu3 %v557_v14  ;;  %v411_v37 = vld [vmem:[%s737_s0 + $0x38] sm:$0xf0]  ;;  %v394_v40 = vor.u32 %v528_v35, %v393_v34  ;;  %v401_v42 = vld [vmem:[%s737_s0 + $0x20] sm:$0xf]  ;;  %v531_v43 = vld [vmem:[%s737_s0 + $0x2c] sm:$0xf0] }
   0xe   :  { %294 = vmatpush.bf16.msra.mxu0 %v537_v11  ;;  %v414_v41 = vor.u32 %v530_v36, %v411_v37  ;;  %v529_v44 = vld [vmem:[%s737_s0 + $0x24] sm:$0xf]  ;;  %v403_v45 = vld [vmem:[%s737_s0 + $0x30] sm:$0xf0]  ;;  %v409_v46 = vld [vmem:[%s737_s0 + $0x28] sm:$0xf]  ;;  %v402_v48 = vor.u32 %v531_v43, %v401_v42 }
   0xf   :  { %313 = vmatpush.bf16.msra.mxu1 %v545_v12  ;;  %v532_v47 = vld [vmem:[%s737_s0 + $0x34] sm:$0xf0]  ;;  %v406_v49 = vor.u32 %v529_v44, %v403_v45  ;;  %v560_v51 = vld [vmem:[%s738_s2] ss:$0 sm:$0xff] }
  0x10   :  { %332 = vmatpush.bf16.msra.mxu2 %v553_v13  ;;  %523 = vmatmul.msk.bf16.vlgmr.msra.gmra.mxu3 %vm284_vm0, %v398_v20  ;;  %v410_v50 = vor.u32 %v532_v47, %v409_v46  ;;  %v561_v59 = vld [vmem:[%s739_s3] ss:$0 sm:$0xff] }
  0x12   :  { %295 = vmatpush.bf16.msra.mxu0 %v536_v17 }
  0x13   :  { %314 = vmatpush.bf16.msra.mxu1 %v544_v18 }
  0x14   :  { %333 = vmatpush.bf16.msra.mxu2 %v552_v19 }
  0x16   :  { %296 = vmatpush.bf16.msra.mxu0 %v535_v21 }
  0x17   :  { %315 = vmatpush.bf16.msra.mxu1 %v543_v22 }
  0x18   :  { %334 = vmatpush.bf16.msra.mxu2 %v551_v23 }
  0x1a   :  { %297 = vmatpush.bf16.msra.mxu0 %v534_v24 }
  0x1b   :  { %316 = vmatpush.bf16.msra.mxu1 %v542_v25 }
  0x1c   :  { %335 = vmatpush.bf16.msra.mxu2 %v550_v26 }
  0x1e   :  { %298 = vmatpush.bf16.msra.mxu0 %v533_v27 }
  0x1f   :  { %317 = vmatpush.bf16.msra.mxu1 %v541_v28 }
  0x20   :  { %336 = vmatpush.bf16.msra.mxu2 %v549_v33  ;;  %524 = vmatmul.msk.bf16.gmra.mxu3 %vm284_vm0, %v414_v41 }
  0x21   :  { %299 = vmatmul.bf16.vlgmr.msra.gmra.mxu0 %v386_v38 }
  0x22   :  { %318 = vmatmul.bf16.vlgmr.msra.gmra.mxu1 %v390_v39 }
  0x23   :  { %337 = vmatmul.bf16.vlgmr.msra.gmra.mxu2 %v394_v40 }
  0x31   :  { %304 = vmatmul.bf16.gmra.mxu0 %v402_v48 }
  0x32   :  { %323 = vmatmul.bf16.gmra.mxu1 %v406_v49 }
  0x33   :  { %342 = vmatmul.bf16.gmra.mxu2 %v410_v50 }
  0x93   :  { %v357_v55 = vpop.f32.mrf.mxu3 }
  0x9b   :  { %v359_v1 = vpop.f32.mrf.mxu3 }
  0x9e   :  { %v300_v52 = vpop.f32.mrf.mxu0 }
  0x9f   :  { %v319_v53 = vpop.f32.mrf.mxu1  ;;  %v301_v54 = vadd.f32 %v560_v51, %v300_v52 }
  0xa1   :  { %v320_v56 = vadd.f32 %v319_v53, %v301_v54 }
  0xa3   :  { %v362_v11 = vpop.f32.mrf.mxu3 }
  0xa6   :  { %v338_v57 = vpop.f32.mrf.mxu2  ;;  %v302_v60 = vpop.f32.mrf.mxu0 }
  0xa7   :  { %v339_v58 = vadd.f32 %v338_v57, %v320_v56  ;;  %v321_v61 = vpop.f32.mrf.mxu1  ;;  %v303_v63 = vadd.f32 %v560_v51, %v302_v60 }
  0xa9   :  { %v358_v62 = vadd.f32 %v357_v55, %v339_v58  ;;  %v322_v2 = vadd.f32 %v321_v61, %v303_v63 }
  0xab   :  { %v371_v0 = vmax.f32 %v358_v62, %v561_v59  ;;  %v364_v22 = vpop.f32.mrf.mxu3 }
  0xad   :  { %375 = vst [vmem:[%s740_s4] sm:$0xff] %v371_v0 }
  0xae   :  { %v340_v3 = vpop.f32.mrf.mxu2  ;;  %v305_v5 = vpop.f32.mrf.mxu0 }
  0xaf   :  { %v341_v4 = vadd.f32 %v340_v3, %v322_v2  ;;  %v306_v6 = vadd.f32 %v560_v51, %v305_v5  ;;  %v324_v8 = vpop.f32.mrf.mxu1 }
  0xb1   :  { %v360_v7 = vadd.f32 %v359_v1, %v341_v4  ;;  %v325_v10 = vadd.f32 %v324_v8, %v306_v6 }
  0xb3   :  { %v372_v9 = vmax.f32 %v360_v7, %v561_v59 }
  0xb5   :  { %376 = vst [vmem:[%s740_s4 + $0x8] sm:$0xff] %v372_v9 }
  0xb6   :  { %v343_v12 = vpop.f32.mrf.mxu2  ;;  %v307_v14 = vpop.f32.mrf.mxu0 }
  0xb7   :  { %v344_v13 = vadd.f32 %v343_v12, %v325_v10  ;;  %v308_v16 = vadd.f32 %v560_v51, %v307_v14  ;;  %v326_v18 = vpop.f32.mrf.mxu1 }
  0xb9   :  { %v363_v15 = vadd.f32 %v362_v11, %v344_v13  ;;  %v327_v19 = vadd.f32 %v326_v18, %v308_v16 }
  0xbb   :  { %v373_v17 = vmax.f32 %v363_v15, %v561_v59 }
  0xbd   :  { %377 = vst [vmem:[%s740_s4 + $0x10] sm:$0xff] %v373_v17 }
  0xbe   :  { %v345_v20 = vpop.f32.mrf.mxu2 }
  0xbf   :  { %v346_v21 = vadd.f32 %v345_v20, %v327_v19 }
  0xc1   :  { %v365_v23 = vadd.f32 %v364_v22, %v346_v21 }
  0xc3   :  { %v374_v24 = vmax.f32 %v365_v23, %v561_v59 }
  0xc5   :  { %378 = vst [vmem:[%s740_s4 + $0x18] sm:$0xff] %v374_v24 }

// kernel: guidance_forward.23
= control target key start
LH: loop header
LB: loop body
LE: loop exit
PB: predicated region body
PF: predicated region fallthrough
CT: control target
= control target key end

     0   :  { %vm1378_vm0 = vcmask 392192   ;;  %s4886_s1 = inlined_call_operand.vmem [shape: bf16[432,1024], index: 1, kind: input, shape index: {}]   ;;  %s4887_s0 = inlined_call_operand.vmem [shape: bf16[32,432], index: 0, kind: input, shape index: {}]   ;;  %s4888_s2 = inlined_call_operand.vmem [shape: f32[1,1024], index: 2, kind: input, shape index: {}]   ;;  %s4889_s3 = inlined_call_operand.vmem [shape: f32[1,1024], index: 3, kind: input, shape index: {}]   ;;  %s4890_s4 = inlined_call_operand.vmem [shape: f32[32,1024], index: 4, kind: output, shape index: {}]  }
   0x1   :  { %v2337_v0 = vld [vmem:[%s4886_s1 + $0x1c0] sm:$0xf]  ;;  %v2992_v35 = vld [vmem:[%s4887_s0 + $0xc] sm:$0xf]  ;;  %v2091_v36 = vld [vmem:[%s4887_s0 + $0x18] sm:$0xf0] }
   0x2   :  { %v3059_v1 = vld [vmem:[%s4886_s1 + $0x1dc] sm:$0xf0]  ;;  %v3055_v37 = vld [vmem:[%s4886_s1 + $0x1c4] sm:$0xf]  ;;  %v3358_v50 = vor.u32 %v2992_v35, %v2091_v36 }
   0x3   :  { %v2593_v2 = vld [vmem:[%s4886_s1 + $0x3c0] sm:$0xf]  ;;  %v2338_v3 = vor.u32 %v3059_v1, %v2337_v0  ;;  %v2339_v39 = vld [vmem:[%s4886_s1 + $0x1e0] sm:$0xf0] }
   0x4   :  { %v3123_v4 = vld [vmem:[%s4886_s1 + $0x3dc] sm:$0xf0]  ;;  %v2342_v42 = vor.u32 %v3055_v37, %v2339_v39  ;;  %v3047_v48 = vld [vmem:[%s4886_s1 + $0x184] sm:$0xf] }
   0x5   :  { %v2849_v5 = vld [vmem:[%s4886_s1 + $0x5c0] sm:$0xf]  ;;  %v2594_v7 = vor.u32 %v3123_v4, %v2593_v2  ;;  %1385 = vmatpush.bf16.msra.mxu0 %v2338_v3  ;;  %v2307_v49 = vld [vmem:[%s4886_s1 + $0x1a0] sm:$0xf0] }
   0x6   :  { %v3187_v6 = vld [vmem:[%s4886_s1 + $0x5dc] sm:$0xf0]  ;;  %v2310_v57 = vor.u32 %v3047_v48, %v2307_v49  ;;  %v3039_v61 = vld [vmem:[%s4886_s1 + $0x144] sm:$0xf]  ;;  %v2994_v49 = vld [vmem:[%s4887_s0 + $0x14] sm:$0xf0] }
   0x7   :  { %v2850_v8 = vor.u32 %v3187_v6, %v2849_v5  ;;  %v2945_v9 = vld [vmem:[%s4886_s1 + $0x680] sm:$0xf]  ;;  %1404 = vmatpush.bf16.msra.mxu1 %v2594_v7  ;;  %v2275_v62 = vld [vmem:[%s4886_s1 + $0x160] sm:$0xf0] }
   0x8   :  { %v3211_v10 = vld [vmem:[%s4886_s1 + $0x69c] sm:$0xf0]  ;;  %v2278_v5 = vor.u32 %v3039_v61, %v2275_v62  ;;  %v2991_v36 = vld [vmem:[%s4887_s0 + $0x4] sm:$0xf] }
   0x9   :  { %v2305_v11 = vld [vmem:[%s4886_s1 + $0x180] sm:$0xf]  ;;  %v2946_v12 = vor.u32 %v3211_v10, %v2945_v9  ;;  %1423 = vmatpush.bf16.msra.mxu2 %v2850_v8  ;;  %v3031_v9 = vld [vmem:[%s4886_s1 + $0x104] sm:$0xf] }
   0xa   :  { %v3051_v13 = vld [vmem:[%s4886_s1 + $0x19c] sm:$0xf0]  ;;  %v2243_v10 = vld [vmem:[%s4886_s1 + $0x120] sm:$0xf0] }
   0xb   :  { %v2561_v14 = vld [vmem:[%s4886_s1 + $0x380] sm:$0xf]  ;;  %v2306_v16 = vor.u32 %v3051_v13, %v2305_v11  ;;  %1447 = vmatpush.bf16.msra.mxu3 %v2946_v12  ;;  %v3119_v37 = vld [vmem:[%s4886_s1 + $0x3c4] sm:$0xf] }
   0xc   :  { %v3115_v15 = vld [vmem:[%s4886_s1 + $0x39c] sm:$0xf0]  ;;  %v2147_v61 = vld [vmem:[%s4886_s1 + $0x60] sm:$0xf0] }
   0xd   :  { %v2562_v17 = vor.u32 %v3115_v15, %v2561_v14  ;;  %v2817_v18 = vld [vmem:[%s4886_s1 + $0x580] sm:$0xf]  ;;  %1386 = vmatpush.bf16.msra.mxu0 %v2306_v16 }
   0xe   :  { %v3179_v19 = vld [vmem:[%s4886_s1 + $0x59c] sm:$0xf0] }
   0xf   :  { %v2913_v20 = vld [vmem:[%s4886_s1 + $0x640] sm:$0xf]  ;;  %v2818_v21 = vor.u32 %v3179_v19, %v2817_v18  ;;  %1405 = vmatpush.bf16.msra.mxu1 %v2562_v17  ;;  %v2246_v17 = vor.u32 %v3031_v9, %v2243_v10  ;;  %v2115_v9 = vld [vmem:[%s4886_s1 + $0x20] sm:$0xf0] }
  0x10   :  { %v3203_v22 = vld [vmem:[%s4886_s1 + $0x65c] sm:$0xf0] }
  0x11   :  { %v2273_v23 = vld [vmem:[%s4886_s1 + $0x140] sm:$0xf]  ;;  %v2914_v25 = vor.u32 %v3203_v22, %v2913_v20  ;;  %1424 = vmatpush.bf16.msra.mxu2 %v2818_v21  ;;  %v3023_v20 = vld [vmem:[%s4886_s1 + $0xc4] sm:$0xf]  ;;  %v2996_v22 = vld [vmem:[%s4887_s0 + $0x2c] sm:$0xf] }
  0x12   :  { %v3043_v24 = vld [vmem:[%s4886_s1 + $0x15c] sm:$0xf0] }
  0x13   :  { %v2529_v26 = vld [vmem:[%s4886_s1 + $0x340] sm:$0xf]  ;;  %v2274_v29 = vor.u32 %v3043_v24, %v2273_v23  ;;  %1448 = vmatpush.bf16.msra.mxu3 %v2914_v25  ;;  %v2107_v23 = vld [vmem:[%s4887_s0 + $0x38] sm:$0xf0]  ;;  %v2211_v24 = vld [vmem:[%s4886_s1 + $0xe0] sm:$0xf0] }
  0x14   :  { %v3107_v27 = vld [vmem:[%s4886_s1 + $0x35c] sm:$0xf0]  ;;  %v2214_v35 = vor.u32 %v3023_v20, %v2211_v24  ;;  %v3052_v24 = vld [vmem:[%s4886_s1 + $0x1a4] sm:$0xf0] }
  0x15   :  { %v2785_v28 = vld [vmem:[%s4886_s1 + $0x540] sm:$0xf]  ;;  %v2530_v33 = vor.u32 %v3107_v27, %v2529_v26  ;;  %1387 = vmatpush.bf16.msra.mxu0 %v2274_v29 }
  0x16   :  { %v3171_v30 = vld [vmem:[%s4886_s1 + $0x55c] sm:$0xf0] }
  0x17   :  { %v2881_v31 = vld [vmem:[%s4886_s1 + $0x600] sm:$0xf]  ;;  %v2786_v34 = vor.u32 %v3171_v30, %v2785_v28  ;;  %1406 = vmatpush.bf16.msra.mxu1 %v2530_v33 }
  0x18   :  { %v3195_v32 = vld [vmem:[%s4886_s1 + $0x61c] sm:$0xf0] }
  0x19   :  { %v2882_v38 = vor.u32 %v3195_v32, %v2881_v31  ;;  %v2241_v40 = vld [vmem:[%s4886_s1 + $0x100] sm:$0xf]  ;;  %1425 = vmatpush.bf16.msra.mxu2 %v2786_v34  ;;  %v2993_v34 = vld [vmem:[%s4887_s0 + $0xc] sm:$0xf0] }
  0x1a   :  { %v3035_v41 = vld [vmem:[%s4886_s1 + $0x11c] sm:$0xf0] }
  0x1b   :  { %v2497_v43 = vld [vmem:[%s4886_s1 + $0x300] sm:$0xf]  ;;  %v2242_v46 = vor.u32 %v3035_v41, %v2241_v40  ;;  %1449 = vmatpush.bf16.msra.mxu3 %v2882_v38  ;;  %v2595_v38 = vld [vmem:[%s4886_s1 + $0x3e0] sm:$0xf0]  ;;  %v2083_v40 = vld [vmem:[%s4887_s0 + $0x10] sm:$0xf0] }
  0x1c   :  { %v3099_v44 = vld [vmem:[%s4886_s1 + $0x31c] sm:$0xf0]  ;;  %v3015_v41 = vld [vmem:[%s4886_s1 + $0x84] sm:$0xf] }
  0x1d   :  { %v2753_v45 = vld [vmem:[%s4886_s1 + $0x500] sm:$0xf]  ;;  %v2498_v51 = vor.u32 %v3099_v44, %v2497_v43  ;;  %1388 = vmatpush.bf16.msra.mxu0 %v2242_v46  ;;  %v3482_v43 = vor.u32 %v2996_v22, %v2107_v23  ;;  %v3207_v46 = vld [vmem:[%s4886_s1 + $0x684] sm:$0xf]  ;;  %v2313_v22 = vld [vmem:[%s4886_s1 + $0x188] sm:$0xf] }
  0x1e   :  { %v3163_v47 = vld [vmem:[%s4886_s1 + $0x51c] sm:$0xf0]  ;;  %2975 = vmatmul.msk.bf16.vlgmr.msra.gmra.mxu3 %vm1378_vm0, %v3358_v50 }
  0x1f   :  { %v2209_v52 = vld [vmem:[%s4886_s1 + $0xc0] sm:$0xf]  ;;  %v2754_v54 = vor.u32 %v3163_v47, %v2753_v45  ;;  %1461 = vmatpush.bf16.msrb.mxu3 %v2342_v42  ;;  %1407 = vmatpush.bf16.msra.mxu1 %v2498_v51  ;;  %v2179_v42 = vld [vmem:[%s4886_s1 + $0xa0] sm:$0xf0]  ;;  %v2089_v45 = vld [vmem:[%s4887_s0 + $0x8] sm:$0xf]  ;;  %v2598_v51 = vor.u32 %v3119_v37, %v2595_v38  ;;  %v2314_v38 = vor.u32 %v3052_v24, %v2313_v22 }
  0x20   :  { %v3027_v53 = vld [vmem:[%s4886_s1 + $0xdc] sm:$0xf0]  ;;  %v2947_v47 = vld [vmem:[%s4886_s1 + $0x6a0] sm:$0xf0]  ;;  %v3520_v62 = vor.u32 %v2994_v49, %v2089_v45  ;;  %v2998_v37 = vld [vmem:[%s4887_s0 + $0x34] sm:$0xf0] }
  0x21   :  { %v2465_v55 = vld [vmem:[%s4886_s1 + $0x2c0] sm:$0xf]  ;;  %v2210_v60 = vor.u32 %v3027_v53, %v2209_v52  ;;  %1426 = vmatpush.bf16.msra.mxu2 %v2754_v54  ;;  %v3183_v52 = vld [vmem:[%s4886_s1 + $0x5c4] sm:$0xf]  ;;  %v2857_v24 = vld [vmem:[%s4886_s1 + $0x5c8] sm:$0xf] }
  0x22   :  { %v3091_v56 = vld [vmem:[%s4886_s1 + $0x2dc] sm:$0xf0]  ;;  %v2851_v53 = vld [vmem:[%s4886_s1 + $0x5e0] sm:$0xf0] }
  0x23   :  { %v2721_v58 = vld [vmem:[%s4886_s1 + $0x4c0] sm:$0xf]  ;;  %v2466_v63 = vor.u32 %v3091_v56, %v2465_v55  ;;  %1462 = vmatpush.bf16.msrb.mxu3 %v2310_v57  ;;  %1389 = vmatpush.bf16.msra.mxu0 %v2210_v60  ;;  %v2182_v55 = vor.u32 %v3015_v41, %v2179_v42  ;;  %v3111_v56 = vld [vmem:[%s4886_s1 + $0x384] sm:$0xf]  ;;  %v2281_v41 = vld [vmem:[%s4886_s1 + $0x148] sm:$0xf] }
  0x24   :  { %v3155_v59 = vld [vmem:[%s4886_s1 + $0x4dc] sm:$0xf0]  ;;  %v2563_v57 = vld [vmem:[%s4886_s1 + $0x3a0] sm:$0xf0]  ;;  %v3044_v42 = vld [vmem:[%s4886_s1 + $0x164] sm:$0xf0] }
  0x25   :  { %v2177_v0 = vld [vmem:[%s4886_s1 + $0x80] sm:$0xf]  ;;  %v2722_v2 = vor.u32 %v3155_v59, %v2721_v58  ;;  %1408 = vmatpush.bf16.msra.mxu1 %v2466_v63  ;;  %v3510_v58 = vor.u32 %v2991_v36, %v2083_v40  ;;  %v2950_v59 = vor.u32 %v3207_v46, %v2947_v47  ;;  %v3007_v60 = vld [vmem:[%s4886_s1 + $0x44] sm:$0xf]  ;;  %v2854_v63 = vor.u32 %v3183_v52, %v2851_v53  ;;  %v2105_v36 = vld [vmem:[%s4887_s0 + $0x28] sm:$0xf] }
  0x26   :  { %v3019_v1 = vld [vmem:[%s4886_s1 + $0x9c] sm:$0xf0]  ;;  %v3151_v40 = vld [vmem:[%s4886_s1 + $0x4c4] sm:$0xf]  ;;  %v2953_v46 = vld [vmem:[%s4886_s1 + $0x688] sm:$0xf] }
  0x27   :  { %v2433_v3 = vld [vmem:[%s4886_s1 + $0x280] sm:$0xf]  ;;  %v2178_v8 = vor.u32 %v3019_v1, %v2177_v0  ;;  %1427 = vmatpush.bf16.msra.mxu2 %v2722_v2  ;;  %1463 = vmatpush.bf16.msrb.mxu3 %v2278_v5  ;;  %v3199_v0 = vld [vmem:[%s4886_s1 + $0x644] sm:$0xf]  ;;  %v2566_v2 = vor.u32 %v3111_v56, %v2563_v57  ;;  %v2150_v5 = vor.u32 %v3007_v60, %v2147_v61  ;;  %v3212_v47 = vld [vmem:[%s4886_s1 + $0x6a4] sm:$0xf0] }
  0x28   :  { %v3083_v4 = vld [vmem:[%s4886_s1 + $0x29c] sm:$0xf0]  ;;  %v2915_v1 = vld [vmem:[%s4886_s1 + $0x660] sm:$0xf0]  ;;  %v2954_v52 = vor.u32 %v3212_v47, %v2953_v46  ;;  %v3638_v56 = vor.u32 %v2998_v37, %v2105_v36  ;;  %v3036_v60 = vld [vmem:[%s4886_s1 + $0x124] sm:$0xf0] }
  0x29   :  { %v2689_v6 = vld [vmem:[%s4886_s1 + $0x480] sm:$0xf]  ;;  %v2434_v11 = vor.u32 %v3083_v4, %v2433_v3  ;;  %1390 = vmatpush.bf16.msra.mxu0 %v2178_v8  ;;  %v3175_v3 = vld [vmem:[%s4886_s1 + $0x584] sm:$0xf]  ;;  %v2918_v10 = vor.u32 %v3199_v0, %v2915_v1  ;;  %v3116_v36 = vld [vmem:[%s4886_s1 + $0x3a4] sm:$0xf0] }
  0x2a   :  { %v3147_v7 = vld [vmem:[%s4886_s1 + $0x49c] sm:$0xf0]  ;;  %v2819_v4 = vld [vmem:[%s4886_s1 + $0x5a0] sm:$0xf0]  ;;  %v2825_v37 = vld [vmem:[%s4886_s1 + $0x588] sm:$0xf] }
  0x2b   :  { %v2145_v12 = vld [vmem:[%s4886_s1 + $0x40] sm:$0xf]  ;;  %v2690_v14 = vor.u32 %v3147_v7, %v2689_v6  ;;  %1409 = vmatpush.bf16.msra.mxu1 %v2434_v11  ;;  %1464 = vmatpush.bf16.msrb.mxu3 %v2246_v17  ;;  %v3103_v6 = vld [vmem:[%s4886_s1 + $0x344] sm:$0xf]  ;;  %v2822_v11 = vor.u32 %v3175_v3, %v2819_v4  ;;  %v2921_v4 = vld [vmem:[%s4886_s1 + $0x648] sm:$0xf] }
  0x2c   :  { %v3011_v13 = vld [vmem:[%s4886_s1 + $0x5c] sm:$0xf0]  ;;  %v2531_v7 = vld [vmem:[%s4886_s1 + $0x360] sm:$0xf0]  ;;  %v3108_v46 = vld [vmem:[%s4886_s1 + $0x364] sm:$0xf0] }
  0x2d   :  { %v2401_v15 = vld [vmem:[%s4886_s1 + $0x240] sm:$0xf]  ;;  %v2146_v21 = vor.u32 %v3011_v13, %v2145_v12  ;;  %1428 = vmatpush.bf16.msra.mxu2 %v2690_v14  ;;  %v2999_v8 = vld [vmem:[%s4886_s1 + $0x4] sm:$0xf]  ;;  %v2345_v12 = vld [vmem:[%s4886_s1 + $0x1c8] sm:$0xf]  ;;  %v2534_v14 = vor.u32 %v3103_v6, %v2531_v7 }
  0x2e   :  { %v3075_v16 = vld [vmem:[%s4886_s1 + $0x25c] sm:$0xf0]  ;;  %2976 = vmatmul.msk.bf16.gmra.mxu3 %vm1378_vm0, %v3482_v43  ;;  %v3060_v13 = vld [vmem:[%s4886_s1 + $0x1e4] sm:$0xf0]  ;;  %v2118_v17 = vor.u32 %v2999_v8, %v2115_v9  ;;  %v2723_v45 = vld [vmem:[%s4886_s1 + $0x4e0] sm:$0xf0] }
  0x2f   :  { %v2657_v18 = vld [vmem:[%s4886_s1 + $0x440] sm:$0xf]  ;;  %v2402_v27 = vor.u32 %v3075_v16, %v2401_v15  ;;  %1391 = vmatpush.bf16.msra.mxu0 %v2146_v21  ;;  %1465 = vmatpush.bf16.msrb.mxu3 %v2214_v35  ;;  %v3167_v15 = vld [vmem:[%s4886_s1 + $0x544] sm:$0xf]  ;;  %v2346_v20 = vor.u32 %v3060_v13, %v2345_v12  ;;  %v2099_v35 = vld [vmem:[%s4887_s0 + $0x30] sm:$0xf0]  ;;  %v2726_v57 = vor.u32 %v3151_v40, %v2723_v45 }
  0x30   :  { %v3139_v19 = vld [vmem:[%s4886_s1 + $0x45c] sm:$0xf0]  ;;  %v2787_v16 = vld [vmem:[%s4886_s1 + $0x560] sm:$0xf0]  ;;  %v2217_v7 = vld [vmem:[%s4886_s1 + $0xc8] sm:$0xf] }
  0x31   :  { %v2113_v25 = vld [vmem:[%s4886_s1] sm:$0xf]  ;;  %v2658_v31 = vor.u32 %v3139_v19, %v2657_v18  ;;  %1410 = vmatpush.bf16.msra.mxu1 %v2402_v27  ;;  %v3095_v18 = vld [vmem:[%s4886_s1 + $0x304] sm:$0xf]  ;;  %v2790_v23 = vor.u32 %v3167_v15, %v2787_v16  ;;  %v3028_v8 = vld [vmem:[%s4886_s1 + $0xe4] sm:$0xf0] }
  0x32   :  { %v3003_v26 = vld [vmem:[%s4886_s1 + $0x1c] sm:$0xf0]  ;;  %v2499_v19 = vld [vmem:[%s4886_s1 + $0x320] sm:$0xf0]  ;;  %v2218_v15 = vor.u32 %v3028_v8, %v2217_v7  ;;  %v2601_v16 = vld [vmem:[%s4886_s1 + $0x3c8] sm:$0xf] }
  0x33   :  { %v2369_v28 = vld [vmem:[%s4886_s1 + $0x200] sm:$0xf]  ;;  %v2114_v39 = vor.u32 %v3003_v26, %v2113_v25  ;;  %1429 = vmatpush.bf16.msra.mxu2 %v2658_v31  ;;  %1466 = vmatpush.bf16.msrb.mxu3 %v2182_v55  ;;  %v3159_v21 = vld [vmem:[%s4886_s1 + $0x504] sm:$0xf]  ;;  %v2502_v27 = vor.u32 %v3095_v18, %v2499_v19  ;;  %v2282_v55 = vor.u32 %v3044_v42, %v2281_v41  ;;  %v2185_v19 = vld [vmem:[%s4886_s1 + $0x88] sm:$0xf] }
  0x34   :  { %v3067_v29 = vld [vmem:[%s4886_s1 + $0x21c] sm:$0xf0]  ;;  %v3191_v25 = vld [vmem:[%s4886_s1 + $0x604] sm:$0xf]  ;;  %v2121_v41 = vld [vmem:[%s4886_s1 + $0x8] sm:$0xf] }
  0x35   :  { %v2625_v30 = vld [vmem:[%s4886_s1 + $0x400] sm:$0xf]  ;;  %v2370_v44 = vor.u32 %v3067_v29, %v2369_v28  ;;  %1392 = vmatpush.bf16.msra.mxu0 %v2114_v39  ;;  %v2883_v26 = vld [vmem:[%s4886_s1 + $0x620] sm:$0xf0]  ;;  %v3004_v42 = vld [vmem:[%s4886_s1 + $0x24] sm:$0xf0] }
  0x36   :  { %v3131_v32 = vld [vmem:[%s4886_s1 + $0x41c] sm:$0xf0]  ;;  %v2755_v28 = vld [vmem:[%s4886_s1 + $0x520] sm:$0xf0]  ;;  %v2886_v31 = vor.u32 %v3191_v25, %v2883_v26  ;;  %v3188_v26 = vld [vmem:[%s4886_s1 + $0x5e4] sm:$0xf0] }
  0x37   :  { %v2081_v33 = vld [vmem:[%s4887_s0] sm:$0xf]  ;;  %v2626_v48 = vor.u32 %v3131_v32, %v2625_v30  ;;  %1411 = vmatpush.bf16.msra.mxu1 %v2370_v44  ;;  %1467 = vmatpush.bf16.msrb.mxu3 %v2150_v5  ;;  %v2997_v30 = vld [vmem:[%s4887_s0 + $0x2c] sm:$0xf0]  ;;  %v2995_v32 = vld [vmem:[%s4887_s0 + $0x24] sm:$0xf]  ;;  %v2758_v39 = vor.u32 %v3159_v21, %v2755_v28 }
  0x38   :  { %v3502_v54 = vor.u32 %v2993_v34, %v2081_v33  ;;  %v2097_v29 = vld [vmem:[%s4887_s0 + $0x20] sm:$0xf]  ;;  %v3087_v33 = vld [vmem:[%s4886_s1 + $0x2c4] sm:$0xf]  ;;  %v3635_v53 = vor.u32 %v2995_v32, %v2099_v35  ;;  %v3204_v5 = vld [vmem:[%s4886_s1 + $0x664] sm:$0xf0] }
  0x39   :  { %1430 = vmatpush.bf16.msra.mxu2 %v2626_v48  ;;  %1480 = vmatpush.bf16.msrb.mxu0 %v2598_v51  ;;  %v2467_v34 = vld [vmem:[%s4886_s1 + $0x2e0] sm:$0xf0]  ;;  %v3627_v48 = vor.u32 %v2997_v30, %v2097_v29  ;;  %v2922_v9 = vor.u32 %v3204_v5, %v2921_v4  ;;  %v3196_v28 = vld [vmem:[%s4886_s1 + $0x624] sm:$0xf0]  ;;  %v3056_v47 = vld [vmem:[%s4886_s1 + $0x1cc] sm:$0xf] }
  0x3a   :  { %1393 = vmatmul.bf16.vlgmr.msra.gmra.mxu0 %v3502_v54  ;;  %1412 = vmatmul.bf16.vlgmr.msra.gmra.mxu1 %v3510_v58  ;;  %v2470_v44 = vor.u32 %v3087_v33, %v2467_v34  ;;  %v3079_v49 = vld [vmem:[%s4886_s1 + $0x284] sm:$0xf]  ;;  %v2153_v32 = vld [vmem:[%s4886_s1 + $0x48] sm:$0xf]  ;;  %v2858_v34 = vor.u32 %v3188_v26, %v2857_v24  ;;  %v3032_v26 = vld [vmem:[%s4886_s1 + $0x10c] sm:$0xf] }
  0x3b   :  { %1499 = vmatpush.bf16.msrb.mxu1 %v2854_v63  ;;  %1468 = vmatpush.bf16.msrb.mxu3 %v2118_v17  ;;  %v2435_v51 = vld [vmem:[%s4886_s1 + $0x2a0] sm:$0xf0]  ;;  %v3124_v17 = vld [vmem:[%s4886_s1 + $0x3e4] sm:$0xf0] }
  0x3c   :  { %1431 = vmatmul.bf16.vlgmr.msra.gmra.mxu2 %v3520_v62  ;;  %v2438_v61 = vor.u32 %v3079_v49, %v2435_v51  ;;  %v3143_v63 = vld [vmem:[%s4886_s1 + $0x484] sm:$0xf]  ;;  %v2602_v25 = vor.u32 %v3124_v17, %v2601_v16  ;;  %v3012_v33 = vld [vmem:[%s4886_s1 + $0x64] sm:$0xf0]  ;;  %v2347_v49 = vld [vmem:[%s4886_s1 + $0x1e8] sm:$0xf0] }
  0x3d   :  { %1523 = vmatpush.bf16.msrb.mxu2 %v2950_v59  ;;  %1481 = vmatpush.bf16.msrb.mxu0 %v2566_v2  ;;  %v2249_v59 = vld [vmem:[%s4886_s1 + $0x108] sm:$0xf]  ;;  %v2691_v0 = vld [vmem:[%s4886_s1 + $0x4a0] sm:$0xf0]  ;;  %v3040_v16 = vld [vmem:[%s4886_s1 + $0x14c] sm:$0xf] }
  0x3e   :  { %1469 = vmatmul.bf16.vlgmr.msrb.gmra.mxu3 %v3502_v54  ;;  %v3071_v1 = vld [vmem:[%s4886_s1 + $0x244] sm:$0xf]  ;;  %v2250_v3 = vor.u32 %v3036_v60, %v2249_v59  ;;  %v2694_v6 = vor.u32 %v3143_v63, %v2691_v0  ;;  %v2569_v35 = vld [vmem:[%s4886_s1 + $0x388] sm:$0xf]  ;;  %v2350_v59 = vor.u32 %v3056_v47, %v2347_v49  ;;  %v2955_v63 = vld [vmem:[%s4886_s1 + $0x6a8] sm:$0xf0] }
  0x3f   :  { %1500 = vmatpush.bf16.msrb.mxu1 %v2822_v11  ;;  %1537 = vmatpush.bf16.msra.mxu3 %v2346_v20  ;;  %v2403_v2 = vld [vmem:[%s4886_s1 + $0x260] sm:$0xf0]  ;;  %v3020_v20 = vld [vmem:[%s4886_s1 + $0xa4] sm:$0xf0]  ;;  %v2570_v40 = vor.u32 %v3116_v36, %v2569_v35  ;;  %v2283_v17 = vld [vmem:[%s4886_s1 + $0x168] sm:$0xf0] }
  0x40   :  { %v3135_v11 = vld [vmem:[%s4886_s1 + $0x444] sm:$0xf]  ;;  %v2186_v29 = vor.u32 %v3020_v20, %v2185_v19  ;;  %v2793_v51 = vld [vmem:[%s4886_s1 + $0x548] sm:$0xf]  ;;  %v3024_v35 = vld [vmem:[%s4886_s1 + $0xcc] sm:$0xf] }
  0x41   :  { %1524 = vmatpush.bf16.msrb.mxu2 %v2918_v10  ;;  %1482 = vmatpush.bf16.msrb.mxu0 %v2534_v14  ;;  %v2406_v10 = vor.u32 %v3071_v1, %v2403_v2  ;;  %v2659_v12 = vld [vmem:[%s4886_s1 + $0x460] sm:$0xf0]  ;;  %v2505_v60 = vld [vmem:[%s4886_s1 + $0x308] sm:$0xf]  ;;  %v3048_v2 = vld [vmem:[%s4886_s1 + $0x18c] sm:$0xf] }
  0x42   :  { %v3063_v13 = vld [vmem:[%s4886_s1 + $0x204] sm:$0xf]  ;;  %v2662_v18 = vor.u32 %v3135_v11, %v2659_v12  ;;  %v3100_v1 = vld [vmem:[%s4886_s1 + $0x324] sm:$0xf0]  ;;  %v2219_v36 = vld [vmem:[%s4886_s1 + $0xe8] sm:$0xf0] }
  0x43   :  { %1501 = vmatpush.bf16.msrb.mxu1 %v2790_v23  ;;  %1538 = vmatpush.bf16.msra.mxu3 %v2314_v38  ;;  %v2371_v14 = vld [vmem:[%s4886_s1 + $0x220] sm:$0xf0]  ;;  %v3180_v38 = vld [vmem:[%s4886_s1 + $0x5a4] sm:$0xf0]  ;;  %v2506_v7 = vor.u32 %v3100_v1, %v2505_v60  ;;  %v3120_v47 = vld [vmem:[%s4886_s1 + $0x3cc] sm:$0xf] }
  0x44   :  { %v2374_v21 = vor.u32 %v3063_v13, %v2371_v14  ;;  %v3127_v22 = vld [vmem:[%s4886_s1 + $0x404] sm:$0xf]  ;;  %v2826_v45 = vor.u32 %v3180_v38, %v2825_v37  ;;  %v2761_v5 = vld [vmem:[%s4886_s1 + $0x508] sm:$0xf]  ;;  %v2923_v14 = vld [vmem:[%s4886_s1 + $0x668] sm:$0xf0] }
  0x45   :  { %1525 = vmatpush.bf16.msrb.mxu2 %v2886_v31  ;;  %1483 = vmatpush.bf16.msrb.mxu0 %v2502_v27  ;;  %v2627_v23 = vld [vmem:[%s4886_s1 + $0x420] sm:$0xf0]  ;;  %v2889_v27 = vld [vmem:[%s4886_s1 + $0x608] sm:$0xf]  ;;  %v3192_v49 = vld [vmem:[%s4886_s1 + $0x60c] sm:$0xf] }
  0x46   :  { %v2890_v30 = vor.u32 %v3196_v28, %v2889_v27  ;;  %v2630_v31 = vor.u32 %v3127_v22, %v2627_v23  ;;  %v3092_v12 = vld [vmem:[%s4886_s1 + $0x2e4] sm:$0xf0]  ;;  %v2251_v27 = vld [vmem:[%s4886_s1 + $0x128] sm:$0xf0] }
  0x47   :  { %1502 = vmatpush.bf16.msrb.mxu1 %v2758_v39  ;;  %1539 = vmatpush.bf16.msra.mxu3 %v2282_v55  ;;  %v2154_v39 = vor.u32 %v3012_v33, %v2153_v32  ;;  %v2122_v55 = vor.u32 %v3004_v42, %v2121_v41  ;;  %v2729_v13 = vld [vmem:[%s4886_s1 + $0x4c8] sm:$0xf]  ;;  %v2222_v42 = vor.u32 %v3024_v35, %v2219_v36  ;;  %v2731_v36 = vld [vmem:[%s4886_s1 + $0x4e8] sm:$0xf0] }
  0x48   :  { %v2441_v22 = vld [vmem:[%s4886_s1 + $0x288] sm:$0xf] }
  0x49   :  { %1484 = vmatpush.bf16.msrb.mxu0 %v2470_v44  ;;  %1599 = vmatpush.bf16.msra.mxu2 %v2954_v52  ;;  %v2537_v44 = vld [vmem:[%s4886_s1 + $0x348] sm:$0xf] }
  0x4a   :  { %1398 = vmatmul.bf16.gmra.mxu0 %v3627_v48  ;;  %1417 = vmatmul.bf16.gmra.mxu1 %v3635_v53  ;;  %v3172_v52 = vld [vmem:[%s4886_s1 + $0x564] sm:$0xf0] }
  0x4b   :  { %1503 = vmatpush.bf16.msrb.mxu1 %v2726_v57  ;;  %1540 = vmatpush.bf16.msra.mxu3 %v2250_v3  ;;  %v2538_v57 = vor.u32 %v3108_v46, %v2537_v44  ;;  %v2794_v0 = vor.u32 %v3172_v52, %v2793_v51  ;;  %v2315_v3 = vld [vmem:[%s4886_s1 + $0x1a8] sm:$0xf0]  ;;  %v3084_v23 = vld [vmem:[%s4886_s1 + $0x2a4] sm:$0xf0] }
  0x4c   :  { %1436 = vmatmul.bf16.gmra.mxu2 %v3638_v56  ;;  %v2318_v8 = vor.u32 %v3048_v2, %v2315_v3  ;;  %v2697_v24 = vld [vmem:[%s4886_s1 + $0x488] sm:$0xf]  ;;  %v2442_v28 = vor.u32 %v3084_v23, %v2441_v22  ;;  %v2187_v46 = vld [vmem:[%s4886_s1 + $0xa8] sm:$0xf0] }
  0x4d   :  { %1485 = vmatpush.bf16.msrb.mxu0 %v2438_v61  ;;  %1600 = vmatpush.bf16.msra.mxu2 %v2922_v9  ;;  %v3208_v61 = vld [vmem:[%s4886_s1 + $0x68c] sm:$0xf]  ;;  %v2473_v9 = vld [vmem:[%s4886_s1 + $0x2c8] sm:$0xf] }
  0x4e   :  { %1474 = vmatmul.bf16.gmra.mxu3 %v3627_v48  ;;  %v2958_v4 = vor.u32 %v3208_v61, %v2955_v63  ;;  %v2474_v19 = vor.u32 %v3092_v12, %v2473_v9  ;;  %v3076_v32 = vld [vmem:[%s4886_s1 + $0x264] sm:$0xf0]  ;;  %v2891_v51 = vld [vmem:[%s4886_s1 + $0x628] sm:$0xf0] }
  0x4f   :  { %1504 = vmatpush.bf16.msrb.mxu1 %v2694_v6  ;;  %1541 = vmatpush.bf16.msra.mxu3 %v2218_v15  ;;  %v3164_v6 = vld [vmem:[%s4886_s1 + $0x524] sm:$0xf0]  ;;  %v2603_v52 = vld [vmem:[%s4886_s1 + $0x3e8] sm:$0xf0] }
  0x50   :  { %v2762_v11 = vor.u32 %v3164_v6, %v2761_v5  ;;  %v3156_v15 = vld [vmem:[%s4886_s1 + $0x4e4] sm:$0xf0]  ;;  %v3008_v2 = vld [vmem:[%s4886_s1 + $0x4c] sm:$0xf] }
  0x51   :  { %1486 = vmatpush.bf16.msrb.mxu0 %v2406_v10  ;;  %1601 = vmatpush.bf16.msra.mxu2 %v2890_v30  ;;  %v3200_v10 = vld [vmem:[%s4886_s1 + $0x64c] sm:$0xf]  ;;  %v2730_v20 = vor.u32 %v3156_v15, %v2729_v13  ;;  %v2254_v30 = vor.u32 %v3032_v26, %v2251_v27  ;;  %v2665_v33 = vld [vmem:[%s4886_s1 + $0x448] sm:$0xf]  ;;  %v2353_v15 = vld [vmem:[%s4886_s1 + $0x1d0] sm:$0xf] }
  0x52   :  { %v2377_v38 = vld [vmem:[%s4886_s1 + $0x208] sm:$0xf]  ;;  %v2155_v3 = vld [vmem:[%s4886_s1 + $0x68] sm:$0xf0]  ;;  %v2321_v26 = vld [vmem:[%s4886_s1 + $0x190] sm:$0xf] }
  0x53   :  { %1505 = vmatpush.bf16.msrb.mxu1 %v2662_v18  ;;  %1542 = vmatpush.bf16.msra.mxu3 %v2186_v29  ;;  %v2926_v18 = vor.u32 %v3200_v10, %v2923_v14  ;;  %v3132_v44 = vld [vmem:[%s4886_s1 + $0x424] sm:$0xf0]  ;;  %v2827_v5 = vld [vmem:[%s4886_s1 + $0x5a8] sm:$0xf0]  ;;  %v3053_v27 = vld [vmem:[%s4886_s1 + $0x1ac] sm:$0xf0] }
  0x54   :  { %v3112_v6 = vld [vmem:[%s4886_s1 + $0x38c] sm:$0xf] }
  0x55   :  { %1487 = vmatpush.bf16.msrb.mxu0 %v2374_v21  ;;  %v2286_v21 = vor.u32 %v3040_v16, %v2283_v17  ;;  %v3000_v10 = vld [vmem:[%s4886_s1 + $0xc] sm:$0xf]  ;;  %v3061_v16 = vld [vmem:[%s4886_s1 + $0x1ec] sm:$0xf0] }
  0x56   :  { %v3168_v12 = vld [vmem:[%s4886_s1 + $0x54c] sm:$0xf] }
  0x57   :  { %1506 = vmatpush.bf16.msrb.mxu1 %v2630_v31  ;;  %1543 = vmatpush.bf16.msra.mxu3 %v2154_v39  ;;  %v2409_v31 = vld [vmem:[%s4886_s1 + $0x248] sm:$0xf]  ;;  %v2795_v14 = vld [vmem:[%s4886_s1 + $0x568] sm:$0xf0] }
  0x58   :  { %v2410_v37 = vor.u32 %v3076_v32, %v2409_v31  ;;  %v3068_v39 = vld [vmem:[%s4886_s1 + $0x224] sm:$0xf0]  ;;  %v3104_v17 = vld [vmem:[%s4886_s1 + $0x34c] sm:$0xf] }
  0x59   :  { %1556 = vmatpush.bf16.msra.mxu0 %v2602_v25  ;;  %v3148_v25 = vld [vmem:[%s4886_s1 + $0x4a4] sm:$0xf0]  ;;  %v2378_v60 = vor.u32 %v3068_v39, %v2377_v38  ;;  %v3096_v22 = vld [vmem:[%s4886_s1 + $0x30c] sm:$0xf]  ;;  %v3045_v38 = vld [vmem:[%s4886_s1 + $0x16c] sm:$0xf0] }
  0x5a   :  { %1488 = vmatmul.bf16.vlgmr.msrb.gmra.mxu0 %v3510_v58  ;;  %1507 = vmatmul.bf16.vlgmr.msrb.gmra.mxu1 %v3520_v62  ;;  %v2698_v29 = vor.u32 %v3148_v25, %v2697_v24  ;;  %v3160_v23 = vld [vmem:[%s4886_s1 + $0x50c] sm:$0xf] }
  0x5b   :  { %1575 = vmatpush.bf16.msra.mxu1 %v2858_v34  ;;  %1544 = vmatpush.bf16.msra.mxu3 %v2122_v55  ;;  %v3140_v34 = vld [vmem:[%s4886_s1 + $0x464] sm:$0xf0]  ;;  %v3184_v55 = vld [vmem:[%s4886_s1 + $0x5cc] sm:$0xf] }
  0x5c   :  { %2977 = vmatmul.msk.bf16.vlgmr.msrb.gmra.mxu2 %vm1378_vm0, %v3358_v50  ;;  %v2666_v41 = vor.u32 %v3140_v34, %v2665_v33  ;;  %v2763_v25 = vld [vmem:[%s4886_s1 + $0x528] sm:$0xf0]  ;;  %v2322_v33 = vor.u32 %v3053_v27, %v2321_v26  ;;  %v2833_v27 = vld [vmem:[%s4886_s1 + $0x590] sm:$0xf] }
  0x5d   :  { %1557 = vmatpush.bf16.msra.mxu0 %v2570_v40  ;;  %1675 = vmatpush.bf16.msrb.mxu2 %v2958_v4  ;;  %v2633_v40 = vld [vmem:[%s4886_s1 + $0x408] sm:$0xf]  ;;  %v3176_v4 = vld [vmem:[%s4886_s1 + $0x58c] sm:$0xf]  ;;  %v2766_v32 = vor.u32 %v3160_v23, %v2763_v25 }
  0x5e   :  { %1545 = vmatmul.bf16.vlgmr.msra.gmra.mxu3 %v3502_v54  ;;  %v2634_v61 = vor.u32 %v3132_v44, %v2633_v40  ;;  %v2830_v9 = vor.u32 %v3176_v4, %v2827_v5  ;;  %v3152_v34 = vld [vmem:[%s4886_s1 + $0x4cc] sm:$0xf]  ;;  %v2225_v4 = vld [vmem:[%s4886_s1 + $0xd0] sm:$0xf] }
  0x5f   :  { %1576 = vmatpush.bf16.msra.mxu1 %v2826_v45  ;;  %1613 = vmatpush.bf16.msrb.mxu3 %v2350_v59  ;;  %v3016_v45 = vld [vmem:[%s4886_s1 + $0x8c] sm:$0xf]  ;;  %v2894_v59 = vor.u32 %v3192_v49, %v2891_v51  ;;  %v2734_v44 = vor.u32 %v3152_v34, %v2731_v36  ;;  %v3029_v5 = vld [vmem:[%s4886_s1 + $0xec] sm:$0xf0] }
  0x60   :  { %v2190_v63 = vor.u32 %v3016_v45, %v2187_v46  ;;  %v3088_v39 = vld [vmem:[%s4886_s1 + $0x2cc] sm:$0xf]  ;;  %v2129_v36 = vld [vmem:[%s4886_s1 + $0x10] sm:$0xf] }
  0x61   :  { %1558 = vmatpush.bf16.msra.mxu0 %v2538_v57  ;;  %1676 = vmatpush.bf16.msrb.mxu2 %v2926_v18  ;;  %v2859_v57 = vld [vmem:[%s4886_s1 + $0x5e8] sm:$0xf0] }
  0x62   :  { %v2862_v1 = vor.u32 %v3184_v55, %v2859_v57  ;;  %v2539_v18 = vld [vmem:[%s4886_s1 + $0x368] sm:$0xf0]  ;;  %v2257_v57 = vld [vmem:[%s4886_s1 + $0x110] sm:$0xf] }
  0x63   :  { %1577 = vmatpush.bf16.msra.mxu1 %v2794_v0  ;;  %1614 = vmatpush.bf16.msrb.mxu3 %v2318_v8  ;;  %v2606_v0 = vor.u32 %v3120_v47, %v2603_v52  ;;  %v2158_v8 = vor.u32 %v3008_v2, %v2155_v3  ;;  %v2542_v24 = vor.u32 %v3104_v17, %v2539_v18  ;;  %v2475_v40 = vld [vmem:[%s4886_s1 + $0x2e8] sm:$0xf0]  ;;  %v2609_v17 = vld [vmem:[%s4886_s1 + $0x3d0] sm:$0xf] }
  0x64   :  { %v2478_v47 = vor.u32 %v3088_v39, %v2475_v40  ;;  %v3144_v49 = vld [vmem:[%s4886_s1 + $0x48c] sm:$0xf]  ;;  %v3125_v18 = vld [vmem:[%s4886_s1 + $0x3ec] sm:$0xf0] }
  0x65   :  { %1559 = vmatpush.bf16.msra.mxu0 %v2506_v7  ;;  %1677 = vmatpush.bf16.msrb.mxu2 %v2894_v59  ;;  %v2571_v7 = vld [vmem:[%s4886_s1 + $0x3a8] sm:$0xf0]  ;;  %v3037_v59 = vld [vmem:[%s4886_s1 + $0x12c] sm:$0xf0]  ;;  %v2610_v26 = vor.u32 %v3125_v18, %v2609_v17  ;;  %v3033_v17 = vld [vmem:[%s4886_s1 + $0x114] sm:$0xf] }
  0x66   :  { %v2574_v13 = vor.u32 %v3112_v6, %v2571_v7  ;;  %v2699_v51 = vld [vmem:[%s4886_s1 + $0x4a8] sm:$0xf0]  ;;  %v3005_v39 = vld [vmem:[%s4886_s1 + $0x2c] sm:$0xf0]  ;;  %v2259_v18 = vld [vmem:[%s4886_s1 + $0x130] sm:$0xf0] }
  0x67   :  { %1578 = vmatpush.bf16.msra.mxu1 %v2762_v11  ;;  %1615 = vmatpush.bf16.msrb.mxu3 %v2286_v21  ;;  %v2123_v11 = vld [vmem:[%s4886_s1 + $0x28] sm:$0xf0]  ;;  %v2354_v21 = vor.u32 %v3061_v16, %v2353_v15  ;;  %v3189_v15 = vld [vmem:[%s4886_s1 + $0x5ec] sm:$0xf0] }
  0x68   :  { %v3080_v52 = vld [vmem:[%s4886_s1 + $0x28c] sm:$0xf]  ;;  %v3021_v16 = vld [vmem:[%s4886_s1 + $0xac] sm:$0xf0] }
  0x69   :  { %1560 = vmatpush.bf16.msra.mxu0 %v2474_v19  ;;  %v2126_v19 = vor.u32 %v3000_v10, %v2123_v11  ;;  %v2443_v55 = vld [vmem:[%s4886_s1 + $0x2a8] sm:$0xf0]  ;;  %v2801_v40 = vld [vmem:[%s4886_s1 + $0x550] sm:$0xf] }
  0x6a   :  { %1493 = vmatmul.bf16.gmra.mxu0 %v3635_v53  ;;  %1512 = vmatmul.bf16.gmra.mxu1 %v3638_v56  ;;  %v3072_v2 = vld [vmem:[%s4886_s1 + $0x24c] sm:$0xf] }
  0x6b   :  { %1579 = vmatpush.bf16.msra.mxu1 %v2730_v20  ;;  %1616 = vmatpush.bf16.msrb.mxu3 %v2254_v30  ;;  %v2798_v20 = vor.u32 %v3168_v12, %v2795_v14  ;;  %v3213_v30 = vld [vmem:[%s4886_s1 + $0x6ac] sm:$0xf0]  ;;  %v2411_v3 = vld [vmem:[%s4886_s1 + $0x268] sm:$0xf0]  ;;  %v2226_v12 = vor.u32 %v3029_v5, %v2225_v4 }
  0x6c   :  { %2978 = vmatmul.msk.bf16.gmra.mxu2 %vm1378_vm0, %v3482_v43  ;;  %v3064_v7 = vld [vmem:[%s4886_s1 + $0x20c] sm:$0xf]  ;;  %v2865_v14 = vld [vmem:[%s4886_s1 + $0x5d0] sm:$0xf] }
  0x6d   :  { %1561 = vmatpush.bf16.msra.mxu0 %v2442_v28  ;;  %v2507_v28 = vld [vmem:[%s4886_s1 + $0x328] sm:$0xf0]  ;;  %v2866_v23 = vor.u32 %v3189_v15, %v2865_v14  ;;  %v2705_v15 = vld [vmem:[%s4886_s1 + $0x490] sm:$0xf] }
  0x6e   :  { %1550 = vmatmul.bf16.gmra.mxu3 %v3627_v48  ;;  %v2510_v35 = vor.u32 %v3096_v22, %v2507_v28  ;;  %v3128_v10 = vld [vmem:[%s4886_s1 + $0x40c] sm:$0xf]  ;;  %v3181_v28 = vld [vmem:[%s4886_s1 + $0x5ac] sm:$0xf0] }
  0x6f   :  { %1580 = vmatpush.bf16.msra.mxu1 %v2698_v29  ;;  %1617 = vmatpush.bf16.msrb.mxu3 %v2222_v42  ;;  %v2961_v29 = vld [vmem:[%s4886_s1 + $0x690] sm:$0xf]  ;;  %v2635_v11 = vld [vmem:[%s4886_s1 + $0x428] sm:$0xf0] }
  0x70   :  { %v2962_v31 = vor.u32 %v3213_v30, %v2961_v29  ;;  %v3205_v42 = vld [vmem:[%s4886_s1 + $0x66c] sm:$0xf0] }
  0x71   :  { %1562 = vmatpush.bf16.msra.mxu0 %v2410_v37  ;;  %v2289_v37 = vld [vmem:[%s4886_s1 + $0x150] sm:$0xf] }
  0x72   :  { %v2290_v45 = vor.u32 %v3045_v38, %v2289_v37  ;;  %v2577_v29 = vld [vmem:[%s4886_s1 + $0x390] sm:$0xf] }
  0x73   :  { %1581 = vmatpush.bf16.msra.mxu1 %v2666_v41  ;;  %1618 = vmatpush.bf16.msrb.mxu3 %v2190_v63  ;;  %v2929_v41 = vld [vmem:[%s4886_s1 + $0x650] sm:$0xf]  ;;  %v3136_v63 = vld [vmem:[%s4886_s1 + $0x44c] sm:$0xf] }
  0x74   :  { %v2930_v46 = vor.u32 %v3205_v42, %v2929_v41  ;;  %v3117_v30 = vld [vmem:[%s4886_s1 + $0x3ac] sm:$0xf0]  ;;  %v3057_v42 = vld [vmem:[%s4886_s1 + $0x1d4] sm:$0xf] }
  0x75   :  { %1563 = vmatpush.bf16.msra.mxu0 %v2378_v60  ;;  %v2702_v60 = vor.u32 %v3144_v49, %v2699_v51  ;;  %v2578_v34 = vor.u32 %v3117_v30, %v2577_v29  ;;  %v2545_v37 = vld [vmem:[%s4886_s1 + $0x350] sm:$0xf] }
  0x76   :  { %v3109_v38 = vld [vmem:[%s4886_s1 + $0x36c] sm:$0xf0] }
  0x77   :  { %1582 = vmatpush.bf16.msra.mxu1 %v2634_v61  ;;  %1619 = vmatpush.bf16.msrb.mxu3 %v2158_v8  ;;  %v2446_v61 = vor.u32 %v3080_v52, %v2443_v55  ;;  %v2414_v8 = vor.u32 %v3072_v2, %v2411_v3  ;;  %v3173_v41 = vld [vmem:[%s4886_s1 + $0x56c] sm:$0xf0] }
  0x78   :  { %v2513_v49 = vld [vmem:[%s4886_s1 + $0x310] sm:$0xf] }
  0x79   :  { %1632 = vmatpush.bf16.msrb.mxu0 %v2606_v0  ;;  %v2667_v0 = vld [vmem:[%s4886_s1 + $0x468] sm:$0xf0]  ;;  %v3101_v51 = vld [vmem:[%s4886_s1 + $0x32c] sm:$0xf0] }
  0x7a   :  { %1564 = vmatmul.bf16.vlgmr.msra.gmra.mxu0 %v3510_v58  ;;  %1583 = vmatmul.bf16.vlgmr.msra.gmra.mxu1 %v3520_v62  ;;  %v2670_v6 = vor.u32 %v3136_v63, %v2667_v0  ;;  %v2769_v55 = vld [vmem:[%s4886_s1 + $0x510] sm:$0xf]  ;;  %v3209_v63 = vld [vmem:[%s4886_s1 + $0x694] sm:$0xf] }
  0x7b   :  { %1651 = vmatpush.bf16.msrb.mxu1 %v2862_v1  ;;  %1620 = vmatpush.bf16.msrb.mxu3 %v2126_v19  ;;  %v2258_v1 = vor.u32 %v3037_v59, %v2257_v57  ;;  %v2638_v19 = vor.u32 %v3128_v10, %v2635_v11  ;;  %v3165_v57 = vld [vmem:[%s4886_s1 + $0x52c] sm:$0xf0]  ;;  %v3049_v59 = vld [vmem:[%s4886_s1 + $0x194] sm:$0xf] }
  0x7c   :  { %2979 = vmatmul.msk.bf16.vlgmr.msra.gmra.mxu2 %vm1378_vm0, %v3358_v50  ;;  %v2963_v0 = vld [vmem:[%s4886_s1 + $0x6b0] sm:$0xf0]  ;;  %v2481_v2 = vld [vmem:[%s4886_s1 + $0x2d0] sm:$0xf] }
  0x7d   :  { %1633 = vmatpush.bf16.msrb.mxu0 %v2574_v13  ;;  %1751 = vmatpush.bf16.msra.mxu2 %v2962_v31  ;;  %v2193_v13 = vld [vmem:[%s4886_s1 + $0x90] sm:$0xf]  ;;  %v2966_v4 = vor.u32 %v3209_v63, %v2963_v0  ;;  %v4248_v0 = vld [vmem:[%s4888_s2] sm:$0xff] }
  0x7e   :  { %1621 = vmatmul.bf16.vlgmr.msrb.gmra.mxu3 %v3502_v54  ;;  %v2194_v25 = vor.u32 %v3021_v16, %v2193_v13  ;;  %v2161_v31 = vld [vmem:[%s4886_s1 + $0x50] sm:$0xf] }
  0x7f   :  { %1652 = vmatpush.bf16.msrb.mxu1 %v2830_v9  ;;  %1689 = vmatpush.bf16.msra.mxu3 %v2354_v21  ;;  %v2379_v9 = vld [vmem:[%s4886_s1 + $0x228] sm:$0xf0]  ;;  %v3197_v21 = vld [vmem:[%s4886_s1 + $0x62c] sm:$0xf0] }
  0x80   :  { %v2382_v22 = vor.u32 %v3064_v7, %v2379_v9  ;;  %v3093_v3 = vld [vmem:[%s4886_s1 + $0x2ec] sm:$0xf0]  ;;  %v2291_v9 = vld [vmem:[%s4886_s1 + $0x170] sm:$0xf0] }
  0x81   :  { %1634 = vmatpush.bf16.msrb.mxu0 %v2542_v24  ;;  %1752 = vmatpush.bf16.msra.mxu2 %v2930_v46  ;;  %v2130_v46 = vor.u32 %v3005_v39, %v2129_v36  ;;  %v3157_v7 = vld [vmem:[%s4886_s1 + $0x4ec] sm:$0xf0]  ;;  %v2482_v10 = vor.u32 %v3093_v3, %v2481_v2  ;;  %v3121_v36 = vld [vmem:[%s4886_s1 + $0x3d4] sm:$0xf] }
  0x82   :  { %v3085_v13 = vld [vmem:[%s4886_s1 + $0x2ac] sm:$0xf0]  ;;  %v2195_v39 = vld [vmem:[%s4886_s1 + $0xb0] sm:$0xf0] }
  0x83   :  { %1653 = vmatpush.bf16.msrb.mxu1 %v2798_v20  ;;  %1690 = vmatpush.bf16.msra.mxu3 %v2322_v33  ;;  %v2897_v20 = vld [vmem:[%s4886_s1 + $0x610] sm:$0xf]  ;;  %v2834_v33 = vor.u32 %v3181_v28, %v2833_v27  ;;  %v2227_v27 = vld [vmem:[%s4886_s1 + $0xf0] sm:$0xf0] }
  0x84   :  { %v2898_v24 = vor.u32 %v3197_v21, %v2897_v20  ;;  %v3149_v16 = vld [vmem:[%s4886_s1 + $0x4ac] sm:$0xf0] }
  0x85   :  { %1635 = vmatpush.bf16.msrb.mxu0 %v2510_v35  ;;  %v2706_v20 = vor.u32 %v3149_v16, %v2705_v15  ;;  %v2417_v21 = vld [vmem:[%s4886_s1 + $0x250] sm:$0xf]  ;;  %v3097_v15 = vld [vmem:[%s4886_s1 + $0x314] sm:$0xf] }
  0x86   :  { %1753 = vmatpush.bf16.msra.mxu2 %v2898_v24  ;;  %v2673_v24 = vld [vmem:[%s4886_s1 + $0x450] sm:$0xf] }
  0x87   :  { %1654 = vmatpush.bf16.msrb.mxu1 %v2766_v32  ;;  %1691 = vmatpush.bf16.msra.mxu3 %v2290_v45  ;;  %v3013_v32 = vld [vmem:[%s4886_s1 + $0x6c] sm:$0xf0]  ;;  %v2546_v45 = vor.u32 %v3109_v38, %v2545_v37  ;;  %v2611_v37 = vld [vmem:[%s4886_s1 + $0x3f0] sm:$0xf0] }
  0x88   :  { %v2162_v35 = vor.u32 %v3013_v32, %v2161_v31  ;;  %v2385_v29 = vld [vmem:[%s4886_s1 + $0x210] sm:$0xf] }
  0x89   :  { %1636 = vmatpush.bf16.msrb.mxu0 %v2478_v47  ;;  %v2802_v47 = vor.u32 %v3173_v41, %v2801_v40  ;;  %v3069_v31 = vld [vmem:[%s4886_s1 + $0x22c] sm:$0xf0]  ;;  %v3185_v40 = vld [vmem:[%s4886_s1 + $0x5d4] sm:$0xf] }
  0x8a   :  { %1569 = vmatmul.bf16.gmra.mxu0 %v3635_v53  ;;  %1588 = vmatmul.bf16.gmra.mxu1 %v3638_v56  ;;  %v2641_v32 = vld [vmem:[%s4886_s1 + $0x410] sm:$0xf]  ;;  %v2867_v41 = vld [vmem:[%s4886_s1 + $0x5f0] sm:$0xf0] }
  0x8b   :  { %1655 = vmatpush.bf16.msrb.mxu1 %v2734_v44  ;;  %1692 = vmatpush.bf16.msra.mxu3 %v2258_v1  ;;  %v2355_v44 = vld [vmem:[%s4886_s1 + $0x1f0] sm:$0xf0]  ;;  %v2770_v1 = vor.u32 %v3165_v57, %v2769_v55 }
  0x8c   :  { %2980 = vmatmul.msk.bf16.gmra.mxu2 %vm1378_vm0, %v3482_v43  ;;  %v2358_v52 = vor.u32 %v3057_v42, %v2355_v44  ;;  %v2386_v42 = vor.u32 %v3069_v31, %v2385_v29  ;;  %v3201_v55 = vld [vmem:[%s4886_s1 + $0x654] sm:$0xf] }
  0x8d   :  { %1637 = vmatpush.bf16.msrb.mxu0 %v2446_v61  ;;  %v2514_v61 = vor.u32 %v3101_v51, %v2513_v49  ;;  %v2870_v51 = vor.u32 %v3185_v40, %v2867_v41  ;;  %v2931_v57 = vld [vmem:[%s4886_s1 + $0x670] sm:$0xf0]  ;;  %v3046_v40 = vld [vmem:[%s4886_s1 + $0x174] sm:$0xf0] }
  0x8e   :  { %1626 = vmatmul.bf16.gmra.mxu3 %v3627_v48  ;;  %v2934_v63 = vor.u32 %v3201_v55, %v2931_v57  ;;  %v3161_v29 = vld [vmem:[%s4886_s1 + $0x514] sm:$0xf] }
  0x8f   :  { %1656 = vmatpush.bf16.msrb.mxu1 %v2702_v60  ;;  %1693 = vmatpush.bf16.msra.mxu3 %v2226_v12  ;;  %v2323_v60 = vld [vmem:[%s4886_s1 + $0x1b0] sm:$0xf0]  ;;  %v2449_v12 = vld [vmem:[%s4886_s1 + $0x290] sm:$0xf] }
  0x90   :  { %v2326_v5 = vor.u32 %v3049_v59, %v2323_v60  ;;  %v2163_v59 = vld [vmem:[%s4886_s1 + $0x70] sm:$0xf0] }
  0x91   :  { %1638 = vmatpush.bf16.msrb.mxu0 %v2414_v8  ;;  %v3041_v8 = vld [vmem:[%s4886_s1 + $0x154] sm:$0xf] }
  0x92   :  { %v2294_v14 = vor.u32 %v3041_v8, %v2291_v9  ;;  %v3177_v60 = vld [vmem:[%s4886_s1 + $0x594] sm:$0xf]  ;;  %v4265_v9 = vperm.slane %v4248_v0, 0 }
  0x93   :  { %1657 = vmatpush.bf16.msrb.mxu1 %v2670_v6  ;;  %1694 = vmatpush.bf16.msra.mxu3 %v2194_v25  ;;  %v2737_v6 = vld [vmem:[%s4886_s1 + $0x4d0] sm:$0xf]  ;;  %v2131_v8 = vld [vmem:[%s4886_s1 + $0x30] sm:$0xf0] }
  0x94   :  { %v2738_v11 = vor.u32 %v3157_v7, %v2737_v6  ;;  %v3141_v25 = vld [vmem:[%s4886_s1 + $0x46c] sm:$0xf0]  ;;  %v3001_v7 = vld [vmem:[%s4886_s1 + $0x14] sm:$0xf] }
  0x95   :  { %1639 = vmatpush.bf16.msrb.mxu0 %v2382_v22  ;;  %v3077_v22 = vld [vmem:[%s4886_s1 + $0x26c] sm:$0xf0]  ;;  %v2674_v30 = vor.u32 %v3141_v25, %v2673_v24  ;;  %v2134_v16 = vor.u32 %v3001_v7, %v2131_v8  ;;  %v3089_v31 = vld [vmem:[%s4886_s1 + $0x2d4] sm:$0xf] }
  0x96   :  { %v2418_v28 = vor.u32 %v3077_v22, %v2417_v21 }
  0x97   :  { %1658 = vmatpush.bf16.msrb.mxu1 %v2638_v19  ;;  %1695 = vmatpush.bf16.msra.mxu3 %v2162_v35  ;;  %v2450_v19 = vor.u32 %v3085_v13, %v2449_v12  ;;  %v3017_v35 = vld [vmem:[%s4886_s1 + $0x94] sm:$0xf] }
  0x98   :  { %v2198_v49 = vor.u32 %v3017_v35, %v2195_v39  ;;  %v3169_v13 = vld [vmem:[%s4886_s1 + $0x554] sm:$0xf]  ;;  %v2297_v39 = vld [vmem:[%s4886_s1 + $0x158] sm:$0xf] }
  0x99   :  { %1708 = vmatpush.bf16.msra.mxu0 %v2610_v26  ;;  %v3025_v26 = vld [vmem:[%s4886_s1 + $0xd4] sm:$0xf]  ;;  %v2298_v55 = vor.u32 %v3046_v40, %v2297_v39 }
  0x9a   :  { %1640 = vmatmul.bf16.vlgmr.msrb.gmra.mxu0 %v3510_v58  ;;  %1659 = vmatmul.bf16.vlgmr.msrb.gmra.mxu1 %v3520_v62  ;;  %v2643_v39 = vld [vmem:[%s4886_s1 + $0x430] sm:$0xf0] }
  0x9b   :  { %1727 = vmatpush.bf16.msra.mxu1 %v2866_v23  ;;  %1696 = vmatpush.bf16.msra.mxu3 %v2130_v46  ;;  %v2262_v23 = vor.u32 %v3033_v17, %v2259_v18  ;;  %v3009_v46 = vld [vmem:[%s4886_s1 + $0x54] sm:$0xf] }
  0x9c   :  { %2981 = vmatmul.msk.bf16.vlgmr.msrb.gmra.mxu2 %vm1378_vm0, %v3358_v50  ;;  %v2166_v2 = vor.u32 %v3009_v46, %v2163_v59  ;;  %v2515_v17 = vld [vmem:[%s4886_s1 + $0x330] sm:$0xf0] }
  0x9d   :  { %1709 = vmatpush.bf16.msra.mxu0 %v2578_v34  ;;  %1827 = vmatpush.bf16.msrb.mxu2 %v2966_v4  ;;  %v2230_v34 = vor.u32 %v3025_v26, %v2227_v27  ;;  %v3105_v4 = vld [vmem:[%s4886_s1 + $0x354] sm:$0xf]  ;;  %v2329_v26 = vld [vmem:[%s4886_s1 + $0x198] sm:$0xf] }
  0x9e   :  { %1697 = vmatmul.bf16.vlgmr.msra.gmra.mxu3 %v3502_v54  ;;  %v3193_v18 = vld [vmem:[%s4886_s1 + $0x614] sm:$0xf]  ;;  %v3054_v27 = vld [vmem:[%s4886_s1 + $0x1b4] sm:$0xf0] }
  0x9f   :  { %1728 = vmatpush.bf16.msra.mxu1 %v2834_v33  ;;  %1765 = vmatpush.bf16.msrb.mxu3 %v2358_v52  ;;  %v3133_v33 = vld [vmem:[%s4886_s1 + $0x42c] sm:$0xf0]  ;;  %v2579_v52 = vld [vmem:[%s4886_s1 + $0x3b0] sm:$0xf0] }
  0xa0   :  { %v2642_v44 = vor.u32 %v3133_v33, %v2641_v32  ;;  %v2483_v32 = vld [vmem:[%s4886_s1 + $0x2f0] sm:$0xf0] }
  0xa1   :  { %1710 = vmatpush.bf16.msra.mxu0 %v2546_v45  ;;  %v4207_v38 = vpop.f32.mrf.mxu3  ;;  %v2614_v45 = vor.u32 %v3121_v36, %v2611_v37  ;;  %1828 = vmatpush.bf16.msrb.mxu2 %v2934_v63  ;;  %v4320_v36 = vld [vmem:[%s4889_s3] sm:$0xff]  ;;  %v2486_v41 = vor.u32 %v3089_v31, %v2483_v32  ;;  %v2451_v46 = vld [vmem:[%s4886_s1 + $0x2b0] sm:$0xf0]  ;;  %v2201_v32 = vld [vmem:[%s4886_s1 + $0x98] sm:$0xf] }
  0xa3   :  { %1729 = vmatpush.bf16.msra.mxu1 %v2802_v47  ;;  %1766 = vmatpush.bf16.msrb.mxu3 %v2326_v5  ;;  %v3113_v47 = vld [vmem:[%s4886_s1 + $0x394] sm:$0xf] }
  0xa4   :  { %v2547_v5 = vld [vmem:[%s4886_s1 + $0x370] sm:$0xf0] }
  0xa5   :  { %1711 = vmatpush.bf16.msra.mxu0 %v2514_v61  ;;  %v2835_v61 = vld [vmem:[%s4886_s1 + $0x5b0] sm:$0xf0]  ;;  %v2550_v12 = vor.u32 %v3105_v4, %v2547_v5 }
  0xa6   :  { %v2838_v3 = vor.u32 %v3177_v60, %v2835_v61  ;;  %v4347_v60 = vperm.slane %v4320_v36, 0  ;;  %v3145_v4 = vld [vmem:[%s4886_s1 + $0x494] sm:$0xf] }
  0xa7   :  { %1730 = vmatpush.bf16.msra.mxu1 %v2770_v1  ;;  %1767 = vmatpush.bf16.msrb.mxu3 %v2294_v14  ;;  %v2582_v1 = vor.u32 %v3113_v47, %v2579_v52  ;;  %v2803_v14 = vld [vmem:[%s4886_s1 + $0x570] sm:$0xf0]  ;;  %v2969_v47 = vld [vmem:[%s4886_s1 + $0x698] sm:$0xf] }
  0xa8   :  { %v2806_v25 = vor.u32 %v3169_v13, %v2803_v14  ;;  %v2707_v5 = vld [vmem:[%s4886_s1 + $0x4b0] sm:$0xf0] }
  0xa9   :  { %1712 = vmatpush.bf16.msra.mxu0 %v2482_v10  ;;  %v4256_v6 = vpop.f32.mrf.mxu3  ;;  %v2361_v10 = vld [vmem:[%s4886_s1 + $0x1d8] sm:$0xf] }
  0xaa   :  { %1645 = vmatmul.bf16.gmra.mxu0 %v3635_v53  ;;  %1664 = vmatmul.bf16.gmra.mxu1 %v3638_v56 }
  0xab   :  { %1731 = vmatpush.bf16.msra.mxu1 %v2738_v11  ;;  %1768 = vmatpush.bf16.msrb.mxu3 %v2262_v23  ;;  %v3062_v11 = vld [vmem:[%s4886_s1 + $0x1f4] sm:$0xf0] }
  0xac   :  { %2982 = vmatmul.msk.bf16.gmra.mxu2 %vm1378_vm0, %v3482_v43  ;;  %v2362_v21 = vor.u32 %v3062_v11, %v2361_v10  ;;  %v3073_v10 = vld [vmem:[%s4886_s1 + $0x254] sm:$0xf] }
  0xad   :  { %1713 = vmatpush.bf16.msra.mxu0 %v2450_v19  ;;  %v2899_v19 = vld [vmem:[%s4886_s1 + $0x630] sm:$0xf0] }
  0xae   :  { %v2902_v22 = vor.u32 %v3193_v18, %v2899_v19  ;;  %1702 = vmatmul.bf16.gmra.mxu3 %v3627_v48  ;;  %v2419_v11 = vld [vmem:[%s4886_s1 + $0x270] sm:$0xf0] }
  0xaf   :  { %1732 = vmatpush.bf16.msra.mxu1 %v2706_v20  ;;  %1769 = vmatpush.bf16.msrb.mxu3 %v2230_v34  ;;  %v2330_v34 = vor.u32 %v3054_v27, %v2329_v26  ;;  %v3137_v18 = vld [vmem:[%s4886_s1 + $0x454] sm:$0xf]  ;;  %v2617_v26 = vld [vmem:[%s4886_s1 + $0x3d8] sm:$0xf] }
  0xb0   :  { %1829 = vmatpush.bf16.msrb.mxu2 %v2902_v22  ;;  %v2675_v19 = vld [vmem:[%s4886_s1 + $0x470] sm:$0xf0]  ;;  %v3126_v27 = vld [vmem:[%s4886_s1 + $0x3f4] sm:$0xf0] }
  0xb1   :  { %1714 = vmatpush.bf16.msra.mxu0 %v2418_v28  ;;  %v2518_v28 = vor.u32 %v3097_v15, %v2515_v17  ;;  %v4312_v33 = vpop.f32.mrf.mxu3  ;;  %v2710_v15 = vor.u32 %v3145_v4, %v2707_v5  ;;  %v2422_v17 = vor.u32 %v3073_v10, %v2419_v11  ;;  %v2387_v22 = vld [vmem:[%s4886_s1 + $0x230] sm:$0xf0]  ;;  %v2678_v31 = vor.u32 %v3137_v18, %v2675_v19  ;;  %v3182_v4 = vld [vmem:[%s4886_s1 + $0x5b4] sm:$0xf0] }
  0xb2   :  { %v2553_v10 = vld [vmem:[%s4886_s1 + $0x358] sm:$0xf] }
  0xb3   :  { %1733 = vmatpush.bf16.msra.mxu1 %v2674_v30  ;;  %1770 = vmatpush.bf16.msrb.mxu3 %v2198_v49  ;;  %v2771_v30 = vld [vmem:[%s4886_s1 + $0x530] sm:$0xf0]  ;;  %v3214_v49 = vld [vmem:[%s4886_s1 + $0x6b4] sm:$0xf0] }
  0xb4   :  { %v2774_v37 = vor.u32 %v3161_v29, %v2771_v30  ;;  %v2970_v57 = vor.u32 %v3214_v49, %v2969_v47  ;;  %v2585_v47 = vld [vmem:[%s4886_s1 + $0x398] sm:$0xf] }
  0xb5   :  { %1715 = vmatpush.bf16.msra.mxu0 %v2386_v42  ;;  %v3153_v42 = vld [vmem:[%s4886_s1 + $0x4d4] sm:$0xf]  ;;  %v3118_v49 = vld [vmem:[%s4886_s1 + $0x3b4] sm:$0xf0] }
  0xb6   :  { %v3110_v11 = vld [vmem:[%s4886_s1 + $0x374] sm:$0xf0] }
  0xb7   :  { %1734 = vmatpush.bf16.msra.mxu1 %v2642_v44  ;;  %1771 = vmatpush.bf16.msrb.mxu3 %v2166_v2  ;;  %v1394_v20 = vpop.f32.mrf.mxu0  ;;  %v1413_v24 = vpop.f32.mrf.mxu1  ;;  %v2739_v44 = vld [vmem:[%s4886_s1 + $0x4f0] sm:$0xf0]  ;;  %v3038_v2 = vld [vmem:[%s4886_s1 + $0x134] sm:$0xf0] }
  0xb8   :  { %v1395_v23 = vadd.f32 %v1394_v20, %v4265_v9  ;;  %v2742_v63 = vor.u32 %v3153_v42, %v2739_v44  ;;  %v2873_v42 = vld [vmem:[%s4886_s1 + $0x5d8] sm:$0xf] }
  0xb9   :  { %1784 = vmatpush.bf16.msrb.mxu0 %v2614_v45  ;;  %v3081_v45 = vld [vmem:[%s4886_s1 + $0x294] sm:$0xf]  ;;  %v3190_v44 = vld [vmem:[%s4886_s1 + $0x5f4] sm:$0xf0] }
  0xba   :  { %1716 = vmatmul.bf16.vlgmr.msra.gmra.mxu0 %v3510_v58  ;;  %1735 = vmatmul.bf16.vlgmr.msra.gmra.mxu1 %v3520_v62  ;;  %v1414_v35 = vadd.f32 %v1413_v24, %v1395_v23 }
  0xbb   :  { %1803 = vmatpush.bf16.msrb.mxu1 %v2870_v51  ;;  %1772 = vmatpush.bf16.msrb.mxu3 %v2134_v16  ;;  %v3030_v16 = vld [vmem:[%s4886_s1 + $0xf4] sm:$0xf0] }
  0xbc   :  { %2983 = vmatmul.msk.bf16.vlgmr.msra.gmra.mxu2 %vm1378_vm0, %v3358_v50 }
  0xbd   :  { %1785 = vmatpush.bf16.msrb.mxu0 %v2582_v1  ;;  %v2265_v1 = vld [vmem:[%s4886_s1 + $0x118] sm:$0xf]  ;;  %1903 = vmatpush.bf16.msra.mxu2 %v2970_v57 }
  0xbe   :  { %v2266_v13 = vor.u32 %v3038_v2, %v2265_v1  ;;  %1773 = vmatmul.bf16.vlgmr.msrb.gmra.mxu3 %v3502_v54  ;;  %v3014_v57 = vld [vmem:[%s4886_s1 + $0x74] sm:$0xf0]  ;;  %v2586_v2 = vor.u32 %v3118_v49, %v2585_v47 }
  0xbf   :  { %1804 = vmatpush.bf16.msrb.mxu1 %v2838_v3  ;;  %1841 = vmatpush.bf16.msra.mxu3 %v2362_v21  ;;  %v1432_v51 = vpop.f32.mrf.mxu2  ;;  %v1396_v52 = vpop.f32.mrf.mxu0  ;;  %v2454_v3 = vor.u32 %v3081_v45, %v2451_v46  ;;  %v3065_v21 = vld [vmem:[%s4886_s1 + $0x214] sm:$0xf]  ;;  %v2489_v49 = vld [vmem:[%s4886_s1 + $0x2d8] sm:$0xf] }
  0xc0   :  { %v1433_v59 = vadd.f32 %v1432_v51, %v1414_v35  ;;  %v1415_v61 = vpop.f32.mrf.mxu1  ;;  %v1397_v8 = vadd.f32 %v1396_v52, %v4265_v9  ;;  %v2390_v35 = vor.u32 %v3065_v21, %v2387_v22  ;;  %v3174_v21 = vld [vmem:[%s4886_s1 + $0x574] sm:$0xf0]  ;;  %v3058_v22 = vld [vmem:[%s4886_s1 + $0x1dc] sm:$0xf] }
  0xc1   :  { %1786 = vmatpush.bf16.msrb.mxu0 %v2550_v12  ;;  %v4369_v12 = vpop.f32.mrf.mxu3 }
  0xc2   :  { %v1452_v7 = vadd.f32 %v4207_v38, %v1433_v59  ;;  %v2233_v38 = vld [vmem:[%s4886_s1 + $0xd8] sm:$0xf]  ;;  %v1416_v20 = vadd.f32 %v1415_v61, %v1397_v8 }
  0xc3   :  { %1805 = vmatpush.bf16.msrb.mxu1 %v2806_v25  ;;  %1842 = vmatpush.bf16.msra.mxu3 %v2330_v34  ;;  %v2234_v25 = vor.u32 %v3030_v16, %v2233_v38  ;;  %v3022_v34 = vld [vmem:[%s4886_s1 + $0xb4] sm:$0xf0] }
  0xc4   :  { %v2011_v14 = vmax.f32 %v1452_v7, %v4347_v60  ;;  %v2202_v46 = vor.u32 %v3022_v34, %v2201_v32  ;;  %v2937_v59 = vld [vmem:[%s4886_s1 + $0x658] sm:$0xf] }
  0xc5   :  { %1787 = vmatpush.bf16.msrb.mxu0 %v2518_v28  ;;  %v3206_v61 = vld [vmem:[%s4886_s1 + $0x674] sm:$0xf0] }
  0xc6   :  { %2043 = vst [vmem:[%s4890_s4] sm:$0xff] %v2011_v14  ;;  %v2938_v1 = vor.u32 %v3206_v61, %v2937_v59  ;;  %v3006_v38 = vld [vmem:[%s4886_s1 + $0x34] sm:$0xf0] }
  0xc7   :  { %1806 = vmatpush.bf16.msrb.mxu1 %v2774_v37  ;;  %1843 = vmatpush.bf16.msra.mxu3 %v2298_v55  ;;  %v1434_v23 = vpop.f32.mrf.mxu2  ;;  %v1399_v24 = vpop.f32.mrf.mxu0  ;;  %v3129_v37 = vld [vmem:[%s4886_s1 + $0x414] sm:$0xf]  ;;  %v2777_v32 = vld [vmem:[%s4886_s1 + $0x518] sm:$0xf] }
  0xc8   :  { %v1435_v28 = vadd.f32 %v1434_v23, %v1416_v20  ;;  %v1400_v29 = vadd.f32 %v1399_v24, %v4265_v9  ;;  %v1418_v30 = vpop.f32.mrf.mxu1  ;;  %v2646_v55 = vor.u32 %v3129_v37, %v2643_v39  ;;  %1904 = vmatpush.bf16.msra.mxu2 %v2938_v1  ;;  %v2554_v20 = vor.u32 %v3110_v11, %v2553_v10  ;;  %v2363_v23 = vld [vmem:[%s4886_s1 + $0x1f8] sm:$0xf0]  ;;  %v3166_v34 = vld [vmem:[%s4886_s1 + $0x534] sm:$0xf0] }
  0xc9   :  { %1788 = vmatpush.bf16.msrb.mxu0 %v2486_v41  ;;  %v2618_v41 = vor.u32 %v3126_v27, %v2617_v26  ;;  %v4421_v45 = vpop.f32.mrf.mxu3  ;;  %v4481_v24 = vperm.slane %v4248_v0, 1  ;;  %v3102_v27 = vld [vmem:[%s4886_s1 + $0x334] sm:$0xf0]  ;;  %v3050_v39 = vld [vmem:[%s4886_s1 + $0x19c] sm:$0xf] }
  0xca   :  { %v1454_v40 = vadd.f32 %v4256_v6, %v1435_v28  ;;  %1721 = vmatmul.bf16.gmra.mxu0 %v3635_v53  ;;  %1740 = vmatmul.bf16.gmra.mxu1 %v3638_v56  ;;  %v2169_v6 = vld [vmem:[%s4886_s1 + $0x58] sm:$0xf]  ;;  %v1419_v52 = vadd.f32 %v1418_v30, %v1400_v29  ;;  %v2299_v1 = vld [vmem:[%s4886_s1 + $0x178] sm:$0xf0] }
  0xcb   :  { %1807 = vmatpush.bf16.msrb.mxu1 %v2742_v63  ;;  %1844 = vmatpush.bf16.msra.mxu3 %v2266_v13  ;;  %v2874_v63 = vor.u32 %v3190_v44, %v2873_v42  ;;  %v2170_v8 = vor.u32 %v3014_v57, %v2169_v6  ;;  %v2905_v28 = vld [vmem:[%s4886_s1 + $0x618] sm:$0xf] }
  0xcc   :  { %v2019_v51 = vmax.f32 %v1454_v40, %v4347_v60  ;;  %2984 = vmatmul.msk.bf16.gmra.mxu2 %vm1378_vm0, %v3482_v43  ;;  %v3198_v29 = vld [vmem:[%s4886_s1 + $0x634] sm:$0xf0]  ;;  %v2331_v40 = vld [vmem:[%s4886_s1 + $0x1b8] sm:$0xf0] }
  0xcd   :  { %1789 = vmatpush.bf16.msrb.mxu0 %v2454_v3  ;;  %v2841_v3 = vld [vmem:[%s4886_s1 + $0x598] sm:$0xf] }
  0xce   :  { %2051 = vst [vmem:[%s4890_s4 + $0x40] sm:$0xff] %v2019_v51  ;;  %v2842_v16 = vor.u32 %v3182_v4, %v2841_v3  ;;  %1778 = vmatmul.bf16.gmra.mxu3 %v3627_v48  ;;  %v3094_v51 = vld [vmem:[%s4886_s1 + $0x2f4] sm:$0xf0] }
  0xcf   :  { %1808 = vmatpush.bf16.msrb.mxu1 %v2710_v15  ;;  %1845 = vmatpush.bf16.msra.mxu3 %v2234_v25  ;;  %v1437_v5 = vpop.f32.mrf.mxu2  ;;  %v1401_v7 = vpop.f32.mrf.mxu0  ;;  %v2137_v15 = vld [vmem:[%s4886_s1 + $0x18] sm:$0xf] }
  0xd0   :  { %v1438_v13 = vadd.f32 %v1437_v5, %v1419_v52  ;;  %v1420_v14 = vpop.f32.mrf.mxu1  ;;  %v1402_v19 = vadd.f32 %v1401_v7, %v4265_v9  ;;  %v2138_v9 = vor.u32 %v3006_v38, %v2137_v15  ;;  %v2521_v25 = vld [vmem:[%s4886_s1 + $0x318] sm:$0xf]  ;;  %v2778_v52 = vor.u32 %v3166_v34, %v2777_v32  ;;  %v3210_v7 = vld [vmem:[%s4886_s1 + $0x69c] sm:$0xf] }
  0xd1   :  { %1790 = vmatpush.bf16.msrb.mxu0 %v2422_v17  ;;  %v2809_v17 = vld [vmem:[%s4886_s1 + $0x558] sm:$0xf]  ;;  %v2522_v44 = vor.u32 %v3102_v27, %v2521_v25  ;;  %v4564_v38 = vperm.slane %v4320_v36, 1  ;;  %v2235_v32 = vld [vmem:[%s4886_s1 + $0xf8] sm:$0xf0] }
  0xd2   :  { %v1457_v18 = vadd.f32 %v4312_v33, %v1438_v13  ;;  %v4483_v33 = vpop.f32.mrf.mxu3  ;;  %v2810_v30 = vor.u32 %v3174_v21, %v2809_v17  ;;  %v1421_v37 = vadd.f32 %v1420_v14, %v1402_v19  ;;  %v3158_v61 = vld [vmem:[%s4886_s1 + $0x4f4] sm:$0xf0]  ;;  %v2267_v17 = vld [vmem:[%s4886_s1 + $0x138] sm:$0xf0] }
  0xd3   :  { %1809 = vmatpush.bf16.msrb.mxu1 %v2678_v31  ;;  %1846 = vmatpush.bf16.msra.mxu3 %v2202_v46  ;;  %v2366_v31 = vor.u32 %v3058_v22, %v2363_v23  ;;  %v1471_v46 = vadd.f32 %v4421_v45, %v4481_v24  ;;  %v2745_v45 = vld [vmem:[%s4886_s1 + $0x4d8] sm:$0xf]  ;;  %v1473_v21 = vadd.f32 %v4483_v33, %v4481_v24 }
  0xd4   :  { %v2027_v26 = vmax.f32 %v1457_v18, %v4347_v60  ;;  %v2457_v3 = vld [vmem:[%s4886_s1 + $0x298] sm:$0xf]  ;;  %v2746_v10 = vor.u32 %v3158_v61, %v2745_v45 }
  0xd5   :  { %1791 = vmatpush.bf16.msrb.mxu0 %v2390_v35  ;;  %v2906_v35 = vor.u32 %v3198_v29, %v2905_v28  ;;  %v3086_v5 = vld [vmem:[%s4886_s1 + $0x2b4] sm:$0xf0] }
  0xd6   :  { %2059 = vst [vmem:[%s4890_s4 + $0x80] sm:$0xff] %v2027_v26  ;;  %v3150_v13 = vld [vmem:[%s4886_s1 + $0x4b4] sm:$0xf0] }
  0xd7   :  { %1810 = vmatpush.bf16.msrb.mxu1 %v2646_v55  ;;  %1847 = vmatpush.bf16.msra.mxu3 %v2170_v8  ;;  %v1489_v42 = vpop.f32.mrf.mxu0  ;;  %v2334_v55 = vor.u32 %v3050_v39, %v2331_v40  ;;  %v2971_v8 = vld [vmem:[%s4886_s1 + $0x6b8] sm:$0xf0]  ;;  %v3078_v25 = vld [vmem:[%s4886_s1 + $0x274] sm:$0xf0] }
  0xd8   :  { %1905 = vmatpush.bf16.msra.mxu2 %v2906_v35  ;;  %v1508_v47 = vpop.f32.mrf.mxu1  ;;  %v1490_v59 = vadd.f32 %v1489_v42, %v1471_v46  ;;  %v2974_v14 = vor.u32 %v3210_v7, %v2971_v8  ;;  %v2681_v28 = vld [vmem:[%s4886_s1 + $0x458] sm:$0xf]  ;;  %v2619_v46 = vld [vmem:[%s4886_s1 + $0x3f8] sm:$0xf0] }
  0xd9   :  { %1860 = vmatpush.bf16.msra.mxu0 %v2618_v41  ;;  %v1439_v41 = vpop.f32.mrf.mxu2  ;;  %v3070_v39 = vld [vmem:[%s4886_s1 + $0x234] sm:$0xf0]  ;;  %v2587_v7 = vld [vmem:[%s4886_s1 + $0x3b8] sm:$0xf0] }
  0xda   :  { %v1440_v6 = vadd.f32 %v1439_v41, %v1421_v37  ;;  %1792 = vmatmul.bf16.vlgmr.msrb.gmra.mxu0 %v3510_v58  ;;  %1811 = vmatmul.bf16.vlgmr.msrb.gmra.mxu1 %v3520_v62  ;;  %v1509_v15 = vadd.f32 %v1508_v47, %v1490_v59  ;;  %v2393_v37 = vld [vmem:[%s4886_s1 + $0x218] sm:$0xf]  ;;  %v2875_v59 = vld [vmem:[%s4886_s1 + $0x5f8] sm:$0xf0] }
  0xdb   :  { %1879 = vmatpush.bf16.msra.mxu1 %v2874_v63  ;;  %1848 = vmatpush.bf16.msra.mxu3 %v2138_v9  ;;  %v3042_v63 = vld [vmem:[%s4886_s1 + $0x15c] sm:$0xf]  ;;  %v2425_v9 = vld [vmem:[%s4886_s1 + $0x258] sm:$0xf]  ;;  %v2394_v45 = vor.u32 %v3070_v39, %v2393_v37 }
  0xdc   :  { %v1459_v57 = vadd.f32 %v4369_v12, %v1440_v6  ;;  %v2490_v12 = vor.u32 %v3094_v51, %v2489_v49  ;;  %2985 = vmatmul.msk.bf16.vlgmr.msrb.gmra.mxu2 %vm1378_vm0, %v3358_v50  ;;  %v2302_v11 = vor.u32 %v3042_v63, %v2299_v1  ;;  %v2426_v35 = vor.u32 %v3078_v25, %v2425_v9  ;;  %v2649_v42 = vld [vmem:[%s4886_s1 + $0x418] sm:$0xf]  ;;  %v3018_v49 = vld [vmem:[%s4886_s1 + $0x9c] sm:$0xf] }
  0xdd   :  { %1861 = vmatpush.bf16.msra.mxu0 %v2586_v2  ;;  %v4536_v2 = vpop.f32.mrf.mxu3  ;;  %1979 = vmatpush.bf16.msrb.mxu2 %v2974_v14  ;;  %v3134_v47 = vld [vmem:[%s4886_s1 + $0x434] sm:$0xf0]  ;;  %v2203_v51 = vld [vmem:[%s4886_s1 + $0xb8] sm:$0xf0] }
  0xde   :  { %v2035_v4 = vmax.f32 %v1459_v57, %v4347_v60  ;;  %v2713_v60 = vld [vmem:[%s4886_s1 + $0x498] sm:$0xf]  ;;  %v3186_v57 = vld [vmem:[%s4886_s1 + $0x5dc] sm:$0xf]  ;;  %v1476_v61 = vadd.f32 %v4536_v2, %v4481_v24  ;;  %1849 = vmatmul.bf16.vlgmr.msra.gmra.mxu3 %v3502_v54 }
  0xdf   :  { %1880 = vmatpush.bf16.msra.mxu1 %v2842_v16  ;;  %1917 = vmatpush.bf16.msrb.mxu3 %v2366_v31  ;;  %v3034_v16 = vld [vmem:[%s4886_s1 + $0x11c] sm:$0xf]  ;;  %v1491_v19 = vpop.f32.mrf.mxu0  ;;  %v2714_v26 = vor.u32 %v3150_v13, %v2713_v60 }
  0xe0   :  { %2067 = vst [vmem:[%s4890_s4 + $0xc0] sm:$0xff] %v2035_v4  ;;  %v1510_v23 = vpop.f32.mrf.mxu1  ;;  %v2270_v27 = vor.u32 %v3034_v16, %v2267_v17  ;;  %v1492_v29 = vadd.f32 %v1491_v19, %v1473_v21  ;;  %v3026_v31 = vld [vmem:[%s4886_s1 + $0xdc] sm:$0xf]  ;;  %v2206_v4 = vor.u32 %v3018_v49, %v2203_v51 }
  0xe1   :  { %1862 = vmatpush.bf16.msra.mxu0 %v2554_v20  ;;  %v1527_v18 = vpop.f32.mrf.mxu2  ;;  %v2458_v20 = vor.u32 %v3086_v5, %v2457_v3  ;;  %v2238_v41 = vor.u32 %v3026_v31, %v2235_v32  ;;  %v2650_v3 = vor.u32 %v3134_v47, %v2649_v42  ;;  %v3114_v5 = vld [vmem:[%s4886_s1 + $0x39c] sm:$0xf] }
  0xe2   :  { %v1528_v22 = vadd.f32 %v1527_v18, %v1509_v15  ;;  %v1511_v6 = vadd.f32 %v1510_v23, %v1492_v29  ;;  %v2171_v60 = vld [vmem:[%s4886_s1 + $0x78] sm:$0xf0]  ;;  %v4660_v16 = vor.u32 %v3114_v5, %v2587_v7 }
  0xe3   :  { %1881 = vmatpush.bf16.msra.mxu1 %v2810_v30  ;;  %1918 = vmatpush.bf16.msrb.mxu3 %v2334_v55  ;;  %v3142_v30 = vld [vmem:[%s4886_s1 + $0x474] sm:$0xf0]  ;;  %v3178_v14 = vld [vmem:[%s4886_s1 + $0x59c] sm:$0xf] }
  0xe4   :  { %v2012_v33 = vmax.f32 %v1528_v22, %v4564_v38  ;;  %v2682_v40 = vor.u32 %v3142_v30, %v2681_v28  ;;  %v2843_v15 = vld [vmem:[%s4886_s1 + $0x5b8] sm:$0xf0] }
  0xe5   :  { %1863 = vmatpush.bf16.msra.mxu0 %v2522_v44  ;;  %v4593_v34 = vpop.f32.mrf.mxu3  ;;  %v3122_v44 = vld [vmem:[%s4886_s1 + $0x3dc] sm:$0xf]  ;;  %v2846_v9 = vor.u32 %v3178_v14, %v2843_v15 }
  0xe6   :  { %2044 = vst [vmem:[%s4890_s4 + $0x8] sm:$0xff] %v2012_v33  ;;  %v3202_v17 = vld [vmem:[%s4886_s1 + $0x65c] sm:$0xf]  ;;  %v1478_v30 = vadd.f32 %v4593_v34, %v4481_v24 }
  0xe7   :  { %1882 = vmatpush.bf16.msra.mxu1 %v2778_v52  ;;  %1919 = vmatpush.bf16.msrb.mxu3 %v2302_v11  ;;  %v1494_v55 = vpop.f32.mrf.mxu0  ;;  %v3010_v11 = vld [vmem:[%s4886_s1 + $0x5c] sm:$0xf] }
  0xe8   :  { %v1513_v1 = vpop.f32.mrf.mxu1  ;;  %v1495_v8 = vadd.f32 %v1494_v55, %v1476_v61  ;;  %v2939_v18 = vld [vmem:[%s4886_s1 + $0x678] sm:$0xf0]  ;;  %v2174_v19 = vor.u32 %v3010_v11, %v2171_v60 }
  0xe9   :  { %1864 = vmatpush.bf16.msra.mxu0 %v2490_v12  ;;  %v1529_v52 = vpop.f32.mrf.mxu2  ;;  %v4631_v12 = vor.u32 %v3122_v44, %v2619_v46  ;;  %v2555_v21 = vld [vmem:[%s4886_s1 + $0x378] sm:$0xf0]  ;;  %v2942_v22 = vor.u32 %v3202_v17, %v2939_v18 }
  0xea   :  { %v1530_v63 = vadd.f32 %v1529_v52, %v1511_v6  ;;  %1797 = vmatmul.bf16.gmra.mxu0 %v3635_v53  ;;  %1816 = vmatmul.bf16.gmra.mxu1 %v3638_v56  ;;  %v1514_v23 = vadd.f32 %v1513_v1, %v1495_v8  ;;  %v3002_v25 = vld [vmem:[%s4886_s1 + $0x1c] sm:$0xf]  ;;  %v4703_v6 = vperm.slane %v4248_v0, 2 }
  0xeb   :  { %1883 = vmatpush.bf16.msra.mxu1 %v2746_v10  ;;  %1920 = vmatpush.bf16.msrb.mxu3 %v2270_v27  ;;  %v2878_v10 = vor.u32 %v3186_v57, %v2875_v59  ;;  %v3170_v33 = vld [vmem:[%s4886_s1 + $0x55c] sm:$0xf] }
  0xec   :  { %v2020_v2 = vmax.f32 %v1530_v63, %v4564_v38  ;;  %2986 = vmatmul.msk.bf16.gmra.mxu2 %vm1378_vm0, %v3482_v43  ;;  %v2811_v29 = vld [vmem:[%s4886_s1 + $0x578] sm:$0xf0] }
  0xed   :  { %1865 = vmatpush.bf16.msra.mxu0 %v2458_v20  ;;  %v1546_v13 = vpop.f32.mrf.mxu3  ;;  %v3106_v20 = vld [vmem:[%s4886_s1 + $0x35c] sm:$0xf]  ;;  %1980 = vmatpush.bf16.msrb.mxu2 %v2942_v22  ;;  %v2814_v24 = vor.u32 %v3170_v33, %v2811_v29 }
  0xee   :  { %2052 = vst [vmem:[%s4890_s4 + $0x48] sm:$0xff] %v2020_v2  ;;  %v3098_v39 = vld [vmem:[%s4886_s1 + $0x31c] sm:$0xf]  ;;  %1854 = vmatmul.bf16.gmra.mxu3 %v3627_v48 }
  0xef   :  { %1884 = vmatpush.bf16.msra.mxu1 %v2714_v26  ;;  %1921 = vmatpush.bf16.msrb.mxu3 %v2238_v41  ;;  %v2139_v26 = vld [vmem:[%s4886_s1 + $0x38] sm:$0xf0]  ;;  %v1496_v28 = vpop.f32.mrf.mxu0 }
  0xf0   :  { %v1515_v32 = vpop.f32.mrf.mxu1  ;;  %v2142_v37 = vor.u32 %v3002_v25, %v2139_v26  ;;  %v1497_v42 = vadd.f32 %v1496_v28, %v1478_v30  ;;  %v3162_v44 = vld [vmem:[%s4886_s1 + $0x51c] sm:$0xf] }
  0xf1   :  { %1866 = vmatpush.bf16.msra.mxu0 %v2426_v35  ;;  %v1532_v27 = vpop.f32.mrf.mxu2  ;;  %v2558_v35 = vor.u32 %v3106_v20, %v2555_v21  ;;  %v2779_v46 = vld [vmem:[%s4886_s1 + $0x538] sm:$0xf0] }
  0xf2   :  { %v1533_v31 = vadd.f32 %v1532_v27, %v1514_v23  ;;  %v3194_v49 = vld [vmem:[%s4886_s1 + $0x61c] sm:$0xf]  ;;  %v1516_v57 = vadd.f32 %v1515_v32, %v1497_v42  ;;  %v2782_v59 = vor.u32 %v3162_v44, %v2779_v46 }
  0xf3   :  { %1885 = vmatpush.bf16.msra.mxu1 %v2682_v40  ;;  %1922 = vmatpush.bf16.msrb.mxu3 %v2206_v4  ;;  %v2523_v40 = vld [vmem:[%s4886_s1 + $0x338] sm:$0xf0]  ;;  %v1547_v4 = vadd.f32 %v1546_v13, %v4703_v6 }
  0xf4   :  { %v2028_v41 = vmax.f32 %v1533_v31, %v4564_v38  ;;  %v2526_v47 = vor.u32 %v3098_v39, %v2523_v40  ;;  %v2907_v51 = vld [vmem:[%s4886_s1 + $0x638] sm:$0xf0] }
  0xf5   :  { %1867 = vmatpush.bf16.msra.mxu0 %v2394_v45  ;;  %v1548_v34 = vpop.f32.mrf.mxu3  ;;  %v3090_v52 = vld [vmem:[%s4886_s1 + $0x2dc] sm:$0xf]  ;;  %v2910_v45 = vor.u32 %v3194_v49, %v2907_v51 }
  0xf6   :  { %2060 = vst [vmem:[%s4890_s4 + $0x88] sm:$0xff] %v2028_v41  ;;  %v2491_v55 = vld [vmem:[%s4886_s1 + $0x2f8] sm:$0xf0]  ;;  %v1549_v25 = vadd.f32 %v1548_v34, %v4703_v6 }
  0xf7   :  { %1886 = vmatpush.bf16.msra.mxu1 %v2650_v3  ;;  %1923 = vmatpush.bf16.msrb.mxu3 %v2174_v19  ;;  %v1565_v63 = vpop.f32.mrf.mxu0  ;;  %v3154_v1 = vld [vmem:[%s4886_s1 + $0x4dc] sm:$0xf]  ;;  %v4757_v19 = vperm.slane %v4320_v36, 2 }
  0xf8   :  { %v2747_v3 = vld [vmem:[%s4886_s1 + $0x4f8] sm:$0xf0]  ;;  %1981 = vmatpush.bf16.msrb.mxu2 %v2910_v45  ;;  %v1584_v7 = vpop.f32.mrf.mxu1  ;;  %v1566_v11 = vadd.f32 %v1565_v63, %v1547_v4  ;;  %v247_v4 = vperm.slane %v4248_v0, 3 }
  0xf9   :  { %1936 = vmatpush.bf16.msrb.mxu0 %v4631_v12  ;;  %v1534_v61 = vpop.f32.mrf.mxu2  ;;  %v3082_v2 = vld [vmem:[%s4886_s1 + $0x29c] sm:$0xf]  ;;  %v2750_v60 = vor.u32 %v3154_v1, %v2747_v3 }
  0xfa   :  { %v1535_v5 = vadd.f32 %v1534_v61, %v1516_v57  ;;  %v2459_v8 = vld [vmem:[%s4886_s1 + $0x2b8] sm:$0xf0]  ;;  %1868 = vmatmul.bf16.vlgmr.msra.gmra.mxu0 %v3510_v58  ;;  %1887 = vmatmul.bf16.vlgmr.msra.gmra.mxu1 %v3520_v62  ;;  %v1585_v18 = vadd.f32 %v1584_v7, %v1566_v11 }
  0xfb   :  { %1955 = vmatpush.bf16.msrb.mxu1 %v2878_v10  ;;  %1924 = vmatpush.bf16.msrb.mxu3 %v2142_v37  ;;  %v3146_v14 = vld [vmem:[%s4886_s1 + $0x49c] sm:$0xf] }
  0xfc   :  { %v2036_v10 = vmax.f32 %v1535_v5, %v4564_v38  ;;  %v2715_v15 = vld [vmem:[%s4886_s1 + $0x4b8] sm:$0xf0]  ;;  %2987 = vmatmul.msk.bf16.vlgmr.msra.gmra.mxu2 %vm1378_vm0, %v3358_v50  ;;  %v2462_v38 = vor.u32 %v3082_v2, %v2459_v8 }
  0xfd   :  { %1937 = vmatpush.bf16.msrb.mxu0 %v4660_v16  ;;  %v1551_v13 = vpop.f32.mrf.mxu3  ;;  %v2427_v17 = vld [vmem:[%s4886_s1 + $0x278] sm:$0xf0]  ;;  %v2718_v20 = vor.u32 %v3146_v14, %v2715_v15  ;;  %v1998_v14 = vperm.slane %v4320_v36, 3 }
  0xfe   :  { %2068 = vst [vmem:[%s4890_s4 + $0xc8] sm:$0xff] %v2036_v10  ;;  %v3138_v23 = vld [vmem:[%s4886_s1 + $0x45c] sm:$0xf]  ;;  %v1552_v44 = vadd.f32 %v1551_v13, %v4703_v6  ;;  %1925 = vmatmul.bf16.vlgmr.msrb.gmra.mxu3 %v3502_v54 }
  0xff   :  { %1956 = vmatpush.bf16.msrb.mxu1 %v2846_v9  ;;  %3215 = vmatpush.bf16.msra.mxu3 %v4631_v12  ;;  %v2494_v12 = vor.u32 %v3090_v52, %v2491_v55  ;;  %v1567_v22 = vpop.f32.mrf.mxu0  ;;  %v2683_v9 = vld [vmem:[%s4886_s1 + $0x478] sm:$0xf0] }
 0x100   :  { %v1586_v27 = vpop.f32.mrf.mxu1  ;;  %v3066_v33 = vld [vmem:[%s4886_s1 + $0x21c] sm:$0xf]  ;;  %v1568_v31 = vadd.f32 %v1567_v22, %v1549_v25  ;;  %v2686_v32 = vor.u32 %v3138_v23, %v2683_v9 }
 0x101   :  { %1938 = vmatpush.bf16.msrb.mxu0 %v2558_v35  ;;  %v1603_v21 = vpop.f32.mrf.mxu2  ;;  %v2395_v29 = vld [vmem:[%s4886_s1 + $0x238] sm:$0xf0] }
 0x102   :  { %v1604_v26 = vadd.f32 %v1603_v21, %v1585_v18  ;;  %v3130_v37 = vld [vmem:[%s4886_s1 + $0x41c] sm:$0xf]  ;;  %v2398_v40 = vor.u32 %v3066_v33, %v2395_v29  ;;  %v1587_v41 = vadd.f32 %v1586_v27, %v1568_v31 }
 0x103   :  { %1957 = vmatpush.bf16.msrb.mxu1 %v2814_v24  ;;  %3216 = vmatpush.bf16.msra.mxu3 %v4660_v16  ;;  %v3074_v16 = vld [vmem:[%s4886_s1 + $0x25c] sm:$0xf] }
 0x104   :  { %v2430_v28 = vor.u32 %v3074_v16, %v2427_v17  ;;  %v2013_v30 = vmax.f32 %v1604_v26, %v4757_v19  ;;  %v2651_v39 = vld [vmem:[%s4886_s1 + $0x438] sm:$0xf0] }
 0x105   :  { %1939 = vmatpush.bf16.msrb.mxu0 %v2526_v47  ;;  %v2654_v42 = vor.u32 %v3130_v37, %v2651_v39  ;;  %v248_v37 = vperm.slane %v4248_v0, 4  ;;  %v1999_v0 = vperm.slane %v4320_v36, 4 }
 0x106   :  { %2045 = vst [vmem:[%s4890_s4 + $0x10] sm:$0xff] %v2013_v30 }
 0x107   :  { %1958 = vmatpush.bf16.msrb.mxu1 %v2782_v59  ;;  %3217 = vmatpush.bf16.msra.mxu3 %v2558_v35  ;;  %v1553_v35 = vpop.f32.mrf.mxu3  ;;  %v1570_v34 = vpop.f32.mrf.mxu0 }
 0x108   :  { %v1571_v51 = vadd.f32 %v1570_v34, %v1552_v44  ;;  %v1554_v57 = vadd.f32 %v1553_v35, %v4703_v6 }
 0x109   :  { %1940 = vmatpush.bf16.msrb.mxu0 %v2494_v12  ;;  %v1605_v24 = vpop.f32.mrf.mxu2 }
 0x10a   :  { %v1606_v46 = vadd.f32 %v1605_v24, %v1587_v41  ;;  %1873 = vmatmul.bf16.gmra.mxu0 %v3635_v53  ;;  %1892 = vmatmul.bf16.gmra.mxu1 %v3638_v56 }
 0x10b   :  { %1959 = vmatpush.bf16.msrb.mxu1 %v2750_v60  ;;  %3218 = vmatpush.bf16.msra.mxu3 %v2526_v47  ;;  %v1589_v47 = vpop.f32.mrf.mxu1 }
 0x10c   :  { %v2021_v49 = vmax.f32 %v1606_v46, %v4757_v19  ;;  %2988 = vmatmul.msk.bf16.gmra.mxu2 %vm1378_vm0, %v3482_v43  ;;  %v1590_v54 = vadd.f32 %v1589_v47, %v1571_v51 }
 0x10d   :  { %1941 = vmatpush.bf16.msrb.mxu0 %v2462_v38 }
 0x10e   :  { %2053 = vst [vmem:[%s4890_s4 + $0x50] sm:$0xff] %v2021_v49  ;;  %1930 = vmatmul.bf16.gmra.mxu3 %v3627_v48 }
 0x10f   :  { %1960 = vmatpush.bf16.msrb.mxu1 %v2718_v20  ;;  %3219 = vmatpush.bf16.msra.mxu3 %v2494_v12  ;;  %v1622_v52 = vpop.f32.mrf.mxu3  ;;  %v1572_v45 = vpop.f32.mrf.mxu0 }
 0x110   :  { %v1573_v1 = vadd.f32 %v1572_v45, %v1554_v57  ;;  %v1623_v2 = vadd.f32 %v1622_v52, %v247_v4 }
 0x111   :  { %1942 = vmatpush.bf16.msrb.mxu0 %v2430_v28  ;;  %v1608_v55 = vpop.f32.mrf.mxu2 }
 0x112   :  { %v1609_v59 = vadd.f32 %v1608_v55, %v1590_v54 }
 0x113   :  { %1961 = vmatpush.bf16.msrb.mxu1 %v2686_v32  ;;  %3220 = vmatpush.bf16.msra.mxu3 %v2462_v38  ;;  %v1591_v61 = vpop.f32.mrf.mxu1 }
 0x114   :  { %v2029_v63 = vmax.f32 %v1609_v59, %v4757_v19  ;;  %v1592_v5 = vadd.f32 %v1591_v61, %v1573_v1 }
 0x115   :  { %1943 = vmatpush.bf16.msrb.mxu0 %v2398_v40 }
 0x116   :  { %2061 = vst [vmem:[%s4890_s4 + $0x90] sm:$0xff] %v2029_v63 }
 0x117   :  { %1962 = vmatpush.bf16.msrb.mxu1 %v2654_v42  ;;  %3221 = vmatpush.bf16.msra.mxu3 %v2430_v28  ;;  %v1624_v3 = vpop.f32.mrf.mxu3  ;;  %v1641_v12 = vpop.f32.mrf.mxu0 }
 0x118   :  { %v1642_v11 = vadd.f32 %v1641_v12, %v1623_v2  ;;  %v1625_v38 = vadd.f32 %v1624_v3, %v247_v4 }
 0x119   :  { %v1610_v7 = vpop.f32.mrf.mxu2 }
 0x11a   :  { %v1611_v8 = vadd.f32 %v1610_v7, %v1592_v5  ;;  %1944 = vmatmul.bf16.vlgmr.msrb.gmra.mxu0 %v3510_v58  ;;  %1963 = vmatmul.bf16.vlgmr.msrb.gmra.mxu1 %v3520_v62 }
 0x11b   :  { %3222 = vmatpush.bf16.msra.mxu3 %v2398_v40  ;;  %v1660_v6 = vpop.f32.mrf.mxu1 }
 0x11c   :  { %v2037_v10 = vmax.f32 %v1611_v8, %v4757_v19  ;;  %2989 = vmatmul.msk.bf16.vlgmr.msrb.gmra.mxu2 %vm1378_vm0, %v3358_v50  ;;  %v1661_v13 = vadd.f32 %v1660_v6, %v1642_v11 }
 0x11e   :  { %2069 = vst [vmem:[%s4890_s4 + $0xd0] sm:$0xff] %v2037_v10  ;;  %1949 = vmatmul.bf16.vlgmr.msra.gmra.mxu3 %v3635_v53 }
 0x11f   :  { %v1627_v60 = vpop.f32.mrf.mxu3  ;;  %v1643_v15 = vpop.f32.mrf.mxu0 }
 0x120   :  { %v1644_v58 = vadd.f32 %v1643_v15, %v1625_v38  ;;  %v1628_v22 = vadd.f32 %v1627_v60, %v247_v4  ;;  %v4835_v15 = vld [vmem:[%s4888_s2] sm:$0xff] }
 0x121   :  { %v1679_v48 = vpop.f32.mrf.mxu2  ;;  %v249_v38 = vperm.slane %v4835_v15, 5 }
 0x122   :  { %v1680_v16 = vadd.f32 %v1679_v48, %v1661_v13 }
 0x123   :  { %v1662_v17 = vpop.f32.mrf.mxu1 }
 0x124   :  { %v2014_v18 = vmax.f32 %v1680_v16, %v1998_v14  ;;  %v1663_v62 = vadd.f32 %v1662_v17, %v1644_v58 }
 0x126   :  { %2046 = vst [vmem:[%s4890_s4 + $0x18] sm:$0xff] %v2014_v18 }
 0x127   :  { %v1629_v19 = vpop.f32.mrf.mxu3  ;;  %v1646_v21 = vpop.f32.mrf.mxu0 }
 0x128   :  { %v1647_v25 = vadd.f32 %v1646_v21, %v1628_v22  ;;  %v1630_v29 = vadd.f32 %v1629_v19, %v247_v4 }
 0x129   :  { %v1681_v20 = vpop.f32.mrf.mxu2 }
 0x12a   :  { %v1682_v50 = vadd.f32 %v1681_v20, %v1663_v62  ;;  %1968 = vmatmul.bf16.gmra.mxu1 %v3638_v56 }
 0x12b   :  { %v1665_v23 = vpop.f32.mrf.mxu1 }
 0x12c   :  { %v2022_v9 = vmax.f32 %v1682_v50, %v1998_v14  ;;  %2990 = vmatmul.msk.bf16.gmra.mxu2 %vm1378_vm0, %v3482_v43  ;;  %v1666_v27 = vadd.f32 %v1665_v23, %v1647_v25  ;;  %v2000_v23 = vperm.slane %v4320_v36, 5 }
 0x12e   :  { %2054 = vst [vmem:[%s4890_s4 + $0x58] sm:$0xff] %v2022_v9 }
 0x12f   :  { %v1698_v26 = vpop.f32.mrf.mxu3  ;;  %v1648_v33 = vpop.f32.mrf.mxu0 }
 0x130   :  { %v1649_v32 = vadd.f32 %v1648_v33, %v1630_v29  ;;  %v1699_v41 = vadd.f32 %v1698_v26, %v248_v37 }
 0x131   :  { %v1684_v28 = vpop.f32.mrf.mxu2 }
 0x132   :  { %v1685_v30 = vadd.f32 %v1684_v28, %v1666_v27 }
 0x133   :  { %v1667_v31 = vpop.f32.mrf.mxu1 }
 0x134   :  { %v2030_v53 = vmax.f32 %v1685_v30, %v1998_v14  ;;  %v1668_v56 = vadd.f32 %v1667_v31, %v1649_v32 }
 0x136   :  { %2062 = vst [vmem:[%s4890_s4 + $0x98] sm:$0xff] %v2030_v53 }
 0x137   :  { %v1700_v35 = vpop.f32.mrf.mxu3  ;;  %v1717_v40 = vpop.f32.mrf.mxu0 }
 0x138   :  { %v1718_v34 = vadd.f32 %v1717_v40, %v1699_v41  ;;  %v1701_v51 = vadd.f32 %v1700_v35, %v248_v37 }
 0x139   :  { %v1686_v39 = vpop.f32.mrf.mxu2 }
 0x13a   :  { %v1687_v43 = vadd.f32 %v1686_v39, %v1668_v56 }
 0x13b   :  { %v1736_v42 = vpop.f32.mrf.mxu1 }
 0x13c   :  { %v2038_v24 = vmax.f32 %v1687_v43, %v1998_v14  ;;  %v1737_v46 = vadd.f32 %v1736_v42, %v1718_v34 }
 0x13e   :  { %2070 = vst [vmem:[%s4890_s4 + $0xd8] sm:$0xff] %v2038_v24 }
 0x13f   :  { %v1703_v44 = vpop.f32.mrf.mxu3  ;;  %v1719_v49 = vpop.f32.mrf.mxu0 }
 0x140   :  { %v1720_v45 = vadd.f32 %v1719_v49, %v1701_v51  ;;  %v1704_v1 = vadd.f32 %v1703_v44, %v248_v37  ;;  %v250_v49 = vperm.slane %v4835_v15, 6 }
 0x141   :  { %v1755_v47 = vpop.f32.mrf.mxu2 }
 0x142   :  { %v1756_v52 = vadd.f32 %v1755_v47, %v1737_v46 }
 0x143   :  { %v1738_v54 = vpop.f32.mrf.mxu1 }
 0x144   :  { %v2015_v55 = vmax.f32 %v1756_v52, %v1999_v0  ;;  %v1739_v59 = vadd.f32 %v1738_v54, %v1720_v45 }
 0x146   :  { %2047 = vst [vmem:[%s4890_s4 + $0x20] sm:$0xff] %v2015_v55 }
 0x147   :  { %v1705_v57 = vpop.f32.mrf.mxu3  ;;  %v1722_v63 = vpop.f32.mrf.mxu0 }
 0x148   :  { %v1723_v7 = vadd.f32 %v1722_v63, %v1704_v1  ;;  %v1706_v10 = vadd.f32 %v1705_v57, %v248_v37 }
 0x149   :  { %v1757_v61 = vpop.f32.mrf.mxu2 }
 0x14a   :  { %v1758_v3 = vadd.f32 %v1757_v61, %v1739_v59 }
 0x14b   :  { %v1741_v4 = vpop.f32.mrf.mxu1 }
 0x14c   :  { %v2023_v5 = vmax.f32 %v1758_v3, %v1999_v0  ;;  %v1742_v2 = vadd.f32 %v1741_v4, %v1723_v7  ;;  %v3224_v3 = vld [vmem:[%s4889_s3] sm:$0xff] }
 0x14d   :  { %v2001_v4 = vperm.slane %v3224_v3, 6 }
 0x14e   :  { %2055 = vst [vmem:[%s4890_s4 + $0x60] sm:$0xff] %v2023_v5 }
 0x14f   :  { %v1774_v12 = vpop.f32.mrf.mxu3  ;;  %v1724_v6 = vpop.f32.mrf.mxu0 }
 0x150   :  { %v1725_v14 = vadd.f32 %v1724_v6, %v1706_v10  ;;  %v1775_v58 = vadd.f32 %v1774_v12, %v249_v38 }
 0x151   :  { %v1760_v8 = vpop.f32.mrf.mxu2 }
 0x152   :  { %v1761_v11 = vadd.f32 %v1760_v8, %v1742_v2 }
 0x153   :  { %v1743_v60 = vpop.f32.mrf.mxu1 }
 0x154   :  { %v2031_v13 = vmax.f32 %v1761_v11, %v1999_v0  ;;  %v1744_v16 = vadd.f32 %v1743_v60, %v1725_v14 }
 0x156   :  { %2063 = vst [vmem:[%s4890_s4 + $0xa0] sm:$0xff] %v2031_v13 }
 0x157   :  { %v1776_v48 = vpop.f32.mrf.mxu3  ;;  %v1793_v18 = vpop.f32.mrf.mxu0 }
 0x158   :  { %v1794_v21 = vadd.f32 %v1793_v18, %v1775_v58  ;;  %v1777_v26 = vadd.f32 %v1776_v48, %v249_v38 }
 0x159   :  { %v1762_v17 = vpop.f32.mrf.mxu2 }
 0x15a   :  { %v1763_v19 = vadd.f32 %v1762_v17, %v1744_v16 }
 0x15b   :  { %v1812_v62 = vpop.f32.mrf.mxu1 }
 0x15c   :  { %v2039_v20 = vmax.f32 %v1763_v19, %v1999_v0  ;;  %v1813_v50 = vadd.f32 %v1812_v62, %v1794_v21 }
 0x15e   :  { %2071 = vst [vmem:[%s4890_s4 + $0xe0] sm:$0xff] %v2039_v20 }
 0x15f   :  { %v1779_v22 = vpop.f32.mrf.mxu3  ;;  %v1795_v25 = vpop.f32.mrf.mxu0 }
 0x160   :  { %v1796_v29 = vadd.f32 %v1795_v25, %v1777_v26  ;;  %v1780_v35 = vadd.f32 %v1779_v22, %v249_v38  ;;  %v251_v26 = vperm.slane %v4835_v15, 7 }
 0x161   :  { %v1831_v9 = vpop.f32.mrf.mxu2 }
 0x162   :  { %v1832_v27 = vadd.f32 %v1831_v9, %v1813_v50 }
 0x163   :  { %v1814_v28 = vpop.f32.mrf.mxu1 }
 0x164   :  { %v2016_v33 = vmax.f32 %v1832_v27, %v2000_v23  ;;  %v1815_v31 = vadd.f32 %v1814_v28, %v1796_v29 }
 0x166   :  { %2048 = vst [vmem:[%s4890_s4 + $0x28] sm:$0xff] %v2016_v33 }
 0x167   :  { %v1781_v30 = vpop.f32.mrf.mxu3  ;;  %v1798_v32 = vpop.f32.mrf.mxu0 }
 0x168   :  { %v1799_v36 = vadd.f32 %v1798_v32, %v1780_v35  ;;  %v1782_v24 = vadd.f32 %v1781_v30, %v249_v38 }
 0x169   :  { %v1833_v53 = vpop.f32.mrf.mxu2 }
 0x16a   :  { %v1834_v37 = vadd.f32 %v1833_v53, %v1815_v31 }
 0x16b   :  { %v1817_v56 = vpop.f32.mrf.mxu1 }
 0x16c   :  { %v2024_v39 = vmax.f32 %v1834_v37, %v2000_v23  ;;  %v1818_v41 = vadd.f32 %v1817_v56, %v1799_v36  ;;  %v2002_v56 = vperm.slane %v3224_v3, 7 }
 0x16e   :  { %2056 = vst [vmem:[%s4890_s4 + $0x68] sm:$0xff] %v2024_v39 }
 0x16f   :  { %v1850_v40 = vpop.f32.mrf.mxu3  ;;  %v1800_v42 = vpop.f32.mrf.mxu0 }
 0x170   :  { %v1801_v0 = vadd.f32 %v1800_v42, %v1782_v24  ;;  %v1851_v55 = vadd.f32 %v1850_v40, %v250_v49 }
 0x171   :  { %v1836_v43 = vpop.f32.mrf.mxu2 }
 0x172   :  { %v1837_v34 = vadd.f32 %v1836_v43, %v1818_v41 }
 0x173   :  { %v1819_v44 = vpop.f32.mrf.mxu1 }
 0x174   :  { %v2032_v46 = vmax.f32 %v1837_v34, %v2000_v23  ;;  %v1820_v51 = vadd.f32 %v1819_v44, %v1801_v0 }
 0x176   :  { %2064 = vst [vmem:[%s4890_s4 + $0xa8] sm:$0xff] %v2032_v46 }
 0x177   :  { %v1852_v47 = vpop.f32.mrf.mxu3  ;;  %v1869_v54 = vpop.f32.mrf.mxu0 }
 0x178   :  { %v1870_v61 = vadd.f32 %v1869_v54, %v1851_v55  ;;  %v1853_v12 = vadd.f32 %v1852_v47, %v250_v49 }
 0x179   :  { %v1838_v52 = vpop.f32.mrf.mxu2 }
 0x17a   :  { %v1839_v45 = vadd.f32 %v1838_v52, %v1820_v51 }
 0x17b   :  { %v1888_v57 = vpop.f32.mrf.mxu1 }
 0x17c   :  { %v2040_v59 = vmax.f32 %v1839_v45, %v2000_v23  ;;  %v1889_v1 = vadd.f32 %v1888_v57, %v1870_v61 }
 0x17e   :  { %2072 = vst [vmem:[%s4890_s4 + $0xe8] sm:$0xff] %v2040_v59 }
 0x17f   :  { %v1855_v63 = vpop.f32.mrf.mxu3  ;;  %v1871_v7 = vpop.f32.mrf.mxu0 }
 0x180   :  { %v1872_v10 = vadd.f32 %v1871_v7, %v1853_v12  ;;  %v1856_v48 = vadd.f32 %v1855_v63, %v250_v49 }
 0x181   :  { %v1907_v5 = vpop.f32.mrf.mxu2 }
 0x182   :  { %v1908_v2 = vadd.f32 %v1907_v5, %v1889_v1 }
 0x183   :  { %v1890_v8 = vpop.f32.mrf.mxu1 }
 0x184   :  { %v2017_v6 = vmax.f32 %v1908_v2, %v2001_v4  ;;  %v1891_v60 = vadd.f32 %v1890_v8, %v1872_v10 }
 0x186   :  { %2049 = vst [vmem:[%s4890_s4 + $0x30] sm:$0xff] %v2017_v6 }
 0x187   :  { %v1857_v11 = vpop.f32.mrf.mxu3  ;;  %v1874_v14 = vpop.f32.mrf.mxu0 }
 0x188   :  { %v1875_v18 = vadd.f32 %v1874_v14, %v1856_v48  ;;  %v1858_v21 = vadd.f32 %v1857_v11, %v250_v49 }
 0x189   :  { %v1909_v13 = vpop.f32.mrf.mxu2 }
 0x18a   :  { %v1910_v38 = vadd.f32 %v1909_v13, %v1891_v60 }
 0x18b   :  { %v1893_v16 = vpop.f32.mrf.mxu1 }
 0x18c   :  { %v2025_v17 = vmax.f32 %v1910_v38, %v2001_v4  ;;  %v1894_v19 = vadd.f32 %v1893_v16, %v1875_v18 }
 0x18e   :  { %2057 = vst [vmem:[%s4890_s4 + $0x70] sm:$0xff] %v2025_v17 }
 0x18f   :  { %v1926_v58 = vpop.f32.mrf.mxu3  ;;  %v1876_v20 = vpop.f32.mrf.mxu0 }
 0x190   :  { %v1877_v9 = vadd.f32 %v1876_v20, %v1858_v21  ;;  %v1927_v29 = vadd.f32 %v1926_v58, %v251_v26 }
 0x191   :  { %v1912_v62 = vpop.f32.mrf.mxu2 }
 0x192   :  { %v1913_v22 = vadd.f32 %v1912_v62, %v1894_v19 }
 0x193   :  { %v1895_v50 = vpop.f32.mrf.mxu1 }
 0x194   :  { %v2033_v23 = vmax.f32 %v1913_v22, %v2001_v4  ;;  %v1896_v27 = vadd.f32 %v1895_v50, %v1877_v9 }
 0x196   :  { %2065 = vst [vmem:[%s4890_s4 + $0xb0] sm:$0xff] %v2033_v23 }
 0x197   :  { %v1928_v25 = vpop.f32.mrf.mxu3  ;;  %v1945_v33 = vpop.f32.mrf.mxu0 }
 0x198   :  { %v1946_v32 = vadd.f32 %v1945_v33, %v1927_v29  ;;  %v1929_v36 = vadd.f32 %v1928_v25, %v251_v26 }
 0x199   :  { %v1914_v28 = vpop.f32.mrf.mxu2 }
 0x19a   :  { %v1915_v30 = vadd.f32 %v1914_v28, %v1896_v27 }
 0x19b   :  { %v1964_v31 = vpop.f32.mrf.mxu1 }
 0x19c   :  { %v2041_v53 = vmax.f32 %v1915_v30, %v2001_v4  ;;  %v1965_v37 = vadd.f32 %v1964_v31, %v1946_v32 }
 0x19e   :  { %2073 = vst [vmem:[%s4890_s4 + $0xf0] sm:$0xff] %v2041_v53 }
 0x19f   :  { %v1931_v35 = vpop.f32.mrf.mxu3  ;;  %v1947_v39 = vpop.f32.mrf.mxu0 }
 0x1a0   :  { %v1948_v42 = vadd.f32 %v1947_v39, %v1929_v36  ;;  %v1932_v0 = vadd.f32 %v1931_v35, %v251_v26 }
 0x1a1   :  { %v1983_v15 = vpop.f32.mrf.mxu2 }
 0x1a2   :  { %v1984_v40 = vadd.f32 %v1983_v15, %v1965_v37 }
 0x1a3   :  { %v1966_v41 = vpop.f32.mrf.mxu1 }
 0x1a4   :  { %v2018_v43 = vmax.f32 %v1984_v40, %v2002_v56  ;;  %v1967_v34 = vadd.f32 %v1966_v41, %v1948_v42 }
 0x1a6   :  { %2050 = vst [vmem:[%s4890_s4 + $0x38] sm:$0xff] %v2018_v43 }
 0x1a7   :  { %v1933_v24 = vpop.f32.mrf.mxu3 }
 0x1a8   :  { %v1934_v57 = vadd.f32 %v1933_v24, %v251_v26 }
 0x1a9   :  { %v1985_v44 = vpop.f32.mrf.mxu2 }
 0x1aa   :  { %v1986_v46 = vadd.f32 %v1985_v44, %v1967_v34 }
 0x1ab   :  { %v1969_v49 = vpop.f32.mrf.mxu1 }
 0x1ac   :  { %v2026_v47 = vmax.f32 %v1986_v46, %v2002_v56 }
 0x1ae   :  { %2058 = vst [vmem:[%s4890_s4 + $0x78] sm:$0xff] %v2026_v47 }
 0x1af   :  { %v1950_v51 = vpop.f32.mrf.mxu3 }
 0x1b0   :  { %v1951_v52 = vadd.f32 %v1950_v51, %v1932_v0 }
 0x1b1   :  { %v1988_v55 = vpop.f32.mrf.mxu2 }
 0x1b2   :  { %v1970_v54 = vadd.f32 %v1969_v49, %v1951_v52 }
 0x1b3   :  { %v1971_v1 = vpop.f32.mrf.mxu1 }
 0x1b4   :  { %v1989_v45 = vadd.f32 %v1988_v55, %v1970_v54 }
 0x1b6   :  { %v2034_v59 = vmax.f32 %v1989_v45, %v2002_v56 }
 0x1b7   :  { %v1952_v61 = vpop.f32.mrf.mxu3 }
 0x1b8   :  { %2066 = vst [vmem:[%s4890_s4 + $0xb8] sm:$0xff] %v2034_v59  ;;  %v1953_v63 = vadd.f32 %v1952_v61, %v1934_v57 }
 0x1b9   :  { %v1990_v4 = vpop.f32.mrf.mxu2 }
 0x1ba   :  { %v1972_v3 = vadd.f32 %v1971_v1, %v1953_v63 }
 0x1bc   :  { %v1991_v5 = vadd.f32 %v1990_v4, %v1972_v3 }
 0x1be   :  { %v2042_v7 = vmax.f32 %v1991_v5, %v2002_v56 }
 0x1c0   :  { %2074 = vst [vmem:[%s4890_s4 + $0xf8] sm:$0xff] %v2042_v7 }

// kernel: guidance_forward.20
= control target key start
LH: loop header
LB: loop body
LE: loop exit
PB: predicated region body
PF: predicated region fallthrough
CT: control target
= control target key end

     0   :  { %vm759_vm0 = vcmask 261120   ;;  %s3738_s0 = inlined_call_operand.vmem [shape: bf16[128,288], index: 0, kind: input, shape index: {}]   ;;  %s3739_s1 = inlined_call_operand.vmem [shape: bf16[288,640], index: 1, kind: input, shape index: {}]   ;;  %s3740_s2 = inlined_call_operand.vmem [shape: f32[1,640], index: 2, kind: input, shape index: {}]   ;;  %s3741_s3 = inlined_call_operand.vmem [shape: f32[1,640], index: 3, kind: input, shape index: {}]   ;;  %s3742_s4 = inlined_call_operand.hbm [shape: f32[128,640], index: 4, kind: output, shape index: {}]  }
   0x1   :  { %v1947_v0 = vld [vmem:[%s3739_s1 + $0x118] sm:$0xf]  ;;  %v2266_v1 = vld [vmem:[%s3739_s1 + $0x128] sm:$0xf0]  ;;  %v2147_v2 = vld [vmem:[%s3739_s1 + $0x2a8] sm:$0xf] }
   0x2   :  { %v1948_v3 = vor.u32 %v2266_v1, %v1947_v0  ;;  %v2316_v4 = vld [vmem:[%s3739_s1 + $0x2b8] sm:$0xf0]  ;;  %v2107_v5 = vld [vmem:[%s3739_s1 + $0x258] sm:$0xf]  ;;  %v2306_v6 = vld [vmem:[%s3739_s1 + $0x268] sm:$0xf0] }
   0x3   :  { %v2148_v7 = vor.u32 %v2316_v4, %v2147_v2  ;;  %v2412_v8 = vor.u32 %v2306_v6, %v2107_v5  ;;  %v1927_v9 = vld [vmem:[%s3739_s1 + $0xf0] sm:$0xf]  ;;  %v2261_v10 = vld [vmem:[%s3739_s1 + $0x100] sm:$0xf0]  ;;  %v2127_v11 = vld [vmem:[%s3739_s1 + $0x280] sm:$0xf] }
   0x4   :  { %784 = vmatpush.bf16.msra.mxu0 %v1948_v3  ;;  %2319 = vmatpush.bf16.msra.mxu3 %v1948_v3  ;;  %v1928_v12 = vor.u32 %v2261_v10, %v1927_v9  ;;  %v2311_v13 = vld [vmem:[%s3739_s1 + $0x290] sm:$0xf0]  ;;  %v2087_v14 = vld [vmem:[%s3739_s1 + $0x230] sm:$0xf]  ;;  %v2301_v15 = vld [vmem:[%s3739_s1 + $0x240] sm:$0xf0] }
   0x5   :  { %888 = vmatpush.bf16.msra.mxu2 %v2148_v7  ;;  %833 = vmatpush.bf16.msra.mxu1 %v2412_v8  ;;  %v2128_v16 = vor.u32 %v2311_v13, %v2127_v11  ;;  %v2433_v17 = vor.u32 %v2301_v15, %v2087_v14  ;;  %v1719_v18 = vld [vmem:[%s3738_s0 + $0x8] sm:$0xf]  ;;  %v2207_v19 = vld [vmem:[%s3738_s0 + $0x10] sm:$0xf0]  ;;  %v2304_v20 = vld [vmem:[%s3739_s1 + $0x25c] sm:$0xf] }
   0x6   :  { %v2109_v21 = vld [vmem:[%s3739_s1 + $0x26c] sm:$0xf0]  ;;  %v1907_v22 = vld [vmem:[%s3739_s1 + $0xc8] sm:$0xf]  ;;  %v2256_v24 = vld [vmem:[%s3739_s1 + $0xd8] sm:$0xf0]  ;;  %v2459_v27 = vor.u32 %v2207_v19, %v1719_v18 }
   0x7   :  { %v2112_v23 = vor.u32 %v2304_v20, %v2109_v21  ;;  %v2067_v25 = vld [vmem:[%s3739_s1 + $0x208] sm:$0xf]  ;;  %v2296_v26 = vld [vmem:[%s3739_s1 + $0x218] sm:$0xf0]  ;;  %v1908_v28 = vor.u32 %v2256_v24, %v1907_v22  ;;  %v1887_v30 = vld [vmem:[%s3739_s1 + $0xa0] sm:$0xf] }
   0x8   :  { %785 = vmatpush.bf16.msra.mxu0 %v1928_v12  ;;  %2320 = vmatpush.bf16.msra.mxu3 %v1928_v12  ;;  %v2462_v29 = vor.u32 %v2296_v26, %v2067_v25  ;;  %v2251_v31 = vld [vmem:[%s3739_s1 + $0xb0] sm:$0xf0]  ;;  %v2047_v32 = vld [vmem:[%s3739_s1 + $0x1e0] sm:$0xf]  ;;  %v1867_v37 = vld [vmem:[%s3739_s1 + $0x78] sm:$0xf] }
   0x9   :  { %889 = vmatpush.bf16.msra.mxu2 %v2128_v16  ;;  %834 = vmatpush.bf16.msra.mxu1 %v2433_v17  ;;  %v2291_v33 = vld [vmem:[%s3739_s1 + $0x1f0] sm:$0xf0]  ;;  %v1888_v34 = vor.u32 %v2251_v31, %v1887_v30  ;;  %v2246_v38 = vld [vmem:[%s3739_s1 + $0x88] sm:$0xf0]  ;;  %v2089_v39 = vld [vmem:[%s3739_s1 + $0x244] sm:$0xf0] }
   0xa   :  { %v2299_v35 = vld [vmem:[%s3739_s1 + $0x234] sm:$0xf]  ;;  %v2482_v36 = vor.u32 %v2291_v33, %v2047_v32  ;;  %v2027_v40 = vld [vmem:[%s3739_s1 + $0x1b8] sm:$0xf]  ;;  %v2286_v41 = vld [vmem:[%s3739_s1 + $0x1c8] sm:$0xf0]  ;;  %v1868_v43 = vor.u32 %v2246_v38, %v1867_v37 }
   0xb   :  { %v2092_v42 = vor.u32 %v2299_v35, %v2089_v39  ;;  %v2500_v44 = vor.u32 %v2286_v41, %v2027_v40  ;;  %v1847_v45 = vld [vmem:[%s3739_s1 + $0x50] sm:$0xf]  ;;  %v2241_v46 = vld [vmem:[%s3739_s1 + $0x60] sm:$0xf0]  ;;  %v2294_v49 = vld [vmem:[%s3739_s1 + $0x20c] sm:$0xf] }
   0xc   :  { %2165 = vmatmul.msk.bf16.vlgmr.msra.gmra.mxu2 %vm759_vm0, %v2459_v27  ;;  %786 = vmatpush.bf16.msra.mxu0 %v1908_v28  ;;  %v2007_v47 = vld [vmem:[%s3739_s1 + $0x190] sm:$0xf]  ;;  %v2281_v48 = vld [vmem:[%s3739_s1 + $0x1a0] sm:$0xf0]  ;;  %v2069_v50 = vld [vmem:[%s3739_s1 + $0x21c] sm:$0xf0]  ;;  %v1848_v51 = vor.u32 %v2241_v46, %v1847_v45 }
   0xd   :  { %980 = vmatpush.bf16.msrb.mxu2 %v2112_v23  ;;  %2321 = vmatpush.bf16.msra.mxu3 %v1908_v28  ;;  %v1731_v52 = vld [vmem:[%s3738_s0 + $0x20] sm:$0xf]  ;;  %v2072_v53 = vor.u32 %v2294_v49, %v2069_v50  ;;  %v2524_v54 = vor.u32 %v2281_v48, %v2007_v47  ;;  %v2210_v55 = vld [vmem:[%s3738_s0 + $0x28] sm:$0xf0]  ;;  %v1827_v56 = vld [vmem:[%s3739_s1 + $0x28] sm:$0xf] }
   0xe   :  { %835 = vmatpush.bf16.msra.mxu1 %v2462_v29  ;;  %v2236_v57 = vld [vmem:[%s3739_s1 + $0x38] sm:$0xf0]  ;;  %v1987_v58 = vld [vmem:[%s3739_s1 + $0x168] sm:$0xf] }
   0xf   :  { %v2276_v59 = vld [vmem:[%s3739_s1 + $0x178] sm:$0xf0] }
  0x10   :  { %787 = vmatpush.bf16.msra.mxu0 %v1888_v34 }
  0x11   :  { %981 = vmatpush.bf16.msrb.mxu2 %v2092_v42  ;;  %2322 = vmatpush.bf16.msra.mxu3 %v1888_v34 }
  0x12   :  { %836 = vmatpush.bf16.msra.mxu1 %v2482_v36 }
  0x14   :  { %788 = vmatpush.bf16.msra.mxu0 %v1868_v43 }
  0x15   :  { %2323 = vmatpush.bf16.msra.mxu3 %v1868_v43  ;;  %982 = vmatpush.bf16.msrb.mxu2 %v2072_v53 }
  0x16   :  { %837 = vmatpush.bf16.msra.mxu1 %v2500_v44 }
  0x17   :  { %9 = vsyncpa [#allocation3], 0  ;;  %v2541_v60 = vor.u32 %v2210_v55, %v1731_v52  ;;  %v1828_v61 = vor.u32 %v2236_v57, %v1827_v56  ;;  %v2544_v62 = vor.u32 %v2276_v59, %v1987_v58  ;;  %v1807_v63 = vld [vmem:[%s3739_s1] sm:$0xf]  ;;  %v2231_v0 = vld [vmem:[%s3739_s1 + $0x10] sm:$0xf0] }
  0x18   :  { %789 = vmatpush.bf16.msra.mxu0 %v1848_v51  ;;  %v1967_v1 = vld [vmem:[%s3739_s1 + $0x140] sm:$0xf]  ;;  %v2271_v2 = vld [vmem:[%s3739_s1 + $0x150] sm:$0xf0]  ;;  %v2206_v4 = vld [vmem:[%s3738_s0 + $0x8] sm:$0xf0]  ;;  %v1808_v10 = vor.u32 %v2231_v0, %v1807_v63 }
  0x19   :  { %2324 = vmatpush.bf16.msra.mxu3 %v1848_v51  ;;  %v1711_v3 = vld [vmem:[%s3738_s0] sm:$0xf]  ;;  %v1783_v5 = vld [vmem:[%s3738_s0 + $0x90] sm:$0xf]  ;;  %v2314_v6 = vld [vmem:[%s3739_s1 + $0x2ac] sm:$0xf]  ;;  %v2588_v14 = vor.u32 %v2271_v2, %v1967_v1 }
  0x1a   :  { %838 = vmatpush.bf16.msra.mxu1 %v2524_v54  ;;  %v2149_v7 = vld [vmem:[%s3739_s1 + $0x2bc] sm:$0xf0]  ;;  %v2267_v11 = vld [vmem:[%s3739_s1 + $0x130] sm:$0xf0]  ;;  %v2289_v12 = vld [vmem:[%s3739_s1 + $0x1e4] sm:$0xf]  ;;  %v2599_v21 = vor.u32 %v2206_v4, %v1711_v3 }
  0x1b   :  { %v1955_v9 = vld [vmem:[%s3739_s1 + $0x120] sm:$0xf]  ;;  %v2049_v13 = vld [vmem:[%s3739_s1 + $0x1f4] sm:$0xf0]  ;;  %v2224_v15 = vld [vmem:[%s3738_s0 + $0x98] sm:$0xf0]  ;;  %v2152_v20 = vor.u32 %v2314_v6, %v2149_v7 }
  0x1c   :  { %2166 = vmatmul.msk.bf16.gmra.mxu2 %vm759_vm0, %v2541_v60  ;;  %790 = vmatpush.bf16.msra.mxu0 %v1828_v61  ;;  %v2205_v16 = vld [vmem:[%s3738_s0 + $0x4] sm:$0xf]  ;;  %v1713_v18 = vld [vmem:[%s3738_s0 + $0xc] sm:$0xf0]  ;;  %v2052_v19 = vor.u32 %v2289_v12, %v2049_v13  ;;  %v1956_v22 = vor.u32 %v2267_v11, %v1955_v9  ;;  %v2601_v23 = vor.u32 %v2224_v15, %v1783_v5  ;;  %v1935_v25 = vld [vmem:[%s3739_s1 + $0xf8] sm:$0xf] }
  0x1d   :  { %2325 = vmatpush.bf16.msra.mxu3 %v1828_v61  ;;  %v2603_v24 = vor.u32 %v2205_v16, %v1713_v18  ;;  %v2262_v26 = vld [vmem:[%s3739_s1 + $0x108] sm:$0xf0]  ;;  %v1743_v30 = vld [vmem:[%s3738_s0 + $0x38] sm:$0xf]  ;;  %v2213_v31 = vld [vmem:[%s3738_s0 + $0x40] sm:$0xf0] }
  0x1e   :  { %839 = vmatpush.bf16.msra.mxu1 %v2544_v62  ;;  %983 = vmatpush.bf16.msrb.mxu2 %v2052_v19  ;;  %v1936_v28 = vor.u32 %v2262_v26, %v1935_v25  ;;  %v1723_v32 = vld [vmem:[%s3738_s0 + $0x18] sm:$0xf]  ;;  %v2209_v33 = vld [vmem:[%s3738_s0 + $0x20] sm:$0xf0]  ;;  %v1795_v34 = vld [vmem:[%s3738_s0 + $0xa8] sm:$0xf] }
  0x1f   :  { %v2029_v35 = vld [vmem:[%s3739_s1 + $0x1cc] sm:$0xf0]  ;;  %v2208_v38 = vld [vmem:[%s3738_s0 + $0x1c] sm:$0xf]  ;;  %v1725_v39 = vld [vmem:[%s3738_s0 + $0x24] sm:$0xf0]  ;;  %v2659_v43 = vor.u32 %v2209_v33, %v1723_v32 }
  0x20   :  { %791 = vmatpush.bf16.msra.mxu0 %v1808_v10  ;;  %v1915_v37 = vld [vmem:[%s3739_s1 + $0xd0] sm:$0xf]  ;;  %v2257_v41 = vld [vmem:[%s3739_s1 + $0xe0] sm:$0xf0]  ;;  %v2663_v46 = vor.u32 %v2208_v38, %v1725_v39  ;;  %v2216_v48 = vld [vmem:[%s3738_s0 + $0x58] sm:$0xf0] }
  0x21   :  { %2326 = vmatpush.bf16.msra.mxu3 %v1808_v10  ;;  %v1916_v42 = vor.u32 %v2257_v41, %v1915_v37  ;;  %v1755_v47 = vld [vmem:[%s3738_s0 + $0x50] sm:$0xf]  ;;  %v2264_v51 = vld [vmem:[%s3739_s1 + $0x11c] sm:$0xf]  ;;  %v2223_v55 = vld [vmem:[%s3738_s0 + $0x94] sm:$0xf] }
  0x22   :  { %840 = vmatpush.bf16.msra.mxu1 %v2588_v14  ;;  %v2682_v50 = vor.u32 %v2216_v48, %v1755_v47  ;;  %v1949_v52 = vld [vmem:[%s3739_s1 + $0x12c] sm:$0xf0]  ;;  %v2259_v57 = vld [vmem:[%s3739_s1 + $0xf4] sm:$0xf]  ;;  %v1929_v58 = vld [vmem:[%s3739_s1 + $0x104] sm:$0xf0] }
  0x23   :  { %792 = vmatmul.bf16.vlgmr.msra.gmra.mxu0 %v2599_v21  ;;  %v1735_v53 = vld [vmem:[%s3738_s0 + $0x30] sm:$0xf]  ;;  %v1952_v56 = vor.u32 %v2264_v51, %v1949_v52  ;;  %v2279_v59 = vld [vmem:[%s3739_s1 + $0x194] sm:$0xf]  ;;  %v2009_v61 = vld [vmem:[%s3739_s1 + $0x1a4] sm:$0xf0]  ;;  %v1932_v3 = vor.u32 %v2259_v57, %v1929_v58 }
  0x24   :  { %1035 = vmatpush.bf16.msrb.mxu0 %v2152_v20  ;;  %822 = vmatmul.bf16.vlgmr.msra.gmra.mxu3 %v2601_v23  ;;  %v2211_v63 = vld [vmem:[%s3738_s0 + $0x34] sm:$0xf]  ;;  %v1737_v0 = vld [vmem:[%s3738_s0 + $0x3c] sm:$0xf0]  ;;  %v2012_v1 = vor.u32 %v2279_v59, %v2009_v61  ;;  %v2254_v6 = vld [vmem:[%s3739_s1 + $0xcc] sm:$0xf] }
  0x25   :  { %2327 = vmatpush.bf16.msrb.mxu3 %v2412_v8  ;;  %841 = vmatmul.bf16.vlgmr.msra.gmra.mxu1 %v2603_v24  ;;  %v2623_v8 = vor.u32 %v2213_v31, %v1743_v30  ;;  %v2728_v5 = vor.u32 %v2211_v63, %v1737_v0  ;;  %v1909_v7 = vld [vmem:[%s3739_s1 + $0xdc] sm:$0xf0]  ;;  %v2249_v10 = vld [vmem:[%s3739_s1 + $0xa4] sm:$0xf]  ;;  %v1889_v11 = vld [vmem:[%s3739_s1 + $0xb4] sm:$0xf0] }
  0x26   :  { %1078 = vmatpush.bf16.msrb.mxu1 %v1956_v22  ;;  %v1912_v9 = vor.u32 %v2254_v6, %v1909_v7  ;;  %v2309_v12 = vld [vmem:[%s3739_s1 + $0x284] sm:$0xf]  ;;  %v2129_v13 = vld [vmem:[%s3739_s1 + $0x294] sm:$0xf0]  ;;  %v1767_v15 = vld [vmem:[%s3738_s0 + $0x68] sm:$0xf]  ;;  %v1892_v22 = vor.u32 %v2249_v10, %v1889_v11 }
  0x27   :  { %v2219_v16 = vld [vmem:[%s3738_s0 + $0x70] sm:$0xf0]  ;;  %v2132_v18 = vor.u32 %v2309_v12, %v2129_v13  ;;  %v2244_v26 = vld [vmem:[%s3739_s1 + $0x7c] sm:$0xf]  ;;  %v1747_v30 = vld [vmem:[%s3738_s0 + $0x48] sm:$0xf] }
  0x28   :  { %v2247_v19 = vld [vmem:[%s3739_s1 + $0x90] sm:$0xf0]  ;;  %v2763_v25 = vor.u32 %v2219_v16, %v1767_v15  ;;  %v2226_v32 = vld [vmem:[%s3738_s0 + $0xac] sm:$0xf]  ;;  %v1797_v33 = vld [vmem:[%s3738_s0 + $0xb4] sm:$0xf0] }
  0x29   :  { %2328 = vmatpush.bf16.msrb.mxu3 %v2433_v17  ;;  %v2227_v17 = vld [vmem:[%s3738_s0 + $0xb0] sm:$0xf0]  ;;  %1036 = vmatpush.bf16.msrb.mxu0 %v2132_v18  ;;  %v1989_v37 = vld [vmem:[%s3739_s1 + $0x17c] sm:$0xf0]  ;;  %v1855_v38 = vld [vmem:[%s3739_s1 + $0x58] sm:$0xf] }
  0x2a   :  { %1079 = vmatpush.bf16.msrb.mxu1 %v1936_v28  ;;  %v2661_v45 = vor.u32 %v2227_v17, %v1795_v34  ;;  %v1869_v28 = vld [vmem:[%s3739_s1 + $0x8c] sm:$0xf0]  ;;  %v2215_v31 = vld [vmem:[%s3738_s0 + $0x50] sm:$0xf0]  ;;  %v2214_v39 = vld [vmem:[%s3738_s0 + $0x4c] sm:$0xf] }
  0x2b   :  { %v1872_v34 = vor.u32 %v2244_v26, %v1869_v28  ;;  %v2239_v17 = vld [vmem:[%s3739_s1 + $0x54] sm:$0xf]  ;;  %v2809_v47 = vor.u32 %v2215_v31, %v1747_v30  ;;  %v2234_v51 = vld [vmem:[%s3739_s1 + $0x2c] sm:$0xf]  ;;  %v1829_v52 = vld [vmem:[%s3739_s1 + $0x3c] sm:$0xf0] }
  0x2c   :  { %2167 = vmatmul.msk.bf16.gmra.mxu2 %vm759_vm0, %v2623_v8  ;;  %v2222_v57 = vld [vmem:[%s3738_s0 + $0x88] sm:$0xf0]  ;;  %v1759_v61 = vld [vmem:[%s3738_s0 + $0x60] sm:$0xf]  ;;  %v2269_v63 = vld [vmem:[%s3739_s1 + $0x144] sm:$0xf] }
  0x2d   :  { %2329 = vmatpush.bf16.msrb.mxu3 %v2462_v29  ;;  %v2284_v29 = vld [vmem:[%s3739_s1 + $0x1bc] sm:$0xf]  ;;  %v1969_v0 = vld [vmem:[%s3739_s1 + $0x154] sm:$0xf0]  ;;  %v1761_v6 = vld [vmem:[%s3738_s0 + $0x6c] sm:$0xf0] }
  0x2e   :  { %v2032_v40 = vor.u32 %v2284_v29, %v2029_v35  ;;  %1080 = vmatpush.bf16.msrb.mxu1 %v1916_v42  ;;  %v1849_v29 = vld [vmem:[%s3739_s1 + $0x64] sm:$0xf0]  ;;  %v2274_v35 = vld [vmem:[%s3739_s1 + $0x16c] sm:$0xf]  ;;  %v1972_v7 = vor.u32 %v2269_v63, %v1969_v0  ;;  %v1791_v15 = vld [vmem:[%s3738_s0 + $0x98] sm:$0xf] }
  0x2f   :  { %v1992_v41 = vor.u32 %v2274_v35, %v1989_v37  ;;  %v2242_v42 = vld [vmem:[%s3739_s1 + $0x68] sm:$0xf0]  ;;  %v1852_v48 = vor.u32 %v2239_v17, %v1849_v29  ;;  %v1815_v13 = vld [vmem:[%s3739_s1 + $0x8] sm:$0xf]  ;;  %v2225_v16 = vld [vmem:[%s3738_s0 + $0xa0] sm:$0xf0] }
  0x30   :  { %984 = vmatpush.bf16.msrb.mxu2 %v2032_v40  ;;  %v1749_v40 = vld [vmem:[%s3738_s0 + $0x54] sm:$0xf0]  ;;  %v2155_v26 = vld [vmem:[%s3739_s1 + $0x2b0] sm:$0xf]  ;;  %v2317_v28 = vld [vmem:[%s3739_s1 + $0x2c0] sm:$0xf0] }
  0x31   :  { %2330 = vmatpush.bf16.msrb.mxu3 %v2482_v36  ;;  %v1895_v36 = vld [vmem:[%s3739_s1 + $0xa8] sm:$0xf]  ;;  %v2220_v30 = vld [vmem:[%s3738_s0 + $0x7c] sm:$0xf]  ;;  %v2307_v17 = vld [vmem:[%s3739_s1 + $0x270] sm:$0xf0] }
  0x32   :  { %v1773_v31 = vld [vmem:[%s3738_s0 + $0x84] sm:$0xf0]  ;;  %v2265_v37 = vld [vmem:[%s3739_s1 + $0x124] sm:$0xf]  ;;  %v2075_v0 = vld [vmem:[%s3739_s1 + $0x210] sm:$0xf] }
  0x33   :  { %797 = vmatmul.bf16.gmra.mxu0 %v2659_v43  ;;  %v2913_v29 = vor.u32 %v2220_v30, %v1773_v31  ;;  %v2055_v31 = vld [vmem:[%s3739_s1 + $0x1e8] sm:$0xf]  ;;  %s1697_s5 = sshll.u32 %s3742_s4, 4  ;;  %s2367_s6 = smov 640   ;;  %s1698_s5 = int_to_ptr.hbm [resolvable:$true] %s1697_s5 }
  0x34   :  { %827 = vmatmul.bf16.gmra.mxu3 %v2661_v45  ;;  %985 = vmatpush.bf16.msrb.mxu2 %v2012_v1  ;;  %v1835_v1 = vld [vmem:[%s3739_s1 + $0x30] sm:$0xf]  ;;  %s2368_s7 = smov 40  }
  0x35   :  { %2331 = vmatpush.bf16.msrb.mxu3 %v2500_v44  ;;  %846 = vmatmul.bf16.gmra.mxu1 %v2663_v46  ;;  %v2252_v44 = vld [vmem:[%s3739_s1 + $0xb8] sm:$0xf0] }
  0x36   :  { %v1896_v49 = vor.u32 %v2252_v44, %v1895_v36  ;;  %v1856_v36 = vor.u32 %v2242_v42, %v1855_v38  ;;  %v2811_v44 = vor.u32 %v2226_v32, %v1797_v33  ;;  %v2156_v32 = vor.u32 %v2317_v28, %v2155_v26  ;;  %v1957_v38 = vld [vmem:[%s3739_s1 + $0x134] sm:$0xf0]  ;;  %v2997_v26 = vld [vmem:[%s3741_s3] sm:$0x1f] }
  0x37   :  { %v1960_v42 = vor.u32 %v2265_v37, %v1957_v38 }
  0x38   :  { %1081 = vmatpush.bf16.msrb.mxu1 %v1896_v49  ;;  %986 = vmatpush.bf16.msrb.mxu2 %v1992_v41  ;;  %v2813_v49 = vor.u32 %v2214_v39, %v1749_v40  ;;  %v2305_v39 = vld [vmem:[%s3739_s1 + $0x264] sm:$0xf]  ;;  %v1803_v40 = vld [vmem:[%s3738_s0 + $0xb0] sm:$0xf]  ;;  %v2228_v41 = vld [vmem:[%s3738_s0 + $0xb8] sm:$0xf0] }
  0x39   :  { %2332 = vmatpush.bf16.msrb.mxu3 %v2524_v54  ;;  %v2212_v54 = vld [vmem:[%s3738_s0 + $0x38] sm:$0xf0]  ;;  %1225 = vmatpush.bf16.msra.mxu0 %v1960_v42 }
  0x3a   :  { %v2724_v2 = vor.u32 %v2212_v54, %v1735_v53  ;;  %v1832_v53 = vor.u32 %v2234_v51, %v1829_v52  ;;  %v2229_v54 = vld [vmem:[%s3739_s1 + $0x4] sm:$0xf]  ;;  %v2936_v51 = vor.u32 %v2228_v41, %v1803_v40  ;;  %v2095_v52 = vld [vmem:[%s3739_s1 + $0x238] sm:$0xf] }
  0x3c   :  { %2168 = vmatmul.msk.bf16.gmra.mxu2 %vm759_vm0, %v2682_v50 }
  0x3d   :  { %2333 = vmatpush.bf16.msrb.mxu3 %v2544_v62  ;;  %v1785_v62 = vld [vmem:[%s3738_s0 + $0x9c] sm:$0xf0]  ;;  %987 = vmatpush.bf16.msrb.mxu2 %v1972_v7  ;;  %v2255_v7 = vld [vmem:[%s3739_s1 + $0xd4] sm:$0xf] }
  0x3e   :  { %v2726_v4 = vor.u32 %v2223_v55, %v1785_v62  ;;  %v1809_v55 = vld [vmem:[%s3739_s1 + $0x14] sm:$0xf0]  ;;  %v2218_v62 = vld [vmem:[%s3738_s0 + $0x68] sm:$0xf0] }
  0x3f   :  { %v1812_v58 = vor.u32 %v2229_v54, %v1809_v55  ;;  %v2864_v11 = vor.u32 %v2218_v62, %v1759_v61  ;;  %v2260_v55 = vld [vmem:[%s3739_s1 + $0xfc] sm:$0xf]  ;;  %v2097_v61 = vld [vmem:[%s3739_s1 + $0x24c] sm:$0xf0] }
  0x41   :  { %2334 = vmatpush.bf16.msrb.mxu3 %v2588_v14  ;;  %v1875_v14 = vld [vmem:[%s3739_s1 + $0x80] sm:$0xf]  ;;  %1182 = vmatpush.bf16.msra.mxu2 %v2156_v32  ;;  %v2292_v32 = vld [vmem:[%s3739_s1 + $0x1f8] sm:$0xf0] }
  0x42   :  { %v1876_v20 = vor.u32 %v2247_v19, %v1875_v14  ;;  %v2232_v14 = vld [vmem:[%s3739_s1 + $0x18] sm:$0xf0]  ;;  %v2883_v19 = vor.u32 %v2225_v16, %v1791_v15  ;;  %v2077_v15 = vld [vmem:[%s3739_s1 + $0x224] sm:$0xf0] }
  0x43   :  { %802 = vmatmul.bf16.gmra.mxu0 %v2724_v2  ;;  %v1816_v18 = vor.u32 %v2232_v14, %v1815_v13  ;;  %v2985_v13 = vld [vmem:[%s3740_s2] sm:$0x1f] }
  0x44   :  { %871 = vmatmul.bf16.vlgmr.msrb.gmra.mxu3 %v2726_v4  ;;  %1082 = vmatpush.bf16.msrb.mxu1 %v1876_v20  ;;  %v1771_v20 = vld [vmem:[%s3738_s0 + $0x78] sm:$0xf] }
  0x45   :  { %931 = vmatpush.bf16.msra.mxu3 %v1952_v56  ;;  %851 = vmatmul.bf16.gmra.mxu1 %v2728_v5  ;;  %v1779_v56 = vld [vmem:[%s3738_s0 + $0x80] sm:$0xf] }
  0x46   :  { %v2836_v59 = vor.u32 %v2222_v57, %v1779_v56  ;;  %v1937_v56 = vld [vmem:[%s3739_s1 + $0x10c] sm:$0xf0]  ;;  %v2300_v57 = vld [vmem:[%s3739_s1 + $0x23c] sm:$0xf] }
  0x47   :  { %v2100_v62 = vor.u32 %v2300_v57, %v2097_v61 }
  0x48   :  { %1083 = vmatpush.bf16.msrb.mxu1 %v1856_v36  ;;  %v2117_v36 = vld [vmem:[%s3739_s1 + $0x274] sm:$0xf0] }
  0x49   :  { %932 = vmatpush.bf16.msra.mxu3 %v1932_v3  ;;  %v2217_v3 = vld [vmem:[%s3738_s0 + $0x64] sm:$0xf] }
  0x4a   :  { %v2866_v12 = vor.u32 %v2217_v3, %v1761_v6 }
  0x4c   :  { %2169 = vmatmul.msk.bf16.gmra.mxu2 %vm759_vm0, %v2763_v25 }
  0x4d   :  { %933 = vmatpush.bf16.msra.mxu3 %v1912_v9  ;;  %v2237_v9 = vld [vmem:[%s3739_s1 + $0x40] sm:$0xf0] }
  0x4e   :  { %v1836_v10 = vor.u32 %v2237_v9, %v1835_v1  ;;  %v2297_v1 = vld [vmem:[%s3739_s1 + $0x220] sm:$0xf0]  ;;  %v1917_v9 = vld [vmem:[%s3739_s1 + $0xe4] sm:$0xf0] }
  0x4f   :  { %v2076_v3 = vor.u32 %v2297_v1, %v2075_v0  ;;  %v1920_v14 = vor.u32 %v2255_v7, %v1917_v9  ;;  %v2135_v7 = vld [vmem:[%s3739_s1 + $0x288] sm:$0xf]  ;;  %v2312_v9 = vld [vmem:[%s3739_s1 + $0x298] sm:$0xf0] }
  0x50   :  { %1084 = vmatpush.bf16.msrb.mxu1 %v1836_v10  ;;  %v2295_v10 = vld [vmem:[%s3739_s1 + $0x214] sm:$0xf] }
  0x51   :  { %934 = vmatpush.bf16.msra.mxu3 %v1892_v22  ;;  %v2221_v22 = vld [vmem:[%s3738_s0 + $0x80] sm:$0xf0]  ;;  %v2080_v16 = vor.u32 %v2295_v10, %v2077_v15  ;;  %v2035_v10 = vld [vmem:[%s3739_s1 + $0x1c0] sm:$0xf] }
  0x52   :  { %v2905_v33 = vor.u32 %v2221_v22, %v1771_v20 }
  0x53   :  { %807 = vmatmul.bf16.gmra.mxu0 %v2809_v47 }
  0x54   :  { %876 = vmatmul.bf16.gmra.mxu3 %v2811_v44  ;;  %1085 = vmatpush.bf16.msrb.mxu1 %v1816_v18  ;;  %v2992_v18 = vperm.slane %v2985_v13, 0 }
  0x55   :  { %935 = vmatpush.bf16.msra.mxu3 %v1872_v34  ;;  %856 = vmatmul.bf16.gmra.mxu1 %v2813_v49  ;;  %v2115_v34 = vld [vmem:[%s3739_s1 + $0x260] sm:$0xf] }
  0x56   :  { %v2116_v35 = vor.u32 %v2307_v17, %v2115_v34  ;;  %v2056_v34 = vor.u32 %v2292_v32, %v2055_v31 }
  0x59   :  { %936 = vmatpush.bf16.msra.mxu3 %v1852_v48  ;;  %v2120_v48 = vor.u32 %v2305_v39, %v2117_v36 }
  0x5b   :  { %1274 = vmatpush.bf16.msra.mxu1 %v2120_v48  ;;  %v2250_v48 = vld [vmem:[%s3739_s1 + $0xac] sm:$0xf] }
  0x5c   :  { %2170 = vmatmul.msk.bf16.gmra.mxu2 %vm759_vm0, %v2836_v59 }
  0x5d   :  { %937 = vmatpush.bf16.msra.mxu3 %v1832_v53  ;;  %v2302_v53 = vld [vmem:[%s3739_s1 + $0x248] sm:$0xf0] }
  0x5e   :  { %v2096_v54 = vor.u32 %v2302_v53, %v2095_v52  ;;  %v1897_v52 = vld [vmem:[%s3739_s1 + $0xbc] sm:$0xf0] }
  0x5f   :  { %1275 = vmatpush.bf16.msra.mxu1 %v2100_v62  ;;  %v1900_v53 = vor.u32 %v2250_v48, %v1897_v52  ;;  %v2285_v48 = vld [vmem:[%s3739_s1 + $0x1c4] sm:$0xf]  ;;  %v2037_v52 = vld [vmem:[%s3739_s1 + $0x1d4] sm:$0xf0] }
  0x61   :  { %938 = vmatpush.bf16.msra.mxu3 %v1812_v58  ;;  %v1940_v58 = vor.u32 %v2260_v55, %v1937_v56  ;;  %v2057_v55 = vld [vmem:[%s3739_s1 + $0x1fc] sm:$0xf0] }
  0x63   :  { %812 = vmatmul.bf16.gmra.mxu0 %v2864_v11  ;;  %1276 = vmatpush.bf16.msra.mxu1 %v2080_v16 }
  0x64   :  { %939 = vmatmul.bf16.vlgmr.msra.gmra.mxu3 %v2599_v21  ;;  %1226 = vmatpush.bf16.msra.mxu0 %v1940_v58 }
  0x65   :  { %861 = vmatmul.bf16.gmra.mxu1 %v2866_v12  ;;  %1127 = vmatpush.bf16.msrb.mxu3 %v2116_v35  ;;  %v3007_v35 = vperm.slane %v2997_v26, 0 }
  0x68   :  { %1227 = vmatpush.bf16.msra.mxu0 %v1920_v14  ;;  %v2287_v14 = vld [vmem:[%s3739_s1 + $0x1d0] sm:$0xf0] }
  0x69   :  { %1128 = vmatpush.bf16.msrb.mxu3 %v2096_v54  ;;  %v2290_v54 = vld [vmem:[%s3739_s1 + $0x1ec] sm:$0xf]  ;;  %v2036_v16 = vor.u32 %v2287_v14, %v2035_v10 }
  0x6a   :  { %v2060_v57 = vor.u32 %v2290_v54, %v2057_v55  ;;  %v2040_v55 = vor.u32 %v2285_v48, %v2037_v52 }
  0x6c   :  { %2171 = vmatmul.msk.bf16.gmra.mxu2 %vm759_vm0, %v2883_v19  ;;  %1228 = vmatpush.bf16.msra.mxu0 %v1900_v53  ;;  %v1995_v53 = vld [vmem:[%s3739_s1 + $0x170] sm:$0xf] }
  0x6d   :  { %1129 = vmatpush.bf16.msrb.mxu3 %v2076_v3  ;;  %1277 = vmatpush.bf16.msra.mxu1 %v2060_v57 }
  0x71   :  { %1130 = vmatpush.bf16.msrb.mxu3 %v2056_v34  ;;  %1278 = vmatpush.bf16.msra.mxu1 %v2040_v55 }
  0x73   :  { %817 = vmatmul.bf16.gmra.mxu0 %v2905_v33 }
  0x74   :  { %944 = vmatmul.bf16.gmra.mxu3 %v2659_v43 }
  0x75   :  { %866 = vmatmul.bf16.gmra.mxu1 %v2913_v29  ;;  %1131 = vmatpush.bf16.msrb.mxu3 %v2036_v16 }
  0x7c   :  { %2172 = vmatmul.msk.bf16.gmra.mxu2 %vm759_vm0, %v2936_v51 }
  0x83   :  { %2173 = vmatmul.msk.bf16.vlgmr.msrb.gmra.mxu0 %vm759_vm0, %v2459_v27 }
  0x84   :  { %949 = vmatmul.bf16.gmra.mxu3 %v2724_v2 }
  0x85   :  { %1086 = vmatmul.bf16.vlgmr.msrb.gmra.mxu1 %v2599_v21 }
  0x8c   :  { %988 = vmatmul.bf16.vlgmr.msrb.gmra.mxu2 %v2603_v24 }
  0x8f   :  { %v891_v63 = vpop.f32.mrf.mxu2 }
  0x93   :  { %2174 = vmatmul.msk.bf16.gmra.mxu0 %vm759_vm0, %v2541_v60 }
  0x94   :  { %954 = vmatmul.bf16.gmra.mxu3 %v2809_v47 }
  0x95   :  { %1091 = vmatmul.bf16.gmra.mxu1 %v2659_v43 }
  0x97   :  { %v893_v6 = vpop.f32.mrf.mxu2 }
  0x9c   :  { %993 = vmatmul.bf16.gmra.mxu2 %v2663_v46 }
  0x9f   :  { %v896_v20 = vpop.f32.mrf.mxu2 }
  0xa0   :  { %v793_v22 = vpop.f32.mrf.mxu0 }
  0xa1   :  { %v794_v28 = vadd.f32 %v793_v22, %v2992_v18 }
  0xa2   :  { %v842_v30 = vpop.f32.mrf.mxu1 }
  0xa3   :  { %v843_v17 = vadd.f32 %v842_v30, %v794_v28  ;;  %2175 = vmatmul.msk.bf16.gmra.mxu0 %vm759_vm0, %v2623_v8  ;;  %v2015_v28 = vld [vmem:[%s3739_s1 + $0x198] sm:$0xf]  ;;  %v2282_v30 = vld [vmem:[%s3739_s1 + $0x1a8] sm:$0xf0] }
  0xa4   :  { %959 = vmatmul.bf16.gmra.mxu3 %v2864_v11 }
  0xa5   :  { %1096 = vmatmul.bf16.gmra.mxu1 %v2724_v2  ;;  %v892_v37 = vadd.f32 %v891_v63, %v843_v17  ;;  %v2016_v17 = vor.u32 %v2282_v30, %v2015_v28 }
  0xa7   :  { %v1531_v38 = vmax.f32 %v892_v37, %v3007_v35  ;;  %v3014_v39 = vpop.f32.mrf.mxu3  ;;  %v898_v40 = vpop.f32.mrf.mxu2  ;;  %1132 = vmatpush.bf16.msrb.mxu3 %v2016_v17 }
  0xa8   :  { %v795_v41 = vpop.f32.mrf.mxu0 }
  0xa9   :  { %1611 = vst [vmem:[#allocation2] sm:$0xff] %v1531_v38  ;;  %v796_v42 = vadd.f32 %v795_v41, %v2992_v18  ;;  %v2245_v41 = vld [vmem:[%s3739_s1 + $0x84] sm:$0xf] }
  0xaa   :  { %v844_v36 = vpop.f32.mrf.mxu1 }
  0xab   :  { %v845_v56 = vadd.f32 %v844_v36, %v796_v42  ;;  %v1877_v42 = vld [vmem:[%s3739_s1 + $0x94] sm:$0xf0] }
  0xac   :  { %998 = vmatmul.bf16.gmra.mxu2 %v2728_v5  ;;  %v1880_v36 = vor.u32 %v2245_v41, %v1877_v42  ;;  %v2017_v41 = vld [vmem:[%s3739_s1 + $0x1ac] sm:$0xf0] }
  0xad   :  { %v894_v58 = vadd.f32 %v893_v6, %v845_v56  ;;  %v2136_v6 = vor.u32 %v2312_v9, %v2135_v7  ;;  %v2277_v56 = vld [vmem:[%s3739_s1 + $0x180] sm:$0xf0] }
  0xae   :  { %1229 = vmatpush.bf16.msra.mxu0 %v1880_v36  ;;  %v1996_v57 = vor.u32 %v2277_v56, %v1995_v53 }
  0xaf   :  { %v1536_v61 = vmax.f32 %v894_v58, %v3007_v35  ;;  %v3031_v62 = vpop.f32.mrf.mxu3  ;;  %v901_v63 = vpop.f32.mrf.mxu2  ;;  %1183 = vmatpush.bf16.msra.mxu2 %v2136_v6 }
  0xb0   :  { %v798_v0 = vpop.f32.mrf.mxu0  ;;  %1133 = vmatpush.bf16.msrb.mxu3 %v1996_v57 }
  0xb1   :  { %1616 = vst [vmem:[#allocation2 + $0x28] sm:$0xff] %v1536_v61  ;;  %v799_v1 = vadd.f32 %v798_v0, %v2992_v18  ;;  %v1975_v61 = vld [vmem:[%s3739_s1 + $0x148] sm:$0xf]  ;;  %v2272_v0 = vld [vmem:[%s3739_s1 + $0x158] sm:$0xf0] }
  0xb2   :  { %v847_v3 = vpop.f32.mrf.mxu1  ;;  %v1976_v9 = vor.u32 %v2272_v0, %v1975_v61 }
  0xb3   :  { %v848_v15 = vadd.f32 %v847_v3, %v799_v1  ;;  %2176 = vmatmul.msk.bf16.gmra.mxu0 %vm759_vm0, %v2682_v50 }
  0xb4   :  { %964 = vmatmul.bf16.gmra.mxu3 %v2905_v33 }
  0xb5   :  { %1101 = vmatmul.bf16.gmra.mxu1 %v2809_v47  ;;  %v897_v22 = vadd.f32 %v896_v20, %v848_v15  ;;  %1134 = vmatpush.bf16.msrb.mxu3 %v1976_v9 }
  0xb7   :  { %v1541_v31 = vmax.f32 %v897_v22, %v3007_v35  ;;  %v3057_v32 = vpop.f32.mrf.mxu3  ;;  %v903_v34 = vpop.f32.mrf.mxu2 }
  0xb8   :  { %v800_v37 = vpop.f32.mrf.mxu0 }
  0xb9   :  { %1621 = vst [vmem:[#allocation2 + $0x50] sm:$0xff] %v1541_v31  ;;  %v801_v20 = vadd.f32 %v800_v37, %v2992_v18  ;;  %v2240_v37 = vld [vmem:[%s3739_s1 + $0x5c] sm:$0xf] }
  0xba   :  { %v849_v38 = vpop.f32.mrf.mxu1 }
  0xbb   :  { %v850_v54 = vadd.f32 %v849_v38, %v801_v20  ;;  %v1857_v20 = vld [vmem:[%s3739_s1 + $0x6c] sm:$0xf0] }
  0xbc   :  { %1003 = vmatmul.bf16.gmra.mxu2 %v2813_v49  ;;  %v1860_v38 = vor.u32 %v2240_v37, %v1857_v20 }
  0xbd   :  { %v899_v58 = vadd.f32 %v898_v40, %v850_v54 }
  0xbe   :  { %1230 = vmatpush.bf16.msra.mxu0 %v1860_v38 }
  0xbf   :  { %v1546_v1 = vmax.f32 %v899_v58, %v3007_v35  ;;  %v3086_v3 = vpop.f32.mrf.mxu3  ;;  %v906_v7 = vpop.f32.mrf.mxu2 }
  0xc0   :  { %v803_v6 = vpop.f32.mrf.mxu0 }
  0xc1   :  { %1626 = vst [vmem:[#allocation2 + $0x78] sm:$0xff] %v1546_v1  ;;  %v804_v40 = vadd.f32 %v803_v6, %v2992_v18 }
  0xc2   :  { %v852_v10 = vpop.f32.mrf.mxu1 }
  0xc3   :  { %v853_v14 = vadd.f32 %v852_v10, %v804_v40  ;;  %2177 = vmatmul.msk.bf16.gmra.mxu0 %vm759_vm0, %v2763_v25  ;;  %v2235_v10 = vld [vmem:[%s3739_s1 + $0x34] sm:$0xf] }
  0xc4   :  { %969 = vmatmul.bf16.gmra.mxu3 %v2601_v23 }
  0xc5   :  { %1106 = vmatmul.bf16.gmra.mxu1 %v2864_v11  ;;  %v902_v15 = vadd.f32 %v901_v63, %v853_v14  ;;  %v2280_v63 = vld [vmem:[%s3739_s1 + $0x19c] sm:$0xf]  ;;  %v1837_v14 = vld [vmem:[%s3739_s1 + $0x44] sm:$0xf0] }
  0xc6   :  { %v2020_v36 = vor.u32 %v2280_v63, %v2017_v41 }
  0xc7   :  { %v1551_v16 = vmax.f32 %v902_v15, %v3007_v35  ;;  %v3094_v22 = vpop.f32.mrf.mxu3  ;;  %v908_v28 = vpop.f32.mrf.mxu2  ;;  %v1840_v15 = vor.u32 %v2235_v10, %v1837_v14 }
  0xc8   :  { %v805_v30 = vpop.f32.mrf.mxu0  ;;  %1279 = vmatpush.bf16.msra.mxu1 %v2020_v36 }
  0xc9   :  { %1631 = vst [vmem:[#allocation2 + $0xa0] sm:$0xff] %v1551_v16  ;;  %v806_v31 = vadd.f32 %v805_v30, %v2992_v18  ;;  %v1997_v16 = vld [vmem:[%s3739_s1 + $0x184] sm:$0xf0]  ;;  %1231 = vmatpush.bf16.msra.mxu0 %v1840_v15 }
  0xca   :  { %v854_v17 = vpop.f32.mrf.mxu1  ;;  %v1963_v15 = vld [vmem:[%s3739_s1 + $0x128] sm:$0xf] }
  0xcb   :  { %v855_v42 = vadd.f32 %v854_v17, %v806_v31 }
  0xcc   :  { %1008 = vmatmul.bf16.gmra.mxu2 %v2866_v12 }
  0xcd   :  { %v904_v48 = vadd.f32 %v903_v34, %v855_v42 }
  0xcf   :  { %v1556_v52 = vmax.f32 %v904_v48, %v3007_v35  ;;  %v3111_v53 = vpop.f32.mrf.mxu3  ;;  %v911_v54 = vpop.f32.mrf.mxu2  ;;  %v1817_v48 = vld [vmem:[%s3739_s1 + $0x1c] sm:$0xf0] }
  0xd0   :  { %v808_v55 = vpop.f32.mrf.mxu0 }
  0xd1   :  { %1636 = vst [vmem:[#allocation2 + $0xc8] sm:$0xff] %v1556_v52  ;;  %v809_v56 = vadd.f32 %v808_v55, %v2992_v18  ;;  %v2270_v52 = vld [vmem:[%s3739_s1 + $0x14c] sm:$0xf] }
  0xd2   :  { %v857_v57 = vpop.f32.mrf.mxu1 }
  0xd3   :  { %v858_v58 = vadd.f32 %v857_v57, %v809_v56  ;;  %2178 = vmatmul.msk.bf16.gmra.mxu0 %vm759_vm0, %v2836_v59  ;;  %v1977_v57 = vld [vmem:[%s3739_s1 + $0x15c] sm:$0xf0] }
  0xd4   :  { %974 = vmatmul.bf16.gmra.mxu3 %v2661_v45 }
  0xd5   :  { %1111 = vmatmul.bf16.gmra.mxu1 %v2905_v33  ;;  %v907_v34 = vadd.f32 %v906_v7, %v858_v58  ;;  %v2275_v7 = vld [vmem:[%s3739_s1 + $0x174] sm:$0xf]  ;;  %v1980_v58 = vor.u32 %v2270_v52, %v1977_v57 }
  0xd6   :  { %v2000_v31 = vor.u32 %v2275_v7, %v1997_v16  ;;  %v2268_v7 = vld [vmem:[%s3739_s1 + $0x138] sm:$0xf0] }
  0xd7   :  { %v1561_v61 = vmax.f32 %v907_v34, %v3007_v35  ;;  %v3119_v0 = vpop.f32.mrf.mxu3  ;;  %v913_v1 = vpop.f32.mrf.mxu2 }
  0xd8   :  { %v810_v9 = vpop.f32.mrf.mxu0  ;;  %1280 = vmatpush.bf16.msra.mxu1 %v2000_v31 }
  0xd9   :  { %1641 = vst [vmem:[#allocation2 + $0xf0] sm:$0xff] %v1561_v61  ;;  %v811_v6 = vadd.f32 %v810_v9, %v2992_v18 }
  0xda   :  { %v859_v40 = vpop.f32.mrf.mxu1 }
  0xdb   :  { %v860_v30 = vadd.f32 %v859_v40, %v811_v6 }
  0xdc   :  { %1013 = vmatmul.bf16.gmra.mxu2 %v2913_v29  ;;  %1281 = vmatpush.bf16.msra.mxu1 %v1980_v58 }
  0xdd   :  { %v909_v17 = vadd.f32 %v908_v28, %v860_v30  ;;  %v2230_v28 = vld [vmem:[%s3739_s1 + $0xc] sm:$0xf]  ;;  %v1964_v30 = vor.u32 %v2268_v7, %v1963_v15 }
  0xde   :  { %v1820_v56 = vor.u32 %v2230_v28, %v1817_v48  ;;  %v826_v28 = vadd.f32 %v3031_v62, %v2992_v18  ;;  %v2157_v62 = vld [vmem:[%s3739_s1 + $0x2c4] sm:$0xf0] }
  0xdf   :  { %v1566_v37 = vmax.f32 %v909_v17, %v3007_v35  ;;  %v3136_v20 = vpop.f32.mrf.mxu3  ;;  %v916_v38 = vpop.f32.mrf.mxu2  ;;  %1372 = vmatpush.bf16.msrb.mxu2 %v1964_v30  ;;  %v829_v30 = vadd.f32 %v3057_v32, %v2992_v18 }
  0xe0   :  { %v813_v63 = vpop.f32.mrf.mxu0  ;;  %1232 = vmatpush.bf16.msra.mxu0 %v1820_v56  ;;  %v875_v52 = vadd.f32 %v3111_v53, %v826_v28  ;;  %v2123_v56 = vld [vmem:[%s3739_s1 + $0x268] sm:$0xf]  ;;  %v2308_v53 = vld [vmem:[%s3739_s1 + $0x278] sm:$0xf0] }
  0xe1   :  { %1646 = vst [vmem:[#allocation2 + $0x118] sm:$0xff] %v1566_v37  ;;  %v814_v41 = vadd.f32 %v813_v63, %v2992_v18 }
  0xe2   :  { %v862_v42 = vpop.f32.mrf.mxu1 }
  0xe3   :  { %v863_v36 = vadd.f32 %v862_v42, %v814_v41  ;;  %2179 = vmatmul.msk.bf16.gmra.mxu0 %vm759_vm0, %v2883_v19 }
  0xe4   :  { %1135 = vmatmul.bf16.vlgmr.msrb.gmra.mxu3 %v2603_v24 }
  0xe5   :  { %1116 = vmatmul.bf16.gmra.mxu1 %v2601_v23  ;;  %v912_v55 = vadd.f32 %v911_v54, %v863_v36  ;;  %v824_v54 = vadd.f32 %v3014_v39, %v2992_v18 }
  0xe7   :  { %v1571_v34 = vmax.f32 %v912_v55, %v3007_v35  ;;  %v918_v61 = vpop.f32.mrf.mxu2  ;;  %v3156_v9 = vpop.f32.mrf.mxu3  ;;  %v873_v31 = vadd.f32 %v3094_v22, %v824_v54  ;;  %v2315_v55 = vld [vmem:[%s3739_s1 + $0x2b4] sm:$0xf] }
  0xe8   :  { %v815_v6 = vpop.f32.mrf.mxu0 }
  0xe9   :  { %1651 = vst [vmem:[#allocation2 + $0x140] sm:$0xff] %v1571_v34  ;;  %v816_v40 = vadd.f32 %v815_v6, %v2992_v18  ;;  %v2163_v6 = vld [vmem:[%s3739_s1 + $0x2b8] sm:$0xf] }
  0xea   :  { %v864_v10 = vpop.f32.mrf.mxu1 }
  0xeb   :  { %v865_v14 = vadd.f32 %v864_v10, %v816_v40  ;;  %v2318_v40 = vld [vmem:[%s3739_s1 + $0x2c8] sm:$0xf0] }
  0xec   :  { %1018 = vmatmul.bf16.gmra.mxu2 %v2726_v4  ;;  %v2164_v15 = vor.u32 %v2318_v40, %v2163_v6 }
  0xed   :  { %v914_v16 = vadd.f32 %v913_v1, %v865_v14  ;;  %v2124_v14 = vor.u32 %v2308_v53, %v2123_v56  ;;  %v2303_v56 = vld [vmem:[%s3739_s1 + $0x250] sm:$0xf0] }
  0xee   :  { %1476 = vmatpush.bf16.msrb.mxu1 %v2164_v15 }
  0xef   :  { %v1576_v17 = vmax.f32 %v914_v16, %v3007_v35  ;;  %v921_v37 = vpop.f32.mrf.mxu2  ;;  %v3170_v63 = vpop.f32.mrf.mxu3  ;;  %1421 = vmatpush.bf16.msrb.mxu0 %v2124_v14 }
  0xf0   :  { %v922_v39 = vadd.f32 %v921_v37, %v873_v31  ;;  %v818_v41 = vpop.f32.mrf.mxu0 }
  0xf1   :  { %1656 = vst [vmem:[#allocation2 + $0x168] sm:$0xff] %v1576_v17  ;;  %v819_v42 = vadd.f32 %v818_v41, %v2992_v18  ;;  %v1943_v41 = vld [vmem:[%s3739_s1 + $0x100] sm:$0xf] }
  0xf2   :  { %v867_v36 = vpop.f32.mrf.mxu1  ;;  %v1591_v1 = vmax.f32 %v922_v39, %v3007_v35  ;;  %v878_v39 = vadd.f32 %v3119_v0, %v829_v30  ;;  %v831_v0 = vadd.f32 %v3086_v3, %v2992_v18 }
  0xf3   :  { %v868_v48 = vadd.f32 %v867_v36, %v819_v42  ;;  %2180 = vmatmul.msk.bf16.gmra.mxu0 %vm759_vm0, %v2936_v51  ;;  %v2263_v42 = vld [vmem:[%s3739_s1 + $0x110] sm:$0xf0] }
  0xf4   :  { %1671 = vst [vmem:[#allocation2 + $0x1e0] sm:$0xff] %v1591_v1  ;;  %1140 = vmatmul.bf16.gmra.mxu3 %v2663_v46  ;;  %v1944_v1 = vor.u32 %v2263_v42, %v1943_v41  ;;  %v2298_v41 = vld [vmem:[%s3739_s1 + $0x228] sm:$0xf0] }
  0xf5   :  { %1121 = vmatmul.bf16.gmra.mxu1 %v2661_v45  ;;  %v917_v22 = vadd.f32 %v916_v38, %v868_v48  ;;  %v2160_v38 = vor.u32 %v2315_v55, %v2157_v62  ;;  %v880_v55 = vadd.f32 %v3136_v20, %v831_v0  ;;  %v2103_v62 = vld [vmem:[%s3739_s1 + $0x240] sm:$0xf] }
  0xf6   :  { %1373 = vmatpush.bf16.msrb.mxu2 %v1944_v1 }
  0xf7   :  { %v1581_v57 = vmax.f32 %v917_v22, %v3007_v35  ;;  %v923_v58 = vpop.f32.mrf.mxu2  ;;  %v3191_v34 = vpop.f32.mrf.mxu3  ;;  %1329 = vmatpush.bf16.msra.mxu3 %v2160_v38 }
  0xf8   :  { %v924_v10 = vadd.f32 %v923_v58, %v875_v52  ;;  %v820_v54 = vpop.f32.mrf.mxu0  ;;  %v3235_v58 = vperm.slane %v2985_v13, 1 }
  0xf9   :  { %1661 = vst [vmem:[#allocation2 + $0x190] sm:$0xff] %v1581_v57  ;;  %v821_v7 = vadd.f32 %v820_v54, %v2992_v18  ;;  %v2104_v57 = vor.u32 %v2303_v56, %v2103_v62  ;;  %v2258_v54 = vld [vmem:[%s3739_s1 + $0xe8] sm:$0xf0]  ;;  %v2253_v62 = vld [vmem:[%s3739_s1 + $0xc0] sm:$0xf0] }
  0xfa   :  { %v869_v16 = vpop.f32.mrf.mxu1  ;;  %v1596_v31 = vmax.f32 %v924_v10, %v3007_v35  ;;  %v941_v40 = vadd.f32 %v3156_v9, %v3235_v58  ;;  %v1923_v10 = vld [vmem:[%s3739_s1 + $0xd8] sm:$0xf] }
  0xfb   :  { %v870_v17 = vadd.f32 %v869_v16, %v821_v7  ;;  %1422 = vmatpush.bf16.msrb.mxu0 %v2104_v57  ;;  %v1924_v7 = vor.u32 %v2258_v54, %v1923_v10  ;;  %v3253_v16 = vperm.slane %v2997_v26, 1  ;;  %v2063_v54 = vld [vmem:[%s3739_s1 + $0x1f0] sm:$0xf] }
  0xfc   :  { %1676 = vst [vmem:[#allocation2 + $0x208] sm:$0xff] %v1596_v31  ;;  %1023 = vmatmul.bf16.gmra.mxu2 %v2811_v44 }
  0xfd   :  { %v919_v37 = vadd.f32 %v918_v61, %v870_v17  ;;  %1374 = vmatpush.bf16.msrb.mxu2 %v1924_v7 }
  0xff   :  { %v1586_v32 = vmax.f32 %v919_v37, %v3007_v35  ;;  %v926_v36 = vpop.f32.mrf.mxu2  ;;  %v3215_v28 = vpop.f32.mrf.mxu3  ;;  %v943_v37 = vadd.f32 %v3170_v63, %v3235_v58  ;;  %v946_v63 = vadd.f32 %v3191_v34, %v3235_v58 }
 0x100   :  { %v927_v48 = vadd.f32 %v926_v36, %v878_v39  ;;  %v1038_v22 = vpop.f32.mrf.mxu0  ;;  %v2083_v39 = vld [vmem:[%s3739_s1 + $0x218] sm:$0xf]  ;;  %v948_v10 = vadd.f32 %v3215_v28, %v3235_v58 }
 0x101   :  { %1666 = vst [vmem:[#allocation2 + $0x1b8] sm:$0xff] %v1586_v32  ;;  %v2084_v36 = vor.u32 %v2298_v41, %v2083_v39 }
 0x102   :  { %v3217_v61 = vpop.f32.mrf.mxu1  ;;  %v1601_v52 = vmax.f32 %v927_v48, %v3007_v35 }
 0x103   :  { %1233 = vmatmul.bf16.vlgmr.msra.gmra.mxu0 %v2599_v21 }
 0x104   :  { %1681 = vst [vmem:[#allocation2 + $0x230] sm:$0xff] %v1601_v52  ;;  %1145 = vmatmul.bf16.gmra.mxu3 %v2728_v5  ;;  %1423 = vmatpush.bf16.msrb.mxu0 %v2084_v36  ;;  %v2248_v36 = vld [vmem:[%s3739_s1 + $0x98] sm:$0xf0] }
 0x105   :  { %1282 = vmatmul.bf16.vlgmr.msra.gmra.mxu1 %v2603_v24 }
 0x107   :  { %v928_v18 = vpop.f32.mrf.mxu2  ;;  %v3232_v3 = vpop.f32.mrf.mxu3 }
 0x108   :  { %v929_v38 = vadd.f32 %v928_v18, %v880_v55  ;;  %v1040_v53 = vpop.f32.mrf.mxu0  ;;  %v1903_v55 = vld [vmem:[%s3739_s1 + $0xb0] sm:$0xf]  ;;  %v951_v28 = vadd.f32 %v3232_v3, %v3235_v58 }
 0x109   :  { %v1904_v57 = vor.u32 %v2253_v62, %v1903_v55 }
 0x10a   :  { %v3237_v6 = vpop.f32.mrf.mxu1  ;;  %v1606_v20 = vmax.f32 %v929_v38, %v3007_v35 }
 0x10b   :  { %1375 = vmatpush.bf16.msrb.mxu2 %v1904_v57  ;;  %v2310_v57 = vld [vmem:[%s3739_s1 + $0x28c] sm:$0xf] }
 0x10c   :  { %1686 = vst [vmem:[#allocation2 + $0x258] sm:$0xff] %v1606_v20  ;;  %2181 = vmatmul.msk.bf16.vlgmr.msra.gmra.mxu2 %vm759_vm0, %v2459_v27 }
 0x10f   :  { %v3250_v14 = vpop.f32.mrf.mxu3  ;;  %v989_v15 = vpop.f32.mrf.mxu2 }
 0x110   :  { %v990_v35 = vadd.f32 %v989_v15, %v941_v40  ;;  %v1043_v9 = vpop.f32.mrf.mxu0  ;;  %v2293_v15 = vld [vmem:[%s3739_s1 + $0x200] sm:$0xf0] }
 0x112   :  { %v3255_v30 = vpop.f32.mrf.mxu1  ;;  %v1039_v31 = vadd.f32 %v1038_v22, %v990_v35 }
 0x113   :  { %1238 = vmatmul.bf16.gmra.mxu0 %v2659_v43 }
 0x114   :  { %v1532_v17 = vmax.f32 %v1039_v31, %v3253_v16  ;;  %1150 = vmatmul.bf16.gmra.mxu3 %v2813_v49 }
 0x115   :  { %1287 = vmatmul.bf16.gmra.mxu1 %v2663_v46 }
 0x116   :  { %1612 = vst [vmem:[#allocation2 + $0x8] sm:$0xff] %v1532_v17 }
 0x117   :  { %v3269_v42 = vpop.f32.mrf.mxu3  ;;  %v991_v32 = vpop.f32.mrf.mxu2 }
 0x118   :  { %v992_v1 = vadd.f32 %v991_v32, %v943_v37  ;;  %v1045_v48 = vpop.f32.mrf.mxu0  ;;  %v1883_v32 = vld [vmem:[%s3739_s1 + $0x88] sm:$0xf] }
 0x11a   :  { %v3271_v22 = vpop.f32.mrf.mxu1  ;;  %v1041_v0 = vadd.f32 %v1040_v53, %v992_v1 }
 0x11c   :  { %v1537_v52 = vmax.f32 %v1041_v0, %v3253_v16  ;;  %2182 = vmatmul.msk.bf16.gmra.mxu2 %vm759_vm0, %v2541_v60  ;;  %v1884_v0 = vor.u32 %v2248_v36, %v1883_v32  ;;  %v956_v32 = vadd.f32 %v3269_v42, %v3235_v58 }
 0x11e   :  { %1617 = vst [vmem:[#allocation2 + $0x30] sm:$0xff] %v1537_v52  ;;  %1376 = vmatpush.bf16.msrb.mxu2 %v1884_v0  ;;  %v2243_v0 = vld [vmem:[%s3739_s1 + $0x70] sm:$0xf0] }
 0x11f   :  { %v3284_v56 = vpop.f32.mrf.mxu3  ;;  %v994_v18 = vpop.f32.mrf.mxu2 }
 0x120   :  { %v995_v38 = vadd.f32 %v994_v18, %v946_v63  ;;  %v1048_v34 = vpop.f32.mrf.mxu0  ;;  %v953_v18 = vadd.f32 %v3250_v14, %v3235_v58  ;;  %v2288_v14 = vld [vmem:[%s3739_s1 + $0x1d8] sm:$0xf0] }
 0x122   :  { %v3286_v53 = vpop.f32.mrf.mxu1  ;;  %v1044_v20 = vadd.f32 %v1043_v9, %v995_v38  ;;  %v2064_v9 = vor.u32 %v2293_v15, %v2063_v54  ;;  %v2137_v38 = vld [vmem:[%s3739_s1 + $0x29c] sm:$0xf0]  ;;  %v2143_v54 = vld [vmem:[%s3739_s1 + $0x290] sm:$0xf] }
 0x123   :  { %1243 = vmatmul.bf16.gmra.mxu0 %v2724_v2 }
 0x124   :  { %v1542_v40 = vmax.f32 %v1044_v20, %v3253_v16  ;;  %1155 = vmatmul.bf16.gmra.mxu3 %v2866_v12  ;;  %1424 = vmatpush.bf16.msrb.mxu0 %v2064_v9 }
 0x125   :  { %1292 = vmatmul.bf16.gmra.mxu1 %v2728_v5 }
 0x126   :  { %1622 = vst [vmem:[#allocation2 + $0x58] sm:$0xff] %v1542_v40  ;;  %v2140_v40 = vor.u32 %v2310_v57, %v2137_v38 }
 0x127   :  { %v3300_v7 = vpop.f32.mrf.mxu3  ;;  %v996_v35 = vpop.f32.mrf.mxu2 }
 0x128   :  { %v997_v31 = vadd.f32 %v996_v35, %v948_v10  ;;  %v1050_v17 = vpop.f32.mrf.mxu0  ;;  %v2043_v10 = vld [vmem:[%s3739_s1 + $0x1c8] sm:$0xf]  ;;  %1330 = vmatpush.bf16.msra.mxu3 %v2140_v40  ;;  %v2023_v40 = vld [vmem:[%s3739_s1 + $0x1a0] sm:$0xf] }
 0x129   :  { %v2044_v9 = vor.u32 %v2288_v14, %v2043_v10 }
 0x12a   :  { %v3302_v37 = vpop.f32.mrf.mxu1  ;;  %v1046_v39 = vadd.f32 %v1045_v48, %v997_v31  ;;  %v2313_v31 = vld [vmem:[%s3739_s1 + $0x2a0] sm:$0xf0] }
 0x12b   :  { %1425 = vmatpush.bf16.msrb.mxu0 %v2044_v9 }
 0x12c   :  { %v1547_v41 = vmax.f32 %v1046_v39, %v3253_v16  ;;  %2183 = vmatmul.msk.bf16.gmra.mxu2 %vm759_vm0, %v2623_v8 }
 0x12e   :  { %1627 = vst [vmem:[#allocation2 + $0x80] sm:$0xff] %v1547_v41 }
 0x12f   :  { %v3315_v1 = vpop.f32.mrf.mxu3  ;;  %v999_v48 = vpop.f32.mrf.mxu2 }
 0x130   :  { %v1000_v63 = vadd.f32 %v999_v48, %v951_v28  ;;  %v1053_v3 = vpop.f32.mrf.mxu0  ;;  %v2144_v28 = vor.u32 %v2313_v31, %v2143_v54  ;;  %v1863_v48 = vld [vmem:[%s3739_s1 + $0x60] sm:$0xf] }
 0x132   :  { %v3317_v52 = vpop.f32.mrf.mxu1  ;;  %v1049_v55 = vadd.f32 %v1048_v34, %v1000_v63  ;;  %1477 = vmatpush.bf16.msrb.mxu1 %v2144_v28 }
 0x133   :  { %1248 = vmatmul.bf16.gmra.mxu0 %v2809_v47 }
 0x134   :  { %v1552_v62 = vmax.f32 %v1049_v55, %v3253_v16  ;;  %1160 = vmatmul.bf16.gmra.mxu3 %v2913_v29  ;;  %v1864_v55 = vor.u32 %v2243_v0, %v1863_v48 }
 0x135   :  { %1297 = vmatmul.bf16.gmra.mxu1 %v2813_v49 }
 0x136   :  { %1632 = vst [vmem:[#allocation2 + $0xa8] sm:$0xff] %v1552_v62  ;;  %1377 = vmatpush.bf16.msrb.mxu2 %v1864_v55 }
 0x137   :  { %v3331_v34 = vpop.f32.mrf.mxu3  ;;  %v1001_v20 = vpop.f32.mrf.mxu2 }
 0x138   :  { %v1002_v15 = vadd.f32 %v1001_v20, %v953_v18  ;;  %v1055_v35 = vpop.f32.mrf.mxu0  ;;  %v958_v20 = vadd.f32 %v3284_v56, %v3235_v58  ;;  %v961_v56 = vadd.f32 %v3300_v7, %v3235_v58 }
 0x13a   :  { %v3345_v39 = vpop.f32.mrf.mxu1  ;;  %v1051_v41 = vadd.f32 %v1050_v17, %v1002_v15 }
 0x13c   :  { %v1557_v36 = vmax.f32 %v1051_v41, %v3253_v16  ;;  %2184 = vmatmul.msk.bf16.gmra.mxu2 %vm759_vm0, %v2682_v50 }
 0x13e   :  { %1637 = vst [vmem:[#allocation2 + $0xd0] sm:$0xff] %v1557_v36  ;;  %v2238_v36 = vld [vmem:[%s3739_s1 + $0x48] sm:$0xf0] }
 0x13f   :  { %v3358_v17 = vpop.f32.mrf.mxu3  ;;  %v1004_v63 = vpop.f32.mrf.mxu2 }
 0x140   :  { %v1005_v62 = vadd.f32 %v1004_v63, %v956_v32  ;;  %v1058_v42 = vpop.f32.mrf.mxu0  ;;  %v1843_v32 = vld [vmem:[%s3739_s1 + $0x38] sm:$0xf] }
 0x141   :  { %v1844_v0 = vor.u32 %v2238_v36, %v1843_v32  ;;  %v1823_v32 = vld [vmem:[%s3739_s1 + $0x10] sm:$0xf]  ;;  %v2233_v36 = vld [vmem:[%s3739_s1 + $0x20] sm:$0xf0] }
 0x142   :  { %v3360_v18 = vpop.f32.mrf.mxu1  ;;  %v1054_v57 = vadd.f32 %v1053_v3, %v1005_v62  ;;  %v2283_v3 = vld [vmem:[%s3739_s1 + $0x1b0] sm:$0xf0] }
 0x143   :  { %1253 = vmatmul.bf16.gmra.mxu0 %v2864_v11  ;;  %v2024_v54 = vor.u32 %v2283_v3, %v2023_v40  ;;  %1378 = vmatpush.bf16.msrb.mxu2 %v1844_v0  ;;  %v1824_v0 = vor.u32 %v2233_v36, %v1823_v32 }
 0x144   :  { %v1562_v38 = vmax.f32 %v1054_v57, %v3253_v16  ;;  %1165 = vmatmul.bf16.gmra.mxu3 %v2726_v4 }
 0x145   :  { %1302 = vmatmul.bf16.gmra.mxu1 %v2866_v12  ;;  %1426 = vmatpush.bf16.msrb.mxu0 %v2024_v54 }
 0x146   :  { %1642 = vst [vmem:[#allocation2 + $0xf8] sm:$0xff] %v1562_v38  ;;  %v963_v38 = vadd.f32 %v3315_v1, %v3235_v58  ;;  %v966_v1 = vadd.f32 %v3331_v34, %v3235_v58 }
 0x147   :  { %v3374_v10 = vpop.f32.mrf.mxu3  ;;  %v1006_v14 = vpop.f32.mrf.mxu2  ;;  %1379 = vmatpush.bf16.msrb.mxu2 %v1824_v0 }
 0x148   :  { %v1007_v15 = vadd.f32 %v1006_v14, %v958_v20  ;;  %v1060_v9 = vpop.f32.mrf.mxu0  ;;  %v2003_v20 = vld [vmem:[%s3739_s1 + $0x178] sm:$0xf] }
 0x14a   :  { %v3376_v31 = vpop.f32.mrf.mxu1  ;;  %v1056_v28 = vadd.f32 %v1055_v35, %v1007_v15 }
 0x14c   :  { %v1567_v41 = vmax.f32 %v1056_v28, %v3253_v16  ;;  %2185 = vmatmul.msk.bf16.gmra.mxu2 %vm759_vm0, %v2763_v25 }
 0x14e   :  { %1647 = vst [vmem:[#allocation2 + $0x120] sm:$0xff] %v1567_v41 }
 0x14f   :  { %v3389_v48 = vpop.f32.mrf.mxu3  ;;  %v1009_v35 = vpop.f32.mrf.mxu2 }
 0x150   :  { %v1010_v63 = vadd.f32 %v1009_v35, %v961_v56  ;;  %v1063_v7 = vpop.f32.mrf.mxu0 }
 0x152   :  { %v3391_v55 = vpop.f32.mrf.mxu1  ;;  %v1059_v62 = vadd.f32 %v1058_v42, %v1010_v63  ;;  %v2278_v42 = vld [vmem:[%s3739_s1 + $0x188] sm:$0xf0] }
 0x153   :  { %1258 = vmatmul.bf16.gmra.mxu0 %v2905_v33  ;;  %v2004_v14 = vor.u32 %v2278_v42, %v2003_v20  ;;  %v968_v20 = vadd.f32 %v3358_v17, %v3235_v58  ;;  %v1983_v42 = vld [vmem:[%s3739_s1 + $0x150] sm:$0xf]  ;;  %v971_v17 = vadd.f32 %v3374_v10, %v3235_v58  ;;  %v973_v10 = vadd.f32 %v3389_v48, %v3235_v58 }
 0x154   :  { %v1572_v57 = vmax.f32 %v1059_v62, %v3253_v16  ;;  %1170 = vmatmul.bf16.gmra.mxu3 %v2811_v44 }
 0x155   :  { %1307 = vmatmul.bf16.gmra.mxu1 %v2913_v29  ;;  %1427 = vmatpush.bf16.msrb.mxu0 %v2004_v14 }
 0x156   :  { %1652 = vst [vmem:[#allocation2 + $0x148] sm:$0xff] %v1572_v57 }
 0x157   :  { %v975_v40 = vpop.f32.mrf.mxu3  ;;  %v1011_v3 = vpop.f32.mrf.mxu2 }
 0x158   :  { %v1012_v54 = vadd.f32 %v1011_v3, %v963_v38  ;;  %v1065_v15 = vpop.f32.mrf.mxu0 }
 0x15a   :  { %v3405_v28 = vpop.f32.mrf.mxu1  ;;  %v1061_v56 = vadd.f32 %v1060_v9, %v1012_v54 }
 0x15c   :  { %v1577_v41 = vmax.f32 %v1061_v56, %v3253_v16  ;;  %2186 = vmatmul.msk.bf16.gmra.mxu2 %vm759_vm0, %v2836_v59 }
 0x15e   :  { %1657 = vst [vmem:[#allocation2 + $0x170] sm:$0xff] %v1577_v41 }
 0x15f   :  { %v3418_v35 = vpop.f32.mrf.mxu3  ;;  %v1014_v9 = vpop.f32.mrf.mxu2 }
 0x160   :  { %v1015_v63 = vadd.f32 %v1014_v9, %v966_v1  ;;  %v1068_v34 = vpop.f32.mrf.mxu0 }
 0x162   :  { %v3420_v62 = vpop.f32.mrf.mxu1  ;;  %v1064_v57 = vadd.f32 %v1063_v7, %v1015_v63  ;;  %v2273_v7 = vld [vmem:[%s3739_s1 + $0x160] sm:$0xf0] }
 0x163   :  { %1263 = vmatmul.bf16.gmra.mxu0 %v2601_v23  ;;  %v1984_v54 = vor.u32 %v2273_v7, %v1983_v42 }
 0x164   :  { %v1582_v38 = vmax.f32 %v1064_v57, %v3253_v16  ;;  %2189 = vmatmul.msk.bf16.vlgmr.msra.gmra.mxu3 %vm759_vm0, %v2459_v27 }
 0x165   :  { %1312 = vmatmul.bf16.gmra.mxu1 %v2726_v4  ;;  %1428 = vmatpush.bf16.msrb.mxu0 %v1984_v54 }
 0x166   :  { %1662 = vst [vmem:[#allocation2 + $0x198] sm:$0xff] %v1582_v38 }
 0x167   :  { %v1016_v3 = vpop.f32.mrf.mxu2  ;;  %v1136_v14 = vpop.f32.mrf.mxu3 }
 0x168   :  { %v1017_v56 = vadd.f32 %v1016_v3, %v968_v20  ;;  %v1070_v1 = vpop.f32.mrf.mxu0 }
 0x16a   :  { %v3435_v41 = vpop.f32.mrf.mxu1  ;;  %v1066_v32 = vadd.f32 %v1065_v15, %v1017_v56 }
 0x16c   :  { %v1587_v36 = vmax.f32 %v1066_v32, %v3253_v16  ;;  %2187 = vmatmul.msk.bf16.gmra.mxu2 %vm759_vm0, %v2883_v19  ;;  %v976_v32 = vadd.f32 %v975_v40, %v3235_v58 }
 0x16e   :  { %1667 = vst [vmem:[#allocation2 + $0x1c0] sm:$0xff] %v1587_v36  ;;  %v3462_v36 = vperm.slane %v2985_v13, 3 }
 0x16f   :  { %v1019_v9 = vpop.f32.mrf.mxu2  ;;  %v3442_v0 = vpop.f32.mrf.mxu3 }
 0x170   :  { %v1020_v63 = vadd.f32 %v1019_v9, %v971_v17  ;;  %v1073_v57 = vpop.f32.mrf.mxu0 }
 0x172   :  { %v3444_v38 = vpop.f32.mrf.mxu1  ;;  %v1069_v20 = vadd.f32 %v1068_v34, %v1020_v63 }
 0x173   :  { %1268 = vmatmul.bf16.gmra.mxu0 %v2661_v45 }
 0x174   :  { %v1592_v15 = vmax.f32 %v1069_v20, %v3253_v16  ;;  %2190 = vmatmul.msk.bf16.gmra.mxu3 %vm759_vm0, %v2541_v60 }
 0x175   :  { %1317 = vmatmul.bf16.gmra.mxu1 %v2811_v44 }
 0x176   :  { %1672 = vst [vmem:[#allocation2 + $0x1e8] sm:$0xff] %v1592_v15 }
 0x177   :  { %v1021_v42 = vpop.f32.mrf.mxu2  ;;  %v3453_v7 = vpop.f32.mrf.mxu3 }
 0x178   :  { %v1022_v3 = vadd.f32 %v1021_v42, %v973_v10  ;;  %v1075_v54 = vpop.f32.mrf.mxu0 }
 0x17a   :  { %v3455_v56 = vpop.f32.mrf.mxu1  ;;  %v1071_v34 = vadd.f32 %v1070_v1, %v1022_v3  ;;  %v978_v3 = vadd.f32 %v3418_v35, %v3235_v58 }
 0x17c   :  { %v1597_v17 = vmax.f32 %v1071_v34, %v3253_v16  ;;  %2188 = vmatmul.msk.bf16.gmra.mxu2 %vm759_vm0, %v2936_v51 }
 0x17e   :  { %1677 = vst [vmem:[#allocation2 + $0x210] sm:$0xff] %v1597_v17 }
 0x17f   :  { %v1024_v48 = vpop.f32.mrf.mxu2  ;;  %v3464_v9 = vpop.f32.mrf.mxu3 }
 0x180   :  { %v1025_v63 = vadd.f32 %v1024_v48, %v976_v32  ;;  %v1234_v20 = vpop.f32.mrf.mxu0 }
 0x181   :  { %v1235_v15 = vadd.f32 %v1234_v20, %v3462_v36 }
 0x182   :  { %v1283_v10 = vpop.f32.mrf.mxu1  ;;  %v1074_v1 = vadd.f32 %v1073_v57, %v1025_v63  ;;  %v3480_v57 = vperm.slane %v2985_v13, 2  ;;  %v3490_v13 = vperm.slane %v2997_v26, 2 }
 0x183   :  { %v3467_v42 = vadd.f32 %v1283_v10, %v1235_v15  ;;  %1429 = vmatmul.bf16.vlgmr.msrb.gmra.mxu0 %v2603_v24 }
 0x184   :  { %v1602_v40 = vmax.f32 %v1074_v1, %v3253_v16  ;;  %2191 = vmatmul.msk.bf16.gmra.mxu3 %vm759_vm0, %v2623_v8 }
 0x185   :  { %2197 = vmatmul.msk.bf16.vlgmr.msrb.gmra.mxu1 %vm759_vm0, %v2459_v27  ;;  %v1088_v27 = vadd.f32 %v3217_v61, %v3480_v57 }
 0x186   :  { %1682 = vst [vmem:[#allocation2 + $0x238] sm:$0xff] %v1602_v40 }
 0x187   :  { %v1026_v34 = vpop.f32.mrf.mxu2  ;;  %v3477_v32 = vpop.f32.mrf.mxu3  ;;  %v1137_v35 = vadd.f32 %v1136_v14, %v1088_v27  ;;  %v1093_v27 = vadd.f32 %v3255_v30, %v3480_v57  ;;  %v1095_v30 = vadd.f32 %v3271_v22, %v3480_v57 }
 0x188   :  { %v1027_v17 = vadd.f32 %v1026_v34, %v978_v3  ;;  %v1236_v24 = vpop.f32.mrf.mxu0 }
 0x189   :  { %v1237_v48 = vadd.f32 %v1236_v24, %v3462_v36 }
 0x18a   :  { %v1285_v63 = vpop.f32.mrf.mxu1  ;;  %v1076_v20 = vadd.f32 %v1075_v54, %v1027_v17 }
 0x18b   :  { %v3483_v15 = vadd.f32 %v1285_v63, %v1237_v48 }
 0x18c   :  { %v1607_v58 = vmax.f32 %v1076_v20, %v3253_v16  ;;  %1380 = vmatmul.bf16.vlgmr.msrb.gmra.mxu2 %v2599_v21  ;;  %v1090_v21 = vadd.f32 %v3237_v6, %v3480_v57 }
 0x18e   :  { %1687 = vst [vmem:[#allocation2 + $0x260] sm:$0xff] %v1607_v58  ;;  %v1139_v26 = vadd.f32 %v3442_v0, %v1090_v21 }
 0x18f   :  { %v3492_v10 = vpop.f32.mrf.mxu3  ;;  %v1185_v1 = vpop.f32.mrf.mxu2 }
 0x190   :  { %v1186_v40 = vadd.f32 %v1185_v1, %v1137_v35  ;;  %v1239_v3 = vpop.f32.mrf.mxu0 }
 0x191   :  { %v1240_v54 = vadd.f32 %v1239_v3, %v3462_v36 }
 0x192   :  { %v1288_v34 = vpop.f32.mrf.mxu1  ;;  %v1533_v17 = vmax.f32 %v1186_v40, %v3490_v13 }
 0x193   :  { %v3496_v61 = vadd.f32 %v1288_v34, %v1240_v54  ;;  %1434 = vmatmul.bf16.gmra.mxu0 %v2663_v46 }
 0x194   :  { %1613 = vst [vmem:[#allocation2 + $0x10] sm:$0xff] %v1533_v17  ;;  %2192 = vmatmul.msk.bf16.gmra.mxu3 %vm759_vm0, %v2682_v50 }
 0x195   :  { %2198 = vmatmul.msk.bf16.gmra.mxu1 %vm759_vm0, %v2541_v60  ;;  %v1142_v60 = vadd.f32 %v3453_v7, %v1093_v27 }
 0x197   :  { %v3506_v16 = vpop.f32.mrf.mxu3  ;;  %v1187_v14 = vpop.f32.mrf.mxu2 }
 0x198   :  { %v1188_v24 = vadd.f32 %v1187_v14, %v1139_v26  ;;  %v1241_v48 = vpop.f32.mrf.mxu0 }
 0x199   :  { %v1242_v63 = vadd.f32 %v1241_v48, %v3462_v36  ;;  %v1098_v48 = vadd.f32 %v3286_v53, %v3480_v57  ;;  %v1100_v53 = vadd.f32 %v3302_v37, %v3480_v57 }
 0x19a   :  { %v1290_v46 = vpop.f32.mrf.mxu1  ;;  %v1538_v20 = vmax.f32 %v1188_v24, %v3490_v13 }
 0x19b   :  { %v3510_v6 = vadd.f32 %v1290_v46, %v1242_v63 }
 0x19c   :  { %1618 = vst [vmem:[#allocation2 + $0x38] sm:$0xff] %v1538_v20  ;;  %1385 = vmatmul.bf16.gmra.mxu2 %v2659_v43  ;;  %v1144_v43 = vadd.f32 %v3464_v9, %v1095_v30 }
 0x19f   :  { %v3516_v0 = vpop.f32.mrf.mxu3  ;;  %v1190_v58 = vpop.f32.mrf.mxu2 }
 0x1a0   :  { %v1191_v35 = vadd.f32 %v1190_v58, %v1142_v60  ;;  %v1244_v1 = vpop.f32.mrf.mxu0 }
 0x1a1   :  { %v1245_v40 = vadd.f32 %v1244_v1, %v3462_v36 }
 0x1a2   :  { %v1293_v3 = vpop.f32.mrf.mxu1  ;;  %v1543_v54 = vmax.f32 %v1191_v35, %v3490_v13 }
 0x1a3   :  { %v3520_v34 = vadd.f32 %v1293_v3, %v1245_v40  ;;  %1439 = vmatmul.bf16.gmra.mxu0 %v2728_v5 }
 0x1a4   :  { %1623 = vst [vmem:[#allocation2 + $0x60] sm:$0xff] %v1543_v54  ;;  %2193 = vmatmul.msk.bf16.gmra.mxu3 %vm759_vm0, %v2763_v25 }
 0x1a5   :  { %2199 = vmatmul.msk.bf16.gmra.mxu1 %vm759_vm0, %v2623_v8  ;;  %v1147_v8 = vadd.f32 %v3477_v32, %v1098_v48 }
 0x1a7   :  { %v3530_v7 = vpop.f32.mrf.mxu3  ;;  %v1192_v17 = vpop.f32.mrf.mxu2 }
 0x1a8   :  { %v1193_v21 = vadd.f32 %v1192_v17, %v1144_v43  ;;  %v1246_v26 = vpop.f32.mrf.mxu0  ;;  %v1103_v43 = vadd.f32 %v3317_v52, %v3480_v57  ;;  %v1105_v52 = vadd.f32 %v3345_v39, %v3480_v57 }
 0x1a9   :  { %v1247_v14 = vadd.f32 %v1246_v26, %v3462_v36 }
 0x1aa   :  { %v1295_v5 = vpop.f32.mrf.mxu1  ;;  %v1548_v24 = vmax.f32 %v1193_v21, %v3490_v13 }
 0x1ab   :  { %v3534_v22 = vadd.f32 %v1295_v5, %v1247_v14 }
 0x1ac   :  { %1628 = vst [vmem:[#allocation2 + $0x88] sm:$0xff] %v1548_v24  ;;  %1390 = vmatmul.bf16.gmra.mxu2 %v2724_v2  ;;  %v1149_v2 = vadd.f32 %v3492_v10, %v1100_v53 }
 0x1af   :  { %v3540_v9 = vpop.f32.mrf.mxu3  ;;  %v1195_v63 = vpop.f32.mrf.mxu2 }
 0x1b0   :  { %v1196_v46 = vadd.f32 %v1195_v63, %v1147_v8  ;;  %v1249_v20 = vpop.f32.mrf.mxu0 }
 0x1b1   :  { %v1250_v27 = vadd.f32 %v1249_v20, %v3462_v36 }
 0x1b2   :  { %v1298_v60 = vpop.f32.mrf.mxu1  ;;  %v1553_v58 = vmax.f32 %v1196_v46, %v3490_v13 }
 0x1b3   :  { %v3544_v35 = vadd.f32 %v1298_v60, %v1250_v27  ;;  %1444 = vmatmul.bf16.gmra.mxu0 %v2813_v49  ;;  %v1108_v60 = vadd.f32 %v3360_v18, %v3480_v57  ;;  %v1110_v18 = vadd.f32 %v3376_v31, %v3480_v57 }
 0x1b4   :  { %1633 = vst [vmem:[#allocation2 + $0xb0] sm:$0xff] %v1553_v58  ;;  %2194 = vmatmul.msk.bf16.gmra.mxu3 %vm759_vm0, %v2836_v59 }
 0x1b5   :  { %2200 = vmatmul.msk.bf16.gmra.mxu1 %vm759_vm0, %v2682_v50  ;;  %v1152_v50 = vadd.f32 %v3506_v16, %v1103_v43 }
 0x1b7   :  { %v3554_v32 = vpop.f32.mrf.mxu3  ;;  %v1197_v1 = vpop.f32.mrf.mxu2 }
 0x1b8   :  { %v1198_v40 = vadd.f32 %v1197_v1, %v1149_v2  ;;  %v1251_v3 = vpop.f32.mrf.mxu0 }
 0x1b9   :  { %v1252_v54 = vadd.f32 %v1251_v3, %v3462_v36 }
 0x1ba   :  { %v1300_v49 = vpop.f32.mrf.mxu1  ;;  %v1558_v30 = vmax.f32 %v1198_v40, %v3490_v13 }
 0x1bb   :  { %v3558_v37 = vadd.f32 %v1300_v49, %v1252_v54 }
 0x1bc   :  { %1638 = vst [vmem:[#allocation2 + $0xd8] sm:$0xff] %v1558_v30  ;;  %1395 = vmatmul.bf16.gmra.mxu2 %v2809_v47  ;;  %v1154_v47 = vadd.f32 %v3516_v0, %v1105_v52 }
 0x1bf   :  { %v3564_v10 = vpop.f32.mrf.mxu3  ;;  %v1200_v17 = vpop.f32.mrf.mxu2 }
 0x1c0   :  { %v1201_v21 = vadd.f32 %v1200_v17, %v1152_v50  ;;  %v1254_v26 = vpop.f32.mrf.mxu0 }
 0x1c1   :  { %v1255_v14 = vadd.f32 %v1254_v26, %v3462_v36 }
 0x1c2   :  { %v1303_v5 = vpop.f32.mrf.mxu1  ;;  %v1563_v24 = vmax.f32 %v1201_v21, %v3490_v13  ;;  %v1113_v21 = vadd.f32 %v3391_v55, %v3480_v57  ;;  %v1115_v55 = vadd.f32 %v3405_v28, %v3480_v57 }
 0x1c3   :  { %v3568_v48 = vadd.f32 %v1303_v5, %v1255_v14  ;;  %1449 = vmatmul.bf16.gmra.mxu0 %v2866_v12 }
 0x1c4   :  { %1643 = vst [vmem:[#allocation2 + $0x100] sm:$0xff] %v1563_v24  ;;  %2195 = vmatmul.msk.bf16.gmra.mxu3 %vm759_vm0, %v2883_v19 }
 0x1c5   :  { %2201 = vmatmul.msk.bf16.gmra.mxu1 %vm759_vm0, %v2763_v25  ;;  %v1157_v25 = vadd.f32 %v3530_v7, %v1108_v60 }
 0x1c7   :  { %v3578_v16 = vpop.f32.mrf.mxu3  ;;  %v1202_v8 = vpop.f32.mrf.mxu2 }
 0x1c8   :  { %v1203_v63 = vadd.f32 %v1202_v8, %v1154_v47  ;;  %v1256_v46 = vpop.f32.mrf.mxu0 }
 0x1c9   :  { %v1257_v20 = vadd.f32 %v1256_v46, %v3462_v36 }
 0x1ca   :  { %v1305_v12 = vpop.f32.mrf.mxu1  ;;  %v1568_v27 = vmax.f32 %v1203_v63, %v3490_v13 }
 0x1cb   :  { %v3582_v39 = vadd.f32 %v1305_v12, %v1257_v20 }
 0x1cc   :  { %1648 = vst [vmem:[#allocation2 + $0x128] sm:$0xff] %v1568_v27  ;;  %1400 = vmatmul.bf16.gmra.mxu2 %v2864_v11  ;;  %v1159_v11 = vadd.f32 %v3540_v9, %v1110_v18 }
 0x1cf   :  { %v3588_v0 = vpop.f32.mrf.mxu3  ;;  %v1205_v58 = vpop.f32.mrf.mxu2 }
 0x1d0   :  { %v1206_v53 = vadd.f32 %v1205_v58, %v1157_v25  ;;  %v1259_v2 = vpop.f32.mrf.mxu0  ;;  %v1118_v58 = vadd.f32 %v3420_v62, %v3480_v57 }
 0x1d1   :  { %v1260_v1 = vadd.f32 %v1259_v2, %v3462_v36 }
 0x1d2   :  { %v1308_v40 = vpop.f32.mrf.mxu1  ;;  %v1573_v3 = vmax.f32 %v1206_v53, %v3490_v13  ;;  %v1167_v53 = vadd.f32 %v3578_v16, %v1118_v58 }
 0x1d3   :  { %v3592_v54 = vadd.f32 %v1308_v40, %v1260_v1  ;;  %1454 = vmatmul.bf16.gmra.mxu0 %v2913_v29 }
 0x1d4   :  { %1653 = vst [vmem:[#allocation2 + $0x150] sm:$0xff] %v1573_v3  ;;  %2196 = vmatmul.msk.bf16.gmra.mxu3 %vm759_vm0, %v2936_v51 }
 0x1d5   :  { %2202 = vmatmul.msk.bf16.gmra.mxu1 %vm759_vm0, %v2836_v59  ;;  %v1162_v59 = vadd.f32 %v3554_v32, %v1113_v21  ;;  %v3627_v32 = vld [vmem:[%s3741_s3] sm:$0x1f] }
 0x1d6   :  { %v3630_v63 = vperm.slane %v3627_v32, 3 }
 0x1d7   :  { %v3602_v7 = vpop.f32.mrf.mxu3  ;;  %v1207_v49 = vpop.f32.mrf.mxu2 }
 0x1d8   :  { %v1208_v30 = vadd.f32 %v1207_v49, %v1159_v11  ;;  %v1261_v43 = vpop.f32.mrf.mxu0 }
 0x1d9   :  { %v1262_v50 = vadd.f32 %v1261_v43, %v3462_v36 }
 0x1da   :  { %v1310_v29 = vpop.f32.mrf.mxu1  ;;  %v1578_v17 = vmax.f32 %v1208_v30, %v3490_v13 }
 0x1db   :  { %v3606_v31 = vadd.f32 %v1310_v29, %v1262_v50 }
 0x1dc   :  { %1658 = vst [vmem:[#allocation2 + $0x178] sm:$0xff] %v1578_v17  ;;  %1405 = vmatmul.bf16.gmra.mxu2 %v2905_v33  ;;  %v1164_v33 = vadd.f32 %v3564_v10, %v1115_v55 }
 0x1df   :  { %v3612_v9 = vpop.f32.mrf.mxu3  ;;  %v1210_v26 = vpop.f32.mrf.mxu2 }
 0x1e0   :  { %v1211_v14 = vadd.f32 %v1210_v26, %v1162_v59  ;;  %v1264_v5 = vpop.f32.mrf.mxu0 }
 0x1e1   :  { %v1265_v24 = vadd.f32 %v1264_v5, %v3462_v36 }
 0x1e2   :  { %v1313_v52 = vpop.f32.mrf.mxu1  ;;  %v1583_v47 = vmax.f32 %v1211_v14, %v3490_v13 }
 0x1e3   :  { %v3616_v8 = vadd.f32 %v1313_v52, %v1265_v24  ;;  %1459 = vmatmul.bf16.gmra.mxu0 %v2726_v4 }
 0x1e4   :  { %1663 = vst [vmem:[#allocation2 + $0x1a0] sm:$0xff] %v1583_v47 }
 0x1e5   :  { %2203 = vmatmul.msk.bf16.gmra.mxu1 %vm759_vm0, %v2883_v19 }
 0x1e7   :  { %v1212_v46 = vpop.f32.mrf.mxu2  ;;  %v1332_v20 = vpop.f32.mrf.mxu3 }
 0x1e8   :  { %v1213_v4 = vadd.f32 %v1212_v46, %v1164_v33  ;;  %v1333_v12 = vadd.f32 %v1332_v20, %v3467_v42  ;;  %v1266_v28 = vpop.f32.mrf.mxu0 }
 0x1e9   :  { %v1267_v27 = vadd.f32 %v1266_v28, %v3462_v36 }
 0x1ea   :  { %v1315_v60 = vpop.f32.mrf.mxu1  ;;  %v1588_v19 = vmax.f32 %v1213_v4, %v3490_v13  ;;  %v1534_v10 = vmax.f32 %v1333_v12, %v3630_v63 }
 0x1eb   :  { %v3636_v25 = vadd.f32 %v1315_v60, %v1267_v27 }
 0x1ec   :  { %1668 = vst [vmem:[#allocation2 + $0x1c8] sm:$0xff] %v1588_v19  ;;  %1410 = vmatmul.bf16.gmra.mxu2 %v2601_v23  ;;  %v1120_v23 = vadd.f32 %v3435_v41, %v3480_v57 }
 0x1ed   :  { %1614 = vst [vmem:[#allocation2 + $0x18] sm:$0xff] %v1534_v10 }
 0x1ef   :  { %v1215_v42 = vpop.f32.mrf.mxu2  ;;  %v1334_v2 = vpop.f32.mrf.mxu3 }
 0x1f0   :  { %v1216_v1 = vadd.f32 %v1215_v42, %v1167_v53  ;;  %v1335_v40 = vadd.f32 %v1334_v2, %v3483_v15  ;;  %v1269_v3 = vpop.f32.mrf.mxu0  ;;  %v1169_v15 = vadd.f32 %v3588_v0, %v1120_v23  ;;  %v3682_v53 = vperm.slane %v3627_v32, 4 }
 0x1f1   :  { %v1270_v18 = vadd.f32 %v1269_v3, %v3462_v36 }
 0x1f2   :  { %v1318_v11 = vpop.f32.mrf.mxu1  ;;  %v1593_v49 = vmax.f32 %v1216_v1, %v3490_v13  ;;  %v1539_v30 = vmax.f32 %v1335_v40, %v3630_v63 }
 0x1f3   :  { %v3646_v62 = vadd.f32 %v1318_v11, %v1270_v18  ;;  %1464 = vmatmul.bf16.gmra.mxu0 %v2811_v44 }
 0x1f4   :  { %1673 = vst [vmem:[#allocation2 + $0x1f0] sm:$0xff] %v1593_v49 }
 0x1f5   :  { %2204 = vmatmul.msk.bf16.gmra.mxu1 %vm759_vm0, %v2936_v51  ;;  %1619 = vst [vmem:[#allocation2 + $0x40] sm:$0xff] %v1539_v30  ;;  %v1123_v51 = vadd.f32 %v3444_v38, %v3480_v57  ;;  %v1125_v38 = vadd.f32 %v3455_v56, %v3480_v57  ;;  %v2339_v56 = vld [vmem:[%s3740_s2] sm:$0x1f]  ;;  %s2366_s2 = smov [#allocation2]  }
 0x1f6   :  { %v3676_v57 = vperm.slane %v2339_v56, 4  ;;  %s1695_s28 = sshll.u32 %s2366_s2, 4  ;;  %s1696_s28 = int_to_ptr.vmem [resolvable:$true] %s1695_s28 }
 0x1f7   :  { %v1217_v16 = vpop.f32.mrf.mxu2  ;;  %v1337_v43 = vpop.f32.mrf.mxu3  ;;  %v1172_v0 = vadd.f32 %v3602_v7, %v1123_v51 }
 0x1f8   :  { %v1218_v50 = vadd.f32 %v1217_v16, %v1169_v15  ;;  %v1338_v29 = vadd.f32 %v1337_v43, %v3496_v61  ;;  %v1271_v17 = vpop.f32.mrf.mxu0 }
 0x1f9   :  { %v1272_v21 = vadd.f32 %v1271_v17, %v3462_v36 }
 0x1fa   :  { %v1320_v59 = vpop.f32.mrf.mxu1  ;;  %v1598_v44 = vmax.f32 %v1218_v50, %v3490_v13  ;;  %v1544_v41 = vmax.f32 %v1338_v29, %v3630_v63 }
 0x1fb   :  { %v3658_v26 = vadd.f32 %v1320_v59, %v1272_v21 }
 0x1fc   :  { %1678 = vst [vmem:[#allocation2 + $0x218] sm:$0xff] %v1598_v44  ;;  %1415 = vmatmul.bf16.gmra.mxu2 %v2661_v45  ;;  %v1174_v45 = vadd.f32 %v3612_v9, %v1125_v38 }
 0x1fd   :  { %1624 = vst [vmem:[#allocation2 + $0x68] sm:$0xff] %v1544_v41 }
 0x1ff   :  { %v1220_v61 = vpop.f32.mrf.mxu2  ;;  %v1339_v14 = vpop.f32.mrf.mxu3 }
 0x200   :  { %v1221_v5 = vadd.f32 %v1220_v61, %v1172_v0  ;;  %v1340_v36 = vadd.f32 %v1339_v14, %v3510_v6  ;;  %v1430_v24 = vpop.f32.mrf.mxu0 }
 0x202   :  { %v1479_v52 = vpop.f32.mrf.mxu1  ;;  %v1603_v47 = vmax.f32 %v1221_v5, %v3490_v13  ;;  %v1549_v55 = vmax.f32 %v1340_v36, %v3630_v63 }
 0x204   :  { %1683 = vst [vmem:[#allocation2 + $0x240] sm:$0xff] %v1603_v47 }
 0x205   :  { %1629 = vst [vmem:[#allocation2 + $0x90] sm:$0xff] %v1549_v55 }
 0x207   :  { %v1222_v33 = vpop.f32.mrf.mxu2  ;;  %v1342_v7 = vpop.f32.mrf.mxu3 }
 0x208   :  { %v1223_v46 = vadd.f32 %v1222_v33, %v1174_v45  ;;  %v1343_v20 = vadd.f32 %v1342_v7, %v3520_v34  ;;  %v1432_v4 = vpop.f32.mrf.mxu0 }
 0x20a   :  { %v1481_v6 = vpop.f32.mrf.mxu1  ;;  %v1608_v12 = vmax.f32 %v1223_v46, %v3490_v13  ;;  %v1554_v28 = vmax.f32 %v1343_v20, %v3630_v63 }
 0x20c   :  { %1688 = vst [vmem:[#allocation2 + $0x268] sm:$0xff] %v1608_v12 }
 0x20d   :  { %1634 = vst [vmem:[#allocation2 + $0xb8] sm:$0xff] %v1554_v28 }
 0x20f   :  { %v1344_v9 = vpop.f32.mrf.mxu3  ;;  %v1381_v27 = vpop.f32.mrf.mxu2 }
 0x210   :  { %v1345_v60 = vadd.f32 %v1344_v9, %v3534_v22  ;;  %v1382_v34 = vadd.f32 %v1381_v27, %v3676_v57  ;;  %v1435_v19 = vpop.f32.mrf.mxu0 }
 0x212   :  { %v1484_v10 = vpop.f32.mrf.mxu1  ;;  %v1559_v13 = vmax.f32 %v1345_v60, %v3630_v63  ;;  %v1431_v58 = vadd.f32 %v1430_v24, %v1382_v34 }
 0x214   :  { %1639 = vst [vmem:[#allocation2 + $0xe0] sm:$0xff] %v1559_v13  ;;  %v1480_v42 = vadd.f32 %v1479_v52, %v1431_v58 }
 0x216   :  { %v1535_v2 = vmax.f32 %v1480_v42, %v3682_v53 }
 0x217   :  { %v1347_v1 = vpop.f32.mrf.mxu3  ;;  %v1383_v40 = vpop.f32.mrf.mxu2 }
 0x218   :  { %1615 = vst [vmem:[#allocation2 + $0x20] sm:$0xff] %v1535_v2  ;;  %v1348_v3 = vadd.f32 %v1347_v1, %v3544_v35  ;;  %v1384_v22 = vadd.f32 %v1383_v40, %v3676_v57  ;;  %v1437_v18 = vpop.f32.mrf.mxu0 }
 0x21a   :  { %v1486_v11 = vpop.f32.mrf.mxu1  ;;  %v1564_v49 = vmax.f32 %v1348_v3, %v3630_v63  ;;  %v1433_v30 = vadd.f32 %v1432_v4, %v1384_v22 }
 0x21c   :  { %1644 = vst [vmem:[#allocation2 + $0x108] sm:$0xff] %v1564_v49  ;;  %v1482_v23 = vadd.f32 %v1481_v6, %v1433_v30 }
 0x21e   :  { %v1540_v32 = vmax.f32 %v1482_v23, %v3682_v53 }
 0x21f   :  { %v1349_v15 = vpop.f32.mrf.mxu3  ;;  %v1386_v16 = vpop.f32.mrf.mxu2 }
 0x220   :  { %1620 = vst [vmem:[#allocation2 + $0x48] sm:$0xff] %v1540_v32  ;;  %v1350_v43 = vadd.f32 %v1349_v15, %v3558_v37  ;;  %v1387_v50 = vadd.f32 %v1386_v16, %v3676_v57  ;;  %v1440_v29 = vpop.f32.mrf.mxu0 }
 0x222   :  { %v1489_v35 = vpop.f32.mrf.mxu1  ;;  %v1569_v17 = vmax.f32 %v1350_v43, %v3630_v63  ;;  %v1436_v21 = vadd.f32 %v1435_v19, %v1387_v50 }
 0x224   :  { %1649 = vst [vmem:[#allocation2 + $0x130] sm:$0xff] %v1569_v17  ;;  %v1485_v59 = vadd.f32 %v1484_v10, %v1436_v21 }
 0x226   :  { %v1545_v44 = vmax.f32 %v1485_v59, %v3682_v53 }
 0x227   :  { %v1352_v41 = vpop.f32.mrf.mxu3  ;;  %v1388_v51 = vpop.f32.mrf.mxu2 }
 0x228   :  { %1625 = vst [vmem:[#allocation2 + $0x70] sm:$0xff] %v1545_v44  ;;  %v1353_v0 = vadd.f32 %v1352_v41, %v3568_v48  ;;  %v1389_v61 = vadd.f32 %v1388_v51, %v3676_v57  ;;  %v1442_v14 = vpop.f32.mrf.mxu0 }
 0x22a   :  { %v1491_v37 = vpop.f32.mrf.mxu1  ;;  %v1574_v5 = vmax.f32 %v1353_v0, %v3630_v63  ;;  %v1438_v36 = vadd.f32 %v1437_v18, %v1389_v61 }
 0x22c   :  { %1654 = vst [vmem:[#allocation2 + $0x158] sm:$0xff] %v1574_v5  ;;  %v1487_v24 = vadd.f32 %v1486_v11, %v1438_v36 }
 0x22e   :  { %v1550_v52 = vmax.f32 %v1487_v24, %v3682_v53 }
 0x22f   :  { %v1354_v47 = vpop.f32.mrf.mxu3  ;;  %v1391_v55 = vpop.f32.mrf.mxu2 }
 0x230   :  { %1630 = vst [vmem:[#allocation2 + $0x98] sm:$0xff] %v1550_v52  ;;  %v1355_v38 = vadd.f32 %v1354_v47, %v3582_v39  ;;  %v1392_v45 = vadd.f32 %v1391_v55, %v3676_v57  ;;  %v1445_v33 = vpop.f32.mrf.mxu0 }
 0x232   :  { %v1494_v48 = vpop.f32.mrf.mxu1  ;;  %v1579_v7 = vmax.f32 %v1355_v38, %v3630_v63  ;;  %v1441_v46 = vadd.f32 %v1440_v29, %v1392_v45 }
 0x234   :  { %1659 = vst [vmem:[#allocation2 + $0x180] sm:$0xff] %v1579_v7  ;;  %v1490_v20 = vadd.f32 %v1489_v35, %v1441_v46 }
 0x236   :  { %v1555_v4 = vmax.f32 %v1490_v20, %v3682_v53 }
 0x237   :  { %v1357_v6 = vpop.f32.mrf.mxu3  ;;  %v1393_v12 = vpop.f32.mrf.mxu2 }
 0x238   :  { %1635 = vst [vmem:[#allocation2 + $0xc0] sm:$0xff] %v1555_v4  ;;  %v1358_v28 = vadd.f32 %v1357_v6, %v3592_v54  ;;  %v1394_v56 = vadd.f32 %v1393_v12, %v3676_v57  ;;  %v1447_v9 = vpop.f32.mrf.mxu0 }
 0x23a   :  { %v1584_v39 = vmax.f32 %v1358_v28, %v3630_v63  ;;  %v1443_v27 = vadd.f32 %v1442_v14, %v1394_v56  ;;  %v1496_v60 = vpop.f32.mrf.mxu1 }
 0x23c   :  { %1664 = vst [vmem:[#allocation2 + $0x1a8] sm:$0xff] %v1584_v39  ;;  %v1492_v34 = vadd.f32 %v1491_v37, %v1443_v27 }
 0x23e   :  { %v1560_v19 = vmax.f32 %v1492_v34, %v3682_v53 }
 0x23f   :  { %v1359_v10 = vpop.f32.mrf.mxu3  ;;  %v1396_v13 = vpop.f32.mrf.mxu2 }
 0x240   :  { %1640 = vst [vmem:[#allocation2 + $0xe8] sm:$0xff] %v1560_v19  ;;  %v1360_v58 = vadd.f32 %v1359_v10, %v3606_v31  ;;  %v1397_v42 = vadd.f32 %v1396_v13, %v3676_v57  ;;  %v1450_v1 = vpop.f32.mrf.mxu0 }
 0x242   :  { %v1589_v54 = vmax.f32 %v1360_v58, %v3630_v63  ;;  %v1446_v2 = vadd.f32 %v1445_v33, %v1397_v42  ;;  %v1499_v3 = vpop.f32.mrf.mxu1 }
 0x244   :  { %1669 = vst [vmem:[#allocation2 + $0x1d0] sm:$0xff] %v1589_v54  ;;  %v1495_v40 = vadd.f32 %v1494_v48, %v1446_v2 }
 0x246   :  { %v1565_v22 = vmax.f32 %v1495_v40, %v3682_v53 }
 0x247   :  { %v1362_v18 = vpop.f32.mrf.mxu3  ;;  %v1398_v11 = vpop.f32.mrf.mxu2 }
 0x248   :  { %1645 = vst [vmem:[#allocation2 + $0x110] sm:$0xff] %v1565_v22  ;;  %v1363_v49 = vadd.f32 %v1362_v18, %v3616_v8  ;;  %v1399_v30 = vadd.f32 %v1398_v11, %v3676_v57  ;;  %v1452_v15 = vpop.f32.mrf.mxu0 }
 0x24a   :  { %v1594_v31 = vmax.f32 %v1363_v49, %v3630_v63  ;;  %v1448_v23 = vadd.f32 %v1447_v9, %v1399_v30  ;;  %v1501_v43 = vpop.f32.mrf.mxu1 }
 0x24c   :  { %1674 = vst [vmem:[#allocation2 + $0x1f8] sm:$0xff] %v1594_v31  ;;  %v1497_v32 = vadd.f32 %v1496_v60, %v1448_v23 }
 0x24e   :  { %v1570_v16 = vmax.f32 %v1497_v32, %v3682_v53 }
 0x24f   :  { %v1364_v50 = vpop.f32.mrf.mxu3  ;;  %v1401_v29 = vpop.f32.mrf.mxu2 }
 0x250   :  { %1650 = vst [vmem:[#allocation2 + $0x138] sm:$0xff] %v1570_v16  ;;  %v1365_v35 = vadd.f32 %v1364_v50, %v3636_v25  ;;  %v1402_v17 = vadd.f32 %v1401_v29, %v3676_v57  ;;  %v1455_v41 = vpop.f32.mrf.mxu0 }
 0x252   :  { %v1599_v8 = vmax.f32 %v1365_v35, %v3630_v63  ;;  %v1451_v21 = vadd.f32 %v1450_v1, %v1402_v17  ;;  %v1504_v37 = vpop.f32.mrf.mxu1 }
 0x254   :  { %1679 = vst [vmem:[#allocation2 + $0x220] sm:$0xff] %v1599_v8  ;;  %v1500_v59 = vadd.f32 %v1499_v3, %v1451_v21 }
 0x256   :  { %v1575_v44 = vmax.f32 %v1500_v59, %v3682_v53 }
 0x257   :  { %v1367_v51 = vpop.f32.mrf.mxu3  ;;  %v1403_v0 = vpop.f32.mrf.mxu2 }
 0x258   :  { %1655 = vst [vmem:[#allocation2 + $0x160] sm:$0xff] %v1575_v44  ;;  %v1368_v61 = vadd.f32 %v1367_v51, %v3646_v62  ;;  %v1404_v14 = vadd.f32 %v1403_v0, %v3676_v57  ;;  %v1457_v45 = vpop.f32.mrf.mxu0 }
 0x25a   :  { %v1604_v25 = vmax.f32 %v1368_v61, %v3630_v63  ;;  %v1453_v5 = vadd.f32 %v1452_v15, %v1404_v14  ;;  %v1506_v48 = vpop.f32.mrf.mxu1 }
 0x25c   :  { %1684 = vst [vmem:[#allocation2 + $0x248] sm:$0xff] %v1604_v25  ;;  %v1502_v36 = vadd.f32 %v1501_v43, %v1453_v5 }
 0x25e   :  { %v1580_v24 = vmax.f32 %v1502_v36, %v3682_v53 }
 0x25f   :  { %v1369_v52 = vpop.f32.mrf.mxu3  ;;  %v1406_v47 = vpop.f32.mrf.mxu2 }
 0x260   :  { %1660 = vst [vmem:[#allocation2 + $0x188] sm:$0xff] %v1580_v24  ;;  %v1370_v55 = vadd.f32 %v1369_v52, %v3658_v26  ;;  %v1407_v38 = vadd.f32 %v1406_v47, %v3676_v57  ;;  %v1460_v12 = vpop.f32.mrf.mxu0 }
 0x262   :  { %v1609_v62 = vmax.f32 %v1370_v55, %v3630_v63  ;;  %v1456_v33 = vadd.f32 %v1455_v41, %v1407_v38  ;;  %v1509_v56 = vpop.f32.mrf.mxu1 }
 0x264   :  { %1689 = vst [vmem:[#allocation2 + $0x270] sm:$0xff] %v1609_v62  ;;  %v1505_v7 = vadd.f32 %v1504_v37, %v1456_v33 }
 0x266   :  { %v1585_v46 = vmax.f32 %v1505_v7, %v3682_v53 }
 0x267   :  { %v1408_v20 = vpop.f32.mrf.mxu2 }
 0x268   :  { %1665 = vst [vmem:[#allocation2 + $0x1b0] sm:$0xff] %v1585_v46  ;;  %v1409_v4 = vadd.f32 %v1408_v20, %v3676_v57  ;;  %v1462_v60 = vpop.f32.mrf.mxu0 }
 0x26a   :  { %v1458_v6 = vadd.f32 %v1457_v45, %v1409_v4  ;;  %v1511_v19 = vpop.f32.mrf.mxu1 }
 0x26c   :  { %v1507_v28 = vadd.f32 %v1506_v48, %v1458_v6 }
 0x26e   :  { %v1590_v26 = vmax.f32 %v1507_v28, %v3682_v53 }
 0x26f   :  { %v1411_v9 = vpop.f32.mrf.mxu2 }
 0x270   :  { %1670 = vst [vmem:[#allocation2 + $0x1d8] sm:$0xff] %v1590_v26  ;;  %v1412_v63 = vadd.f32 %v1411_v9, %v3676_v57  ;;  %v1465_v2 = vpop.f32.mrf.mxu0 }
 0x272   :  { %v1461_v39 = vadd.f32 %v1460_v12, %v1412_v63  ;;  %v1514_v3 = vpop.f32.mrf.mxu1 }
 0x274   :  { %v1510_v27 = vadd.f32 %v1509_v56, %v1461_v39 }
 0x276   :  { %v1595_v34 = vmax.f32 %v1510_v27, %v3682_v53 }
 0x277   :  { %v1413_v10 = vpop.f32.mrf.mxu2 }
 0x278   :  { %1675 = vst [vmem:[#allocation2 + $0x200] sm:$0xff] %v1595_v34  ;;  %v1414_v13 = vadd.f32 %v1413_v10, %v3676_v57  ;;  %v1467_v31 = vpop.f32.mrf.mxu0 }
 0x27a   :  { %v1463_v58 = vadd.f32 %v1462_v60, %v1414_v13  ;;  %v1516_v32 = vpop.f32.mrf.mxu1 }
 0x27c   :  { %v1512_v42 = vadd.f32 %v1511_v19, %v1463_v58 }
 0x27e   :  { %v1600_v54 = vmax.f32 %v1512_v42, %v3682_v53 }
 0x27f   :  { %v1416_v1 = vpop.f32.mrf.mxu2 }
 0x280   :  { %1680 = vst [vmem:[#allocation2 + $0x228] sm:$0xff] %v1600_v54  ;;  %v1417_v40 = vadd.f32 %v1416_v1, %v3676_v57 }
 0x282   :  { %v1466_v22 = vadd.f32 %v1465_v2, %v1417_v40 }
 0x284   :  { %v1515_v18 = vadd.f32 %v1514_v3, %v1466_v22 }
 0x286   :  { %v1605_v11 = vmax.f32 %v1515_v18, %v3682_v53 }
 0x287   :  { %v1418_v49 = vpop.f32.mrf.mxu2 }
 0x288   :  { %1685 = vst [vmem:[#allocation2 + $0x250] sm:$0xff] %v1605_v11  ;;  %v1419_v30 = vadd.f32 %v1418_v49, %v3676_v57 }
 0x28a   :  { %v1468_v23 = vadd.f32 %v1467_v31, %v1419_v30 }
 0x28c   :  { %v1517_v15 = vadd.f32 %v1516_v32, %v1468_v23 }
 0x28e   :  { %v1610_v16 = vmax.f32 %v1517_v15, %v3682_v53 }
 0x290   :  { %1690 = vst [vmem:[#allocation2 + $0x278] sm:$0xff] %v1610_v16 }
 0x291   :  { %1703 = dma.vmem_to_hbm [thread:$0]  %s1696_s28, 10240, %s1698_s5, [#allocation3], %s2367_s6, %s2367_s6, %s2368_s7  }
 0x292   :  { %2364 = dma.done.wait [#allocation3], 10240  }
 0x293   :  { %2365 = vsyncadd [#allocation3], 4294957056 }
 0x294   :  { %1708 = vsyncpa [#allocation3], 1 }

</bundles_post_ra>
